<compile_context>
chip_gen: v6e
topology: v6e:2x2x1
jax: 0.10.0
libtpu: 0.0.40
codegen_flags: <defaults>
</compile_context>

<pallas_src>
import functools
import numpy as np

import jax
import jax.numpy as jnp
from jax import lax
from jax.experimental import pallas as pl
from jax.experimental.pallas import tpu as pltpu

BG_PROT_MODE = 'gridconv'
BG_THRESH = 0.95
FG_PROT_MODE = 'kmeans'
FG_THRESH = 0.55

P_MAX = 128   # prototypes per group (lane aligned, static across calls)
C_PAD = 128   # zero-padded channel dim (padding doesn't change cosine sims)
OUT_W = 128   # packed lane-dense output slab width


# ----------------------------------------------------------------------------
# Pallas kernels
# ----------------------------------------------------------------------------
def _conv1x1_relu_kernel(xT_ref, wT_ref, b_ref, oT_ref):
    """1x1 conv + bias + ReLU in transposed (channels-first) layout.

    xT: [Cin, N] (Cin tiny, N lane-dense), wT: [Cout, Cin], b: [Cout, 1],
    out: [Cout, N].  Cin==3 fills <3% of an MXU pass, so we issue Cin VPU
    multiply-adds instead of a matmul.
    """
    xT = xT_ref[...]
    wT = wT_ref[...]
    y = jnp.broadcast_to(b_ref[...], oT_ref.shape)
    for c in range(xT_ref.shape[0]):          # static, tiny (Cin)
        y = y + wT[:, c:c + 1] * xT[c:c + 1, :]
    oT_ref[...] = jnp.maximum(y, 0.0)


def conv1x1_relu_T(xT, wT, b_col):
    cin, n = xT.shape
    cout = wT.shape[0]
    return pl.pallas_call(
        _conv1x1_relu_kernel,
        out_shape=jax.ShapeDtypeStruct((cout, n), jnp.float32),
        grid=(1,),
        in_specs=[
            pl.BlockSpec((cin, n), lambda i: (0, 0)),
            pl.BlockSpec((cout, cin), lambda i: (0, 0)),
            pl.BlockSpec((cout, 1), lambda i: (0, 0)),
        ],
        out_specs=pl.BlockSpec((cout, n), lambda i: (0, 0)),
        compiler_params=pltpu.CompilerParams(
            dimension_semantics=("arbitrary",)),
    )(xT, wT, b_col)


def _fused_score_kernel(counts_ref, q_ref, p_ref, packed_ref, *maybe_dists,
                        n_groups, p_max):
    """Cosine-similarity prototype scoring for all prototype groups at once.

    counts_ref: SMEM int32 [n_groups] -- valid prototype count per group.
    q_ref:      [HW, C_PAD]  query features.
    p_ref:      [n_groups * p_max, C_PAD] zero-padded prototype buffer.
    packed_ref: [HW, OUT_W] lane-dense packed output:
                  column 2*g   = softmax-weighted score of group g
                  column 2*g+1 = (float) first-argmax prototype index of group g
    optional dists_ref: [HW, n_groups*p_max] raw cosine*20 (0 in padded cols).
    """
    dists_ref = maybe_dists[0] if maybe_dists else None
    eps = 1e-4
    q = q_ref[...]
    p = p_ref[...]
    # safe_norm: x / max(||x||, eps) == x * rsqrt(max(||x||^2, eps^2))   (EUP)
    qn = q * lax.rsqrt(
        jnp.maximum(jnp.sum(q * q, axis=-1, keepdims=True), eps * eps))
    pn = p * lax.rsqrt(
        jnp.maximum(jnp.sum(p * p, axis=-1, keepdims=True), eps * eps))
    # 1x1 conv over channels == matmul on the MXU, scaled by 20
    d = lax.dot_general(qn, pn, (((1,), (1,)), ((), ())),
                        preferred_element_type=jnp.float32) * 20.0

    hw = q_ref.shape[0]
    col = lax.broadcasted_iota(jnp.int32, (hw, p_max), 1)        # hoisted
    out_lane = lax.broadcasted_iota(jnp.int32, packed_ref.shape, 1)
    packed = jnp.zeros(packed_ref.shape, jnp.float32)
    masked_d = []
    for g in range(n_groups):                 # static, tiny
        cnt = counts_ref[g]
        dg = d[:, g * p_max:(g + 1) * p_max]  # [HW, p_max] (static slice)
        valid = col < cnt
        dm = jnp.where(valid, dg, -1e30)
        m = jnp.max(dm, axis=-1, keepdims=True)
        e = jnp.where(valid, jnp.exp(dm - m), 0.0)
        w = e * pl.reciprocal(jnp.sum(e, axis=-1, keepdims=True), approx=True)
        dg_valid = jnp.where(valid, dg, 0.0)
        pred = jnp.sum(w * dg_valid, axis=-1, keepdims=True)        # [HW, 1]
        assign = jnp.min(jnp.where(dm == m, col, p_max),
                         axis=-1, keepdims=True).astype(jnp.float32)  # [HW, 1]
        packed = jnp.where(out_lane == 2 * g, pred, packed)
        packed = jnp.where(out_lane == 2 * g + 1, assign, packed)
        if dists_ref is not None:
            masked_d.append(dg_valid)
    packed_ref[...] = packed
    if dists_ref is not None:
        dists_ref[...] = jnp.concatenate(masked_d, axis=-1)


def fused_proto_scores(qry_flat_pad, protos_all, counts, vis_sim=False):
    """qry_flat_pad: [HW, C_PAD]; protos_all: [n_groups*P_MAX, C_PAD];
    counts: int32 [n_groups] (runtime SMEM scalars)."""
    hw, c_pad = qry_flat_pad.shape
    gp = protos_all.shape[0]
    n_groups = counts.shape[0]
    p_max = gp // n_groups
    kernel = functools.partial(_fused_score_kernel,
                               n_groups=n_groups, p_max=p_max)
    out_shape = [jax.ShapeDtypeStruct((hw, OUT_W), jnp.float32)]
    out_specs = [pl.BlockSpec((hw, OUT_W), lambda i, c: (0, 0))]
    if vis_sim:
        out_shape.append(jax.ShapeDtypeStruct((hw, gp), jnp.float32))
        out_specs.append(pl.BlockSpec((hw, gp), lambda i, c: (0, 0)))
    results = pl.pallas_call(
        kernel,
        out_shape=tuple(out_shape),
        grid_spec=pltpu.PrefetchScalarGridSpec(
            num_scalar_prefetch=1,
            grid=(1,),
            in_specs=[
                pl.BlockSpec((hw, c_pad), lambda i, c: (0, 0)),
                pl.BlockSpec((gp, c_pad), lambda i, c: (0, 0)),
            ],
            out_specs=tuple(out_specs),
        ),
        compiler_params=pltpu.CompilerParams(
            dimension_semantics=("arbitrary",)),
    )(counts, qry_flat_pad, protos_all)
    packed = results[0]
    dists = results[1] if vis_sim else None
    return packed, dists


# ----------------------------------------------------------------------------
# Plain-JAX glue helpers
# ----------------------------------------------------------------------------
def avg_pool2d(x, k):
    """Average pool with square kernel/stride k over the last two dims."""
    if k == 1:
        return x
    shp = x.shape
    h, w = shp[-2], shp[-1]
    x = x.reshape(shp[:-2] + (h // k, k, w // k, k))
    return jnp.mean(x, axis=(-3, -1))


def _interp_matrix(out_size, in_size):
    """align_corners=True linear interpolation matrix [out, in] (trace-time)."""
    m = np.zeros((out_size, in_size), np.float32)
    if out_size == 1:
        m[0, 0] = 1.0
        return m
    pos = np.arange(out_size, dtype=np.float64) * (in_size - 1) / (out_size - 1)
    lo = np.floor(pos).astype(np.int64)
    lo = np.minimum(lo, in_size - 1)
    hi = np.minimum(lo + 1, in_size - 1)
    frac = (pos - lo).astype(np.float32)
    m[np.arange(out_size), lo] += (1.0 - frac)
    m[np.arange(out_size), hi] += frac
    return m


def bilinear_ac(x, out_hw):
    """Bilinear resize (align_corners=True) on the last two dims of x."""
    h, w = x.shape[-2], x.shape[-1]
    mh = jnp.asarray(_interp_matrix(int(out_hw[0]), h))
    mw = jnp.asarray(_interp_matrix(int(out_hw[1]), w))
    return jnp.einsum('oh,...hw,pw->...op', mh, x, mw)


# ----------------------------------------------------------------------------
# Prototype construction (plain JAX, runs under jit; feeds the fused kernel)
# ----------------------------------------------------------------------------
def _flatten_grid_feats(sup_x, k):
    """[shot, C, h, w] -> pooled grid features [shot*gh*gw, C], shot-major
    (matches the torch view/permute/reshape order)."""
    shot, c = sup_x.shape[0], sup_x.shape[1]
    pooled = avg_pool2d(sup_x, k)
    return jnp.transpose(pooled.reshape(shot, c, -1), (0, 2, 1)).reshape(-1, c)


def build_gridconv_protos(sup_x, sup_y, k, thresh):
    """On-device 'gridconv' prototype selection into a static [P_MAX, C_PAD]
    buffer + int32 valid count (compaction preserves torch boolean-mask order).
    No host-side numpy selection -> no recompiles, no extra syncs."""
    feats = _flatten_grid_feats(sup_x, k)            # [shot*G, C]
    y_g = avg_pool2d(sup_y, k).reshape(-1)           # [shot*G]
    assert feats.shape[0] <= P_MAX, "prototype grid larger than P_MAX"
    assert feats.shape[1] <= C_PAD
    valid = y_g > thresh
    count = jnp.sum(valid.astype(jnp.int32))
    pos = jnp.cumsum(valid.astype(jnp.int32)) - 1
    target = jnp.where(valid, pos, P_MAX)            # invalid rows -> OOB (dropped)
    feats = jnp.pad(feats, ((0, 0), (0, C_PAD - feats.shape[1])))
    protos = jnp.zeros((P_MAX, C_PAD), jnp.float32).at[target].set(
        feats, mode='drop')
    return protos, count


def build_mask_proto(sup_x, sup_y):
    """Masked global-average prototype ('mask' mode), padded to [P_MAX, C_PAD].
    With a single valid prototype, softmax-weighted readout == raw cosine*20,
    so the fused kernel reproduces the reference 'mask'-mode score exactly."""
    proto = jnp.sum(sup_x * sup_y, axis=(-1, -2)) / \
        (jnp.sum(sup_y, axis=(-1, -2)) + 1e-5)       # [shot, C]
    proto = jnp.mean(proto, axis=0, keepdims=True)   # [1, C]
    assert proto.shape[1] <= C_PAD
    proto = jnp.pad(proto, ((0, P_MAX - 1), (0, C_PAD - proto.shape[1])))
    return proto, jnp.int32(1)


# ----------------------------------------------------------------------------
# Synthetic encoder (stand-in backbone) and the single jitted forward core
# ----------------------------------------------------------------------------
def encode_images(imgs, enc_wT, enc_b, feature_hw):
    """[B, Cin, H, W] -> features [B, C, fh, fw] (avg-pool + Pallas 1x1 conv)."""
    b, cin = imgs.shape[0], imgs.shape[1]
    h = imgs.shape[-2]
    fh, fw = feature_hw
    pooled = avg_pool2d(imgs, h // fh)                          # [B, Cin, fh, fw]
    xT = jnp.transpose(pooled, (1, 0, 2, 3)).reshape(cin, -1)   # [Cin, B*fh*fw]
    oT = conv1x1_relu_T(xT, enc_wT, enc_b)                      # [Cout, B*fh*fw]
    cout = oT.shape[0]
    return jnp.transpose(oT.reshape(cout, b, fh, fw), (1, 0, 2, 3))


def _forward_core(enc_wT, enc_b, imgs_concat, fore_mask_s, back_mask_s, *,
                  feature_hw, k, img_size, vis_sim):
    """Entire numeric forward as one XLA program:
    encoder -> mask resize -> prototype build -> fused Pallas scoring ->
    bilinear upsample.  Returns the FG-mode decision statistic as well so the
    host can make the (Python-level) 'kmeans' vs 'mask' branch decision."""
    n_supp = imgs_concat.shape[0] - 1
    img_fts = encode_images(imgs_concat, enc_wT, enc_b, feature_hw)
    fts_size = img_fts.shape[-2:]
    supp_fts = img_fts[:n_supp]                   # [shot, C, fh, fw]
    qry_fts = img_fts[n_supp:]                    # [1, C, fh, fw]
    res_fg_msk = bilinear_ac(fore_mask_s, fts_size)   # [way, shot, B, fh, fw]
    res_bg_msk = bilinear_ac(back_mask_s, fts_size)
    # FG-mode decision statistic (reference: F.avg_pool2d(_msk, 4).max())
    fg_pool_max = jnp.max(avg_pool2d(res_fg_msk[0], 4))

    c = qry_fts.shape[1]
    fh, fw = fts_size
    hw = fh * fw
    qry_flat = jnp.transpose(qry_fts[0], (1, 2, 0)).reshape(hw, c)
    qry_flat = jnp.pad(qry_flat, ((0, 0), (0, C_PAD - c)))

    bg_msk = res_bg_msk[0]                        # [shot, 1, fh, fw]
    fg_msk = res_fg_msk[0]
    # group 0: background 'gridconv' prototypes; group 1: foreground 'mask' proto
    bg_protos, bg_count = build_gridconv_protos(supp_fts, bg_msk, k, BG_THRESH)
    fg_protos, fg_count = build_mask_proto(supp_fts, fg_msk)
    protos_all = jnp.concatenate([bg_protos, fg_protos], axis=0)
    counts = jnp.stack([bg_count, fg_count]).astype(jnp.int32)

    packed, dists = fused_proto_scores(qry_flat, protos_all, counts,
                                       vis_sim=vis_sim)
    bg_pred = packed[:, 0].reshape(1, 1, fh, fw)
    bg_assign = packed[:, 1].reshape(1, fh, fw)
    fg_pred = packed[:, 2].reshape(1, 1, fh, fw)

    pred = jnp.concatenate([bg_pred, fg_pred], axis=1)   # [1, 1+ways, fh, fw]
    output = bilinear_ac(pred, img_size)                 # [1, 1+ways, H, W]
    assign_maps = bg_assign[:, None]                     # [1, 1, fh, fw]
    if vis_sim:
        # NOTE: padded prototype columns contain 0 (not -1e30 sentinels).
        bg_sims = jnp.transpose(dists[:, :P_MAX], (1, 0)).reshape(
            P_MAX, fh, fw)[None, None]                   # [1, 1, P_MAX, fh, fw]
        fg_sims = dists[:, P_MAX].reshape(fh, fw)[None, None]  # [1, 1, fh, fw]
        return output, assign_maps, bg_sims, fg_sims, fg_pool_max
    return output, assign_maps, fg_pool_max


_forward_jit = jax.jit(_forward_core,
                       static_argnames=("feature_hw", "k", "img_size",
                                        "vis_sim"))


# ----------------------------------------------------------------------------
# FewShotSeg (JAX / Pallas)
# ----------------------------------------------------------------------------
class FewShotSegJAX:
    def __init__(self, in_channels=3, cfg=None, key=None):
        self.config = cfg or {'align': False}
        assert self.config['cls_name'] == 'grid_proto'
        proto_hw = self.config['proto_grid_size']
        feature_hw = self.config['feature_hw']
        self.kernel_size = feature_hw[0] // proto_hw
        # TODO(synk): real ResNet101 / DeepLab / SAM backbone is not
        # reproducible here; replaced by a deterministic avg-pool + 1x1-conv
        # + ReLU stand-in whose conv runs in a Pallas kernel.
        c_feat = self.config['feat_channels']
        k1, k2 = jax.random.split(key)
        self.enc_wT = jax.random.normal(k1, (c_feat, in_channels),
                                        jnp.float32) * 0.5
        self.enc_b = jax.random.normal(k2, (c_feat, 1), jnp.float32) * 0.1

    def forward(self, supp_imgs, fore_mask, back_mask, qry_imgs,
                isval, val_wsize, show_viz=False):
        n_ways = len(supp_imgs)
        n_queries = len(qry_imgs)
        assert n_ways == 1 and n_queries == 1
        sup_bsize = supp_imgs[0][0].shape[0]
        img_size = tuple(int(s) for s in supp_imgs[0][0].shape[-2:])
        qry_bsize = qry_imgs[0].shape[0]
        assert sup_bsize == qry_bsize == 1
        assert BG_PROT_MODE == 'gridconv'

        imgs_concat = jnp.concatenate(
            [jnp.concatenate(way, axis=0) for way in supp_imgs]
            + [jnp.concatenate(qry_imgs, axis=0)], axis=0)
        fore_mask_s = jnp.stack([jnp.stack(way, axis=0) for way in fore_mask], 0)
        back_mask_s = jnp.stack([jnp.stack(way, axis=0) for way in back_mask], 0)

        k = int(val_wsize) if isval else self.kernel_size
        results = _forward_jit(
            self.enc_wT, self.enc_b, imgs_concat, fore_mask_s, back_mask_s,
            feature_hw=tuple(int(s) for s in self.config['feature_hw']),
            k=k, img_size=img_size, vis_sim=bool(show_viz))

        if show_viz:
            output, assign_maps, bg_sim_maps, fg_sim_maps, fg_pool_max = results
        else:
            output, assign_maps, fg_pool_max = results
            bg_sim_maps = fg_sim_maps = None

        # Single 4-byte host read (after the whole program is enqueued): the
        # 'kmeans' (GmlvqModel) branch cannot be expressed on-device, so the
        # FG-mode decision must be a Python branch.
        use_kmeans = (FG_PROT_MODE != 'mask') and bool(fg_pool_max >= FG_THRESH)
        if use_kmeans:
            # TODO(synk): 'kmeans' branch requires lvq_fg / sklearn GmlvqModel
            # fitting, which has no Pallas equivalent.
            raise NotImplementedError("kmeans (GmlvqModel) prototype mode")

        # TODO(synk): alignLoss (training-only, config['align']=True) is not
        # implemented; eval path keeps align_loss = 0.
        align_loss = 0.0
        return output, align_loss / sup_bsize, [bg_sim_maps, fg_sim_maps], \
            assign_maps


# ----------------------------------------------------------------------------
# main
# ----------------------------------------------------------------------------
if __name__ == "__main__":
    cfg = {
        'align': False,
        'which_model': 'synthetic_conv1x1',
        'cls_name': 'grid_proto',
        'proto_grid_size': 8,
        'feature_hw': [16, 16],
        'feat_channels': 32,
    }

    key = jax.random.PRNGKey(0)
    k_sup, k_qry, k_enc = jax.random.split(key, 3)

    H = W = 64
    supp_img = jax.random.normal(k_sup, (1, 3, H, W), jnp.float32)
    qry_img = jax.random.normal(k_qry, (1, 3, H, W), jnp.float32)

    fm_np = np.zeros((1, H, W), np.float32)
    fm_np[:, 8:16, 8:16] = 1.0           # small foreground blob
    fore = jnp.asarray(fm_np)
    back = 1.0 - fore

    model = FewShotSegJAX(in_channels=3, cfg=cfg, key=k_enc)
    output, align_loss, sim_maps, assign_maps = model.forward(
        supp_imgs=[[supp_img]],
        fore_mask=[[fore]],
        back_mask=[[back]],
        qry_imgs=[qry_img],
        isval=False,
        val_wsize=None,
        show_viz=False,
    )

    output = jax.block_until_ready(output)
    assign_maps = jax.block_until_ready(assign_maps)
    assert output.shape == (1, 2, H, W), output.shape
    assert assign_maps.shape == (1, 1, 16, 16), assign_maps.shape
    assert np.all(np.isfinite(np.asarray(output)))
    print("KERNEL_OK")
</pallas_src>

<mosaic_0001>
module attributes {stable_mosaic.version = 11 : i64} {
  func.func @_conv1x1_relu_kernel(%arg0: i32, %arg1: memref<3x512xf32, #tpu.memory_space<vmem>>, %arg2: memref<32x3xf32, #tpu.memory_space<vmem>>, %arg3: memref<32x1xf32, #tpu.memory_space<vmem>>, %arg4: memref<32x512xf32, #tpu.memory_space<vmem>>) attributes {dimension_semantics = [#tpu.dimension_semantics<arbitrary>], iteration_bounds = array<i64: 1>, scalar_prefetch = 0 : i64, scratch_operands = 0 : i64, tpu.core_type = #tpu.core_type<tc>, window_params = [{pipeline_mode = #tpu.pipeline_mode<synchronous>, transform_indices = @transform_0, window_bounds = array<i64: 3, 512>}, {pipeline_mode = #tpu.pipeline_mode<synchronous>, transform_indices = @transform_1, window_bounds = array<i64: 32, 3>}, {pipeline_mode = #tpu.pipeline_mode<synchronous>, transform_indices = @transform_2, window_bounds = array<i64: 32, 1>}, {pipeline_mode = #tpu.pipeline_mode<synchronous>, transform_indices = @transform_3, window_bounds = array<i64: 32, 512>}]} {
    %c0 = arith.constant 0 : index
    %c0_0 = arith.constant 0 : index
    %0 = vector.load %arg1[%c0, %c0_0] : memref<3x512xf32, #tpu.memory_space<vmem>>, vector<3x512xf32>
    %c0_1 = arith.constant 0 : index
    %c0_2 = arith.constant 0 : index
    %1 = vector.load %arg2[%c0_1, %c0_2] : memref<32x3xf32, #tpu.memory_space<vmem>>, vector<32x3xf32>
    %c0_3 = arith.constant 0 : index
    %c0_4 = arith.constant 0 : index
    %2 = vector.load %arg3[%c0_3, %c0_4] : memref<32x1xf32, #tpu.memory_space<vmem>>, vector<32x1xf32>
    %3 = vector.shape_cast %2 : vector<32x1xf32> to vector<32x1xf32>
    %4 = vector.broadcast %3 : vector<32x1xf32> to vector<32x512xf32>
    %5 = vector.extract_strided_slice %1 {offsets = [0, 0], sizes = [32, 1], strides = [1, 1]} : vector<32x3xf32> to vector<32x1xf32>
    %6 = vector.extract_strided_slice %0 {offsets = [0, 0], sizes = [1, 512], strides = [1, 1]} : vector<3x512xf32> to vector<1x512xf32>
    %7 = vector.broadcast %5 : vector<32x1xf32> to vector<32x512xf32>
    %8 = vector.broadcast %6 : vector<1x512xf32> to vector<32x512xf32>
    %9 = arith.mulf %7, %8 : vector<32x512xf32>
    %10 = arith.addf %4, %9 : vector<32x512xf32>
    %11 = vector.extract_strided_slice %1 {offsets = [0, 1], sizes = [32, 1], strides = [1, 1]} : vector<32x3xf32> to vector<32x1xf32>
    %12 = vector.extract_strided_slice %0 {offsets = [1, 0], sizes = [1, 512], strides = [1, 1]} : vector<3x512xf32> to vector<1x512xf32>
    %13 = vector.broadcast %11 : vector<32x1xf32> to vector<32x512xf32>
    %14 = vector.broadcast %12 : vector<1x512xf32> to vector<32x512xf32>
    %15 = arith.mulf %13, %14 : vector<32x512xf32>
    %16 = arith.addf %10, %15 : vector<32x512xf32>
    %17 = vector.extract_strided_slice %1 {offsets = [0, 2], sizes = [32, 1], strides = [1, 1]} : vector<32x3xf32> to vector<32x1xf32>
    %18 = vector.extract_strided_slice %0 {offsets = [2, 0], sizes = [1, 512], strides = [1, 1]} : vector<3x512xf32> to vector<1x512xf32>
    %19 = vector.broadcast %17 : vector<32x1xf32> to vector<32x512xf32>
    %20 = vector.broadcast %18 : vector<1x512xf32> to vector<32x512xf32>
    %21 = arith.mulf %19, %20 : vector<32x512xf32>
    %22 = arith.addf %16, %21 : vector<32x512xf32>
    %cst = arith.constant 0.000000e+00 : f32
    %23 = vector.broadcast %cst : f32 to vector<32x512xf32>
    %24 = arith.maximumf %22, %23 : vector<32x512xf32>
    %c0_5 = arith.constant 0 : index
    %c0_6 = arith.constant 0 : index
    %25 = vector.load %arg4[%c0_5, %c0_6] : memref<32x512xf32, #tpu.memory_space<vmem>>, vector<32x512xf32>
    tpu.vector_store %arg4[%c0_5, %c0_6], %24 {strides = array<i32>} : memref<32x512xf32, #tpu.memory_space<vmem>>, vector<32x512xf32>,
    return
  }
  func.func @transform_0(%arg0: i32) -> (i32, i32) {
    %c0_i32 = arith.constant 0 : i32
    %c0_i32_0 = arith.constant 0 : i32
    %c0_i32_1 = arith.constant 0 : i32
    return %c0_i32, %c0_i32_0 : i32, i32
  }
  func.func @transform_1(%arg0: i32) -> (i32, i32) {
    %c0_i32 = arith.constant 0 : i32
    %c0_i32_0 = arith.constant 0 : i32
    %c0_i32_1 = arith.constant 0 : i32
    return %c0_i32, %c0_i32_0 : i32, i32
  }
  func.func @transform_2(%arg0: i32) -> (i32, i32) {
    %c0_i32 = arith.constant 0 : i32
    %c0_i32_0 = arith.constant 0 : i32
    %c0_i32_1 = arith.constant 0 : i32
    return %c0_i32, %c0_i32_0 : i32, i32
  }
  func.func @transform_3(%arg0: i32) -> (i32, i32) {
    %c0_i32 = arith.constant 0 : i32
    %c0_i32_0 = arith.constant 0 : i32
    %c0_i32_1 = arith.constant 0 : i32
    return %c0_i32, %c0_i32_0 : i32, i32
  }
}

module attributes {stable_mosaic.version = 11 : i64} {
  func.func @_fused_score_kernel(%arg0: i32, %arg1: memref<2xi32, #tpu.memory_space<smem>>, %arg2: memref<256x128xf32, #tpu.memory_space<vmem>>, %arg3: memref<256x128xf32, #tpu.memory_space<vmem>>, %arg4: memref<256x128xf32, #tpu.memory_space<vmem>>) attributes {dimension_semantics = [#tpu.dimension_semantics<arbitrary>], iteration_bounds = array<i64: 1>, scalar_prefetch = 1 : i64, scratch_operands = 0 : i64, tpu.core_type = #tpu.core_type<tc>, window_params = [{pipeline_mode = #tpu.pipeline_mode<synchronous>, transform_indices = @transform_0, window_bounds = array<i64: 256, 128>}, {pipeline_mode = #tpu.pipeline_mode<synchronous>, transform_indices = @transform_1, window_bounds = array<i64: 256, 128>}, {pipeline_mode = #tpu.pipeline_mode<synchronous>, transform_indices = @transform_2, window_bounds = array<i64: 256, 128>}]} {
    %c0 = arith.constant 0 : index
    %c0_0 = arith.constant 0 : index
    %0 = vector.load %arg2[%c0, %c0_0] : memref<256x128xf32, #tpu.memory_space<vmem>>, vector<256x128xf32>
    %c0_1 = arith.constant 0 : index
    %c0_2 = arith.constant 0 : index
    %1 = vector.load %arg3[%c0_1, %c0_2] : memref<256x128xf32, #tpu.memory_space<vmem>>, vector<256x128xf32>
    %2 = arith.mulf %0, %0 : vector<256x128xf32>
    %cst = arith.constant dense<0.000000e+00> : vector<256xf32>
    %3 = vector.multi_reduction <add>, %2, %cst [1] : vector<256x128xf32> to vector<256xf32>
    %4 = vector.shape_cast %3 : vector<256xf32> to vector<256x1xf32>
    %cst_3 = arith.constant 9.99999993E-9 : f32
    %5 = vector.broadcast %cst_3 : f32 to vector<256x1xf32>
    %6 = arith.maximumf %4, %5 : vector<256x1xf32>
    %7 = math.rsqrt %6 : vector<256x1xf32>
    %8 = vector.broadcast %7 : vector<256x1xf32> to vector<256x128xf32>
    %9 = arith.mulf %0, %8 : vector<256x128xf32>
    %10 = arith.mulf %1, %1 : vector<256x128xf32>
    %cst_4 = arith.constant dense<0.000000e+00> : vector<256xf32>
    %11 = vector.multi_reduction <add>, %10, %cst_4 [1] : vector<256x128xf32> to vector<256xf32>
    %12 = vector.shape_cast %11 : vector<256xf32> to vector<256x1xf32>
    %cst_5 = arith.constant 9.99999993E-9 : f32
    %13 = vector.broadcast %cst_5 : f32 to vector<256x1xf32>
    %14 = arith.maximumf %12, %13 : vector<256x1xf32>
    %15 = math.rsqrt %14 : vector<256x1xf32>
    %16 = vector.broadcast %15 : vector<256x1xf32> to vector<256x128xf32>
    %17 = arith.mulf %1, %16 : vector<256x128xf32>
    %cst_6 = arith.constant dense<0.000000e+00> : vector<256x256xf32>
    %18 = tpu.matmul %9, %17, %cst_6 {dimension_numbers = #tpu.dot_dimension_numbers<[1], [1], [0], [0], [0, 0, 1, 0], [], []>} : vector<256x128xf32>, vector<256x128xf32>, vector<256x256xf32> -> vector<256x256xf32>
    %cst_7 = arith.constant 2.000000e+01 : f32
    %19 = vector.broadcast %cst_7 : f32 to vector<256x256xf32>
    %20 = arith.mulf %18, %19 : vector<256x256xf32>
    %21 = tpu.iota {dimensions = array<i32: 1>} : vector<256x128xi32>
    %22 = tpu.iota {dimensions = array<i32: 1>} : vector<256x128xi32>
    %cst_8 = arith.constant 0.000000e+00 : f32
    %23 = vector.broadcast %cst_8 : f32 to vector<256x128xf32>
    %c0_9 = arith.constant 0 : index
    %24 = memref.load %arg1[%c0_9] : memref<2xi32, #tpu.memory_space<smem>>
    %25 = vector.extract_strided_slice %20 {offsets = [0, 0], sizes = [256, 128], strides = [1, 1]} : vector<256x256xf32> to vector<256x128xf32>
    %26 = vector.broadcast %24 : i32 to vector<256x128xi32>
    %27 = arith.cmpi slt, %21, %26 : vector<256x128xi32>
    %cst_10 = arith.constant -1.000000e+30 : f32
    %28 = vector.broadcast %cst_10 : f32 to vector<256x128xf32>
    %29 = arith.select %27, %25, %28 : vector<256x128xi1>, vector<256x128xf32>
    %cst_11 = arith.constant dense<0xFF800000> : vector<256xf32>
    %30 = vector.multi_reduction <maximumf>, %29, %cst_11 [1] : vector<256x128xf32> to vector<256xf32>
    %31 = vector.shape_cast %30 : vector<256xf32> to vector<256x1xf32>
    %32 = vector.broadcast %31 : vector<256x1xf32> to vector<256x128xf32>
    %33 = arith.subf %29, %32 : vector<256x128xf32>
    %34 = math.exp %33 : vector<256x128xf32>
    %cst_12 = arith.constant 0.000000e+00 : f32
    %35 = vector.broadcast %cst_12 : f32 to vector<256x128xf32>
    %36 = arith.select %27, %34, %35 : vector<256x128xi1>, vector<256x128xf32>
    %cst_13 = arith.constant dense<0.000000e+00> : vector<256xf32>
    %37 = vector.multi_reduction <add>, %36, %cst_13 [1] : vector<256x128xf32> to vector<256xf32>
    %38 = vector.shape_cast %37 : vector<256xf32> to vector<256x1xf32>
    %39 = tpu.reciprocal %38 {approx = true} : vector<256x1xf32> -> vector<256x1xf32>
    %40 = vector.broadcast %39 : vector<256x1xf32> to vector<256x128xf32>
    %41 = arith.mulf %36, %40 : vector<256x128xf32>
    %cst_14 = arith.constant 0.000000e+00 : f32
    %42 = vector.broadcast %cst_14 : f32 to vector<256x128xf32>
    %43 = arith.select %27, %25, %42 : vector<256x128xi1>, vector<256x128xf32>
    %44 = arith.mulf %41, %43 : vector<256x128xf32>
    %cst_15 = arith.constant dense<0.000000e+00> : vector<256xf32>
    %45 = vector.multi_reduction <add>, %44, %cst_15 [1] : vector<256x128xf32> to vector<256xf32>
    %46 = vector.shape_cast %45 : vector<256xf32> to vector<256x1xf32>
    %47 = vector.broadcast %31 : vector<256x1xf32> to vector<256x128xf32>
    %48 = arith.cmpf oeq, %29, %47 : vector<256x128xf32>
    %c128_i32 = arith.constant 128 : i32
    %49 = vector.broadcast %c128_i32 : i32 to vector<256x128xi32>
    %50 = arith.select %48, %21, %49 : vector<256x128xi1>, vector<256x128xi32>
    %cst_16 = arith.constant dense<2147483647> : vector<256xi32>
    %51 = vector.multi_reduction <minsi>, %50, %cst_16 [1] : vector<256x128xi32> to vector<256xi32>
    %52 = vector.shape_cast %51 : vector<256xi32> to vector<256x1xi32>
    %53 = arith.sitofp %52 : vector<256x1xi32> to vector<256x1xf32>
    %c0_i32 = arith.constant 0 : i32
    %54 = vector.broadcast %c0_i32 : i32 to vector<256x128xi32>
    %55 = arith.cmpi eq, %22, %54 : vector<256x128xi32>
    %56 = vector.shape_cast %46 : vector<256x1xf32> to vector<256x1xf32>
    %57 = vector.broadcast %56 : vector<256x1xf32> to vector<256x128xf32>
    %58 = arith.select %55, %57, %23 : vector<256x128xi1>, vector<256x128xf32>
    %c1_i32 = arith.constant 1 : i32
    %59 = vector.broadcast %c1_i32 : i32 to vector<256x128xi32>
    %60 = arith.cmpi eq, %22, %59 : vector<256x128xi32>
    %61 = vector.shape_cast %53 : vector<256x1xf32> to vector<256x1xf32>
    %62 = vector.broadcast %61 : vector<256x1xf32> to vector<256x128xf32>
    %63 = arith.select %60, %62, %58 : vector<256x128xi1>, vector<256x128xf32>
    %c1 = arith.constant 1 : index
    %64 = memref.load %arg1[%c1] : memref<2xi32, #tpu.memory_space<smem>>
    %65 = vector.extract_strided_slice %20 {offsets = [0, 128], sizes = [256, 128], strides = [1, 1]} : vector<256x256xf32> to vector<256x128xf32>
    %66 = vector.broadcast %64 : i32 to vector<256x128xi32>
    %67 = arith.cmpi slt, %21, %66 : vector<256x128xi32>
    %cst_17 = arith.constant -1.000000e+30 : f32
    %68 = vector.broadcast %cst_17 : f32 to vector<256x128xf32>
    %69 = arith.select %67, %65, %68 : vector<256x128xi1>, vector<256x128xf32>
    %cst_18 = arith.constant dense<0xFF800000> : vector<256xf32>
    %70 = vector.multi_reduction <maximumf>, %69, %cst_18 [1] : vector<256x128xf32> to vector<256xf32>
    %71 = vector.shape_cast %70 : vector<256xf32> to vector<256x1xf32>
    %72 = vector.broadcast %71 : vector<256x1xf32> to vector<256x128xf32>
    %73 = arith.subf %69, %72 : vector<256x128xf32>
    %74 = math.exp %73 : vector<256x128xf32>
    %cst_19 = arith.constant 0.000000e+00 : f32
    %75 = vector.broadcast %cst_19 : f32 to vector<256x128xf32>
    %76 = arith.select %67, %74, %75 : vector<256x128xi1>, vector<256x128xf32>
    %cst_20 = arith.constant dense<0.000000e+00> : vector<256xf32>
    %77 = vector.multi_reduction <add>, %76, %cst_20 [1] : vector<256x128xf32> to vector<256xf32>
    %78 = vector.shape_cast %77 : vector<256xf32> to vector<256x1xf32>
    %79 = tpu.reciprocal %78 {approx = true} : vector<256x1xf32> -> vector<256x1xf32>
    %80 = vector.broadcast %79 : vector<256x1xf32> to vector<256x128xf32>
    %81 = arith.mulf %76, %80 : vector<256x128xf32>
    %cst_21 = arith.constant 0.000000e+00 : f32
    %82 = vector.broadcast %cst_21 : f32 to vector<256x128xf32>
    %83 = arith.select %67, %65, %82 : vector<256x128xi1>, vector<256x128xf32>
    %84 = arith.mulf %81, %83 : vector<256x128xf32>
    %cst_22 = arith.constant dense<0.000000e+00> : vector<256xf32>
    %85 = vector.multi_reduction <add>, %84, %cst_22 [1] : vector<256x128xf32> to vector<256xf32>
    %86 = vector.shape_cast %85 : vector<256xf32> to vector<256x1xf32>
    %87 = vector.broadcast %71 : vector<256x1xf32> to vector<256x128xf32>
    %88 = arith.cmpf oeq, %69, %87 : vector<256x128xf32>
    %c128_i32_23 = arith.constant 128 : i32
    %89 = vector.broadcast %c128_i32_23 : i32 to vector<256x128xi32>
    %90 = arith.select %88, %21, %89 : vector<256x128xi1>, vector<256x128xi32>
    %cst_24 = arith.constant dense<2147483647> : vector<256xi32>
    %91 = vector.multi_reduction <minsi>, %90, %cst_24 [1] : vector<256x128xi32> to vector<256xi32>
    %92 = vector.shape_cast %91 : vector<256xi32> to vector<256x1xi32>
    %93 = arith.sitofp %92 : vector<256x1xi32> to vector<256x1xf32>
    %c2_i32 = arith.constant 2 : i32
    %94 = vector.broadcast %c2_i32 : i32 to vector<256x128xi32>
    %95 = arith.cmpi eq, %22, %94 : vector<256x128xi32>
    %96 = vector.shape_cast %86 : vector<256x1xf32> to vector<256x1xf32>
    %97 = vector.broadcast %96 : vector<256x1xf32> to vector<256x128xf32>
    %98 = arith.select %95, %97, %63 : vector<256x128xi1>, vector<256x128xf32>
    %c3_i32 = arith.constant 3 : i32
    %99 = vector.broadcast %c3_i32 : i32 to vector<256x128xi32>
    %100 = arith.cmpi eq, %22, %99 : vector<256x128xi32>
    %101 = vector.shape_cast %93 : vector<256x1xf32> to vector<256x1xf32>
    %102 = vector.broadcast %101 : vector<256x1xf32> to vector<256x128xf32>
    %103 = arith.select %100, %102, %98 : vector<256x128xi1>, vector<256x128xf32>
    %c0_25 = arith.constant 0 : index
    %c0_26 = arith.constant 0 : index
    %104 = vector.load %arg4[%c0_25, %c0_26] : memref<256x128xf32, #tpu.memory_space<vmem>>, vector<256x128xf32>
    tpu.vector_store %arg4[%c0_25, %c0_26], %103 {strides = array<i32>} : memref<256x128xf32, #tpu.memory_space<vmem>>, vector<256x128xf32>,
    return
  }
  func.func @transform_0(%arg0: i32, %arg1: memref<2xi32, #tpu.memory_space<smem>>) -> (i32, i32) {
    %c0_i32 = arith.constant 0 : i32
    %c0_i32_0 = arith.constant 0 : i32
    %c0_i32_1 = arith.constant 0 : i32
    return %c0_i32, %c0_i32_0 : i32, i32
  }
  func.func @transform_1(%arg0: i32, %arg1: memref<2xi32, #tpu.memory_space<smem>>) -> (i32, i32) {
    %c0_i32 = arith.constant 0 : i32
    %c0_i32_0 = arith.constant 0 : i32
    %c0_i32_1 = arith.constant 0 : i32
    return %c0_i32, %c0_i32_0 : i32, i32
  }
  func.func @transform_2(%arg0: i32, %arg1: memref<2xi32, #tpu.memory_space<smem>>) -> (i32, i32) {
    %c0_i32 = arith.constant 0 : i32
    %c0_i32_0 = arith.constant 0 : i32
    %c0_i32_1 = arith.constant 0 : i32
    return %c0_i32, %c0_i32_0 : i32, i32
  }
}

</mosaic_0001>

<bundles_post_ra>
// kernel: _forward_core.2
= control target key start
LH: loop header
LB: loop body
LE: loop exit
PB: predicated region body
PF: predicated region fallthrough
CT: control target
= control target key end

     0   :  { %v347_v0 = vmov 0   ;;  %v348_v9 = vmov 1   ;;  %v349_v10 = vmov 2   ;;  %v66_v11 = vlaneseq  ;;  %s508_s1 = inlined_call_operand.vmem [shape: f32[32,3], index: 1, kind: input, shape index: {}]   ;;  %s509_s2 = inlined_call_operand.vmem [shape: f32[32,1], index: 2, kind: input, shape index: {}]   ;;  %s510_s0 = inlined_call_operand.vmem [shape: f32[3,512], index: 0, kind: input, shape index: {}]   ;;  %s511_s3 = inlined_call_operand.vmem [shape: f32[32,512], index: 3, kind: output, shape index: {}]  }
   0x1   :  { %342 = vset.pattern.permute.xlu1 %v347_v0  ;;  %341 = vset.pattern.permute.xlu0 %v347_v0  ;;  %v18_v1 = vld [vmem:[%s508_s1 + $0x10] sm:$0xff]  ;;  %v16_v2 = vld [vmem:[%s508_s1] sm:$0xff]  ;;  %v19_v3 = vld [vmem:[%s508_s1 + $0x18] sm:$0xff] }
   0x2   :  { %56 = vperm.xlu1 %342, %v18_v1   ;;  %46 = vperm.xlu0 %341, %v16_v2   ;;  %v17_v4 = vld [vmem:[%s508_s1 + $0x8] sm:$0xff]  ;;  %v20_v6 = vld [vmem:[%s509_s2] sm:$0xff]  ;;  %v23_v7 = vld [vmem:[%s509_s2 + $0x18] sm:$0xff]  ;;  %v67_v12 = vshrl.u32 %v66_v11, 7 }
   0x3   :  { %v21_v5 = vld [vmem:[%s509_s2 + $0x8] sm:$0xff]  ;;  %v22_v8 = vld [vmem:[%s509_s2 + $0x10] sm:$0xff]  ;;  %v14_v17 = vld [vmem:[%s510_s0] sm:$0x77] }
   0x4   :  { %v68_v15 = vsub.s32 0, %v67_v12  ;;  %v72_v16 = vsub.s32 4, %v67_v12  ;;  %v15_v18 = vld [vmem:[%s510_s0 + $0x8] sm:$0x77]  ;;  %v152_v19 = vsub.s32 1, %v67_v12  ;;  %v156_v20 = vsub.s32 5, %v67_v12 }
   0x5   :  { %v236_v21 = vsub.s32 2, %v67_v12  ;;  %v240_v22 = vsub.s32 6, %v67_v12 }
   0x6   :  { %61 = vperm.xlu1 %342, %v19_v3   ;;  %51 = vperm.xlu0 %341, %v17_v4   ;;  %v69_v25 = vrot.slane %v14_v17, %v68_v15  ;;  %v73_v26 = vrot.slane %v14_v17, %v72_v16  ;;  %v77_v27 = vrot.slane %v15_v18, %v68_v15 }
   0x7   :  { %v81_v28 = vrot.slane %v15_v18, %v72_v16  ;;  %v153_v29 = vrot.slane %v14_v17, %v152_v19  ;;  %v157_v30 = vrot.slane %v14_v17, %v156_v20  ;;  %v161_v31 = vrot.slane %v15_v18, %v152_v19 }
   0x8   :  { %v165_v32 = vrot.slane %v15_v18, %v156_v20  ;;  %v237_v33 = vrot.slane %v14_v17, %v236_v21  ;;  %v241_v34 = vrot.slane %v14_v17, %v240_v22  ;;  %v245_v35 = vrot.slane %v15_v18, %v236_v21 }
   0x9   :  { %v249_v36 = vrot.slane %v15_v18, %v240_v22  ;;  %v89_v39 = vrot.slane %v69_v25, %v68_v15  ;;  %v93_v40 = vrot.slane %v73_v26, %v68_v15  ;;  %v97_v41 = vrot.slane %v77_v27, %v68_v15 }
   0xa   :  { %31 = vperm.xlu1 %342, %v21_v5   ;;  %26 = vperm.xlu0 %341, %v20_v6   ;;  %v101_v42 = vrot.slane %v81_v28, %v68_v15  ;;  %v400_v43 = vrot.slane %v153_v29, %v152_v19  ;;  %v402_v44 = vrot.slane %v157_v30, %v152_v19 }
   0xb   :  { %v404_v45 = vrot.slane %v161_v31, %v152_v19  ;;  %v406_v46 = vrot.slane %v165_v32, %v152_v19  ;;  %v408_v47 = vrot.slane %v237_v33, %v236_v21  ;;  %v410_v48 = vrot.slane %v241_v34, %v236_v21 }
   0xc   :  { %v412_v49 = vrot.slane %v245_v35, %v236_v21  ;;  %v414_v50 = vrot.slane %v249_v36, %v236_v21 }
   0xe   :  { %41 = vperm.xlu1 %342, %v23_v7   ;;  %36 = vperm.xlu0 %341, %v22_v8  }
  0x12   :  { %344 = vset.pattern.permute.xlu1 %v348_v9  ;;  %343 = vset.pattern.permute.xlu0 %v348_v9 }
  0x13   :  { %139 = vperm.xlu1 %344, %v17_v4   ;;  %135 = vperm.xlu0 %343, %v16_v2  }
  0x17   :  { %143 = vperm.xlu1 %344, %v18_v1   ;;  %147 = vperm.xlu0 %343, %v19_v3  }
  0x1b   :  { %345 = vset.pattern.permute.xlu1 %v349_v10  ;;  %346 = vset.pattern.permute.xlu0 %v349_v10 }
  0x1c   :  { %219 = vperm.xlu1 %345, %v16_v2   ;;  %223 = vperm.xlu0 %346, %v17_v4  }
  0x20   :  { %227 = vperm.xlu1 %345, %v18_v1  }
  0x24   :  { %231 = vperm.xlu1 %345, %v19_v3  }
  0x7d   :  { %v57_v13 = vpop.permute.xlu1 %56  ;;  %v47_v14 = vpop.permute.xlu0 %46 }
  0x7e   :  { %v102_v57 = vmul.f32 %v89_v39, %v47_v14  ;;  %v103_v58 = vmul.f32 %v93_v40, %v47_v14  ;;  %v104_v59 = vmul.f32 %v97_v41, %v47_v14  ;;  %v105_v60 = vmul.f32 %v101_v42, %v47_v14 }
  0x7f   :  { %v110_v61 = vmul.f32 %v89_v39, %v57_v13  ;;  %v111_v62 = vmul.f32 %v93_v40, %v57_v13  ;;  %v112_v63 = vmul.f32 %v97_v41, %v57_v13  ;;  %v113_v0 = vmul.f32 %v101_v42, %v57_v13 }
  0x81   :  { %v62_v23 = vpop.permute.xlu1 %61  ;;  %v52_v24 = vpop.permute.xlu0 %51 }
  0x82   :  { %v106_v51 = vmul.f32 %v89_v39, %v52_v24  ;;  %v107_v52 = vmul.f32 %v93_v40, %v52_v24  ;;  %v108_v53 = vmul.f32 %v97_v41, %v52_v24  ;;  %v109_v54 = vmul.f32 %v101_v42, %v52_v24 }
  0x83   :  { %v114_v1 = vmul.f32 %v89_v39, %v62_v23  ;;  %v115_v2 = vmul.f32 %v93_v40, %v62_v23  ;;  %v116_v3 = vmul.f32 %v97_v41, %v62_v23  ;;  %v117_v4 = vmul.f32 %v101_v42, %v62_v23 }
  0x85   :  { %v32_v37 = vpop.permute.xlu1 %31  ;;  %v27_v38 = vpop.permute.xlu0 %26 }
  0x86   :  { %v122_v5 = vadd.f32 %v106_v51, %v32_v37  ;;  %v123_v6 = vadd.f32 %v107_v52, %v32_v37  ;;  %v124_v7 = vadd.f32 %v108_v53, %v32_v37  ;;  %v125_v8 = vadd.f32 %v109_v54, %v32_v37 }
  0x87   :  { %v118_v9 = vadd.f32 %v102_v57, %v27_v38  ;;  %v119_v10 = vadd.f32 %v103_v58, %v27_v38  ;;  %v120_v11 = vadd.f32 %v104_v59, %v27_v38  ;;  %v121_v12 = vadd.f32 %v105_v60, %v27_v38 }
  0x89   :  { %v42_v55 = vpop.permute.xlu1 %41  ;;  %v37_v56 = vpop.permute.xlu0 %36 }
  0x8a   :  { %v416_v17 = vadd.f32 %v114_v1, %v42_v55  ;;  %v418_v14 = vadd.f32 %v115_v2, %v42_v55  ;;  %v420_v18 = vadd.f32 %v116_v3, %v42_v55  ;;  %v422_v13 = vadd.f32 %v117_v4, %v42_v55 }
  0x8b   :  { %v126_v27 = vadd.f32 %v110_v61, %v37_v56  ;;  %v127_v28 = vadd.f32 %v111_v62, %v37_v56  ;;  %v128_v29 = vadd.f32 %v112_v63, %v37_v56  ;;  %v129_v30 = vadd.f32 %v113_v0, %v37_v56 }
  0x8e   :  { %v140_v15 = vpop.permute.xlu1 %139  ;;  %v136_v16 = vpop.permute.xlu0 %135 }
  0x8f   :  { %v190_v19 = vmul.f32 %v400_v43, %v140_v15  ;;  %v191_v20 = vmul.f32 %v402_v44, %v140_v15  ;;  %v192_v21 = vmul.f32 %v404_v45, %v140_v15  ;;  %v193_v22 = vmul.f32 %v406_v46, %v140_v15 }
  0x90   :  { %v186_v23 = vmul.f32 %v400_v43, %v136_v16  ;;  %v187_v24 = vmul.f32 %v402_v44, %v136_v16  ;;  %v188_v25 = vmul.f32 %v404_v45, %v136_v16  ;;  %v189_v26 = vmul.f32 %v406_v46, %v136_v16 }
  0x91   :  { %v206_v37 = vadd.f32 %v190_v19, %v122_v5  ;;  %v207_v38 = vadd.f32 %v191_v20, %v123_v6  ;;  %v208_v39 = vadd.f32 %v192_v21, %v124_v7  ;;  %v209_v40 = vadd.f32 %v193_v22, %v125_v8 }
  0x92   :  { %v144_v31 = vpop.permute.xlu1 %143  ;;  %v148_v32 = vpop.permute.xlu0 %147  ;;  %v202_v41 = vadd.f32 %v186_v23, %v118_v9  ;;  %v203_v42 = vadd.f32 %v187_v24, %v119_v10  ;;  %v204_v51 = vadd.f32 %v188_v25, %v120_v11  ;;  %v205_v52 = vadd.f32 %v189_v26, %v121_v12 }
  0x93   :  { %v194_v33 = vmul.f32 %v400_v43, %v144_v31  ;;  %v195_v34 = vmul.f32 %v402_v44, %v144_v31  ;;  %v196_v35 = vmul.f32 %v404_v45, %v144_v31  ;;  %v197_v36 = vmul.f32 %v406_v46, %v144_v31 }
  0x94   :  { %v198_v53 = vmul.f32 %v400_v43, %v148_v32  ;;  %v199_v54 = vmul.f32 %v402_v44, %v148_v32  ;;  %v200_v55 = vmul.f32 %v404_v45, %v148_v32  ;;  %v201_v56 = vmul.f32 %v406_v46, %v148_v32 }
  0x95   :  { %v210_v57 = vadd.f32 %v194_v33, %v126_v27  ;;  %v211_v58 = vadd.f32 %v195_v34, %v127_v28  ;;  %v212_v59 = vadd.f32 %v196_v35, %v128_v29  ;;  %v213_v60 = vadd.f32 %v197_v36, %v129_v30 }
  0x96   :  { %v214_v29 = vadd.f32 %v198_v53, %v416_v17  ;;  %v215_v30 = vadd.f32 %v199_v54, %v418_v14  ;;  %v216_v31 = vadd.f32 %v200_v55, %v420_v18  ;;  %v217_v32 = vadd.f32 %v201_v56, %v422_v13 }
  0x97   :  { %v220_v61 = vpop.permute.xlu1 %219  ;;  %v224_v62 = vpop.permute.xlu0 %223 }
  0x98   :  { %v270_v63 = vmul.f32 %v408_v47, %v220_v61  ;;  %v271_v0 = vmul.f32 %v410_v48, %v220_v61  ;;  %v272_v1 = vmul.f32 %v412_v49, %v220_v61  ;;  %v273_v43 = vmul.f32 %v414_v50, %v220_v61 }
  0x99   :  { %v274_v44 = vmul.f32 %v408_v47, %v224_v62  ;;  %v275_v45 = vmul.f32 %v410_v48, %v224_v62  ;;  %v276_v46 = vmul.f32 %v412_v49, %v224_v62  ;;  %v277_v2 = vmul.f32 %v414_v50, %v224_v62 }
  0x9a   :  { %v286_v3 = vadd.f32 %v270_v63, %v202_v41  ;;  %v287_v4 = vadd.f32 %v271_v0, %v203_v42  ;;  %v288_v5 = vadd.f32 %v272_v1, %v204_v51  ;;  %v289_v6 = vadd.f32 %v273_v43, %v205_v52 }
  0x9b   :  { %v290_v7 = vadd.f32 %v274_v44, %v206_v37  ;;  %v291_v8 = vadd.f32 %v275_v45, %v207_v38  ;;  %v292_v9 = vadd.f32 %v276_v46, %v208_v39  ;;  %v293_v10 = vadd.f32 %v277_v2, %v209_v40  ;;  %v228_v11 = vpop.permute.xlu1 %227 }
  0x9c   :  { %v302_v12 = vmax.f32 %v286_v3, 0.0  ;;  %v303_v15 = vmax.f32 %v287_v4, 0.0  ;;  %v304_v16 = vmax.f32 %v288_v5, 0.0  ;;  %v305_v19 = vmax.f32 %v289_v6, 0.0 }
  0x9d   :  { %v306_v20 = vmax.f32 %v290_v7, 0.0  ;;  %v307_v21 = vmax.f32 %v291_v8, 0.0  ;;  %v308_v22 = vmax.f32 %v292_v9, 0.0  ;;  %v309_v23 = vmax.f32 %v293_v10, 0.0 }
  0x9e   :  { %318 = vst [vmem:[%s511_s3] sm:$0xff] %v302_v12  ;;  %319 = vst [vmem:[%s511_s3 + $0x8] sm:$0xff] %v303_v15  ;;  %v278_v24 = vmul.f32 %v408_v47, %v228_v11  ;;  %v279_v25 = vmul.f32 %v410_v48, %v228_v11  ;;  %v280_v26 = vmul.f32 %v412_v49, %v228_v11 }
  0x9f   :  { %320 = vst [vmem:[%s511_s3 + $0x10] sm:$0xff] %v304_v16  ;;  %321 = vst [vmem:[%s511_s3 + $0x18] sm:$0xff] %v305_v19  ;;  %v281_v27 = vmul.f32 %v414_v50, %v228_v11  ;;  %v232_v28 = vpop.permute.xlu1 %231 }
  0xa0   :  { %322 = vst [vmem:[%s511_s3 + $0x20] sm:$0xff] %v306_v20  ;;  %323 = vst [vmem:[%s511_s3 + $0x28] sm:$0xff] %v307_v21  ;;  %v294_v33 = vadd.f32 %v278_v24, %v210_v57  ;;  %v295_v34 = vadd.f32 %v279_v25, %v211_v58  ;;  %v296_v35 = vadd.f32 %v280_v26, %v212_v59 }
  0xa1   :  { %324 = vst [vmem:[%s511_s3 + $0x30] sm:$0xff] %v308_v22  ;;  %325 = vst [vmem:[%s511_s3 + $0x38] sm:$0xff] %v309_v23  ;;  %v297_v36 = vadd.f32 %v281_v27, %v213_v60  ;;  %v282_v37 = vmul.f32 %v408_v47, %v232_v28  ;;  %v283_v38 = vmul.f32 %v410_v48, %v232_v28 }
  0xa2   :  { %v284_v39 = vmul.f32 %v412_v49, %v232_v28  ;;  %v285_v40 = vmul.f32 %v414_v50, %v232_v28  ;;  %v310_v41 = vmax.f32 %v294_v33, 0.0  ;;  %v311_v17 = vmax.f32 %v295_v34, 0.0 }
  0xa3   :  { %v312_v42 = vmax.f32 %v296_v35, 0.0  ;;  %v313_v14 = vmax.f32 %v297_v36, 0.0  ;;  %v298_v51 = vadd.f32 %v282_v37, %v214_v29  ;;  %v299_v18 = vadd.f32 %v283_v38, %v215_v30 }
  0xa4   :  { %v300_v52 = vadd.f32 %v284_v39, %v216_v31  ;;  %v301_v13 = vadd.f32 %v285_v40, %v217_v32  ;;  %326 = vst [vmem:[%s511_s3 + $0x40] sm:$0xff] %v310_v41  ;;  %327 = vst [vmem:[%s511_s3 + $0x48] sm:$0xff] %v311_v17 }
  0xa5   :  { %328 = vst [vmem:[%s511_s3 + $0x50] sm:$0xff] %v312_v42  ;;  %329 = vst [vmem:[%s511_s3 + $0x58] sm:$0xff] %v313_v14  ;;  %v314_v47 = vmax.f32 %v298_v51, 0.0  ;;  %v315_v48 = vmax.f32 %v299_v18, 0.0 }
  0xa6   :  { %v316_v49 = vmax.f32 %v300_v52, 0.0  ;;  %v317_v50 = vmax.f32 %v301_v13, 0.0 }
  0xa7   :  { %330 = vst [vmem:[%s511_s3 + $0x60] sm:$0xff] %v314_v47  ;;  %331 = vst [vmem:[%s511_s3 + $0x68] sm:$0xff] %v315_v48 }
  0xa8   :  { %332 = vst [vmem:[%s511_s3 + $0x70] sm:$0xff] %v316_v49  ;;  %333 = vst [vmem:[%s511_s3 + $0x78] sm:$0xff] %v317_v50 }

// kernel: squeeze.12
= control target key start
LH: loop header
LB: loop body
LE: loop exit
PB: predicated region body
PF: predicated region fallthrough
CT: control target
= control target key end

     0   :  { %s95_s8 = smov 80   ;;  %vm20_vm0 = vcmask 130048   ;;  %s96_s9 = smov 96   ;;  %s125_s0 = inlined_call_operand.vmem [shape: bf16[256], index: 0, kind: input, shape index: {}]   ;;  %s126_s1 = inlined_call_operand.vmem [shape: bf16[1,1,16,16], index: 1, kind: output, shape index: {}]  }
   0x1   :  { %v15_v0 = vld [vmem:[%s125_s0] sm:$0x1]  ;;  %s94_s0 = smov 112   ;;  %s97_s10 = smov 64  }
   0x2   :  { %v16_v1 = vunpack.c.l.bf16 %v15_v0  ;;  %s98_s11 = smov 48   ;;  %s99_s12 = smov 32  }
   0x3   :  { %s100_s13 = smov 16  }
   0x4   :  { %18 = vst [vmem:[#allocation1] sm:$0x3] %v16_v1 }
   0xb   :  { %v22_v2 = vld [vmem:[#allocation1] sm:$0x3]  }
   0xc   :  { %v34_v3 = vld [vmem:[#allocation1] sm:$0x3]   ;;  %23 = vrot.lane.b32.xlu0 %v22_v2, %s94_s0 }
   0xd   :  { %35 = vrot.lane.b32.xlu1 %v34_v3, %s95_s8  ;;  %v28_v4 = vld [vmem:[#allocation1] sm:$0x3]  }
   0xe   :  { %v40_v5 = vld [vmem:[#allocation1] sm:$0x3]  }
   0xf   :  { %v19_v6 = vld [vmem:[#allocation1] sm:$0x3]  }
  0x10   :  { %21 = vst.msk [vmem:[#allocation0] ss:$8 sm:$0x3] %vm20_vm0, %v19_v6   ;;  %29 = vrot.lane.b32.xlu0 %v28_v4, %s96_s9  ;;  %v46_v7 = vld [vmem:[#allocation1] sm:$0x3]  }
  0x11   :  { %41 = vrot.lane.b32.xlu1 %v40_v5, %s97_s10  ;;  %v52_v8 = vld [vmem:[#allocation1] sm:$0x3]  }
  0x12   :  { %v58_v9 = vld [vmem:[#allocation1] sm:$0x3]  }
  0x14   :  { %47 = vrot.lane.b32.xlu0 %v46_v7, %s98_s11 }
  0x15   :  { %53 = vrot.lane.b32.xlu1 %v52_v8, %s99_s12 }
  0x18   :  { %59 = vrot.lane.b32.xlu0 %v58_v9, %s100_s13 }
  0x7e   :  { %v24_v10 = vpop.permute.xlu0 %23  }
  0x7f   :  { %v36_v11 = vpop.permute.xlu1 %35   ;;  %27 = vst.msk [vmem:[#allocation0 + $0x1] ss:$8 sm:$0x3] %vm20_vm0, %v24_v10  }
  0x80   :  { %39 = vst.msk [vmem:[#allocation0 + $0x3] ss:$8 sm:$0x3] %vm20_vm0, %v36_v11  }
  0x82   :  { %v30_v12 = vpop.permute.xlu0 %29  }
  0x83   :  { %v42_v13 = vpop.permute.xlu1 %41   ;;  %33 = vst.msk [vmem:[#allocation0 + $0x2] ss:$8 sm:$0x3] %vm20_vm0, %v30_v12  }
  0x84   :  { %45 = vst.msk [vmem:[#allocation0 + $0x4] ss:$8 sm:$0x3] %vm20_vm0, %v42_v13  }
  0x86   :  { %v48_v14 = vpop.permute.xlu0 %47  }
  0x87   :  { %v54_v15 = vpop.permute.xlu1 %53   ;;  %51 = vst.msk [vmem:[#allocation0 + $0x5] ss:$8 sm:$0x3] %vm20_vm0, %v48_v14  }
  0x88   :  { %57 = vst.msk [vmem:[#allocation0 + $0x6] ss:$8 sm:$0x3] %vm20_vm0, %v54_v15  }
  0x8a   :  { %v60_v16 = vpop.permute.xlu0 %59  }
  0x8b   :  { %63 = vst.msk [vmem:[#allocation0 + $0x7] ss:$8 sm:$0x3] %vm20_vm0, %v60_v16  }
  0x92   :  { %v69_v17 = vld [vmem:[#allocation0] sm:$0xff]  ;;  %v75_v18 = vld [vmem:[#allocation0 + $0x8] sm:$0xff] }
  0x93   :  { %v85_v19 = vpack.c.bf16 %v75_v18, %v69_v17 }
  0x95   :  { %86 = vst [vmem:[%s126_s1] sm:$0xff] %v85_v19  }

// kernel: squeeze.13
= control target key start
LH: loop header
LB: loop body
LE: loop exit
PB: predicated region body
PF: predicated region fallthrough
CT: control target
= control target key end

     0   :  { %s125_s0 = inlined_call_operand.vmem [shape: f32[256], index: 0, kind: input, shape index: {}]   ;;  %s126_s1 = inlined_call_operand.hbm [shape: f32[1,1,16,16], index: 1, kind: output, shape index: {}]  }
   0x1   :  { %v6_v0 = vld [vmem:[%s125_s0] sm:$0x3] }
   0x2   :  { %7 = vst [vmem:[#allocation2] sm:$0x3] %v6_v0 }
   0x3   :  { %2 = vsyncpa [#allocation1], 0  ;;  %s93_s0 = smov 112   ;;  %s94_s8 = smov 80   ;;  %vm9_vm0 = vcmask 130048  }
   0x4   :  { %s95_s9 = smov 96   ;;  %s96_s10 = smov 64  }
   0x5   :  { %s97_s11 = smov 48   ;;  %s98_s12 = smov 32  }
   0x6   :  { %s99_s13 = smov 16   ;;  %s100_s14 = smov [#allocation0]  }
   0x7   :  { %s57_s15 = sshll.u32 %s100_s14, 4  ;;  %s58_s15 = int_to_ptr.vmem [resolvable:$true] %s57_s15 }
   0x8   :  { %s71_s16 = scalar_lea.vmem %s58_s15, 256  ;;  %p76_p1 = scmp.lt.s32.totalorder %s58_s15, %s58_s15 }
   0x9   :  { %v11_v1 = vld [vmem:[#allocation2] sm:$0x3]   ;;  %p72_p0 = scmp.ne.s32.totalorder %s58_s15, %s71_s16  ;;  %p77_p2 = scmp.lt.s32.totalorder %s71_s16, %s71_s16 }
   0xa   :  { %v23_v2 = vld [vmem:[#allocation2] sm:$0x3]   ;;  %12 = vrot.lane.b32.xlu0 %v11_v1, %s93_s0 }
   0xb   :  { %24 = vrot.lane.b32.xlu1 %v23_v2, %s94_s8  ;;  %v17_v3 = vld [vmem:[#allocation2] sm:$0x3]   ;;  %p78_p3 = por %p77_p2, %p76_p1 }
   0xc   :  { %v29_v4 = vld [vmem:[#allocation2] sm:$0x3]  }
   0xd   :  { %v8_v5 = vld [vmem:[#allocation2] sm:$0x3]   ;;  %p79_p4 = pnand %p78_p3, %p72_p0 }
   0xe   :  { %10 = vst.msk [vmem:[#allocation0] ss:$8 sm:$0x3] %vm9_vm0, %v8_v5   ;;  %18 = vrot.lane.b32.xlu0 %v17_v3, %s95_s9  ;;  %v35_v6 = vld [vmem:[#allocation2] sm:$0x3]  }
   0xf   :  { %30 = vrot.lane.b32.xlu1 %v29_v4, %s96_s10  ;;  %v41_v7 = vld [vmem:[#allocation2] sm:$0x3]  }
  0x10   :  { %v47_v8 = vld [vmem:[#allocation2] sm:$0x3]  }
  0x12   :  { %36 = vrot.lane.b32.xlu0 %v35_v6, %s97_s11 }
  0x13   :  { %42 = vrot.lane.b32.xlu1 %v41_v7, %s98_s12 }
  0x16   :  { %48 = vrot.lane.b32.xlu0 %v47_v8, %s99_s13 }
  0x7c   :  { %v13_v9 = vpop.permute.xlu0 %12  }
  0x7d   :  { %v25_v10 = vpop.permute.xlu1 %24   ;;  %16 = vst.msk [vmem:[#allocation0 + $0x1] ss:$8 sm:$0x3] %vm9_vm0, %v13_v9  }
  0x7e   :  { %28 = vst.msk [vmem:[#allocation0 + $0x3] ss:$8 sm:$0x3] %vm9_vm0, %v25_v10  }
  0x80   :  { %v19_v11 = vpop.permute.xlu0 %18  }
  0x81   :  { %v31_v12 = vpop.permute.xlu1 %30   ;;  %22 = vst.msk [vmem:[#allocation0 + $0x2] ss:$8 sm:$0x3] %vm9_vm0, %v19_v11  }
  0x82   :  { %34 = vst.msk [vmem:[#allocation0 + $0x4] ss:$8 sm:$0x3] %vm9_vm0, %v31_v12  }
  0x84   :  { %v37_v13 = vpop.permute.xlu0 %36  }
  0x85   :  { %v43_v14 = vpop.permute.xlu1 %42   ;;  %40 = vst.msk [vmem:[#allocation0 + $0x5] ss:$8 sm:$0x3] %vm9_vm0, %v37_v13  }
  0x86   :  { %46 = vst.msk [vmem:[#allocation0 + $0x6] ss:$8 sm:$0x3] %vm9_vm0, %v43_v14  }
  0x88   :  { %v49_v15 = vpop.permute.xlu0 %48  }
  0x89   :  { %52 = vst.msk [vmem:[#allocation0 + $0x7] ss:$8 sm:$0x3] %vm9_vm0, %v49_v15  }
  0x8a   :  { %82 = shalt.err (!%p79_p4)
}
  0x8b   :  { %60 = dma.vmem_to_hbm [thread:$0]  %s58_s15, 256, %s126_s1, [#allocation1]  }
  0x8c   :  { %91 = dma.done.wait [#allocation1], 256  }
  0x8d   :  { %92 = vsyncadd [#allocation1], 4294967040 }
  0x8e   :  { %62 = vsyncpa [#allocation1], 1 }

// kernel: squeeze.7
= control target key start
LH: loop header
LB: loop body
LE: loop exit
PB: predicated region body
PF: predicated region fallthrough
CT: control target
= control target key end

     0   :  { %vm3_vm0 = vcmask 31744   ;;  %s213_s10 = smov 124   ;;  %s214_s11 = smov 116   ;;  %s295_s0 = inlined_call_operand.vmem [shape: f32[16,16], index: 0, kind: input, shape index: {}]   ;;  %s296_s1 = inlined_call_operand.vmem [shape: f32[4,4,4,4], index: 1, kind: output, shape index: {}]  }
   0x1   :  { %v30_v0 = vld [vmem:[%s295_s0] sm:$0xff]   ;;  %v192_v1 = vld [vmem:[%s295_s0 + $0x8] sm:$0xff]   ;;  %s212_s0 = smov 120  }
   0x2   :  { %31 = vrot.lane.b32.xlu1 %v30_v0, %s212_s0  ;;  %14 = vrot.lane.b32.xlu0 %v30_v0, %s213_s10  ;;  %10 = vst.msk [vmem:[#allocation0 + $0x40] ss:$8 sm:$0xf] %vm3_vm0, %v192_v1   ;;  %12 = vst.msk [vmem:[#allocation0 + $0x40] ss:$8 sm:$0xf0] %vm3_vm0, %v192_v1  }
   0x3   :  { %4 = vst.msk [vmem:[#allocation0] ss:$8 sm:$0xf] %vm3_vm0, %v30_v0   ;;  %5 = vst.msk [vmem:[#allocation0] ss:$8 sm:$0xf0] %vm3_vm0, %v30_v0  }
   0x6   :  { %40 = vrot.lane.b32.xlu1 %v192_v1, %s212_s0  ;;  %23 = vrot.lane.b32.xlu0 %v192_v1, %s213_s10 }
   0xa   :  { %57 = vrot.lane.b32.xlu1 %v192_v1, %s214_s11  ;;  %48 = vrot.lane.b32.xlu0 %v30_v0, %s214_s11 }
  0x74   :  { %v32_v2 = vpop.permute.xlu1 %31   ;;  %v15_v3 = vpop.permute.xlu0 %14  }
  0x75   :  { %35 = vst.msk [vmem:[#allocation0 + $0x2] ss:$8 sm:$0xf] %vm3_vm0, %v32_v2   ;;  %37 = vst.msk [vmem:[#allocation0 + $0x2] ss:$8 sm:$0xf0] %vm3_vm0, %v32_v2  }
  0x76   :  { %18 = vst.msk [vmem:[#allocation0 + $0x1] ss:$8 sm:$0xf] %vm3_vm0, %v15_v3   ;;  %20 = vst.msk [vmem:[#allocation0 + $0x1] ss:$8 sm:$0xf0] %vm3_vm0, %v15_v3  }
  0x78   :  { %v41_v4 = vpop.permute.xlu1 %40   ;;  %v24_v5 = vpop.permute.xlu0 %23  }
  0x79   :  { %44 = vst.msk [vmem:[#allocation0 + $0x42] ss:$8 sm:$0xf] %vm3_vm0, %v41_v4   ;;  %46 = vst.msk [vmem:[#allocation0 + $0x42] ss:$8 sm:$0xf0] %vm3_vm0, %v41_v4  }
  0x7a   :  { %27 = vst.msk [vmem:[#allocation0 + $0x41] ss:$8 sm:$0xf] %vm3_vm0, %v24_v5   ;;  %29 = vst.msk [vmem:[#allocation0 + $0x41] ss:$8 sm:$0xf0] %vm3_vm0, %v24_v5  }
  0x7c   :  { %v58_v6 = vpop.permute.xlu1 %57   ;;  %v49_v7 = vpop.permute.xlu0 %48  }
  0x7d   :  { %61 = vst.msk [vmem:[#allocation0 + $0x43] ss:$8 sm:$0xf] %vm3_vm0, %v58_v6   ;;  %63 = vst.msk [vmem:[#allocation0 + $0x43] ss:$8 sm:$0xf0] %vm3_vm0, %v58_v6  }
  0x7e   :  { %52 = vst.msk [vmem:[#allocation0 + $0x3] ss:$8 sm:$0xf] %vm3_vm0, %v49_v7   ;;  %54 = vst.msk [vmem:[#allocation0 + $0x3] ss:$8 sm:$0xf0] %vm3_vm0, %v49_v7  }
  0x84   :  { %v121_v8 = vld [vmem:[#allocation0 + $0x40] sm:$0xf]  ;;  %v128_v9 = vld [vmem:[#allocation0 + $0x48] sm:$0xf]  ;;  %v135_v10 = vld [vmem:[#allocation0 + $0x50] sm:$0xf] }
  0x85   :  { %201 = vst [vmem:[%s296_s1 + $0x20] sm:$0xf] %v121_v8  ;;  %202 = vst [vmem:[%s296_s1 + $0x24] sm:$0xf] %v128_v9  ;;  %v142_v11 = vld [vmem:[#allocation0 + $0x58] sm:$0xf] }
  0x86   :  { %203 = vst [vmem:[%s296_s1 + $0x28] sm:$0xf] %v135_v10  ;;  %v149_v12 = vld [vmem:[#allocation0 + $0x60] sm:$0xf]  ;;  %v156_v13 = vld [vmem:[#allocation0 + $0x68] sm:$0xf] }
  0x87   :  { %204 = vst [vmem:[%s296_s1 + $0x2c] sm:$0xf] %v142_v11  ;;  %205 = vst [vmem:[%s296_s1 + $0x30] sm:$0xf] %v149_v12  ;;  %v163_v14 = vld [vmem:[#allocation0 + $0x70] sm:$0xf] }
  0x88   :  { %206 = vst [vmem:[%s296_s1 + $0x34] sm:$0xf] %v156_v13  ;;  %v170_v15 = vld [vmem:[#allocation0 + $0x78] sm:$0xf]  ;;  %v68_v16 = vld [vmem:[#allocation0] sm:$0xf] }
  0x89   :  { %207 = vst [vmem:[%s296_s1 + $0x38] sm:$0xf] %v163_v14  ;;  %208 = vst [vmem:[%s296_s1 + $0x3c] sm:$0xf] %v170_v15  ;;  %v73_v17 = vld [vmem:[#allocation0 + $0x8] sm:$0xf] }
  0x8a   :  { %71 = vst [vmem:[%s296_s1] sm:$0xf] %v68_v16  ;;  %v79_v18 = vld [vmem:[#allocation0 + $0x10] sm:$0xf]  ;;  %v86_v19 = vld [vmem:[#allocation0 + $0x18] sm:$0xf] }
  0x8b   :  { %194 = vst [vmem:[%s296_s1 + $0x4] sm:$0xf] %v73_v17  ;;  %195 = vst [vmem:[%s296_s1 + $0x8] sm:$0xf] %v79_v18  ;;  %v93_v20 = vld [vmem:[#allocation0 + $0x20] sm:$0xf] }
  0x8c   :  { %196 = vst [vmem:[%s296_s1 + $0xc] sm:$0xf] %v86_v19  ;;  %v100_v21 = vld [vmem:[#allocation0 + $0x28] sm:$0xf]  ;;  %v107_v22 = vld [vmem:[#allocation0 + $0x30] sm:$0xf] }
  0x8d   :  { %197 = vst [vmem:[%s296_s1 + $0x10] sm:$0xf] %v93_v20  ;;  %198 = vst [vmem:[%s296_s1 + $0x14] sm:$0xf] %v100_v21  ;;  %v114_v23 = vld [vmem:[#allocation0 + $0x38] sm:$0xf] }
  0x8e   :  { %199 = vst [vmem:[%s296_s1 + $0x18] sm:$0xf] %v107_v22  ;;  %200 = vst [vmem:[%s296_s1 + $0x1c] sm:$0xf] %v114_v23 }

// kernel: _forward_core.3
= control target key start
LH: loop header
LB: loop body
LE: loop exit
PB: predicated region body
PF: predicated region fallthrough
CT: control target
= control target key end

     0   :  { %s7292_s0 = inlined_call_operand.vmem [shape: s32[2], index: 0, kind: input, shape index: {}]   ;;  %s7293_s1 = inlined_call_operand.vmem [shape: f32[256,128], index: 1, kind: input, shape index: {}]   ;;  %s7294_s2 = inlined_call_operand.vmem [shape: f32[256,128], index: 2, kind: input, shape index: {}]   ;;  %s7295_s3 = inlined_call_operand.vmem [shape: f32[256,128], index: 3, kind: output, shape index: {}]  }
   0x1   :  { %s8_s14 = sshll.u32 %s7292_s0, 4  ;;  %s9_s14 = int_to_ptr.vmem [resolvable:$true] %s8_s14 }
   0x2   :  { %s3542_s15 = scalar_lea.vmem %s9_s14, 16  ;;  %p3547_p1 = scmp.lt.s32.totalorder %s9_s14, %s9_s14 }
   0x3   :  { %p3543_p0 = scmp.ne.s32.totalorder %s9_s14, %s3542_s15  ;;  %p3548_p2 = scmp.lt.s32.totalorder %s3542_s15, %s3542_s15 }
   0x5   :  { %p3549_p3 = por %p3548_p2, %p3547_p1 }
   0x7   :  { %p3550_p4 = pnand %p3549_p3, %p3543_p0 }
   0x9   :  { %3553 = shalt.err (!%p3550_p4)  }
   0xa   :  { %s3556_s16 = smov [#allocation3]  }
   0xb   :  { %11 = dma.vmem_to_smem %s9_s14, 16, %s3556_s16, [#allocation2] }
   0xc   :  { %3554 = dma.done.wait [#allocation2], 16 }
   0xd   :  { %3555 = vsyncadd [#allocation2], 4294967280 }
   0xe   :  { %13 = sfence }
   0xf   :  { %v3583_v0 = vld [vmem:[%s7293_s1 + $0x10] sm:$0xff]  ;;  %v3588_v1 = vld [vmem:[%s7293_s1 + $0x18] sm:$0xff]  ;;  %v3593_v2 = vld [vmem:[%s7293_s1] sm:$0xff]  ;;  %s789_s9 = sld [smem:[#allocation3]] }
  0x10   :  { %7672 = vst [vmem:[#allocation5_spill] sm:$0xff] %v3583_v0  ;;  %7673 = vst [vmem:[#allocation6_spill] sm:$0xff] %v3588_v1  ;;  %v84_v3 = vmul.f32 %v3583_v0, %v3583_v0  ;;  %v82_v4 = vmul.f32 %v3593_v2, %v3593_v2  ;;  %v3602_v5 = vld [vmem:[%s7293_s1 + $0x8] sm:$0xff]  ;;  %v85_v6 = vmul.f32 %v3588_v1, %v3588_v1  ;;  %v3614_v9 = vld [vmem:[%s7293_s1 + $0x20] sm:$0xff]  ;;  %s3011_s10 = sld [smem:[#allocation3 + $0x1]] }
  0x11   :  { %7674 = vst [vmem:[#allocation7_spill] sm:$0xff] %v3602_v5  ;;  %v83_v7 = vmul.f32 %v3602_v5, %v3602_v5  ;;  %v23_v8 = vld [vmem:[%s7293_s1 + $0x28] sm:$0xff]  ;;  %7675 = vst [vmem:[#allocation8_spill] sm:$0xff] %v3614_v9  ;;  %v86_v11 = vmul.f32 %v3614_v9, %v3614_v9  ;;  %v25_v12 = vld [vmem:[%s7293_s1 + $0x38] sm:$0xff] }
  0x12   :  { %118 = vadd.xlane.f32.xlu1 %v84_v3  ;;  %114 = vadd.xlane.f32.xlu0 %v82_v4  ;;  %v87_v10 = vmul.f32 %v23_v8, %v23_v8  ;;  %v24_v13 = vld [vmem:[%s7293_s1 + $0x30] sm:$0xff]  ;;  %v89_v14 = vmul.f32 %v25_v12, %v25_v12  ;;  %v27_v16 = vld [vmem:[%s7293_s1 + $0x48] sm:$0xff]  ;;  %v26_v17 = vld [vmem:[%s7293_s1 + $0x40] sm:$0xff] }
  0x13   :  { %v88_v15 = vmul.f32 %v24_v13, %v24_v13  ;;  %v91_v18 = vmul.f32 %v27_v16, %v27_v16  ;;  %v90_v19 = vmul.f32 %v26_v17, %v26_v17  ;;  %v29_v20 = vld [vmem:[%s7293_s1 + $0x58] sm:$0xff]  ;;  %v28_v21 = vld [vmem:[%s7293_s1 + $0x50] sm:$0xff]  ;;  %v31_v24 = vld [vmem:[%s7293_s1 + $0x68] sm:$0xff] }
  0x14   :  { %v93_v22 = vmul.f32 %v29_v20, %v29_v20  ;;  %v92_v23 = vmul.f32 %v28_v21, %v28_v21  ;;  %v30_v25 = vld [vmem:[%s7293_s1 + $0x60] sm:$0xff]  ;;  %v95_v26 = vmul.f32 %v31_v24, %v31_v24  ;;  %v33_v28 = vld [vmem:[%s7293_s1 + $0x78] sm:$0xff]  ;;  %v32_v29 = vld [vmem:[%s7293_s1 + $0x70] sm:$0xff] }
  0x15   :  { %v94_v27 = vmul.f32 %v30_v25, %v30_v25  ;;  %v97_v30 = vmul.f32 %v33_v28, %v33_v28  ;;  %v96_v31 = vmul.f32 %v32_v29, %v32_v29  ;;  %v3651_v32 = vld [vmem:[%s7293_s1 + $0x88] sm:$0xff]  ;;  %v3656_v33 = vld [vmem:[%s7293_s1 + $0x80] sm:$0xff]  ;;  %v3665_v36 = vld [vmem:[%s7293_s1 + $0x98] sm:$0xff] }
  0x16   :  { %120 = vadd.xlane.f32.xlu1 %v85_v6  ;;  %116 = vadd.xlane.f32.xlu0 %v83_v7  ;;  %7676 = vst [vmem:[#allocation9_spill] sm:$0xff] %v3651_v32  ;;  %v99_v34 = vmul.f32 %v3651_v32, %v3651_v32  ;;  %v98_v35 = vmul.f32 %v3656_v33, %v3656_v33  ;;  %7677 = vst [vmem:[#allocation10_spill] sm:$0xff] %v3665_v36  ;;  %v3670_v37 = vld [vmem:[%s7293_s1 + $0x90] sm:$0xff]  ;;  %v3679_v40 = vld [vmem:[%s7293_s1 + $0xa8] sm:$0xff] }
  0x17   :  { %7678 = vst [vmem:[#allocation11_spill] sm:$0xff] %v3670_v37  ;;  %v101_v38 = vmul.f32 %v3665_v36, %v3665_v36  ;;  %v100_v39 = vmul.f32 %v3670_v37, %v3670_v37  ;;  %7679 = vst [vmem:[#allocation12_spill] sm:$0xff] %v3679_v40  ;;  %v3684_v41 = vld [vmem:[%s7293_s1 + $0xa0] sm:$0xff]  ;;  %v103_v42 = vmul.f32 %v3679_v40, %v3679_v40  ;;  %v3693_v44 = vld [vmem:[%s7293_s1 + $0xb8] sm:$0xff] }
  0x18   :  { %7680 = vst [vmem:[#allocation13_spill] sm:$0xff] %v3684_v41  ;;  %v102_v43 = vmul.f32 %v3684_v41, %v3684_v41  ;;  %7681 = vst [vmem:[#allocation14_spill] sm:$0xff] %v3693_v44  ;;  %v3698_v45 = vld [vmem:[%s7293_s1 + $0xb0] sm:$0xff]  ;;  %v105_v46 = vmul.f32 %v3693_v44, %v3693_v44  ;;  %v3707_v48 = vld [vmem:[%s7293_s1 + $0xc8] sm:$0xff] }
  0x19   :  { %7682 = vst [vmem:[#allocation15_spill] sm:$0xff] %v3698_v45  ;;  %v104_v47 = vmul.f32 %v3698_v45, %v3698_v45  ;;  %7683 = vst [vmem:[#allocation16_spill] sm:$0xff] %v3707_v48  ;;  %v3712_v49 = vld [vmem:[%s7293_s1 + $0xc0] sm:$0xff]  ;;  %v107_v50 = vmul.f32 %v3707_v48, %v3707_v48  ;;  %v45_v52 = vld [vmem:[%s7293_s1 + $0xd8] sm:$0xff] }
  0x1a   :  { %124 = vadd.xlane.f32.xlu1 %v87_v10  ;;  %122 = vadd.xlane.f32.xlu0 %v86_v11  ;;  %7684 = vst [vmem:[#allocation17_spill] sm:$0xff] %v3712_v49  ;;  %v106_v51 = vmul.f32 %v3712_v49, %v3712_v49  ;;  %v44_v53 = vld [vmem:[%s7293_s1 + $0xd0] sm:$0xff]  ;;  %v109_v54 = vmul.f32 %v45_v52, %v45_v52  ;;  %v47_v56 = vld [vmem:[%s7293_s1 + $0xe8] sm:$0xff]  ;;  %v46_v57 = vld [vmem:[%s7293_s1 + $0xe0] sm:$0xff] }
  0x1b   :  { %v108_v55 = vmul.f32 %v44_v53, %v44_v53  ;;  %v111_v58 = vmul.f32 %v47_v56, %v47_v56  ;;  %v110_v59 = vmul.f32 %v46_v57, %v46_v57  ;;  %v49_v60 = vld [vmem:[%s7293_s1 + $0xf8] sm:$0xff]  ;;  %v48_v61 = vld [vmem:[%s7293_s1 + $0xf0] sm:$0xff]  ;;  %v3739_v3 = vld [vmem:[%s7294_s2 + $0x8] sm:$0xff] }
  0x1c   :  { %v113_v62 = vmul.f32 %v49_v60, %v49_v60  ;;  %v112_v63 = vmul.f32 %v48_v61, %v48_v61  ;;  %7685 = vst [vmem:[#allocation18_spill] sm:$0xff] %v3739_v3  ;;  %v3744_v4 = vld [vmem:[%s7294_s2] sm:$0xff]  ;;  %v275_v6 = vmul.f32 %v3739_v3, %v3739_v3  ;;  %v3753_v8 = vld [vmem:[%s7294_s2 + $0x18] sm:$0xff]  ;;  %v3758_v10 = vld [vmem:[%s7294_s2 + $0x10] sm:$0xff] }
  0x1d   :  { %7686 = vst [vmem:[#allocation19_spill] sm:$0xff] %v3744_v4  ;;  %v274_v7 = vmul.f32 %v3744_v4, %v3744_v4  ;;  %7687 = vst [vmem:[#allocation20_spill] sm:$0xff] %v3753_v8  ;;  %v277_v11 = vmul.f32 %v3753_v8, %v3753_v8  ;;  %v276_v12 = vmul.f32 %v3758_v10, %v3758_v10  ;;  %v3767_v13 = vld [vmem:[%s7294_s2 + $0x28] sm:$0xff]  ;;  %v3781_v17 = vld [vmem:[%s7294_s2 + $0x38] sm:$0xff] }
  0x1e   :  { %128 = vadd.xlane.f32.xlu1 %v89_v14  ;;  %126 = vadd.xlane.f32.xlu0 %v88_v15  ;;  %7688 = vst [vmem:[#allocation21_spill] sm:$0xff] %v3758_v10  ;;  %v3772_v14 = vld [vmem:[%s7294_s2 + $0x20] sm:$0xff]  ;;  %v279_v15 = vmul.f32 %v3767_v13, %v3767_v13  ;;  %v3795_v21 = vld [vmem:[%s7294_s2 + $0x48] sm:$0xff]  ;;  %v3809_v25 = vld [vmem:[%s7294_s2 + $0x58] sm:$0xff] }
  0x1f   :  { %v278_v16 = vmul.f32 %v3772_v14, %v3772_v14  ;;  %v3823_v29 = vld [vmem:[%s7294_s2 + $0x68] sm:$0xff]  ;;  %v3870_v52 = vld [vmem:[%s7294_s2 + $0x90] sm:$0xff]  ;;  %v3884_v56 = vld [vmem:[%s7294_s2 + $0xa0] sm:$0xff] }
  0x20   :  { %7692 = vst [vmem:[#allocation25_spill] sm:$0xff] %v3870_v52  ;;  %v3898_v60 = vld [vmem:[%s7294_s2 + $0xb0] sm:$0xff] }
  0x22   :  { %132 = vadd.xlane.f32.xlu1 %v91_v18  ;;  %130 = vadd.xlane.f32.xlu0 %v90_v19  ;;  %v3786_v18 = vld [vmem:[%s7294_s2 + $0x30] sm:$0xff]  ;;  %v281_v19 = vmul.f32 %v3781_v17, %v3781_v17 }
  0x23   :  { %v280_v20 = vmul.f32 %v3786_v18, %v3786_v18 }
  0x26   :  { %136 = vadd.xlane.f32.xlu1 %v93_v22  ;;  %134 = vadd.xlane.f32.xlu0 %v92_v23  ;;  %v3800_v22 = vld [vmem:[%s7294_s2 + $0x40] sm:$0xff]  ;;  %v283_v23 = vmul.f32 %v3795_v21, %v3795_v21 }
  0x27   :  { %v282_v24 = vmul.f32 %v3800_v22, %v3800_v22 }
  0x2a   :  { %140 = vadd.xlane.f32.xlu1 %v95_v26  ;;  %138 = vadd.xlane.f32.xlu0 %v94_v27  ;;  %v3814_v26 = vld [vmem:[%s7294_s2 + $0x50] sm:$0xff]  ;;  %v285_v27 = vmul.f32 %v3809_v25, %v3809_v25 }
  0x2b   :  { %v284_v28 = vmul.f32 %v3814_v26, %v3814_v26 }
  0x2e   :  { %144 = vadd.xlane.f32.xlu1 %v97_v30  ;;  %142 = vadd.xlane.f32.xlu0 %v96_v31  ;;  %v3828_v30 = vld [vmem:[%s7294_s2 + $0x60] sm:$0xff]  ;;  %v287_v31 = vmul.f32 %v3823_v29, %v3823_v29 }
  0x32   :  { %148 = vadd.xlane.f32.xlu1 %v99_v34  ;;  %146 = vadd.xlane.f32.xlu0 %v98_v35  ;;  %v286_v34 = vmul.f32 %v3828_v30, %v3828_v30  ;;  %v3837_v35 = vld [vmem:[%s7294_s2 + $0x78] sm:$0xff] }
  0x36   :  { %152 = vadd.xlane.f32.xlu1 %v101_v38  ;;  %150 = vadd.xlane.f32.xlu0 %v100_v39  ;;  %v3842_v38 = vld [vmem:[%s7294_s2 + $0x70] sm:$0xff]  ;;  %v289_v39 = vmul.f32 %v3837_v35, %v3837_v35 }
  0x3a   :  { %156 = vadd.xlane.f32.xlu1 %v103_v42  ;;  %154 = vadd.xlane.f32.xlu0 %v102_v43  ;;  %v288_v42 = vmul.f32 %v3842_v38, %v3842_v38  ;;  %v3851_v43 = vld [vmem:[%s7294_s2 + $0x88] sm:$0xff] }
  0x3b   :  { %7689 = vst [vmem:[#allocation22_spill] sm:$0xff] %v3851_v43 }
  0x3e   :  { %160 = vadd.xlane.f32.xlu1 %v105_v46  ;;  %158 = vadd.xlane.f32.xlu0 %v104_v47  ;;  %v3856_v46 = vld [vmem:[%s7294_s2 + $0x80] sm:$0xff]  ;;  %v291_v47 = vmul.f32 %v3851_v43, %v3851_v43 }
  0x3f   :  { %7690 = vst [vmem:[#allocation23_spill] sm:$0xff] %v3856_v46 }
  0x42   :  { %164 = vadd.xlane.f32.xlu1 %v107_v50  ;;  %162 = vadd.xlane.f32.xlu0 %v106_v51  ;;  %v290_v50 = vmul.f32 %v3856_v46, %v3856_v46  ;;  %v3865_v51 = vld [vmem:[%s7294_s2 + $0x98] sm:$0xff] }
  0x43   :  { %7691 = vst [vmem:[#allocation24_spill] sm:$0xff] %v3865_v51  ;;  %v293_v53 = vmul.f32 %v3865_v51, %v3865_v51 }
  0x46   :  { %168 = vadd.xlane.f32.xlu1 %v109_v54  ;;  %166 = vadd.xlane.f32.xlu0 %v108_v55  ;;  %v292_v54 = vmul.f32 %v3870_v52, %v3870_v52  ;;  %v3879_v55 = vld [vmem:[%s7294_s2 + $0xa8] sm:$0xff] }
  0x47   :  { %v295_v57 = vmul.f32 %v3879_v55, %v3879_v55 }
  0x4a   :  { %172 = vadd.xlane.f32.xlu1 %v111_v58  ;;  %170 = vadd.xlane.f32.xlu0 %v110_v59  ;;  %v294_v58 = vmul.f32 %v3884_v56, %v3884_v56  ;;  %v3893_v59 = vld [vmem:[%s7294_s2 + $0xf8] sm:$0xff] }
  0x4b   :  { %v305_v61 = vmul.f32 %v3893_v59, %v3893_v59 }
  0x4e   :  { %176 = vadd.xlane.f32.xlu1 %v113_v62  ;;  %174 = vadd.xlane.f32.xlu0 %v112_v63  ;;  %v296_v62 = vmul.f32 %v3898_v60, %v3898_v60  ;;  %v3907_v63 = vld [vmem:[%s7294_s2 + $0xf0] sm:$0xff] }
  0x52   :  { %308 = vadd.xlane.f32.xlu1 %v275_v6  ;;  %306 = vadd.xlane.f32.xlu0 %v274_v7  ;;  %v3912_v6 = vld [vmem:[%s7294_s2 + $0xb8] sm:$0xff]  ;;  %v304_v7 = vmul.f32 %v3907_v63, %v3907_v63 }
  0x56   :  { %312 = vadd.xlane.f32.xlu1 %v277_v11  ;;  %310 = vadd.xlane.f32.xlu0 %v276_v12  ;;  %v297_v11 = vmul.f32 %v3912_v6, %v3912_v6  ;;  %v3921_v12 = vld [vmem:[%s7294_s2 + $0xe8] sm:$0xff] }
  0x5a   :  { %316 = vadd.xlane.f32.xlu1 %v279_v15  ;;  %314 = vadd.xlane.f32.xlu0 %v278_v16  ;;  %v3926_v15 = vld [vmem:[%s7294_s2 + $0xc0] sm:$0xff]  ;;  %v303_v16 = vmul.f32 %v3921_v12, %v3921_v12 }
  0x5e   :  { %320 = vadd.xlane.f32.xlu1 %v281_v19  ;;  %318 = vadd.xlane.f32.xlu0 %v280_v20  ;;  %v298_v19 = vmul.f32 %v3926_v15, %v3926_v15  ;;  %v3935_v20 = vld [vmem:[%s7294_s2 + $0xe0] sm:$0xff] }
  0x62   :  { %324 = vadd.xlane.f32.xlu1 %v283_v23  ;;  %322 = vadd.xlane.f32.xlu0 %v282_v24  ;;  %v3940_v23 = vld [vmem:[%s7294_s2 + $0xc8] sm:$0xff]  ;;  %v302_v24 = vmul.f32 %v3935_v20, %v3935_v20 }
  0x66   :  { %328 = vadd.xlane.f32.xlu1 %v285_v27  ;;  %326 = vadd.xlane.f32.xlu0 %v284_v28  ;;  %v299_v27 = vmul.f32 %v3940_v23, %v3940_v23  ;;  %v3949_v28 = vld [vmem:[%s7294_s2 + $0xd8] sm:$0xff] }
  0x6a   :  { %332 = vadd.xlane.f32.xlu1 %v287_v31  ;;  %330 = vadd.xlane.f32.xlu0 %v286_v34  ;;  %v3954_v31 = vld [vmem:[%s7294_s2 + $0xd0] sm:$0xff]  ;;  %v301_v34 = vmul.f32 %v3949_v28, %v3949_v28 }
  0x6e   :  { %336 = vadd.xlane.f32.xlu1 %v289_v39  ;;  %334 = vadd.xlane.f32.xlu0 %v288_v42  ;;  %v300_v39 = vmul.f32 %v3954_v31, %v3954_v31 }
  0x72   :  { %340 = vadd.xlane.f32.xlu1 %v291_v47  ;;  %338 = vadd.xlane.f32.xlu0 %v290_v50 }
  0x76   :  { %344 = vadd.xlane.f32.xlu1 %v293_v53  ;;  %342 = vadd.xlane.f32.xlu0 %v292_v54 }
  0x7a   :  { %348 = vadd.xlane.f32.xlu1 %v295_v57  ;;  %346 = vadd.xlane.f32.xlu0 %v294_v58 }
  0x7e   :  { %368 = vadd.xlane.f32.xlu1 %v305_v61  ;;  %350 = vadd.xlane.f32.xlu0 %v296_v62 }
  0x82   :  { %366 = vadd.xlane.f32.xlu1 %v304_v7  ;;  %352 = vadd.xlane.f32.xlu0 %v297_v11 }
  0x86   :  { %364 = vadd.xlane.f32.xlu1 %v303_v16  ;;  %354 = vadd.xlane.f32.xlu0 %v298_v19 }
  0x8a   :  { %362 = vadd.xlane.f32.xlu1 %v302_v24  ;;  %356 = vadd.xlane.f32.xlu0 %v299_v27 }
  0x8e   :  { %360 = vadd.xlane.f32.xlu1 %v301_v34  ;;  %358 = vadd.xlane.f32.xlu0 %v300_v39 }
  0x9b   :  { %v3960_v42 = vpop.xlane.xlu1 %118  ;;  %v115_v47 = vpop.xlane.xlu0 %114 }
  0x9c   :  { %7693 = vst [vmem:[#allocation26_spill] sm:$0xff] %v3960_v42  ;;  %v178_v50 = vmax.f32 %v115_v47, 1e-08 }
  0x9e   :  { %3141 = vrsqrt.f32 %v178_v50 }
  0x9f   :  { %v3962_v53 = vpop.xlane.xlu1 %120  ;;  %v3964_v54 = vpop.xlane.xlu0 %116 }
  0xa0   :  { %7694 = vst [vmem:[#allocation27_spill] sm:$0xff] %v3962_v53 }
  0xa3   :  { %v3966_v57 = vpop.xlane.xlu1 %124  ;;  %v3968_v58 = vpop.xlane.xlu0 %122 }
  0xa4   :  { %7695 = vst [vmem:[#allocation28_spill] sm:$0xff] %v3966_v57  ;;  %7696 = vst [vmem:[#allocation29_spill] sm:$0xff] %v3968_v58 }
  0xa7   :  { %v3970_v61 = vpop.xlane.xlu1 %128  ;;  %v3972_v62 = vpop.xlane.xlu0 %126 }
  0xa8   :  { %7697 = vst [vmem:[#allocation30_spill] sm:$0xff] %v3970_v61  ;;  %7698 = vst [vmem:[#allocation31_spill] sm:$0xff] %v3972_v62 }
  0xab   :  { %v3974_v7 = vpop.xlane.xlu1 %132  ;;  %v3976_v11 = vpop.xlane.xlu0 %130 }
  0xac   :  { %7699 = vst [vmem:[#allocation32_spill] sm:$0xff] %v3974_v7  ;;  %7700 = vst [vmem:[#allocation33_spill] sm:$0xff] %v3976_v11  ;;  %v3142_v16 = vpop.eup %3141 }
  0xad   :  { %v3979_v19 = vmul.f32 %v3142_v16, %v3593_v2 }
  0xaf   :  { %7701 = vst [vmem:[#allocation34_spill] sm:$0xff] %v3979_v19  ;;  %v3981_v24 = vpop.xlane.xlu1 %136  ;;  %3044 = vmatprep.mubr.f32.mxu0 %v3979_v19  ;;  %v3984_v27 = vpop.xlane.xlu0 %134 }
  0xb0   :  { %7702 = vst [vmem:[#allocation35_spill] sm:$0xff] %v3981_v24  ;;  %7703 = vst [vmem:[#allocation36_spill] sm:$0xff] %v3984_v27 }
  0xb3   :  { %v3986_v34 = vpop.xlane.xlu1 %140  ;;  %v3988_v39 = vpop.xlane.xlu0 %138 }
  0xb4   :  { %7704 = vst [vmem:[#allocation37_spill] sm:$0xff] %v3986_v34  ;;  %7705 = vst [vmem:[#allocation38_spill] sm:$0xff] %v3988_v39 }
  0xb7   :  { %v3990_v47 = vpop.xlane.xlu1 %144  ;;  %v3992_v50 = vpop.xlane.xlu0 %142 }
  0xb8   :  { %7706 = vst [vmem:[#allocation39_spill] sm:$0xff] %v3990_v47  ;;  %7707 = vst [vmem:[#allocation40_spill] sm:$0xff] %v3992_v50 }
  0xbb   :  { %v3994_v48 = vpop.xlane.xlu1 %148  ;;  %v147_v49 = vpop.xlane.xlu0 %146 }
  0xbc   :  { %v194_v44 = vmax.f32 %v147_v49, 1e-08 }
  0xbe   :  { %3143 = vrsqrt.f32 %v194_v44 }
  0xbf   :  { %v3996_v2 = vpop.xlane.xlu1 %152  ;;  %v3998_v16 = vpop.xlane.xlu0 %150 }
  0xc0   :  { %7708 = vst [vmem:[#allocation41_spill] sm:$0xff] %v3996_v2  ;;  %7709 = vst [vmem:[#allocation42_spill] sm:$0xff] %v3998_v16 }
  0xc3   :  { %v4000_v45 = vpop.xlane.xlu1 %156  ;;  %v4002_v24 = vpop.xlane.xlu0 %154 }
  0xc4   :  { %7710 = vst [vmem:[#allocation43_spill] sm:$0xff] %v4000_v45  ;;  %7711 = vst [vmem:[#allocation44_spill] sm:$0xff] %v4002_v24 }
  0xc7   :  { %v4004_v34 = vpop.xlane.xlu1 %160  ;;  %v4006_v39 = vpop.xlane.xlu0 %158 }
  0xc8   :  { %7712 = vst [vmem:[#allocation45_spill] sm:$0xff] %v4004_v34  ;;  %7713 = vst [vmem:[#allocation46_spill] sm:$0xff] %v4006_v39 }
  0xcb   :  { %v4008_v47 = vpop.xlane.xlu1 %164  ;;  %v4010_v50 = vpop.xlane.xlu0 %162 }
  0xcc   :  { %7714 = vst [vmem:[#allocation47_spill] sm:$0xff] %v4008_v47  ;;  %7715 = vst [vmem:[#allocation48_spill] sm:$0xff] %v4010_v50  ;;  %v3144_v40 = vpop.eup %3143 }
  0xcd   :  { %v4013_v49 = vmul.f32 %v3144_v40, %v3656_v33 }
  0xcf   :  { %7716 = vst [vmem:[#allocation49_spill] sm:$0xff] %v4013_v49  ;;  %v4015_v27 = vpop.xlane.xlu1 %168  ;;  %3076 = vmatprep.mubr.f32.mxu1 %v4013_v49  ;;  %v4018_v44 = vpop.xlane.xlu0 %166 }
  0xd0   :  { %7717 = vst [vmem:[#allocation50_spill] sm:$0xff] %v4015_v27  ;;  %7718 = vst [vmem:[#allocation51_spill] sm:$0xff] %v4018_v44 }
  0xd3   :  { %v4020_v41 = vpop.xlane.xlu1 %172  ;;  %v4022_v9 = vpop.xlane.xlu0 %170 }
  0xd4   :  { %7719 = vst [vmem:[#allocation52_spill] sm:$0xff] %v4020_v41  ;;  %7720 = vst [vmem:[#allocation53_spill] sm:$0xff] %v4022_v9 }
  0xd7   :  { %v4024_v7 = vpop.xlane.xlu1 %176  ;;  %v4026_v36 = vpop.xlane.xlu0 %174 }
  0xd8   :  { %7721 = vst [vmem:[#allocation54_spill] sm:$0xff] %v4024_v7  ;;  %7722 = vst [vmem:[#allocation55_spill] sm:$0xff] %v4026_v36 }
  0xdb   :  { %v4028_v47 = vpop.xlane.xlu1 %308  ;;  %v4030_v1 = vpop.xlane.xlu0 %306 }
  0xdf   :  { %v4032_v33 = vpop.xlane.xlu1 %312  ;;  %v4034_v40 = vpop.xlane.xlu0 %310 }
  0xe3   :  { %v4036_v27 = vpop.xlane.xlu1 %316  ;;  %v4038_v50 = vpop.xlane.xlu0 %314 }
  0xe7   :  { %v4040_v44 = vpop.xlane.xlu1 %320  ;;  %v4042_v41 = vpop.xlane.xlu0 %318 }
  0xeb   :  { %v4044_v9 = vpop.xlane.xlu1 %324  ;;  %v4046_v7 = vpop.xlane.xlu0 %322 }
  0xef   :  { %v329_v36 = vpop.xlane.xlu1 %328  ;;  %v327_v11 = vpop.xlane.xlu0 %326 }
  0xf3   :  { %v333_v37 = vpop.xlane.xlu1 %332  ;;  %v331_v0 = vpop.xlane.xlu0 %330 }
  0xf4   :  { %v383_v10 = vmax.f32 %v333_v37, 1e-08  ;;  %v382_v8 = vmax.f32 %v331_v0, 1e-08 }
  0xf7   :  { %v337_v34 = vpop.xlane.xlu1 %336  ;;  %v335_v61 = vpop.xlane.xlu0 %334 }
  0xf8   :  { %v385_v4 = vmax.f32 %v337_v34, 1e-08  ;;  %v384_v3 = vmax.f32 %v335_v61, 1e-08 }
  0xfa   :  { %3145 = vrsqrt.f32 %v385_v4 }
  0xfb   :  { %v4048_v49 = vpop.xlane.xlu1 %340  ;;  %v4050_v19 = vpop.xlane.xlu0 %338 }
  0xff   :  { %v4052_v32 = vpop.xlane.xlu1 %344  ;;  %v4054_v5 = vpop.xlane.xlu0 %342 }
 0x103   :  { %v4056_v39 = vpop.xlane.xlu1 %348  ;;  %v4058_v62 = vpop.xlane.xlu0 %346 }
 0x107   :  { %v369_v45 = vpop.xlane.xlu1 %368  ;;  %v4060_v57 = vpop.xlane.xlu0 %350 }
 0x108   :  { %v401_v46 = vmax.f32 %v369_v45, 1e-08  ;;  %v381_v45 = vmax.f32 %v329_v36, 1e-08  ;;  %v3146_v4 = vpop.eup %3145 }
 0x10a   :  { %3147 = vrsqrt.f32 %v401_v46 }
 0x10b   :  { %v367_v24 = vpop.xlane.xlu1 %366  ;;  %v4062_v58 = vpop.xlane.xlu0 %352  ;;  %3149 = vrsqrt.f32 %v384_v3 }
 0x10c   :  { %v400_v43 = vmax.f32 %v367_v24, 1e-08 }
 0x10e   :  { %3151 = vrsqrt.f32 %v400_v43  ;;  %v380_v43 = vmax.f32 %v327_v11, 1e-08 }
 0x10f   :  { %v365_v2 = vpop.xlane.xlu1 %364  ;;  %v355_v53 = vpop.xlane.xlu0 %354  ;;  %3153 = vrsqrt.f32 %v383_v10  ;;  %v449_v10 = vmul.f32 %v3146_v4, %v3837_v35 }
 0x110   :  { %v399_v52 = vmax.f32 %v365_v2, 1e-08  ;;  %v394_v11 = vmax.f32 %v355_v53, 1e-08 }
 0x112   :  { %3155 = vrsqrt.f32 %v399_v52 }
 0x113   :  { %v363_v34 = vpop.xlane.xlu1 %362  ;;  %v357_v16 = vpop.xlane.xlu0 %356  ;;  %3157 = vrsqrt.f32 %v382_v8 }
 0x114   :  { %v398_v42 = vmax.f32 %v363_v34, 1e-08  ;;  %v395_v52 = vmax.f32 %v357_v16, 1e-08  ;;  %v378_v16 = vmax.f32 %v4046_v7, 1e-08 }
 0x115   :  { %v392_v7 = vmax.f32 %v4060_v57, 1e-08 }
 0x116   :  { %3159 = vrsqrt.f32 %v398_v42  ;;  %v379_v42 = vmax.f32 %v4044_v9, 1e-08  ;;  %v393_v9 = vmax.f32 %v4062_v58, 1e-08 }
 0x117   :  { %v3148_v46 = vpop.eup %3147  ;;  %v361_v61 = vpop.xlane.xlu1 %360  ;;  %3161 = vrsqrt.f32 %v381_v45  ;;  %v377_v45 = vmax.f32 %v4040_v44, 1e-08 }
 0x118   :  { %v359_v51 = vpop.xlane.xlu0 %358  ;;  %v397_v24 = vmax.f32 %v361_v61, 1e-08  ;;  %v465_v37 = vmul.f32 %v3148_v46, %v3893_v59  ;;  %v3150_v0 = vpop.eup %3149 }
 0x119   :  { %v396_v3 = vmax.f32 %v359_v51, 1e-08  ;;  %v448_v51 = vmul.f32 %v3150_v0, %v3842_v38 }
 0x11a   :  { %3163 = vrsqrt.f32 %v397_v24  ;;  %3012 = vmatprep.subr.mxu0 %v465_v37  ;;  %3108 = vmatprep.subr.mxu1 %v465_v37  ;;  %v391_v24 = vmax.f32 %v4056_v39, 1e-08 }
 0x11b   :  { %v3152_v36 = vpop.eup %3151  ;;  %3013 = vmatpush3.xpose.msra.mxu0 %v449_v10  ;;  %3124 = vmatpush3.xpose.msra.mxu1 %v449_v10  ;;  %3165 = vrsqrt.f32 %v396_v3  ;;  %v374_v3 = vmax.f32 %v4038_v50, 1e-08  ;;  %v389_v10 = vmax.f32 %v4052_v32, 1e-08 }
 0x11c   :  { %v464_v8 = vmul.f32 %v3152_v36, %v3907_v63  ;;  %3167 = vrsqrt.f32 %v380_v43  ;;  %v3154_v59 = vpop.eup %3153 }
 0x11d   :  { %3169 = vrsqrt.f32 %v395_v52  ;;  %v447_v63 = vmul.f32 %v3154_v59, %v3823_v29 }
 0x11e   :  { %3014 = vmatprep.subr.mxu0 %v464_v8  ;;  %3109 = vmatprep.subr.mxu1 %v464_v8  ;;  %3171 = vrsqrt.f32 %v379_v42  ;;  %v387_v8 = vmax.f32 %v4048_v49, 1e-08 }
 0x11f   :  { %v3156_v35 = vpop.eup %3155  ;;  %3015 = vmatpush3.xpose.msra.mxu0 %v448_v51  ;;  %3125 = vmatpush3.xpose.msra.mxu1 %v448_v51  ;;  %3173 = vrsqrt.f32 %v394_v11 }
 0x120   :  { %v463_v2 = vmul.f32 %v3156_v35, %v3921_v12  ;;  %v3158_v34 = vpop.eup %3157  ;;  %3175 = vrsqrt.f32 %v378_v16 }
 0x121   :  { %v446_v12 = vmul.f32 %v3158_v34, %v3828_v30  ;;  %3177 = vrsqrt.f32 %v393_v9  ;;  %v7726_v9 = vld [vmem:[#allocation20_spill] sm:$0xff] }
 0x122   :  { %3016 = vmatprep.subr.mxu0 %v463_v2  ;;  %3110 = vmatprep.subr.mxu1 %v463_v2  ;;  %3179 = vrsqrt.f32 %v377_v45 }
 0x123   :  { %v3160_v38 = vpop.eup %3159  ;;  %3017 = vmatpush3.xpose.msra.mxu0 %v447_v63  ;;  %3126 = vmatpush3.xpose.msra.mxu1 %v447_v63  ;;  %3181 = vrsqrt.f32 %v392_v7  ;;  %v7724_v63 = vld [vmem:[#allocation26_spill] sm:$0xff]  ;;  %v7729_v7 = vld [vmem:[#allocation41_spill] sm:$0xff] }
 0x124   :  { %v462_v53 = vmul.f32 %v3160_v38, %v3935_v20  ;;  %v3162_v4 = vpop.eup %3161  ;;  %v376_v20 = vmax.f32 %v4042_v41, 1e-08 }
 0x125   :  { %v445_v44 = vmul.f32 %v3162_v4, %v3809_v25  ;;  %v390_v25 = vmax.f32 %v4058_v62, 1e-08 }
 0x126   :  { %3018 = vmatprep.subr.mxu0 %v462_v53  ;;  %3111 = vmatprep.subr.mxu1 %v462_v53  ;;  %3183 = vrsqrt.f32 %v376_v20  ;;  %v7727_v53 = vld [vmem:[#allocation25_spill] sm:$0xff] }
 0x127   :  { %v3164_v29 = vpop.eup %3163  ;;  %3019 = vmatpush3.xpose.msra.mxu0 %v446_v12  ;;  %3127 = vmatpush3.xpose.msra.mxu1 %v446_v12  ;;  %3185 = vrsqrt.f32 %v391_v24  ;;  %v7728_v12 = vld [vmem:[#allocation27_spill] sm:$0xff]  ;;  %v7732_v24 = vld [vmem:[#allocation29_spill] sm:$0xff] }
 0x128   :  { %v3166_v58 = vpop.eup %3165  ;;  %v461_v46 = vmul.f32 %v3164_v29, %v3949_v28  ;;  %v375_v28 = vmax.f32 %v4036_v27, 1e-08  ;;  %v181_v4 = vmax.f32 %v7728_v12, 1e-08  ;;  %v197_v29 = vmax.f32 %v7729_v7, 1e-08 }
 0x129   :  { %v460_v61 = vmul.f32 %v3166_v58, %v3954_v31  ;;  %v3168_v30 = vpop.eup %3167  ;;  %v7730_v58 = vld [vmem:[#allocation21_spill] sm:$0xff]  ;;  %v7755_v12 = vld [vmem:[#allocation8_spill] sm:$0xff] }
 0x12a   :  { %3020 = vmatprep.subr.mxu0 %v461_v46  ;;  %3112 = vmatprep.subr.mxu1 %v461_v46  ;;  %v3170_v57 = vpop.eup %3169  ;;  %v444_v41 = vmul.f32 %v3168_v30, %v3814_v26  ;;  %3187 = vrsqrt.f32 %v375_v28  ;;  %v7733_v28 = vld [vmem:[#allocation44_spill] sm:$0xff]  ;;  %v7756_v7 = vld [vmem:[#allocation13_spill] sm:$0xff] }
 0x12b   :  { %3021 = vmatpush3.xpose.msra.mxu0 %v445_v44  ;;  %3128 = vmatpush3.xpose.msra.mxu1 %v445_v44  ;;  %v3172_v37 = vpop.eup %3171  ;;  %v459_v31 = vmul.f32 %v3170_v57, %v3940_v23  ;;  %3189 = vrsqrt.f32 %v390_v25  ;;  %v373_v23 = vmax.f32 %v4032_v33, 1e-08  ;;  %v7731_v44 = vld [vmem:[#allocation22_spill] sm:$0xff]  ;;  %v182_v57 = vmax.f32 %v7732_v24, 1e-08 }
 0x12c   :  { %3022 = vmatprep.subr.mxu0 %v460_v61  ;;  %3113 = vmatprep.subr.mxu1 %v460_v61  ;;  %v3174_v39 = vpop.eup %3173  ;;  %v443_v43 = vmul.f32 %v3172_v37, %v3795_v21  ;;  %3191 = vrsqrt.f32 %v374_v3  ;;  %v388_v21 = vmax.f32 %v4054_v5, 1e-08  ;;  %v371_v5 = vmax.f32 %v4028_v47, 1e-08  ;;  %v7734_v37 = vld [vmem:[#allocation18_spill] sm:$0xff] }
 0x12d   :  { %v3176_v27 = vpop.eup %3175  ;;  %v458_v26 = vmul.f32 %v3174_v39, %v3926_v15  ;;  %3193 = vrsqrt.f32 %v389_v10  ;;  %v372_v15 = vmax.f32 %v4034_v40, 1e-08  ;;  %v7735_v39 = vld [vmem:[#allocation23_spill] sm:$0xff]  ;;  %v3525_v24 = vld [vmem:[%s7293_s1 + $0x28] sm:$0xff] }
 0x12e   :  { %v3178_v0 = vpop.eup %3177  ;;  %v442_v62 = vmul.f32 %v3176_v27, %v3800_v22  ;;  %3195 = vrsqrt.f32 %v373_v23  ;;  %v7738_v23 = vld [vmem:[#allocation19_spill] sm:$0xff] }
 0x12f   :  { %3023 = vmatpush3.xpose.msra.mxu0 %v444_v41  ;;  %3129 = vmatpush3.xpose.msra.mxu1 %v444_v41  ;;  %v3180_v52 = vpop.eup %3179  ;;  %v457_v50 = vmul.f32 %v3178_v0, %v3912_v6  ;;  %3197 = vrsqrt.f32 %v388_v21  ;;  %v198_v41 = vmax.f32 %v7733_v28, 1e-08  ;;  %v7739_v21 = vld [vmem:[#allocation31_spill] sm:$0xff]  ;;  %v7759_v28 = vld [vmem:[#allocation12_spill] sm:$0xff] }
 0x130   :  { %3024 = vmatprep.subr.mxu0 %v459_v31  ;;  %3114 = vmatprep.subr.mxu1 %v459_v31  ;;  %v3182_v32 = vpop.eup %3181  ;;  %v441_v36 = vmul.f32 %v3180_v52, %v3781_v17  ;;  %3199 = vrsqrt.f32 %v372_v15  ;;  %v386_v17 = vmax.f32 %v4050_v19, 1e-08  ;;  %v179_v19 = vmax.f32 %v3964_v54, 1e-08  ;;  %v7725_v54 = vld [vmem:[#allocation42_spill] sm:$0xff] }
 0x131   :  { %v456_v22 = vmul.f32 %v3182_v32, %v3898_v60  ;;  %3201 = vrsqrt.f32 %v387_v8  ;;  %v370_v60 = vmax.f32 %v4030_v1, 1e-08  ;;  %v7723_v1 = vld [vmem:[#allocation24_spill] sm:$0xff]  ;;  %v196_v34 = vmax.f32 %v7725_v54, 1e-08  ;;  %v7740_v15 = vld [vmem:[#allocation46_spill] sm:$0xff] }
 0x132   :  { %3203 = vrsqrt.f32 %v371_v5  ;;  %v7752_v54 = vld [vmem:[#allocation10_spill] sm:$0xff] }
 0x133   :  { %3025 = vmatpush3.xpose.msra.mxu0 %v443_v43  ;;  %3130 = vmatpush3.xpose.msra.mxu1 %v443_v43  ;;  %v3184_v33 = vpop.eup %3183  ;;  %3205 = vrsqrt.f32 %v386_v17  ;;  %v7736_v43 = vld [vmem:[#allocation28_spill] sm:$0xff]  ;;  %v7745_v17 = vld [vmem:[#allocation30_spill] sm:$0xff] }
 0x134   :  { %3026 = vmatprep.subr.mxu0 %v458_v26  ;;  %3115 = vmatprep.subr.mxu1 %v458_v26  ;;  %v3186_v42 = vpop.eup %3185  ;;  %v440_v6 = vmul.f32 %v3184_v33, %v3786_v18  ;;  %3207 = vrsqrt.f32 %v370_v60  ;;  %v183_v27 = vmax.f32 %v7736_v43, 1e-08  ;;  %v7737_v26 = vld [vmem:[#allocation43_spill] sm:$0xff]  ;;  %v7746_v60 = vld [vmem:[#allocation45_spill] sm:$0xff] }
 0x135   :  { %v455_v40 = vmul.f32 %v3186_v42, %v3879_v55  ;;  %v195_v55 = vmax.f32 %v3994_v48, 1e-08  ;;  %3209 = vrsqrt.f32 %v179_v19  ;;  %v199_v0 = vmax.f32 %v7737_v26, 1e-08  ;;  %v7741_v33 = vld [vmem:[#allocation7_spill] sm:$0xff] }
 0x136   :  { %v7762_v26 = vld [vmem:[#allocation15_spill] sm:$0xff] }
 0x137   :  { %3027 = vmatpush3.xpose.msra.mxu0 %v442_v62  ;;  %3131 = vmatpush3.xpose.msra.mxu1 %v442_v62  ;;  %v3188_v51 = vpop.eup %3187  ;;  %3211 = vrsqrt.f32 %v195_v55 }
 0x138   :  { %3028 = vmatprep.subr.mxu0 %v457_v50  ;;  %3116 = vmatprep.subr.mxu1 %v457_v50  ;;  %v3190_v49 = vpop.eup %3189  ;;  %v439_v59 = vmul.f32 %v3188_v51, %v3767_v13  ;;  %v184_v50 = vmax.f32 %v7739_v21, 1e-08  ;;  %v7744_v51 = vld [vmem:[#allocation49_spill] sm:$0xff] }
 0x139   :  { %v3192_v47 = vpop.eup %3191  ;;  %v454_v18 = vmul.f32 %v3190_v49, %v3884_v56  ;;  %v180_v56 = vmax.f32 %v7724_v63, 1e-08  ;;  %v7751_v63 = vld [vmem:[#allocation6_spill] sm:$0xff] }
 0x13a   :  { %v3194_v11 = vpop.eup %3193  ;;  %v438_v35 = vmul.f32 %v3192_v47, %v3772_v14  ;;  %v7747_v47 = vld [vmem:[#allocation5_spill] sm:$0xff] }
 0x13b   :  { %3029 = vmatpush3.xpose.msra.mxu0 %v441_v36  ;;  %3132 = vmatpush3.xpose.msra.mxu1 %v441_v36  ;;  %v3196_v2 = vpop.eup %3195  ;;  %v453_v16 = vmul.f32 %v3194_v11, %v7723_v1  ;;  %3213 = vrsqrt.f32 %v180_v56  ;;  %v200_v36 = vmax.f32 %v7740_v15, 1e-08  ;;  %v7748_v11 = vld [vmem:[#allocation11_spill] sm:$0xff]  ;;  %v3527_v15 = vld [vmem:[%s7293_s1 + $0x38] sm:$0xff] }
 0x13c   :  { %3030 = vmatprep.subr.mxu0 %v456_v22  ;;  %3117 = vmatprep.subr.mxu1 %v456_v22  ;;  %v3198_v13 = vpop.eup %3197  ;;  %v437_v38 = vmul.f32 %v3196_v2, %v7726_v9  ;;  %3215 = vrsqrt.f32 %v196_v34  ;;  %v7742_v22 = vld [vmem:[#allocation9_spill] sm:$0xff] }
 0x13d   :  { %v3200_v48 = vpop.eup %3199  ;;  %v452_v45 = vmul.f32 %v3198_v13, %v7727_v53  ;;  %3217 = vrsqrt.f32 %v181_v4 }
 0x13e   :  { %v3202_v14 = vpop.eup %3201  ;;  %v436_v46 = vmul.f32 %v3200_v48, %v7730_v58  ;;  %3219 = vrsqrt.f32 %v197_v29 }
 0x13f   :  { %3031 = vmatpush3.xpose.msra.mxu0 %v440_v6  ;;  %3133 = vmatpush3.xpose.msra.mxu1 %v440_v6  ;;  %v3204_v20 = vpop.eup %3203  ;;  %v451_v61 = vmul.f32 %v3202_v14, %v7731_v44  ;;  %3221 = vrsqrt.f32 %v182_v57  ;;  %v7743_v6 = vld [vmem:[#allocation34_spill] sm:$0xff] }
 0x140   :  { %3032 = vmatprep.subr.mxu0 %v455_v40  ;;  %3118 = vmatprep.subr.mxu1 %v455_v40  ;;  %v3206_v30 = vpop.eup %3205  ;;  %v435_v25 = vmul.f32 %v3204_v20, %v7734_v37  ;;  %3223 = vrsqrt.f32 %v198_v41  ;;  %v185_v40 = vmax.f32 %v7745_v17, 1e-08 }
 0x141   :  { %v3208_v31 = vpop.eup %3207  ;;  %v450_v3 = vmul.f32 %v3206_v30, %v7735_v39  ;;  %3225 = vrsqrt.f32 %v183_v27  ;;  %v3526_v27 = vld [vmem:[%s7293_s1 + $0x30] sm:$0xff] }
 0x142   :  { %v3210_v10 = vpop.eup %3209  ;;  %v434_v62 = vmul.f32 %v3208_v31, %v7738_v23  ;;  %3227 = vrsqrt.f32 %v199_v0 }
 0x143   :  { %3033 = vmatpush3.xpose.msra.mxu0 %v439_v59  ;;  %3134 = vmatpush3.xpose.msra.mxu1 %v439_v59  ;;  %v243_v8 = vmul.f32 %v3210_v10, %v7741_v33  ;;  %3229 = vrsqrt.f32 %v184_v50  ;;  %v201_v59 = vmax.f32 %v7746_v60, 1e-08  ;;  %v7764_v50 = vld [vmem:[#allocation53_spill] sm:$0xff]  ;;  %v7765_v33 = vld [vmem:[#allocation14_spill] sm:$0xff] }
 0x144   :  { %3034 = vmatprep.subr.mxu0 %v454_v18  ;;  %3119 = vmatprep.subr.mxu1 %v454_v18  ;;  %v3212_v52 = vpop.eup %3211  ;;  %3231 = vrsqrt.f32 %v200_v36  ;;  %v7768_v60 = vld [vmem:[#allocation17_spill] sm:$0xff] }
 0x145   :  { %v259_v42 = vmul.f32 %v3212_v52, %v7742_v22  ;;  %3233 = vrsqrt.f32 %v185_v40  ;;  %v3528_v40 = vld [vmem:[%s7293_s1 + $0x40] sm:$0xff] }
 0x146   :  { %3235 = vrsqrt.f32 %v201_v59 }
 0x147   :  { %3035 = vmatpush3.xpose.msra.mxu0 %v438_v35  ;;  %3135 = vmatpush3.xpose.msra.mxu1 %v438_v35  ;;  %v7749_v35 = vld [vmem:[#allocation33_spill] sm:$0xff] }
 0x148   :  { %3036 = vmatprep.subr.mxu0 %v453_v16  ;;  %3120 = vmatprep.subr.mxu1 %v453_v16  ;;  %v3214_v32 = vpop.eup %3213  ;;  %v186_v2 = vmax.f32 %v7749_v35, 1e-08  ;;  %v7750_v16 = vld [vmem:[#allocation48_spill] sm:$0xff] }
 0x149   :  { %v3216_v5 = vpop.eup %3215  ;;  %v244_v18 = vmul.f32 %v3214_v32, %v7747_v47  ;;  %v202_v13 = vmax.f32 %v7750_v16, 1e-08  ;;  %v206_v32 = vmax.f32 %v7764_v50, 1e-08  ;;  %v7771_v16 = vld [vmem:[#allocation16_spill] sm:$0xff] }
 0x14a   :  { %v3218_v49 = vpop.eup %3217  ;;  %v260_v19 = vmul.f32 %v3216_v5, %v7748_v11  ;;  %3237 = vrsqrt.f32 %v186_v2  ;;  %v3529_v2 = vld [vmem:[%s7293_s1 + $0x48] sm:$0xff] }
 0x14b   :  { %3037 = vmatpush3.xpose.msra.mxu0 %v437_v38  ;;  %3136 = vmatpush3.xpose.msra.mxu1 %v437_v38  ;;  %v3220_v55 = vpop.eup %3219  ;;  %v245_v56 = vmul.f32 %v3218_v49, %v7751_v63  ;;  %v7753_v38 = vld [vmem:[#allocation32_spill] sm:$0xff]  ;;  %3239 = vrsqrt.f32 %v202_v13 }
 0x14c   :  { %3038 = vmatprep.subr.mxu0 %v452_v45  ;;  %3121 = vmatprep.subr.mxu1 %v452_v45  ;;  %v3222_v1 = vpop.eup %3221  ;;  %v261_v34 = vmul.f32 %v3220_v55, %v7752_v54  ;;  %v187_v48 = vmax.f32 %v7753_v38, 1e-08  ;;  %v7754_v45 = vld [vmem:[#allocation47_spill] sm:$0xff] }
 0x14d   :  { %v3224_v9 = vpop.eup %3223  ;;  %v203_v14 = vmax.f32 %v7754_v45, 1e-08  ;;  %v246_v4 = vmul.f32 %v3222_v1, %v7755_v12  ;;  %v7770_v55 = vld [vmem:[#allocation55_spill] sm:$0xff] }
 0x14e   :  { %v3226_v53 = vpop.eup %3225  ;;  %v262_v29 = vmul.f32 %v3224_v9, %v7756_v7  ;;  %3241 = vrsqrt.f32 %v187_v48  ;;  %v208_v35 = vmax.f32 %v7770_v55, 1e-08  ;;  %v7773_v9 = vld [vmem:[#allocation54_spill] sm:$0xff]  ;;  %v3530_v48 = vld [vmem:[%s7293_s1 + $0x50] sm:$0xff]  ;;  %v3532_v7 = vld [vmem:[%s7293_s1 + $0x58] sm:$0xff] }
 0x14f   :  { %3039 = vmatpush3.xpose.msra.mxu0 %v436_v46  ;;  %3137 = vmatpush3.xpose.msra.mxu1 %v436_v46  ;;  %v3228_v58 = vpop.eup %3227  ;;  %v7757_v46 = vld [vmem:[#allocation36_spill] sm:$0xff]  ;;  %3243 = vrsqrt.f32 %v203_v14  ;;  %v247_v57 = vmul.f32 %v3525_v24, %v3226_v53  ;;  %v209_v38 = vmax.f32 %v7773_v9, 1e-08  ;;  %v3531_v45 = vld [vmem:[%s7293_s1 + $0xd0] sm:$0xff]  ;;  %v3535_v24 = vld [vmem:[%s7293_s1 + $0xe0] sm:$0xff] }
 0x150   :  { %3040 = vmatprep.subr.mxu0 %v451_v61  ;;  %3122 = vmatprep.subr.mxu1 %v451_v61  ;;  %v188_v20 = vmax.f32 %v7757_v46, 1e-08  ;;  %v3230_v44 = vpop.eup %3229  ;;  %v7758_v61 = vld [vmem:[#allocation51_spill] sm:$0xff]  ;;  %v263_v41 = vmul.f32 %v3228_v58, %v7759_v28  ;;  %v3533_v58 = vld [vmem:[%s7293_s1 + $0xd8] sm:$0xff] }
 0x151   :  { %v204_v30 = vmax.f32 %v7758_v61, 1e-08  ;;  %v3232_v37 = vpop.eup %3231  ;;  %v248_v10 = vmul.f32 %v3526_v27, %v3230_v44  ;;  %v3534_v61 = vld [vmem:[%s7293_s1 + $0x60] sm:$0xff]  ;;  %v3538_v27 = vld [vmem:[%s7293_s1 + $0x70] sm:$0xff] }
 0x152   :  { %3245 = vrsqrt.f32 %v188_v20  ;;  %v3234_v39 = vpop.eup %3233  ;;  %v264_v0 = vmul.f32 %v3232_v37, %v7762_v26  ;;  %v3536_v37 = vld [vmem:[%s7293_s1 + $0x68] sm:$0xff]  ;;  %v3539_v26 = vld [vmem:[%s7293_s1 + $0xf0] sm:$0xff] }
 0x153   :  { %3041 = vmatpush3.xpose.msra.mxu0 %v435_v25  ;;  %3138 = vmatpush3.xpose.msra.mxu1 %v435_v25  ;;  %v7760_v25 = vld [vmem:[#allocation35_spill] sm:$0xff]  ;;  %3247 = vrsqrt.f32 %v204_v30  ;;  %v3236_v23 = vpop.eup %3235  ;;  %v249_v36 = vmul.f32 %v3527_v15, %v3234_v39 }
 0x154   :  { %3042 = vmatprep.subr.mxu0 %v450_v3  ;;  %3123 = vmatprep.subr.mxu1 %v450_v3  ;;  %v189_v31 = vmax.f32 %v7760_v25, 1e-08  ;;  %v7761_v3 = vld [vmem:[#allocation50_spill] sm:$0xff] }
 0x155   :  { %v205_v43 = vmax.f32 %v7761_v3, 1e-08 }
 0x156   :  { %3249 = vrsqrt.f32 %v189_v31  ;;  %v3537_v31 = vld [vmem:[%s7293_s1 + $0xe8] sm:$0xff] }
 0x157   :  { %3043 = vmatpush3.xpose.msra.mxu0 %v434_v62  ;;  %3139 = vmatpush3.xpose.msra.mxu1 %v434_v62  ;;  %v7763_v62 = vld [vmem:[#allocation38_spill] sm:$0xff]  ;;  %v3238_v21 = vpop.eup %3237  ;;  %3251 = vrsqrt.f32 %v205_v43 }
 0x158   :  { %v190_v52 = vmax.f32 %v7763_v62, 1e-08  ;;  %v3240_v22 = vpop.eup %3239  ;;  %v250_v49 = vmul.f32 %v3528_v40, %v3238_v21  ;;  %v3540_v62 = vld [vmem:[%s7293_s1 + $0x78] sm:$0xff] }
 0x159   :  { %v266_v59 = vmul.f32 %v3240_v22, %v7768_v60  ;;  %v3541_v21 = vld [vmem:[%s7293_s1 + $0xf8] sm:$0xff] }
 0x15a   :  { %3045 = vmatmul.mubr.f32.vlgmr.msra.gmra.mxu0 %v7743_v6  ;;  %3077 = vmatmul.mubr.f32.vlgmr.msra.gmra.mxu1 %v7744_v51  ;;  %3253 = vrsqrt.f32 %v190_v52  ;;  %v7767_v51 = vld [vmem:[#allocation52_spill] sm:$0xff] }
 0x15b   :  { %3046 = vmatprep.mubr.f32.mxu0 %v243_v8  ;;  %3078 = vmatprep.mubr.f32.mxu1 %v259_v42  ;;  %v3242_v6 = vpop.eup %3241  ;;  %v207_v17 = vmax.f32 %v7767_v51, 1e-08  ;;  %3255 = vrsqrt.f32 %v206_v32  ;;  %v787_v32 = vlaneseq }
 0x15c   :  { %v3244_v47 = vpop.eup %3243  ;;  %v251_v1 = vmul.f32 %v3529_v2, %v3242_v6 }
 0x15d   :  { %v267_v13 = vmul.f32 %v3244_v47, %v7771_v16  ;;  %v4210_v15 = vand.u32 127, %v787_v32 }
 0x15e   :  { %3047 = vmatmul.mubr.f32.gmra.mxu0 %v243_v8  ;;  %3079 = vmatmul.mubr.f32.gmra.mxu1 %v259_v42  ;;  %v265_v8 = vmul.f32 %v3236_v23, %v7765_v33  ;;  %v7766_v42 = vld [vmem:[#allocation37_spill] sm:$0xff] }
 0x15f   :  { %3048 = vmatprep.mubr.f32.mxu0 %v244_v18  ;;  %3080 = vmatprep.mubr.f32.mxu1 %v260_v19  ;;  %v191_v5 = vmax.f32 %v7766_v42, 1e-08  ;;  %7774 = vst [vmem:[#allocation24_spill] sm:$0xff] %v4210_v15 }
 0x161   :  { %3257 = vrsqrt.f32 %v191_v5 }
 0x162   :  { %3049 = vmatmul.mubr.f32.gmra.mxu0 %v244_v18  ;;  %3081 = vmatmul.mubr.f32.gmra.mxu1 %v260_v19  ;;  %v7769_v18 = vld [vmem:[#allocation40_spill] sm:$0xff]  ;;  %v3246_v19 = vpop.eup %3245  ;;  %3259 = vrsqrt.f32 %v207_v17 }
 0x163   :  { %3050 = vmatprep.mubr.f32.mxu0 %v245_v56  ;;  %3082 = vmatprep.mubr.f32.mxu1 %v261_v34  ;;  %v192_v11 = vmax.f32 %v7769_v18, 1e-08  ;;  %v3248_v63 = vpop.eup %3247  ;;  %v252_v53 = vmul.f32 %v3530_v48, %v3246_v19 }
 0x164   :  { %v268_v14 = vmul.f32 %v3531_v45, %v3248_v63 }
 0x165   :  { %3261 = vrsqrt.f32 %v192_v11 }
 0x166   :  { %3051 = vmatmul.mubr.f32.gmra.mxu0 %v245_v56  ;;  %3083 = vmatmul.mubr.f32.gmra.mxu1 %v261_v34  ;;  %v7772_v56 = vld [vmem:[#allocation39_spill] sm:$0xff]  ;;  %v3250_v34 = vpop.eup %3249  ;;  %3263 = vrsqrt.f32 %v208_v35 }
 0x167   :  { %3052 = vmatprep.mubr.f32.mxu0 %v246_v4  ;;  %3084 = vmatprep.mubr.f32.mxu1 %v262_v29  ;;  %v193_v54 = vmax.f32 %v7772_v56, 1e-08  ;;  %v3252_v12 = vpop.eup %3251 }
 0x168   :  { %v269_v46 = vmul.f32 %v3533_v58, %v3252_v12 }
 0x169   :  { %3265 = vrsqrt.f32 %v193_v54 }
 0x16a   :  { %3053 = vmatmul.mubr.f32.gmra.mxu0 %v246_v4  ;;  %3085 = vmatmul.mubr.f32.gmra.mxu1 %v262_v29  ;;  %v3254_v4 = vpop.eup %3253  ;;  %3267 = vrsqrt.f32 %v209_v38  ;;  %v253_v29 = vmul.f32 %v3532_v7, %v3250_v34 }
 0x16b   :  { %3054 = vmatprep.mubr.f32.mxu0 %v247_v57  ;;  %3086 = vmatprep.mubr.f32.mxu1 %v263_v41  ;;  %v3256_v20 = vpop.eup %3255  ;;  %v254_v30 = vmul.f32 %v3534_v61, %v3254_v4 }
 0x16e   :  { %3055 = vmatmul.mubr.f32.gmra.mxu0 %v247_v57  ;;  %3087 = vmatmul.mubr.f32.gmra.mxu1 %v263_v41  ;;  %v3258_v44 = vpop.eup %3257  ;;  %v270_v57 = vmul.f32 %v3535_v24, %v3256_v20 }
 0x16f   :  { %3056 = vmatprep.mubr.f32.mxu0 %v248_v10  ;;  %3088 = vmatprep.mubr.f32.mxu1 %v264_v0  ;;  %v3260_v28 = vpop.eup %3259  ;;  %v255_v25 = vmul.f32 %v3536_v37, %v3258_v44 }
 0x170   :  { %v271_v39 = vmul.f32 %v3537_v31, %v3260_v28 }
 0x172   :  { %3057 = vmatmul.mubr.f32.gmra.mxu0 %v248_v10  ;;  %3089 = vmatmul.mubr.f32.gmra.mxu1 %v264_v0  ;;  %v3262_v41 = vpop.eup %3261 }
 0x173   :  { %3058 = vmatprep.mubr.f32.mxu0 %v249_v36  ;;  %3090 = vmatprep.mubr.f32.mxu1 %v265_v8  ;;  %v3264_v3 = vpop.eup %3263  ;;  %v256_v10 = vmul.f32 %v3538_v27, %v3262_v41 }
 0x174   :  { %v272_v0 = vmul.f32 %v3539_v26, %v3264_v3 }
 0x176   :  { %3059 = vmatmul.mubr.f32.gmra.mxu0 %v249_v36  ;;  %3091 = vmatmul.mubr.f32.gmra.mxu1 %v265_v8  ;;  %v3266_v43 = vpop.eup %3265  ;;  %v790_v36 = vstv %s789_s9 }
 0x177   :  { %3060 = vmatprep.mubr.f32.mxu0 %v250_v49  ;;  %3092 = vmatprep.mubr.f32.mxu1 %v266_v59  ;;  %v3268_v23 = vpop.eup %3267  ;;  %v257_v52 = vmul.f32 %v3540_v62, %v3266_v43  ;;  %vm4215_vm0 = vcmp.lt.s32.totalorder %v4210_v15, %v790_v36 }
 0x178   :  { %v273_v50 = vmul.f32 %v3541_v21, %v3268_v23 }
 0x17a   :  { %3061 = vmatmul.mubr.f32.gmra.mxu0 %v250_v49  ;;  %3093 = vmatmul.mubr.f32.gmra.mxu1 %v266_v59  ;;  %v1883_v59 = vstv %s3011_s10 }
 0x17b   :  { %3062 = vmatprep.mubr.f32.mxu0 %v251_v1  ;;  %3094 = vmatprep.mubr.f32.mxu1 %v267_v13  ;;  %vm4244_vm1 = vcmp.lt.s32.totalorder %v4210_v15, %v1883_v59 }
 0x17e   :  { %3063 = vmatmul.mubr.f32.gmra.mxu0 %v251_v1  ;;  %3095 = vmatmul.mubr.f32.gmra.mxu1 %v267_v13 }
 0x17f   :  { %3064 = vmatprep.mubr.f32.mxu0 %v252_v53  ;;  %3096 = vmatprep.mubr.f32.mxu1 %v268_v14 }
 0x182   :  { %3065 = vmatmul.mubr.f32.gmra.mxu0 %v252_v53  ;;  %3097 = vmatmul.mubr.f32.gmra.mxu1 %v268_v14 }
 0x183   :  { %3066 = vmatprep.mubr.f32.mxu0 %v253_v29  ;;  %3098 = vmatprep.mubr.f32.mxu1 %v269_v46 }
 0x186   :  { %3067 = vmatmul.mubr.f32.gmra.mxu0 %v253_v29  ;;  %3099 = vmatmul.mubr.f32.gmra.mxu1 %v269_v46 }
 0x187   :  { %3068 = vmatprep.mubr.f32.mxu0 %v254_v30  ;;  %3100 = vmatprep.mubr.f32.mxu1 %v270_v57 }
 0x18a   :  { %3069 = vmatmul.mubr.f32.gmra.mxu0 %v254_v30  ;;  %3101 = vmatmul.mubr.f32.gmra.mxu1 %v270_v57 }
 0x18b   :  { %3070 = vmatprep.mubr.f32.mxu0 %v255_v25  ;;  %3102 = vmatprep.mubr.f32.mxu1 %v271_v39 }
 0x18e   :  { %3071 = vmatmul.mubr.f32.gmra.mxu0 %v255_v25  ;;  %3103 = vmatmul.mubr.f32.gmra.mxu1 %v271_v39 }
 0x18f   :  { %3072 = vmatprep.mubr.f32.mxu0 %v256_v10  ;;  %3104 = vmatprep.mubr.f32.mxu1 %v272_v0 }
 0x192   :  { %3073 = vmatmul.mubr.f32.gmra.mxu0 %v256_v10  ;;  %3105 = vmatmul.mubr.f32.gmra.mxu1 %v272_v0 }
 0x193   :  { %3074 = vmatprep.mubr.f32.mxu0 %v257_v52  ;;  %3106 = vmatprep.mubr.f32.mxu1 %v273_v50 }
 0x196   :  { %3075 = vmatmul.mubr.f32.gmra.mxu0 %v257_v52  ;;  %3107 = vmatmul.mubr.f32.gmra.mxu1 %v273_v50 }
 0x21a   :  { %v532_v33 = vpop.f32.mrf.mxu0  ;;  %v628_v8 = vpop.f32.mrf.mxu1 }
 0x21b   :  { %v4212_v22 = vmul.f32 20.0, %v532_v33  ;;  %v4219_v51 = vmul.f32 20.0, %v628_v8 }
 0x21c   :  { %v534_v5 = vpop.f32.mrf.mxu0  ;;  %v630_v6 = vpop.f32.mrf.mxu1 }
 0x21d   :  { %7775 = vst [vmem:[#allocation26_spill] sm:$0xff] %v4212_v22  ;;  %7778 = vst [vmem:[#allocation42_spill] sm:$0xff] %v4219_v51  ;;  %v4224_v17 = vsel %vm4215_vm0, %v4212_v22, -1e+30  ;;  %v4229_v18 = vmul.f32 20.0, %v534_v5  ;;  %v4250_v16 = vmul.f32 20.0, %v630_v6 }
 0x21e   :  { %v538_v40 = vpop.f32.mrf.mxu0  ;;  %v634_v49 = vpop.f32.mrf.mxu1  ;;  %824 = vmax.xlane.f32.xlu0 %v4224_v17  ;;  %v4236_v19 = vsel %vm4215_vm0, %v4219_v51, -1e+30 }
 0x21f   :  { %v4227_v60 = vmul.f32 20.0, %v538_v40  ;;  %7780 = vst [vmem:[#allocation25_spill] sm:$0xff] %v4229_v18  ;;  %v4231_v11 = vmul.f32 20.0, %v634_v49  ;;  %7784 = vst [vmem:[#allocation41_spill] sm:$0xff] %v4250_v16  ;;  %v4257_v63 = vsel %vm4244_vm1, %v4229_v18, -1e+30 }
 0x220   :  { %v540_v47 = vpop.f32.mrf.mxu0  ;;  %v636_v2 = vpop.f32.mrf.mxu1  ;;  %v4273_v48 = vsel %vm4244_vm1, %v4250_v16, -1e+30 }
 0x221   :  { %7779 = vst [vmem:[#allocation20_spill] sm:$0xff] %v4227_v60  ;;  %7781 = vst [vmem:[#allocation27_spill] sm:$0xff] %v4231_v11  ;;  %v4241_v55 = vsel %vm4215_vm0, %v4227_v60, -1e+30  ;;  %v4252_v13 = vmul.f32 20.0, %v540_v47  ;;  %v4266_v9 = vmul.f32 20.0, %v636_v2 }
 0x222   :  { %856 = vmax.xlane.f32.xlu0 %v4236_v19  ;;  %826 = vmax.xlane.f32.xlu1 %v4241_v55  ;;  %v544_v1 = vpop.f32.mrf.mxu0  ;;  %v4262_v56 = vsel %vm4215_vm0, %v4231_v11, -1e+30  ;;  %v640_v54 = vpop.f32.mrf.mxu1 }
 0x223   :  { %7785 = vst [vmem:[#allocation21_spill] sm:$0xff] %v4252_v13  ;;  %7786 = vst [vmem:[#allocation22_spill] sm:$0xff] %v4266_v9  ;;  %v4268_v38 = vmul.f32 20.0, %v544_v1  ;;  %v4278_v53 = vsel %vm4244_vm1, %v4252_v13, -1e+30  ;;  %v4282_v12 = vmul.f32 20.0, %v640_v54 }
 0x224   :  { %v546_v34 = vpop.f32.mrf.mxu0  ;;  %v642_v45 = vpop.f32.mrf.mxu1  ;;  %v4289_v7 = vsel %vm4244_vm1, %v4266_v9, -1e+30 }
 0x225   :  { %7787 = vst [vmem:[#allocation29_spill] sm:$0xff] %v4268_v38  ;;  %7788 = vst [vmem:[#allocation44_spill] sm:$0xff] %v4282_v12  ;;  %v4294_v29 = vsel %vm4215_vm0, %v4268_v38, -1e+30  ;;  %v4298_v20 = vmul.f32 20.0, %v546_v34  ;;  %v4314_v28 = vmul.f32 20.0, %v642_v45 }
 0x226   :  { %1917 = vmax.xlane.f32.xlu0 %v4257_v63  ;;  %858 = vmax.xlane.f32.xlu1 %v4262_v56  ;;  %v550_v14 = vpop.f32.mrf.mxu0  ;;  %v646_v58 = vpop.f32.mrf.mxu1  ;;  %v4305_v61 = vsel %vm4215_vm0, %v4282_v12, -1e+30 }
 0x227   :  { %v4284_v4 = vmul.f32 20.0, %v550_v14  ;;  %7790 = vst [vmem:[#allocation23_spill] sm:$0xff] %v4298_v20  ;;  %v4300_v44 = vmul.f32 20.0, %v646_v58  ;;  %7792 = vst [vmem:[#allocation43_spill] sm:$0xff] %v4314_v28  ;;  %v4321_v37 = vsel %vm4244_vm1, %v4298_v20, -1e+30 }
 0x228   :  { %v552_v46 = vpop.f32.mrf.mxu0  ;;  %v648_v24 = vpop.f32.mrf.mxu1  ;;  %v4337_v27 = vsel %vm4244_vm1, %v4314_v28, -1e+30 }
 0x229   :  { %7789 = vst [vmem:[#allocation18_spill] sm:$0xff] %v4284_v4  ;;  %7791 = vst [vmem:[#allocation28_spill] sm:$0xff] %v4300_v44  ;;  %v4310_v30 = vsel %vm4215_vm0, %v4284_v4, -1e+30  ;;  %v4316_v41 = vmul.f32 20.0, %v552_v46  ;;  %v4330_v3 = vmul.f32 20.0, %v648_v24 }
 0x22a   :  { %1949 = vmax.xlane.f32.xlu0 %v4273_v48  ;;  %1919 = vmax.xlane.f32.xlu1 %v4278_v53  ;;  %v556_v57 = vpop.f32.mrf.mxu0  ;;  %v4326_v25 = vsel %vm4215_vm0, %v4300_v44, -1e+30  ;;  %v652_v31 = vpop.f32.mrf.mxu1 }
 0x22b   :  { %7793 = vst [vmem:[#allocation19_spill] sm:$0xff] %v4316_v41  ;;  %7794 = vst [vmem:[#allocation31_spill] sm:$0xff] %v4330_v3  ;;  %v4332_v43 = vmul.f32 20.0, %v556_v57  ;;  %v4342_v10 = vsel %vm4244_vm1, %v4316_v41, -1e+30  ;;  %v4346_v23 = vmul.f32 20.0, %v652_v31 }
 0x22c   :  { %v558_v39 = vpop.f32.mrf.mxu0  ;;  %v654_v26 = vpop.f32.mrf.mxu1  ;;  %v4353_v52 = vsel %vm4244_vm1, %v4330_v3, -1e+30 }
 0x22d   :  { %7795 = vst [vmem:[#allocation46_spill] sm:$0xff] %v4332_v43  ;;  %7796 = vst [vmem:[#allocation7_spill] sm:$0xff] %v4346_v23  ;;  %v4358_v21 = vsel %vm4215_vm0, %v4332_v43, -1e+30  ;;  %v4362_v36 = vmul.f32 20.0, %v558_v39  ;;  %v4378_v49 = vmul.f32 20.0, %v654_v26 }
 0x22e   :  { %1951 = vmax.xlane.f32.xlu1 %v4289_v7  ;;  %828 = vmax.xlane.f32.xlu0 %v4294_v29  ;;  %v562_v0 = vpop.f32.mrf.mxu0  ;;  %v658_v50 = vpop.f32.mrf.mxu1  ;;  %v4369_v8 = vsel %vm4215_vm0, %v4346_v23, -1e+30 }
 0x22f   :  { %v4348_v62 = vmul.f32 20.0, %v562_v0  ;;  %7798 = vst [vmem:[#allocation34_spill] sm:$0xff] %v4362_v36  ;;  %v4364_v33 = vmul.f32 20.0, %v658_v50  ;;  %7800 = vst [vmem:[#allocation30_spill] sm:$0xff] %v4378_v49  ;;  %v4385_v47 = vsel %vm4244_vm1, %v4362_v36, -1e+30 }
 0x230   :  { %v564_v32 = vpop.f32.mrf.mxu0  ;;  %v660_v6 = vpop.f32.mrf.mxu1  ;;  %v4401_v14 = vsel %vm4244_vm1, %v4378_v49, -1e+30 }
 0x231   :  { %7797 = vst [vmem:[#allocation9_spill] sm:$0xff] %v4348_v62  ;;  %7799 = vst [vmem:[#allocation49_spill] sm:$0xff] %v4364_v33  ;;  %v4374_v5 = vsel %vm4215_vm0, %v4348_v62, -1e+30  ;;  %v4380_v59 = vmul.f32 20.0, %v564_v32  ;;  %v4394_v34 = vmul.f32 20.0, %v660_v6 }
 0x232   :  { %860 = vmax.xlane.f32.xlu0 %v4305_v61  ;;  %830 = vmax.xlane.f32.xlu1 %v4310_v30  ;;  %v568_v40 = vpop.f32.mrf.mxu0  ;;  %v4390_v2 = vsel %vm4215_vm0, %v4364_v33, -1e+30  ;;  %v664_v1 = vpop.f32.mrf.mxu1 }
 0x233   :  { %7801 = vst [vmem:[#allocation45_spill] sm:$0xff] %v4380_v59  ;;  %7802 = vst [vmem:[#allocation5_spill] sm:$0xff] %v4394_v34  ;;  %v4396_v45 = vmul.f32 20.0, %v568_v40  ;;  %v4406_v58 = vsel %vm4244_vm1, %v4380_v59, -1e+30  ;;  %v4410_v57 = vmul.f32 20.0, %v664_v1 }
 0x234   :  { %v570_v54 = vpop.f32.mrf.mxu0  ;;  %v666_v46 = vpop.f32.mrf.mxu1  ;;  %v4417_v39 = vsel %vm4244_vm1, %v4394_v34, -1e+30 }
 0x235   :  { %7803 = vst [vmem:[#allocation11_spill] sm:$0xff] %v4396_v45  ;;  %7804 = vst [vmem:[#allocation33_spill] sm:$0xff] %v4410_v57  ;;  %v4422_v26 = vsel %vm4215_vm0, %v4396_v45, -1e+30  ;;  %v4426_v32 = vmul.f32 20.0, %v570_v54  ;;  %v4442_v54 = vmul.f32 20.0, %v666_v46 }
 0x236   :  { %1921 = vmax.xlane.f32.xlu0 %v4321_v37  ;;  %862 = vmax.xlane.f32.xlu1 %v4326_v25  ;;  %v574_v24 = vpop.f32.mrf.mxu0  ;;  %v670_v0 = vpop.f32.mrf.mxu1  ;;  %v4433_v40 = vsel %vm4215_vm0, %v4410_v57, -1e+30 }
 0x237   :  { %v4412_v31 = vmul.f32 20.0, %v574_v24  ;;  %7806 = vst [vmem:[#allocation6_spill] sm:$0xff] %v4426_v32  ;;  %v4428_v6 = vmul.f32 20.0, %v670_v0  ;;  %7808 = vst [vmem:[#allocation32_spill] sm:$0xff] %v4442_v54  ;;  %v4449_v57 = vsel %vm4244_vm1, %v4426_v32, -1e+30 }
 0x238   :  { %v576_v50 = vpop.f32.mrf.mxu0  ;;  %v672_v24 = vpop.f32.mrf.mxu1  ;;  %v4465_v32 = vsel %vm4244_vm1, %v4442_v54, -1e+30 }
 0x239   :  { %7805 = vst [vmem:[#allocation48_spill] sm:$0xff] %v4412_v31  ;;  %7807 = vst [vmem:[#allocation10_spill] sm:$0xff] %v4428_v6  ;;  %v4438_v1 = vsel %vm4215_vm0, %v4412_v31, -1e+30  ;;  %v4444_v0 = vmul.f32 20.0, %v576_v50  ;;  %v4458_v46 = vmul.f32 20.0, %v672_v24 }
 0x23a   :  { %1953 = vmax.xlane.f32.xlu0 %v4337_v27  ;;  %1923 = vmax.xlane.f32.xlu1 %v4342_v10  ;;  %v580_v45 = vpop.f32.mrf.mxu0  ;;  %v4454_v49 = vsel %vm4215_vm0, %v4428_v6, -1e+30  ;;  %v676_v36 = vpop.f32.mrf.mxu1 }
 0x23b   :  { %7809 = vst [vmem:[#allocation47_spill] sm:$0xff] %v4444_v0  ;;  %7810 = vst [vmem:[#allocation8_spill] sm:$0xff] %v4458_v46  ;;  %v4460_v50 = vmul.f32 20.0, %v580_v45  ;;  %v4470_v43 = vsel %vm4244_vm1, %v4444_v0, -1e+30  ;;  %v4474_v24 = vmul.f32 20.0, %v676_v36 }
 0x23c   :  { %v582_v23 = vpop.f32.mrf.mxu0  ;;  %v678_v31 = vpop.f32.mrf.mxu1  ;;  %v4481_v54 = vsel %vm4244_vm1, %v4458_v46, -1e+30 }
 0x23d   :  { %7811 = vst [vmem:[#allocation13_spill] sm:$0xff] %v4460_v50  ;;  %7812 = vst [vmem:[#allocation36_spill] sm:$0xff] %v4474_v24  ;;  %v4486_v0 = vsel %vm4215_vm0, %v4460_v50, -1e+30  ;;  %v4490_v36 = vmul.f32 20.0, %v582_v23  ;;  %v4506_v23 = vmul.f32 20.0, %v678_v31 }
 0x23e   :  { %1955 = vmax.xlane.f32.xlu1 %v4353_v52  ;;  %832 = vmax.xlane.f32.xlu0 %v4358_v21  ;;  %v586_v6 = vpop.f32.mrf.mxu0  ;;  %7814 = vst [vmem:[#allocation12_spill] sm:$0xff] %v4486_v0  ;;  %v682_v28 = vpop.f32.mrf.mxu1  ;;  %v4497_v46 = vsel %vm4215_vm0, %v4474_v24, -1e+30 }
 0x23f   :  { %v4476_v45 = vmul.f32 20.0, %v586_v6  ;;  %7815 = vst [vmem:[#allocation35_spill] sm:$0xff] %v4490_v36  ;;  %v4492_v6 = vmul.f32 20.0, %v682_v28  ;;  %7817 = vst [vmem:[#allocation15_spill] sm:$0xff] %v4497_v46  ;;  %v4513_v24 = vsel %vm4244_vm1, %v4490_v36, -1e+30 }
 0x240   :  { %v588_v34 = vpop.f32.mrf.mxu0  ;;  %v684_v20 = vpop.f32.mrf.mxu1  ;;  %7818 = vst [vmem:[#allocation38_spill] sm:$0xff] %v4506_v23  ;;  %7820 = vst [vmem:[#allocation14_spill] sm:$0xff] %v4513_v24  ;;  %v4529_v36 = vsel %vm4244_vm1, %v4506_v23, -1e+30 }
 0x241   :  { %7813 = vst [vmem:[#allocation51_spill] sm:$0xff] %v4476_v45  ;;  %7816 = vst [vmem:[#allocation50_spill] sm:$0xff] %v4492_v6  ;;  %v4502_v50 = vsel %vm4215_vm0, %v4476_v45, -1e+30  ;;  %v4508_v28 = vmul.f32 20.0, %v588_v34  ;;  %v4522_v31 = vmul.f32 20.0, %v684_v20 }
 0x242   :  { %864 = vmax.xlane.f32.xlu0 %v4369_v8  ;;  %834 = vmax.xlane.f32.xlu1 %v4374_v5  ;;  %v592_v59 = vpop.f32.mrf.mxu0  ;;  %v4518_v45 = vsel %vm4215_vm0, %v4492_v6, -1e+30  ;;  %v688_v12 = vpop.f32.mrf.mxu1  ;;  %7823 = vst [vmem:[#allocation17_spill] sm:$0xff] %v4529_v36 }
 0x243   :  { %7819 = vst [vmem:[#allocation53_spill] sm:$0xff] %v4508_v28  ;;  %7821 = vst [vmem:[#allocation37_spill] sm:$0xff] %v4522_v31  ;;  %v4524_v34 = vmul.f32 20.0, %v592_v59  ;;  %v4534_v6 = vsel %vm4244_vm1, %v4508_v28, -1e+30  ;;  %v4538_v20 = vmul.f32 20.0, %v688_v12 }
 0x244   :  { %v594_v33 = vpop.f32.mrf.mxu0  ;;  %v690_v38 = vpop.f32.mrf.mxu1  ;;  %v4545_v23 = vsel %vm4244_vm1, %v4522_v31, -1e+30 }
 0x245   :  { %7822 = vst [vmem:[#allocation52_spill] sm:$0xff] %v4524_v34  ;;  %7824 = vst [vmem:[#allocation40_spill] sm:$0xff] %v4538_v20  ;;  %v4550_v28 = vsel %vm4215_vm0, %v4524_v34, -1e+30  ;;  %v4554_v12 = vmul.f32 20.0, %v594_v33  ;;  %v4570_v33 = vmul.f32 20.0, %v690_v38 }
 0x246   :  { %1925 = vmax.xlane.f32.xlu0 %v4385_v47  ;;  %866 = vmax.xlane.f32.xlu1 %v4390_v2  ;;  %v598_v62 = vpop.f32.mrf.mxu0  ;;  %7826 = vst [vmem:[#allocation16_spill] sm:$0xff] %v4550_v28  ;;  %v694_v3 = vpop.f32.mrf.mxu1  ;;  %v4561_v31 = vsel %vm4215_vm0, %v4538_v20, -1e+30 }
 0x247   :  { %v4540_v59 = vmul.f32 20.0, %v598_v62  ;;  %7827 = vst [vmem:[#allocation39_spill] sm:$0xff] %v4554_v12  ;;  %v4556_v62 = vmul.f32 20.0, %v694_v3  ;;  %7829 = vst [vmem:[#allocation56_spill] sm:$0xff] %v4561_v31  ;;  %v4577_v20 = vsel %vm4244_vm1, %v4554_v12, -1e+30 }
 0x248   :  { %v600_v41 = vpop.f32.mrf.mxu0  ;;  %v696_v44 = vpop.f32.mrf.mxu1  ;;  %7831 = vst [vmem:[#allocation58_spill] sm:$0xff] %v4570_v33  ;;  %7833 = vst [vmem:[#allocation60_spill] sm:$0xff] %v4577_v20  ;;  %v4593_v12 = vsel %vm4244_vm1, %v4570_v33, -1e+30 }
 0x249   :  { %7825 = vst [vmem:[#allocation55_spill] sm:$0xff] %v4540_v59  ;;  %7828 = vst [vmem:[#allocation54_spill] sm:$0xff] %v4556_v62  ;;  %v4566_v34 = vsel %vm4215_vm0, %v4540_v59, -1e+30  ;;  %v4572_v3 = vmul.f32 20.0, %v600_v41  ;;  %v4586_v38 = vmul.f32 20.0, %v696_v44 }
 0x24a   :  { %1957 = vmax.xlane.f32.xlu0 %v4401_v14  ;;  %1927 = vmax.xlane.f32.xlu1 %v4406_v58  ;;  %7830 = vst [vmem:[#allocation57_spill] sm:$0xff] %v4566_v34  ;;  %v604_v4 = vpop.f32.mrf.mxu0  ;;  %v4582_v59 = vsel %vm4215_vm0, %v4556_v62, -1e+30  ;;  %v700_v16 = vpop.f32.mrf.mxu1  ;;  %7837 = vst [vmem:[#allocation64_spill] sm:$0xff] %v4593_v12 }
 0x24b   :  { %7832 = vst [vmem:[#allocation59_spill] sm:$0xff] %v4572_v3  ;;  %7834 = vst [vmem:[#allocation61_spill] sm:$0xff] %v4582_v59  ;;  %v4588_v41 = vmul.f32 20.0, %v604_v4  ;;  %v4598_v62 = vsel %vm4244_vm1, %v4572_v3, -1e+30  ;;  %v4602_v44 = vmul.f32 20.0, %v700_v16 }
 0x24c   :  { %v606_v18 = vpop.f32.mrf.mxu0  ;;  %7835 = vst [vmem:[#allocation62_spill] sm:$0xff] %v4586_v38  ;;  %v702_v51 = vpop.f32.mrf.mxu1  ;;  %v4609_v33 = vsel %vm4244_vm1, %v4586_v38, -1e+30 }
 0x24d   :  { %7836 = vst [vmem:[#allocation63_spill] sm:$0xff] %v4588_v41  ;;  %7838 = vst [vmem:[#allocation65_spill] sm:$0xff] %v4602_v44  ;;  %v4614_v3 = vsel %vm4215_vm0, %v4588_v41, -1e+30  ;;  %v4618_v16 = vmul.f32 20.0, %v606_v18  ;;  %v4634_v18 = vmul.f32 20.0, %v702_v51 }
 0x24e   :  { %1959 = vmax.xlane.f32.xlu1 %v4417_v39  ;;  %836 = vmax.xlane.f32.xlu0 %v4422_v26  ;;  %v610_v22 = vpop.f32.mrf.mxu0  ;;  %7840 = vst [vmem:[#allocation67_spill] sm:$0xff] %v4614_v3  ;;  %v706_v9 = vpop.f32.mrf.mxu1  ;;  %v4625_v38 = vsel %vm4215_vm0, %v4602_v44, -1e+30 }
 0x24f   :  { %v4604_v4 = vmul.f32 20.0, %v610_v22  ;;  %7841 = vst [vmem:[#allocation68_spill] sm:$0xff] %v4618_v16  ;;  %v4620_v22 = vmul.f32 20.0, %v706_v9  ;;  %7843 = vst [vmem:[#allocation70_spill] sm:$0xff] %v4625_v38  ;;  %v4641_v44 = vsel %vm4244_vm1, %v4618_v16, -1e+30 }
 0x250   :  { %v612_v13 = vpop.f32.mrf.mxu0  ;;  %v708_v11 = vpop.f32.mrf.mxu1  ;;  %7845 = vst [vmem:[#allocation72_spill] sm:$0xff] %v4634_v18  ;;  %7847 = vst [vmem:[#allocation74_spill] sm:$0xff] %v4641_v44  ;;  %v4657_v16 = vsel %vm4244_vm1, %v4634_v18, -1e+30 }
 0x251   :  { %7839 = vst [vmem:[#allocation66_spill] sm:$0xff] %v4604_v4  ;;  %7842 = vst [vmem:[#allocation69_spill] sm:$0xff] %v4620_v22  ;;  %v4630_v41 = vsel %vm4215_vm0, %v4604_v4, -1e+30  ;;  %v4636_v9 = vmul.f32 20.0, %v612_v13  ;;  %v4650_v51 = vmul.f32 20.0, %v708_v11 }
 0x252   :  { %868 = vmax.xlane.f32.xlu0 %v4433_v40  ;;  %838 = vmax.xlane.f32.xlu1 %v4438_v1  ;;  %7844 = vst [vmem:[#allocation71_spill] sm:$0xff] %v4630_v41  ;;  %v616_v60 = vpop.f32.mrf.mxu0  ;;  %v4646_v4 = vsel %vm4215_vm0, %v4620_v22, -1e+30  ;;  %7851 = vst [vmem:[#allocation78_spill] sm:$0xff] %v4657_v16 }
 0x253   :  { %7846 = vst [vmem:[#allocation73_spill] sm:$0xff] %v4636_v9  ;;  %7848 = vst [vmem:[#allocation75_spill] sm:$0xff] %v4646_v4  ;;  %v4652_v13 = vmul.f32 20.0, %v616_v60  ;;  %v4662_v22 = vsel %vm4244_vm1, %v4636_v9, -1e+30 }
 0x254   :  { %7849 = vst [vmem:[#allocation76_spill] sm:$0xff] %v4650_v51  ;;  %7852 = vst [vmem:[#allocation79_spill] sm:$0xff] %v4662_v22  ;;  %v4673_v18 = vsel %vm4244_vm1, %v4650_v51, -1e+30 }
 0x255   :  { %7850 = vst [vmem:[#allocation77_spill] sm:$0xff] %v4652_v13  ;;  %7855 = vst [vmem:[#allocation82_spill] sm:$0xff] %v4673_v18  ;;  %v4678_v9 = vsel %vm4215_vm0, %v4652_v13, -1e+30 }
 0x256   :  { %1929 = vmax.xlane.f32.xlu0 %v4449_v57  ;;  %870 = vmax.xlane.f32.xlu1 %v4454_v49  ;;  %7856 = vst [vmem:[#allocation83_spill] sm:$0xff] %v4678_v9 }
 0x25a   :  { %1961 = vmax.xlane.f32.xlu0 %v4465_v32  ;;  %1931 = vmax.xlane.f32.xlu1 %v4470_v43 }
 0x25e   :  { %1963 = vmax.xlane.f32.xlu1 %v4481_v54  ;;  %840 = vmax.xlane.f32.xlu0 %v4486_v0 }
 0x262   :  { %872 = vmax.xlane.f32.xlu0 %v4497_v46  ;;  %842 = vmax.xlane.f32.xlu1 %v4502_v50 }
 0x266   :  { %1933 = vmax.xlane.f32.xlu0 %v4513_v24  ;;  %874 = vmax.xlane.f32.xlu1 %v4518_v45 }
 0x26a   :  { %1965 = vmax.xlane.f32.xlu0 %v4529_v36  ;;  %1935 = vmax.xlane.f32.xlu1 %v4534_v6 }
 0x26e   :  { %1967 = vmax.xlane.f32.xlu1 %v4545_v23  ;;  %844 = vmax.xlane.f32.xlu0 %v4550_v28 }
 0x272   :  { %876 = vmax.xlane.f32.xlu0 %v4561_v31  ;;  %846 = vmax.xlane.f32.xlu1 %v4566_v34 }
 0x276   :  { %1937 = vmax.xlane.f32.xlu0 %v4577_v20  ;;  %878 = vmax.xlane.f32.xlu1 %v4582_v59 }
 0x27a   :  { %1969 = vmax.xlane.f32.xlu0 %v4593_v12  ;;  %1939 = vmax.xlane.f32.xlu1 %v4598_v62  ;;  %v618_v12 = vpop.f32.mrf.mxu0 }
 0x27c   :  { %v622_v20 = vpop.f32.mrf.mxu0 }
 0x27d   :  { %v4668_v60 = vmul.f32 20.0, %v622_v20 }
 0x27e   :  { %1971 = vmax.xlane.f32.xlu1 %v4609_v33  ;;  %848 = vmax.xlane.f32.xlu0 %v4614_v3  ;;  %v712_v3 = vpop.f32.mrf.mxu1  ;;  %v624_v13 = vpop.f32.mrf.mxu0 }
 0x27f   :  { %v4666_v11 = vmul.f32 20.0, %v712_v3  ;;  %7854 = vst [vmem:[#allocation81_spill] sm:$0xff] %v4668_v60  ;;  %v4694_v51 = vsel %vm4215_vm0, %v4668_v60, -1e+30 }
 0x280   :  { %7860 = vst [vmem:[#allocation87_spill] sm:$0xff] %v4694_v51 }
 0x281   :  { %7853 = vst [vmem:[#allocation80_spill] sm:$0xff] %v4666_v11  ;;  %v4689_v20 = vsel %vm4215_vm0, %v4666_v11, -1e+30 }
 0x282   :  { %880 = vmax.xlane.f32.xlu0 %v4625_v38  ;;  %850 = vmax.xlane.f32.xlu1 %v4630_v41  ;;  %v714_v38 = vpop.f32.mrf.mxu1  ;;  %7859 = vst [vmem:[#allocation86_spill] sm:$0xff] %v4689_v20 }
 0x286   :  { %1941 = vmax.xlane.f32.xlu0 %v4641_v44  ;;  %882 = vmax.xlane.f32.xlu1 %v4646_v4  ;;  %v718_v44 = vpop.f32.mrf.mxu1 }
 0x287   :  { %v4684_v3 = vmul.f32 20.0, %v718_v44 }
 0x288   :  { %v720_v60 = vpop.f32.mrf.mxu1 }
 0x289   :  { %7858 = vst [vmem:[#allocation85_spill] sm:$0xff] %v4684_v3  ;;  %v4710_v11 = vsel %vm4215_vm0, %v4684_v3, -1e+30 }
 0x28a   :  { %1973 = vmax.xlane.f32.xlu0 %v4657_v16  ;;  %1943 = vmax.xlane.f32.xlu1 %v4662_v22  ;;  %v4682_v16 = vmul.f32 20.0, %v618_v12  ;;  %v4700_v12 = vmul.f32 20.0, %v624_v13  ;;  %7864 = vst [vmem:[#allocation91_spill] sm:$0xff] %v4710_v11 }
 0x28c   :  { %7857 = vst [vmem:[#allocation84_spill] sm:$0xff] %v4682_v16  ;;  %7862 = vst [vmem:[#allocation89_spill] sm:$0xff] %v4700_v12  ;;  %v4705_v44 = vsel %vm4244_vm1, %v4682_v16, -1e+30  ;;  %v4724_v13 = vsel %vm4244_vm1, %v4700_v12, -1e+30 }
 0x28d   :  { %7863 = vst [vmem:[#allocation90_spill] sm:$0xff] %v4705_v44  ;;  %7867 = vst [vmem:[#allocation94_spill] sm:$0xff] %v4724_v13 }
 0x28e   :  { %1975 = vmax.xlane.f32.xlu1 %v4673_v18  ;;  %852 = vmax.xlane.f32.xlu0 %v4678_v9  ;;  %v4698_v9 = vmul.f32 20.0, %v714_v38 }
 0x290   :  { %7861 = vst [vmem:[#allocation88_spill] sm:$0xff] %v4698_v9  ;;  %v4719_v38 = vsel %vm4244_vm1, %v4698_v9, -1e+30 }
 0x291   :  { %7866 = vst [vmem:[#allocation93_spill] sm:$0xff] %v4719_v38 }
 0x292   :  { %884 = vmax.xlane.f32.xlu0 %v4689_v20  ;;  %854 = vmax.xlane.f32.xlu1 %v4694_v51  ;;  %v4714_v20 = vmul.f32 20.0, %v720_v60 }
 0x294   :  { %7865 = vst [vmem:[#allocation92_spill] sm:$0xff] %v4714_v20  ;;  %v4731_v16 = vsel %vm4244_vm1, %v4714_v20, -1e+30 }
 0x295   :  { %7868 = vst [vmem:[#allocation95_spill] sm:$0xff] %v4731_v16 }
 0x296   :  { %1945 = vmax.xlane.f32.xlu0 %v4705_v44  ;;  %886 = vmax.xlane.f32.xlu1 %v4710_v11 }
 0x29a   :  { %1977 = vmax.xlane.f32.xlu0 %v4719_v38  ;;  %1947 = vmax.xlane.f32.xlu1 %v4724_v13 }
 0x29e   :  { %1979 = vmax.xlane.f32.xlu1 %v4731_v16 }
 0x2a7   :  { %v4734_v60 = vpop.xlane.xlu0 %824 }
 0x2a8   :  { %vm1272_vm2 = vcmp.eq.f32.partialorder %v4224_v17, %v4734_v60 }
 0x2a9   :  { %v4739_v9 = vsel %vm1272_vm2, %v4210_v15, 128 }
 0x2aa   :  { %7869 = vst [vmem:[#allocation96_spill] sm:$0xff] %v4739_v9  ;;  %v1337_v12 = vshra.s32 %v4739_v9, 16 }
 0x2ab   :  { %v4742_v3 = vpop.xlane.xlu0 %856  ;;  %v827_v38 = vpop.xlane.xlu1 %826 }
 0x2ac   :  { %vm1288_vm3 = vcmp.eq.f32.partialorder %v4236_v19, %v4742_v3  ;;  %v4749_v44 = vcvt.s32.f32 %v1337_v12  ;;  %vm1273_vm5 = vcmp.eq.f32.partialorder %v4241_v55, %v827_v38 }
 0x2ad   :  { %v4747_v20 = vsel %vm1288_vm3, %v4210_v15, 128 }
 0x2ae   :  { %7870 = vst [vmem:[#allocation97_spill] sm:$0xff] %v4747_v20  ;;  %7871 = vst [vmem:[#allocation98_spill] sm:$0xff] %v4749_v44  ;;  %v1561_v31 = vshra.s32 %v4747_v20, 16  ;;  %1340 = vmin.xlane.f32.xlu0 %v4749_v44 }
 0x2af   :  { %v4753_v11 = vpop.xlane.xlu0 %1917  ;;  %v859_v28 = vpop.xlane.xlu1 %858 }
 0x2b0   :  { %vm2365_vm4 = vcmp.eq.f32.partialorder %v4257_v63, %v4753_v11  ;;  %v4760_v16 = vcvt.s32.f32 %v1561_v31  ;;  %v4776_v31 = vsel %vm1273_vm5, %v4210_v15, 128  ;;  %vm1289_vm8 = vcmp.eq.f32.partialorder %v4262_v56, %v859_v28 }
 0x2b1   :  { %v4758_v51 = vsel %vm2365_vm4, %v4210_v15, 128  ;;  %7876 = vst [vmem:[#allocation103_spill] sm:$0xff] %v4776_v31  ;;  %v1351_v22 = vshra.s32 %v4776_v31, 16  ;;  %v4796_v59 = vsel %vm1289_vm8, %v4210_v15, 128 }
 0x2b2   :  { %7872 = vst [vmem:[#allocation99_spill] sm:$0xff] %v4758_v51  ;;  %7873 = vst [vmem:[#allocation100_spill] sm:$0xff] %v4760_v16  ;;  %v2430_v13 = vshra.s32 %v4758_v51, 16  ;;  %1564 = vmin.xlane.f32.xlu0 %v4760_v16 }
 0x2b3   :  { %v4765_v12 = vpop.xlane.xlu0 %1949  ;;  %v1920_v4 = vpop.xlane.xlu1 %1919  ;;  %7880 = vst [vmem:[#allocation107_spill] sm:$0xff] %v4796_v59 }
 0x2b4   :  { %vm2381_vm6 = vcmp.eq.f32.partialorder %v4273_v48, %v4765_v12  ;;  %vm2366_vm7 = vcmp.eq.f32.partialorder %v4278_v53, %v1920_v4  ;;  %v4773_v36 = vcvt.s32.f32 %v2430_v13 }
 0x2b5   :  { %v4770_v41 = vsel %vm2381_vm6, %v4210_v15, 128  ;;  %v4779_v51 = vsel %vm2366_vm7, %v4210_v15, 128 }
 0x2b6   :  { %7874 = vst [vmem:[#allocation101_spill] sm:$0xff] %v4770_v41  ;;  %7875 = vst [vmem:[#allocation102_spill] sm:$0xff] %v4773_v36  ;;  %v2654_v16 = vshra.s32 %v4770_v41, 16  ;;  %2433 = vmin.xlane.f32.xlu0 %v4773_v36  ;;  %v2444_v24 = vshra.s32 %v4779_v51, 16  ;;  %v889_v41 = vsub.f32 %v4241_v55, %v827_v38  ;;  %v905_v55 = vsub.f32 %v4262_v56, %v859_v28 }
 0x2b7   :  { %7877 = vst [vmem:[#allocation104_spill] sm:$0xff] %v4779_v51  ;;  %v1952_v18 = vpop.xlane.xlu1 %1951  ;;  %v4784_v44 = vpop.xlane.xlu0 %828  ;;  %v4810_v38 = vcvt.s32.f32 %v1351_v22 }
 0x2b8   :  { %vm2382_vm9 = vcmp.eq.f32.partialorder %v4289_v7, %v1952_v18  ;;  %v4791_v20 = vcvt.s32.f32 %v2654_v16  ;;  %v4798_v36 = vcvt.s32.f32 %v2444_v24  ;;  %vm1274_vm10 = vcmp.eq.f32.partialorder %v4294_v29, %v4784_v44 }
 0x2b9   :  { %v4789_v13 = vsel %vm2382_vm9, %v4210_v15, 128  ;;  %7882 = vst [vmem:[#allocation109_spill] sm:$0xff] %v4810_v38  ;;  %v1575_v24 = vshra.s32 %v4796_v59, 16  ;;  %v922_v9 = vmul.f32 1.442695, %v889_v41  ;;  %v4816_v34 = vsel %vm1274_vm10, %v4210_v15, 128 }
 0x2ba   :  { %7878 = vst [vmem:[#allocation105_spill] sm:$0xff] %v4789_v13  ;;  %7879 = vst [vmem:[#allocation106_spill] sm:$0xff] %v4791_v20  ;;  %2657 = vmin.xlane.f32.xlu0 %v4791_v20  ;;  %v2668_v16 = vshra.s32 %v4789_v13, 16  ;;  %2447 = vmin.xlane.f32.xlu1 %v4798_v36  ;;  %v954_v56 = vmul.f32 1.442695, %v905_v55  ;;  %v1365_v22 = vshra.s32 %v4816_v34, 16  ;;  %v1982_v41 = vsub.f32 %v4278_v53, %v1920_v4 }
 0x2bb   :  { %7881 = vst [vmem:[#allocation108_spill] sm:$0xff] %v4798_v36  ;;  %v4803_v51 = vpop.xlane.xlu0 %860  ;;  %v4805_v46 = vpop.xlane.xlu1 %830  ;;  %7884 = vst [vmem:[#allocation111_spill] sm:$0xff] %v4816_v34  ;;  %v4826_v28 = vcvt.s32.f32 %v1575_v24  ;;  %3269 = vpow2.f32 %v922_v9  ;;  %v888_v55 = vsub.f32 %v4224_v17, %v4734_v60  ;;  %v1998_v24 = vsub.f32 %v4289_v7, %v1952_v18 }
 0x2bc   :  { %v4812_v31 = vcvt.s32.f32 %v2668_v16  ;;  %vm1290_vm11 = vcmp.eq.f32.partialorder %v4305_v61, %v4803_v51  ;;  %3271 = vpow2.f32 %v954_v56  ;;  %v4844_v53 = vcvt.s32.f32 %v1365_v22 }
 0x2bd   :  { %7885 = vst [vmem:[#allocation112_spill] sm:$0xff] %v4826_v28  ;;  %v4831_v16 = vsel %vm1290_vm11, %v4210_v15, 128  ;;  %v2015_v9 = vmul.f32 1.442695, %v1982_v41  ;;  %v920_v22 = vmul.f32 1.442695, %v888_v55  ;;  %v904_v7 = vsub.f32 %v4236_v19, %v4742_v3 }
 0x2be   :  { %7883 = vst [vmem:[#allocation110_spill] sm:$0xff] %v4812_v31  ;;  %1354 = vmin.xlane.f32.xlu0 %v4810_v38  ;;  %2671 = vmin.xlane.f32.xlu1 %v4812_v31  ;;  %7886 = vst [vmem:[#allocation113_spill] sm:$0xff] %v4831_v16  ;;  %v1589_v4 = vshra.s32 %v4831_v16, 16  ;;  %vm1275_vm2 = vcmp.eq.f32.partialorder %v4310_v30, %v4805_v46 }
 0x2bf   :  { %v4821_v20 = vpop.xlane.xlu0 %1921  ;;  %v4823_v13 = vpop.xlane.xlu1 %862  ;;  %7887 = vst [vmem:[#allocation114_spill] sm:$0xff] %v4844_v53  ;;  %3273 = vpow2.f32 %v2015_v9 }
 0x2c0   :  { %vm2367_vm12 = vcmp.eq.f32.partialorder %v4321_v37, %v4821_v20  ;;  %v4869_v41 = vcvt.s32.f32 %v1589_v4  ;;  %3275 = vpow2.f32 %v920_v22  ;;  %v952_v4 = vmul.f32 1.442695, %v904_v7 }
 0x2c1   :  { %v4849_v34 = vsel %vm2367_vm12, %v4210_v15, 128  ;;  %vm1291_vm3 = vcmp.eq.f32.partialorder %v4326_v25, %v4823_v13 }
 0x2c2   :  { %1578 = vmin.xlane.f32.xlu0 %v4826_v28  ;;  %7888 = vst [vmem:[#allocation115_spill] sm:$0xff] %v4849_v34  ;;  %7891 = vst [vmem:[#allocation118_spill] sm:$0xff] %v4869_v41  ;;  %v2047_v28 = vmul.f32 1.442695, %v1998_v24 }
 0x2c3   :  { %v4836_v36 = vpop.xlane.xlu0 %1953  ;;  %v4838_v38 = vpop.xlane.xlu1 %1923 }
 0x2c4   :  { %vm2368_vm13 = vcmp.eq.f32.partialorder %v4342_v10, %v4838_v38  ;;  %vm2383_vm14 = vcmp.eq.f32.partialorder %v4337_v27, %v4836_v36  ;;  %3277 = vpow2.f32 %v2047_v28 }
 0x2c5   :  { %v4852_v31 = vsel %vm2368_vm13, %v4210_v15, 128  ;;  %3279 = vpow2.f32 %v952_v4 }
 0x2c6   :  { %7889 = vst [vmem:[#allocation116_spill] sm:$0xff] %v4852_v31  ;;  %1368 = vmin.xlane.f32.xlu0 %v4844_v53  ;;  %v2472_v56 = vshra.s32 %v4852_v31, 16  ;;  %v2458_v53 = vshra.s32 %v4849_v34, 16  ;;  %v4875_v31 = vsel %vm2383_vm14, %v4210_v15, 128  ;;  %v1981_v34 = vsub.f32 %v4257_v63, %v4753_v11 }
 0x2c7   :  { %v4857_v17 = vpop.xlane.xlu1 %1955  ;;  %v4859_v60 = vpop.xlane.xlu0 %832  ;;  %7893 = vst [vmem:[#allocation120_spill] sm:$0xff] %v4875_v31  ;;  %v1997_v63 = vsub.f32 %v4273_v48, %v4765_v12 }
 0x2c8   :  { %vm2384_vm15 = vcmp.eq.f32.partialorder %v4353_v52, %v4857_v17  ;;  %v4871_v16 = vcvt.s32.f32 %v2472_v56  ;;  %v4886_v9 = vcvt.s32.f32 %v2458_v53  ;;  %v2682_v56 = vshra.s32 %v4875_v31, 16 }
 0x2c9   :  { %v4867_v18 = vsel %vm2384_vm15, %v4210_v15, 128  ;;  %v891_v31 = vsub.f32 %v4310_v30, %v4805_v46  ;;  %v2045_v4 = vmul.f32 1.442695, %v1997_v63  ;;  %vm1276_vm6 = vcmp.eq.f32.partialorder %v4358_v21, %v4859_v60 }
 0x2ca   :  { %7890 = vst [vmem:[#allocation117_spill] sm:$0xff] %v4867_v18  ;;  %7892 = vst [vmem:[#allocation119_spill] sm:$0xff] %v4871_v16  ;;  %v2696_v55 = vshra.s32 %v4867_v18, 16  ;;  %1592 = vmin.xlane.f32.xlu0 %v4869_v41  ;;  %2475 = vmin.xlane.f32.xlu1 %v4871_v16  ;;  %v4894_v18 = vsel %vm1275_vm2, %v4210_v15, 128  ;;  %v3270_v16 = vpop.eup %3269  ;;  %v4906_v11 = vcvt.s32.f32 %v2682_v56 }
 0x2cb   :  { %v4882_v19 = vpop.xlane.xlu0 %864  ;;  %v4884_v3 = vpop.xlane.xlu1 %834  ;;  %7894 = vst [vmem:[#allocation121_spill] sm:$0xff] %v4886_v9  ;;  %7896 = vst [vmem:[#allocation123_spill] sm:$0xff] %v4894_v18  ;;  %v1379_v28 = vshra.s32 %v4894_v18, 16  ;;  %v926_v56 = vmul.f32 1.442695, %v891_v31 }
 0x2cc   :  { %v4888_v24 = vcvt.s32.f32 %v2696_v55  ;;  %7897 = vst [vmem:[#allocation124_spill] sm:$0xff] %v4906_v11  ;;  %v3272_v7 = vpop.eup %3271  ;;  %v2013_v55 = vmul.f32 1.442695, %v1981_v34  ;;  %v907_v34 = vsub.f32 %v4326_v25, %v4823_v13  ;;  %vm1292_vm7 = vcmp.eq.f32.partialorder %v4369_v8, %v4882_v19 }
 0x2cd   :  { %v4926_v30 = vcvt.s32.f32 %v1379_v28  ;;  %vm1277_vm11 = vcmp.eq.f32.partialorder %v4374_v5, %v4884_v3 }
 0x2ce   :  { %7895 = vst [vmem:[#allocation122_spill] sm:$0xff] %v4888_v24  ;;  %2461 = vmin.xlane.f32.xlu0 %v4886_v9  ;;  %2699 = vmin.xlane.f32.xlu1 %v4888_v24  ;;  %v4912_v9 = vsel %vm1291_vm3, %v4210_v15, 128  ;;  %v4916_v24 = vsel %vm4215_vm0, %v3270_v16, 0.0  ;;  %3281 = vpow2.f32 %v2013_v55  ;;  %v4931_v16 = vsel %vm4215_vm0, %v3272_v7, 0.0 }
 0x2cf   :  { %v4900_v53 = vpop.xlane.xlu0 %1925  ;;  %v4902_v22 = vpop.xlane.xlu1 %866  ;;  %7898 = vst [vmem:[#allocation125_spill] sm:$0xff] %v4912_v9  ;;  %7899 = vst [vmem:[#allocation126_spill] sm:$0xff] %v4916_v24  ;;  %v1603_v46 = vshra.s32 %v4912_v9, 16  ;;  %3283 = vpow2.f32 %v2045_v4  ;;  %v958_v28 = vmul.f32 1.442695, %v907_v34  ;;  %v1984_v7 = vsub.f32 %v4342_v10, %v4838_v38 }
 0x2d0   :  { %7900 = vst [vmem:[#allocation127_spill] sm:$0xff] %v4926_v30  ;;  %7901 = vst [vmem:[#allocation128_spill] sm:$0xff] %v4931_v16  ;;  %3285 = vpow2.f32 %v926_v56  ;;  %v2000_v56 = vsub.f32 %v4353_v52, %v4857_v17  ;;  %vm2369_vm8 = vcmp.eq.f32.partialorder %v4385_v47, %v4900_v53  ;;  %vm1293_vm13 = vcmp.eq.f32.partialorder %v4390_v2, %v4902_v22 }
 0x2d1   :  { %v4941_v31 = vcvt.s32.f32 %v1603_v46  ;;  %3287 = vpow2.f32 %v958_v28  ;;  %v2019_v46 = vmul.f32 1.442695, %v1984_v7  ;;  %v5042_v0 = vsel %vm2369_vm8, %v4210_v15, 128 }
 0x2d2   :  { %2685 = vmin.xlane.f32.xlu0 %v4906_v11  ;;  %1018 = vadd.xlane.f32.xlu1 %v4916_v24  ;;  %v3274_v11 = vpop.eup %3273  ;;  %v2051_v52 = vmul.f32 1.442695, %v2000_v56  ;;  %v4998_v56 = vsel %vm1276_vm6, %v4210_v15, 128  ;;  %v909_v24 = vsub.f32 %v4390_v2, %v4902_v22  ;;  %7918 = vst [vmem:[#allocation145_spill] sm:$0xff] %v5042_v0  ;;  %v1999_v2 = vsub.f32 %v4337_v27, %v4836_v36 }
 0x2d3   :  { %v4920_v48 = vpop.xlane.xlu0 %1957  ;;  %v4922_v12 = vpop.xlane.xlu1 %1927  ;;  %7902 = vst [vmem:[#allocation129_spill] sm:$0xff] %v4941_v31  ;;  %v4950_v9 = vsel %vm4244_vm1, %v3274_v11, 0.0  ;;  %3289 = vpow2.f32 %v2019_v46  ;;  %7911 = vst [vmem:[#allocation138_spill] sm:$0xff] %v4998_v56  ;;  %v5121_v22 = vsel %vm1293_vm13, %v4210_v15, 128 }
 0x2d4   :  { %vm2370_vm4 = vcmp.eq.f32.partialorder %v4406_v58, %v4922_v12  ;;  %v3276_v13 = vpop.eup %3275  ;;  %7904 = vst [vmem:[#allocation131_spill] sm:$0xff] %v4950_v9  ;;  %3291 = vpow2.f32 %v2051_v52  ;;  %v893_v52 = vsub.f32 %v4374_v5, %v4884_v3  ;;  %vm2385_vm9 = vcmp.eq.f32.partialorder %v4401_v14, %v4920_v48  ;;  %7928 = vst [vmem:[#allocation155_spill] sm:$0xff] %v5121_v22 }
 0x2d5   :  { %v4946_v55 = vsel %vm2370_vm4, %v4210_v15, 128  ;;  %v4962_v10 = vsel %vm4215_vm0, %v3276_v13, 0.0  ;;  %v2049_v27 = vmul.f32 1.442695, %v1999_v2 }
 0x2d6   :  { %1382 = vmin.xlane.f32.xlu0 %v4926_v30  ;;  %1050 = vadd.xlane.f32.xlu1 %v4931_v16  ;;  %7903 = vst [vmem:[#allocation130_spill] sm:$0xff] %v4946_v55  ;;  %v3278_v30 = vpop.eup %3277  ;;  %7905 = vst [vmem:[#allocation132_spill] sm:$0xff] %v4962_v10  ;;  %v2500_v38 = vshra.s32 %v4946_v55, 16 }
 0x2d7   :  { %v4937_v63 = vpop.xlane.xlu1 %1959  ;;  %v4939_v25 = vpop.xlane.xlu0 %836  ;;  %v4972_v18 = vsel %vm4244_vm1, %v3278_v30, 0.0 }
 0x2d8   :  { %vm2386_vm5 = vcmp.eq.f32.partialorder %v4417_v39, %v4937_v63  ;;  %v3280_v11 = vpop.eup %3279  ;;  %7907 = vst [vmem:[#allocation134_spill] sm:$0xff] %v4972_v18  ;;  %v4980_v55 = vcvt.s32.f32 %v2500_v38  ;;  %vm1278_vm15 = vcmp.eq.f32.partialorder %v4422_v26, %v4939_v25 }
 0x2d9   :  { %v4985_v17 = vsel %vm4215_vm0, %v3280_v11, 0.0 }
 0x2da   :  { %1606 = vmin.xlane.f32.xlu0 %v4941_v31  ;;  %2111 = vadd.xlane.f32.xlu1 %v4950_v9  ;;  %v4968_v31 = vsel %vm2386_vm5, %v4210_v15, 128  ;;  %7908 = vst [vmem:[#allocation135_spill] sm:$0xff] %v4980_v55  ;;  %7909 = vst [vmem:[#allocation136_spill] sm:$0xff] %v4985_v17 }
 0x2db   :  { %v4956_v4 = vpop.xlane.xlu0 %868  ;;  %v4958_v34 = vpop.xlane.xlu1 %838  ;;  %7906 = vst [vmem:[#allocation133_spill] sm:$0xff] %v4968_v31  ;;  %v2724_v7 = vshra.s32 %v4968_v31, 16 }
 0x2dc   :  { %v3282_v30 = vpop.eup %3281  ;;  %vm1294_vm3 = vcmp.eq.f32.partialorder %v4433_v40, %v4956_v4  ;;  %vm1279_vm6 = vcmp.eq.f32.partialorder %v4438_v1, %v4958_v34 }
 0x2dd   :  { %v3284_v46 = vpop.eup %3283  ;;  %v5002_v11 = vsel %vm4244_vm1, %v3282_v30, 0.0  ;;  %v5016_v30 = vsel %vm1292_vm7, %v4210_v15, 128 }
 0x2de   :  { %1016 = vadd.xlane.f32.xlu0 %v4962_v10  ;;  %2143 = vadd.xlane.f32.xlu1 %v4972_v18  ;;  %v4995_v10 = vcvt.s32.f32 %v2724_v7  ;;  %7912 = vst [vmem:[#allocation139_spill] sm:$0xff] %v5002_v11  ;;  %v3286_v31 = vpop.eup %3285  ;;  %7913 = vst [vmem:[#allocation140_spill] sm:$0xff] %v5016_v30  ;;  %v5020_v9 = vsel %vm4244_vm1, %v3284_v46, 0.0  ;;  %v930_v46 = vmul.f32 1.442695, %v893_v52  ;;  %v1617_v59 = vshra.s32 %v5016_v30, 16 }
 0x2df   :  { %v4976_v13 = vpop.xlane.xlu0 %1929  ;;  %v4978_v28 = vpop.xlane.xlu1 %870  ;;  %7914 = vst [vmem:[#allocation141_spill] sm:$0xff] %v5020_v9  ;;  %v2486_v30 = vshra.s32 %v5042_v0, 16 }
 0x2e0   :  { %7910 = vst [vmem:[#allocation137_spill] sm:$0xff] %v4995_v10  ;;  %v3288_v18 = vpop.eup %3287  ;;  %3293 = vpow2.f32 %v930_v46  ;;  %v5060_v52 = vcvt.s32.f32 %v1617_v59  ;;  %vm2371_vm4 = vcmp.eq.f32.partialorder %v4449_v57, %v4976_v13  ;;  %vm1295_vm7 = vcmp.eq.f32.partialorder %v4454_v49, %v4978_v28 }
 0x2e2   :  { %1048 = vadd.xlane.f32.xlu0 %v4985_v17  ;;  %2503 = vmin.xlane.f32.xlu1 %v4980_v55  ;;  %v1393_v17 = vshra.s32 %v4998_v56, 16  ;;  %7920 = vst [vmem:[#allocation147_spill] sm:$0xff] %v5060_v52 }
 0x2e3   :  { %v4991_v41 = vpop.xlane.xlu0 %1961  ;;  %v4993_v38 = vpop.xlane.xlu1 %1931 }
 0x2e4   :  { %vm2372_vm10 = vcmp.eq.f32.partialorder %v4470_v43, %v4993_v38  ;;  %vm2387_vm5 = vcmp.eq.f32.partialorder %v4465_v32, %v4991_v41 }
 0x2e6   :  { %2109 = vadd.xlane.f32.xlu0 %v5002_v11  ;;  %2727 = vmin.xlane.f32.xlu1 %v4995_v10  ;;  %v5024_v10 = vsel %vm4215_vm0, %v3286_v31, 0.0  ;;  %v890_v11 = vsub.f32 %v4294_v29, %v4784_v44  ;;  %v5038_v31 = vcvt.s32.f32 %v1393_v17  ;;  %v906_v17 = vsub.f32 %v4305_v61, %v4803_v51 }
 0x2e7   :  { %v5008_v55 = vpop.xlane.xlu1 %1963  ;;  %v5010_v7 = vpop.xlane.xlu0 %840  ;;  %7915 = vst [vmem:[#allocation142_spill] sm:$0xff] %v5024_v10 }
 0x2e8   :  { %7917 = vst [vmem:[#allocation144_spill] sm:$0xff] %v5038_v31  ;;  %v924_v44 = vmul.f32 1.442695, %v890_v11  ;;  %v5069_v11 = vsel %vm2372_vm10, %v4210_v15, 128  ;;  %vm2388_vm12 = vcmp.eq.f32.partialorder %v4481_v54, %v5008_v55 }
 0x2e9   :  { %7922 = vst [vmem:[#allocation149_spill] sm:$0xff] %v5069_v11  ;;  %v2528_v0 = vshra.s32 %v5069_v11, 16 }
 0x2ea   :  { %2141 = vadd.xlane.f32.xlu0 %v5020_v9  ;;  %1022 = vadd.xlane.f32.xlu1 %v5024_v10  ;;  %v5046_v9 = vsel %vm4215_vm0, %v3288_v18, 0.0  ;;  %v3290_v10 = vpop.eup %3289  ;;  %v962_v18 = vmul.f32 1.442695, %v909_v24  ;;  %3295 = vpow2.f32 %v924_v44  ;;  %v1983_v24 = vsub.f32 %v4321_v37, %v4821_v20 }
 0x2eb   :  { %v5030_v56 = vpop.xlane.xlu0 %872  ;;  %v5034_v16 = vpop.xlane.xlu1 %842  ;;  %7919 = vst [vmem:[#allocation146_spill] sm:$0xff] %v5046_v9  ;;  %v5075_v61 = vsel %vm4244_vm1, %v3290_v10, 0.0  ;;  %v5091_v10 = vcvt.s32.f32 %v2486_v30  ;;  %v2002_v44 = vsub.f32 %v4417_v39, %v4937_v63  ;;  %v5114_v63 = vcvt.s32.f32 %v2528_v0 }
 0x2ec   :  { %7916 = vst [vmem:[#allocation143_spill] sm:$0xff] %v5030_v56  ;;  %v5064_v56 = vsel %vm2385_vm9, %v4210_v15, 128  ;;  %v3292_v51 = vpop.eup %3291  ;;  %3297 = vpow2.f32 %v962_v18  ;;  %v2017_v20 = vmul.f32 1.442695, %v1983_v24  ;;  %v1631_v24 = vshra.s32 %v5121_v22, 16 }
 0x2ed   :  { %7921 = vst [vmem:[#allocation148_spill] sm:$0xff] %v5064_v56  ;;  %7924 = vst [vmem:[#allocation151_spill] sm:$0xff] %v5091_v10  ;;  %v2710_v46 = vshra.s32 %v5064_v56, 16  ;;  %v5102_v37 = vsel %vm4244_vm1, %v3292_v51, 0.0  ;;  %v2055_v18 = vmul.f32 1.442695, %v2002_v44 }
 0x2ee   :  { %1396 = vmin.xlane.f32.xlu0 %v5038_v31  ;;  %1054 = vadd.xlane.f32.xlu1 %v5046_v9  ;;  %v1986_v31 = vsub.f32 %v4406_v58, %v4922_v12  ;;  %v956_v58 = vmul.f32 1.442695, %v906_v17  ;;  %v5089_v12 = vsel %vm1277_vm11, %v4210_v15, 128  ;;  %v5098_v17 = vsel %vm2388_vm12, %v4210_v15, 128  ;;  %7927 = vst [vmem:[#allocation154_spill] sm:$0xff] %v5114_v63 }
 0x2ef   :  { %v5054_v29 = vpop.xlane.xlu0 %1933  ;;  %v5071_v9 = vpop.xlane.xlu1 %874  ;;  %7923 = vst [vmem:[#allocation150_spill] sm:$0xff] %v5089_v12  ;;  %7925 = vst [vmem:[#allocation152_spill] sm:$0xff] %v5098_v17  ;;  %v5112_v39 = vcvt.s32.f32 %v2710_v46  ;;  %v1407_v30 = vshra.s32 %v5089_v12, 16 }
 0x2f0   :  { %3299 = vpow2.f32 %v956_v58  ;;  %v3294_v46 = vpop.eup %3293 }
 0x2f1   :  { %7926 = vst [vmem:[#allocation153_spill] sm:$0xff] %v5112_v39  ;;  %v5127_v0 = vcvt.s32.f32 %v1407_v30  ;;  %v895_v30 = vsub.f32 %v4438_v1, %v4958_v34  ;;  %v5277_v34 = vsel %vm1279_vm6, %v4210_v15, 128 }
 0x2f2   :  { %1620 = vmin.xlane.f32.xlu0 %v5060_v52  ;;  %2115 = vadd.xlane.f32.xlu1 %v5075_v61  ;;  %v2023_v52 = vmul.f32 1.442695, %v1986_v31  ;;  %v2752_v31 = vshra.s32 %v5098_v17, 16  ;;  %7952 = vst [vmem:[#allocation179_spill] sm:$0xff] %v5277_v34 }
 0x2f3   :  { %v5081_v59 = vpop.xlane.xlu0 %1965  ;;  %v5110_v3 = vpop.xlane.xlu1 %1935  ;;  %7929 = vst [vmem:[#allocation156_spill] sm:$0xff] %v5127_v0 }
 0x2f4   :  { %3301 = vpow2.f32 %v2023_v52  ;;  %v5129_v58 = vcvt.s32.f32 %v2752_v31  ;;  %v5144_v31 = vsel %vm4215_vm0, %v3294_v46, 0.0  ;;  %vm2374_vm14 = vcmp.eq.f32.partialorder %v4534_v6, %v5110_v3 }
 0x2f5   :  { %3303 = vpow2.f32 %v2017_v20  ;;  %7932 = vst [vmem:[#allocation159_spill] sm:$0xff] %v5144_v31 }
 0x2f6   :  { %2489 = vmin.xlane.f32.xlu0 %v5091_v10  ;;  %2147 = vadd.xlane.f32.xlu1 %v5102_v37  ;;  %7930 = vst [vmem:[#allocation157_spill] sm:$0xff] %v5129_v58  ;;  %3305 = vpow2.f32 %v2055_v18 }
 0x2f7   :  { %v5108_v5 = vpop.xlane.xlu0 %844  ;;  %v5132_v36 = vpop.xlane.xlu1 %1967  ;;  %3307 = vpow2.f32 %v2049_v27  ;;  %v934_v27 = vmul.f32 1.442695, %v895_v30 }
 0x2f8   :  { %v3296_v44 = vpop.eup %3295  ;;  %vm2390_vm2 = vcmp.eq.f32.partialorder %v4545_v23, %v5132_v36 }
 0x2f9   :  { %v3298_v20 = vpop.eup %3297  ;;  %v5156_v10 = vsel %vm4215_vm0, %v3296_v44, 0.0  ;;  %3309 = vpow2.f32 %v934_v27  ;;  %v2004_v27 = vsub.f32 %v4481_v54, %v5008_v55 }
 0x2fa   :  { %2713 = vmin.xlane.f32.xlu0 %v5112_v39  ;;  %2531 = vmin.xlane.f32.xlu1 %v5114_v63  ;;  %v5138_v39 = vcvt.s32.f32 %v1631_v24  ;;  %v911_v24 = vsub.f32 %v4454_v49, %v4978_v28  ;;  %7933 = vst [vmem:[#allocation160_spill] sm:$0xff] %v5156_v10  ;;  %v5160_v46 = vsel %vm4215_vm0, %v3298_v20, 0.0  ;;  %v1988_v20 = vsub.f32 %v4470_v43, %v4993_v38 }
 0x2fb   :  { %v5125_v51 = vpop.xlane.xlu0 %876  ;;  %v5148_v2 = vpop.xlane.xlu1 %846  ;;  %7934 = vst [vmem:[#allocation161_spill] sm:$0xff] %v5160_v46  ;;  %v5175_v63 = vsel %vm2374_vm14, %v4210_v15, 128  ;;  %v5190_v43 = vsel %vm1278_vm15, %v4210_v15, 128  ;;  %v5292_v49 = vsel %vm1295_vm7, %v4210_v15, 128 }
 0x2fc   :  { %7931 = vst [vmem:[#allocation158_spill] sm:$0xff] %v5138_v39  ;;  %v966_v30 = vmul.f32 1.442695, %v911_v24  ;;  %7936 = vst [vmem:[#allocation163_spill] sm:$0xff] %v5175_v63  ;;  %v1421_v55 = vshra.s32 %v5190_v43, 16 }
 0x2fd   :  { %v3300_v56 = vpop.eup %3299  ;;  %7938 = vst [vmem:[#allocation165_spill] sm:$0xff] %v5190_v43  ;;  %7954 = vst [vmem:[#allocation181_spill] sm:$0xff] %v5292_v49 }
 0x2fe   :  { %1410 = vmin.xlane.f32.xlu0 %v5127_v0  ;;  %2755 = vmin.xlane.f32.xlu1 %v5129_v58  ;;  %v5170_v44 = vsel %vm4215_vm0, %v3300_v56, 0.0  ;;  %3311 = vpow2.f32 %v966_v30  ;;  %v2556_v56 = vshra.s32 %v5175_v63, 16  ;;  %v5200_v0 = vsel %vm2390_vm2, %v4210_v15, 128 }
 0x2ff   :  { %v5136_v52 = vpop.xlane.xlu0 %1937  ;;  %7935 = vst [vmem:[#allocation162_spill] sm:$0xff] %v5170_v44  ;;  %v5177_v11 = vpop.xlane.xlu1 %878  ;;  %7940 = vst [vmem:[#allocation167_spill] sm:$0xff] %v5200_v0  ;;  %v2059_v63 = vmul.f32 1.442695, %v2004_v27  ;;  %v5237_v27 = vsel %vm2371_vm4, %v4210_v15, 128  ;;  %vm1281_vm4 = vcmp.eq.f32.partialorder %v4502_v50, %v5034_v16 }
 0x300   :  { %v5214_v54 = vcvt.s32.f32 %v2556_v56  ;;  %v892_v56 = vsub.f32 %v4358_v21, %v4859_v60  ;;  %7947 = vst [vmem:[#allocation174_spill] sm:$0xff] %v5237_v27  ;;  %v908_v21 = vsub.f32 %v4369_v8, %v4882_v19  ;;  %v1985_v19 = vsub.f32 %v4385_v47, %v4900_v53 }
 0x301   :  { %v3302_v58 = vpop.eup %3301 }
 0x302   :  { %1634 = vmin.xlane.f32.xlu0 %v5138_v39  ;;  %1026 = vadd.xlane.f32.xlu1 %v5144_v31  ;;  %v3304_v17 = vpop.eup %3303  ;;  %v5183_v22 = vsel %vm4244_vm1, %v3302_v58, 0.0  ;;  %v2027_v58 = vmul.f32 1.442695, %v1988_v20  ;;  %7942 = vst [vmem:[#allocation169_spill] sm:$0xff] %v5214_v54  ;;  %v2780_v20 = vshra.s32 %v5200_v0, 16  ;;  %v5231_v0 = vcvt.s32.f32 %v1421_v55 }
 0x303   :  { %v5150_v18 = vpop.xlane.xlu0 %1969  ;;  %7937 = vst [vmem:[#allocation164_spill] sm:$0xff] %v5183_v22  ;;  %v3306_v24 = vpop.eup %3305  ;;  %v5194_v38 = vsel %vm4244_vm1, %v3304_v17, 0.0  ;;  %v928_v60 = vmul.f32 1.442695, %v892_v56  ;;  %v960_v8 = vmul.f32 1.442695, %v908_v21 }
 0x304   :  { %7939 = vst [vmem:[#allocation166_spill] sm:$0xff] %v5194_v38  ;;  %v5204_v12 = vsel %vm4244_vm1, %v3306_v24, 0.0  ;;  %v5210_v17 = vpop.xlane.xlu1 %1939  ;;  %v5219_v24 = vsel %vm1294_vm3, %v4210_v15, 128  ;;  %3313 = vpow2.f32 %v2027_v58  ;;  %7945 = vst [vmem:[#allocation172_spill] sm:$0xff] %v5231_v0  ;;  %v5233_v43 = vcvt.s32.f32 %v2780_v20 }
 0x305   :  { %7941 = vst [vmem:[#allocation168_spill] sm:$0xff] %v5204_v12  ;;  %7943 = vst [vmem:[#allocation170_spill] sm:$0xff] %v5219_v24  ;;  %v1645_v58 = vshra.s32 %v5219_v24, 16  ;;  %3315 = vpow2.f32 %v2059_v63  ;;  %v2514_v63 = vshra.s32 %v5237_v27, 16  ;;  %v897_v24 = vsub.f32 %v4502_v50, %v5034_v16 }
 0x306   :  { %1020 = vadd.xlane.f32.xlu0 %v5156_v10  ;;  %1058 = vadd.xlane.f32.xlu1 %v5160_v46  ;;  %7946 = vst [vmem:[#allocation173_spill] sm:$0xff] %v5233_v43  ;;  %3317 = vpow2.f32 %v928_v60  ;;  %vm2376_vm8 = vcmp.eq.f32.partialorder %v4598_v62, %v5210_v17  ;;  %v2021_v60 = vmul.f32 1.442695, %v1985_v19  ;;  %v5480_v50 = vsel %vm1281_vm4, %v4210_v15, 128 }
 0x307   :  { %v5179_v39 = vpop.xlane.xlu0 %848  ;;  %v5249_v55 = vcvt.s32.f32 %v1645_v58  ;;  %v938_v21 = vmul.f32 1.442695, %v897_v24  ;;  %3319 = vpow2.f32 %v960_v8  ;;  %8005 = vst [vmem:[#allocation204_spill] sm:$0xff] %v5480_v50 }
 0x309   :  { %7948 = vst [vmem:[#allocation175_spill] sm:$0xff] %v5249_v55  ;;  %3321 = vpow2.f32 %v938_v21 }
 0x30a   :  { %1052 = vadd.xlane.f32.xlu0 %v5170_v44  ;;  %2119 = vadd.xlane.f32.xlu1 %v5183_v22  ;;  %v3308_v22 = vpop.eup %3307  ;;  %3323 = vpow2.f32 %v2021_v60  ;;  %v7985_v44 = vld [vmem:[#allocation14_spill] sm:$0xff] }
 0x30b   :  { %v5212_v30 = vpop.xlane.xlu0 %880  ;;  %vm2373_vm13 = vcmp.eq.f32.partialorder %v7985_v44, %v5054_v29 }
 0x30e   :  { %2113 = vadd.xlane.f32.xlu0 %v5194_v38  ;;  %2151 = vadd.xlane.f32.xlu1 %v5204_v12  ;;  %v5223_v38 = vsel %vm4244_vm1, %v3308_v22, 0.0  ;;  %v5239_v22 = vpop.xlane.xlu1 %1971 }
 0x30f   :  { %7944 = vst [vmem:[#allocation171_spill] sm:$0xff] %v5223_v38  ;;  %v5241_v12 = vpop.xlane.xlu0 %1941  ;;  %vm2392_vm9 = vcmp.eq.f32.partialorder %v4609_v33, %v5239_v22 }
 0x310   :  { %v5321_v27 = vsel %vm2392_vm9, %v4210_v15, 128 }
 0x311   :  { %7960 = vst [vmem:[#allocation187_spill] sm:$0xff] %v5321_v27 }
 0x312   :  { %2145 = vadd.xlane.f32.xlu0 %v5223_v38  ;;  %2559 = vmin.xlane.f32.xlu1 %v5214_v54  ;;  %v3310_v38 = vpop.eup %3309  ;;  %v5253_v54 = vsel %vm2387_vm5, %v4210_v15, 128  ;;  %v5267_v56 = vpop.xlane.xlu1 %850  ;;  %vm1297_vm5 = vcmp.eq.f32.partialorder %v4518_v45, %v5071_v9 }
 0x313   :  { %v3312_v20 = vpop.eup %3311  ;;  %7949 = vst [vmem:[#allocation176_spill] sm:$0xff] %v5253_v54  ;;  %v5269_v58 = vpop.xlane.xlu0 %1973  ;;  %v2738_v1 = vshra.s32 %v5253_v54, 16  ;;  %v1990_v54 = vsub.f32 %v4534_v6, %v5110_v3 }
 0x314   :  { %v5283_v47 = vsel %vm4215_vm0, %v3312_v20, 0.0  ;;  %v3314_v53 = vpop.eup %3313  ;;  %v1435_v20 = vshra.s32 %v5277_v34, 16 }
 0x315   :  { %7953 = vst [vmem:[#allocation180_spill] sm:$0xff] %v5283_v47  ;;  %v5294_v24 = vcvt.s32.f32 %v2738_v1  ;;  %v2031_v21 = vmul.f32 1.442695, %v1990_v54 }
 0x316   :  { %1424 = vmin.xlane.f32.xlu0 %v5231_v0  ;;  %2783 = vmin.xlane.f32.xlu1 %v5233_v43  ;;  %v5259_v0 = vsel %vm4215_vm0, %v3310_v38, 0.0  ;;  %v913_v38 = vsub.f32 %v4518_v45, %v5071_v9  ;;  %v5273_v43 = vcvt.s32.f32 %v2514_v63  ;;  %v2001_v63 = vsub.f32 %v4401_v14, %v4920_v48  ;;  %v5302_v8 = vpop.xlane.xlu1 %882  ;;  %v3316_v48 = vpop.eup %3315  ;;  %v8009_v45 = vld [vmem:[#allocation109_spill] sm:$0xff] }
 0x317   :  { %7950 = vst [vmem:[#allocation177_spill] sm:$0xff] %v5259_v0  ;;  %7955 = vst [vmem:[#allocation182_spill] sm:$0xff] %v5294_v24  ;;  %v5304_v19 = vpop.xlane.xlu0 %852  ;;  %v5308_v14 = vsel %vm4244_vm1, %v3314_v53, 0.0  ;;  %v5314_v3 = vcvt.s32.f32 %v1435_v20  ;;  %v2006_v53 = vsub.f32 %v4545_v23, %v5132_v36  ;;  %v2808_v23 = vshra.s32 %v5321_v27, 16  ;;  %v3318_v36 = vpop.eup %3317 }
 0x318   :  { %7951 = vst [vmem:[#allocation178_spill] sm:$0xff] %v5273_v43  ;;  %v970_v28 = vmul.f32 1.442695, %v913_v38  ;;  %7957 = vst [vmem:[#allocation184_spill] sm:$0xff] %v5304_v19  ;;  %v2053_v6 = vmul.f32 1.442695, %v2001_v63 }
 0x319   :  { %7958 = vst [vmem:[#allocation185_spill] sm:$0xff] %v5308_v14  ;;  %7959 = vst [vmem:[#allocation186_spill] sm:$0xff] %v5314_v3  ;;  %v1659_v38 = vshra.s32 %v5292_v49, 16  ;;  %v2063_v20 = vmul.f32 1.442695, %v2006_v53  ;;  %v5340_v49 = vcvt.s32.f32 %v2808_v23  ;;  %v7969_v23 = vld [vmem:[#allocation57_spill] sm:$0xff] }
 0x31a   :  { %1648 = vmin.xlane.f32.xlu0 %v5249_v55  ;;  %1030 = vadd.xlane.f32.xlu1 %v5259_v0  ;;  %3325 = vpow2.f32 %v970_v28  ;;  %v5329_v60 = vpop.xlane.xlu1 %1943  ;;  %v7976_v0 = vld [vmem:[#allocation15_spill] sm:$0xff] }
 0x31b   :  { %3327 = vpow2.f32 %v2053_v6  ;;  %v5331_v63 = vpop.xlane.xlu0 %884  ;;  %v5333_v54 = vcvt.s32.f32 %v1659_v38  ;;  %7965 = vst [vmem:[#allocation192_spill] sm:$0xff] %v5340_v49  ;;  %v5348_v38 = vsel %vm4215_vm0, %v3318_v36, 0.0 }
 0x31c   :  { %7962 = vst [vmem:[#allocation189_spill] sm:$0xff] %v5331_v63  ;;  %3329 = vpow2.f32 %v2031_v21  ;;  %7967 = vst [vmem:[#allocation194_spill] sm:$0xff] %v5348_v38 }
 0x31d   :  { %7963 = vst [vmem:[#allocation190_spill] sm:$0xff] %v5333_v54  ;;  %3331 = vpow2.f32 %v2063_v20  ;;  %v899_v20 = vsub.f32 %v7969_v23, %v5148_v2 }
 0x31e   :  { %2517 = vmin.xlane.f32.xlu0 %v5273_v43  ;;  %1062 = vadd.xlane.f32.xlu1 %v5283_v47  ;;  %v5300_v43 = vsel %vm2376_vm8, %v4210_v15, 128  ;;  %v5342_v6 = vpop.xlane.xlu1 %1975 }
 0x31f   :  { %7956 = vst [vmem:[#allocation183_spill] sm:$0xff] %v5300_v43  ;;  %v2584_v1 = vshra.s32 %v5300_v43, 16  ;;  %v942_v27 = vmul.f32 1.442695, %v899_v20 }
 0x321   :  { %v5335_v28 = vcvt.s32.f32 %v2584_v1  ;;  %3333 = vpow2.f32 %v942_v27  ;;  %v5425_v27 = vsel %vm2373_vm13, %v4210_v15, 128 }
 0x322   :  { %2741 = vmin.xlane.f32.xlu0 %v5294_v24  ;;  %2123 = vadd.xlane.f32.xlu1 %v5308_v14  ;;  %v5325_v24 = vsel %vm4244_vm1, %v3316_v48, 0.0  ;;  %v3320_v48 = vpop.eup %3319  ;;  %v5366_v55 = vpop.xlane.xlu1 %854 }
 0x323   :  { %7961 = vst [vmem:[#allocation188_spill] sm:$0xff] %v5325_v24  ;;  %7964 = vst [vmem:[#allocation191_spill] sm:$0xff] %v5335_v28  ;;  %v3322_v1 = vpop.eup %3321  ;;  %v5358_v34 = vsel %vm4215_vm0, %v3320_v48, 0.0  ;;  %v7975_v48 = vld [vmem:[#allocation143_spill] sm:$0xff] }
 0x324   :  { %v3324_v21 = vpop.eup %3323  ;;  %v5362_v36 = vsel %vm4215_vm0, %v3322_v1, 0.0  ;;  %vm1296_vm11 = vcmp.eq.f32.partialorder %v7976_v0, %v7975_v48  ;;  %v7977_v1 = vld [vmem:[#allocation61_spill] sm:$0xff] }
 0x325   :  { %7971 = vst [vmem:[#allocation57_spill] sm:$0xff] %v5362_v36  ;;  %v5392_v20 = vsel %vm1296_vm11, %v4210_v15, 128 }
 0x326   :  { %1438 = vmin.xlane.f32.xlu0 %v5314_v3  ;;  %2155 = vadd.xlane.f32.xlu1 %v5325_v24  ;;  %v5344_v3 = vpop.xlane.xlu0 %1945  ;;  %v7973_v24 = vld [vmem:[#allocation96_spill] sm:$0xff]  ;;  %7982 = vst [vmem:[#allocation61_spill] sm:$0xff] %v5392_v20  ;;  %v5410_v10 = vpop.xlane.xlu1 %886 }
 0x327   :  { %7966 = vst [vmem:[#allocation193_spill] sm:$0xff] %v5344_v3  ;;  %v3326_v53 = vpop.eup %3325  ;;  %v1336_v14 = vand.u32 65535, %v7973_v24  ;;  %v7981_v3 = vld [vmem:[#allocation97_spill] sm:$0xff] }
 0x328   :  { %v3328_v47 = vpop.eup %3327  ;;  %v1560_v43 = vand.u32 65535, %v7981_v3  ;;  %v7986_v3 = vld [vmem:[#allocation98_spill] sm:$0xff] }
 0x329   :  { %v3330_v24 = vpop.eup %3329  ;;  %v1338_v19 = vcvt.s32.f32 %v1336_v14 }
 0x32a   :  { %1662 = vmin.xlane.f32.xlu0 %v5333_v54  ;;  %2587 = vmin.xlane.f32.xlu1 %v5335_v28  ;;  %v7968_v54 = vld [vmem:[#allocation12_spill] sm:$0xff]  ;;  %v915_v28 = vsub.f32 %v7977_v1, %v5177_v11 }
 0x32b   :  { %vm1280_vm10 = vcmp.eq.f32.partialorder %v7968_v54, %v5010_v7  ;;  %7970 = vst [vmem:[#allocation12_spill] sm:$0xff] %v5358_v34 }
 0x32e   :  { %1024 = vadd.xlane.f32.xlu0 %v5348_v38  ;;  %2811 = vmin.xlane.f32.xlu1 %v5340_v49  ;;  %v5368_v38 = vpop.xlane.xlu0 %1977  ;;  %v5372_v49 = vsel %vm1280_vm10, %v4210_v15, 128 }
 0x32f   :  { %7972 = vst [vmem:[#allocation195_spill] sm:$0xff] %v5368_v38  ;;  %7974 = vst [vmem:[#allocation96_spill] sm:$0xff] %v5372_v49  ;;  %v7980_v38 = vld [vmem:[#allocation79_spill] sm:$0xff] }
 0x330   :  { %vm2378_vm12 = vcmp.eq.f32.partialorder %v7980_v38, %v5329_v60 }
 0x331   :  { %v5408_v46 = vsel %vm2378_vm12, %v4210_v15, 128 }
 0x332   :  { %1056 = vadd.xlane.f32.xlu0 %v5358_v34  ;;  %1034 = vadd.xlane.f32.xlu1 %v5362_v36  ;;  %v5380_v36 = vsel %vm4244_vm1, %v3324_v21, 0.0  ;;  %v5384_v34 = vsel %vm4215_vm0, %v3326_v53, 0.0  ;;  %v5398_v21 = vsel %vm4244_vm1, %v3328_v47, 0.0  ;;  %v1449_v53 = vshra.s32 %v5372_v49, 16  ;;  %7987 = vst [vmem:[#allocation14_spill] sm:$0xff] %v5408_v46  ;;  %v3332_v49 = vpop.eup %3331 }
 0x333   :  { %7978 = vst [vmem:[#allocation143_spill] sm:$0xff] %v5380_v36  ;;  %7979 = vst [vmem:[#allocation15_spill] sm:$0xff] %v5384_v34  ;;  %v5414_v47 = vsel %vm4244_vm1, %v3330_v24, 0.0  ;;  %v2612_v31 = vshra.s32 %v5408_v46, 16 }
 0x334   :  { %7984 = vst [vmem:[#allocation97_spill] sm:$0xff] %v5398_v21  ;;  %7988 = vst [vmem:[#allocation98_spill] sm:$0xff] %v5414_v47  ;;  %v5429_v24 = vcvt.s32.f32 %v1449_v53 }
 0x336   :  { %2117 = vadd.xlane.f32.xlu0 %v5380_v36  ;;  %1066 = vadd.xlane.f32.xlu1 %v5384_v34  ;;  %v974_v36 = vmul.f32 1.442695, %v915_v28  ;;  %v1992_v34 = vsub.f32 %v4598_v62, %v5210_v17  ;;  %v7989_v28 = vld [vmem:[#allocation82_spill] sm:$0xff]  ;;  %v1562_v62 = vcvt.s32.f32 %v1560_v43  ;;  %v894_v17 = vsub.f32 %v4422_v26, %v4939_v25  ;;  %7992 = vst [vmem:[#allocation197_spill] sm:$0xff] %v5429_v24 }
 0x337   :  { %v5394_v63 = vpop.xlane.xlu0 %1340  ;;  %vm2394_vm15 = vcmp.eq.f32.partialorder %v7989_v28, %v5342_v6  ;;  %7990 = vst [vmem:[#allocation82_spill] sm:$0xff] %v5425_v27  ;;  %v2008_v43 = vsub.f32 %v4609_v33, %v5239_v22  ;;  %v5442_v25 = vsel %vm4244_vm1, %v3332_v49, 0.0  ;;  %v910_v33 = vsub.f32 %v4433_v40, %v4956_v4  ;;  %v5452_v22 = vpop.xlane.xlu1 %1947 }
 0x338   :  { %7983 = vst [vmem:[#allocation79_spill] sm:$0xff] %v5394_v63  ;;  %vm1342_vm14 = vcmp.eq.f32.partialorder %v7986_v3, %v5394_v63  ;;  %3335 = vpow2.f32 %v974_v36  ;;  %v2035_v63 = vmul.f32 1.442695, %v1992_v34  ;;  %v5438_v26 = vsel %vm2394_vm15, %v4210_v15, 128  ;;  %7995 = vst [vmem:[#allocation198_spill] sm:$0xff] %v5442_v25  ;;  %v7996_v36 = vld [vmem:[#allocation17_spill] sm:$0xff] }
 0x339   :  { %v5416_v14 = vsel %vm1342_vm14, %v1338_v19, inf  ;;  %v1673_v19 = vshra.s32 %v5392_v20, 16  ;;  %vm2389_vm3 = vcmp.eq.f32.partialorder %v7996_v36, %v5081_v59  ;;  %v932_v34 = vmul.f32 1.442695, %v894_v17 }
 0x33a   :  { %2149 = vadd.xlane.f32.xlu0 %v5398_v21  ;;  %2127 = vadd.xlane.f32.xlu1 %v5414_v47  ;;  %v7993_v21 = vld [vmem:[#allocation100_spill] sm:$0xff]  ;;  %v5458_v49 = vcvt.s32.f32 %v2612_v31  ;;  %v2836_v20 = vshra.s32 %v5438_v26, 16  ;;  %3337 = vpow2.f32 %v2035_v63  ;;  %v2067_v17 = vmul.f32 1.442695, %v2008_v43  ;;  %v8002_v31 = vld [vmem:[#allocation103_spill] sm:$0xff] }
 0x33b   :  { %v5427_v3 = vpop.xlane.xlu0 %1564  ;;  %7994 = vst [vmem:[#allocation100_spill] sm:$0xff] %v5438_v26  ;;  %3339 = vpow2.f32 %v932_v34  ;;  %v1987_v40 = vsub.f32 %v4449_v57, %v4976_v13  ;;  %v5482_v16 = vpop.xlane.xlu1 %1979  ;;  %v2003_v13 = vsub.f32 %v4465_v32, %v4991_v41  ;;  %vm1283_vm14 = vcmp.eq.f32.partialorder %v7969_v23, %v5148_v2 }
 0x33c   :  { %7991 = vst [vmem:[#allocation196_spill] sm:$0xff] %v5427_v3  ;;  %vm1566_vm2 = vcmp.eq.f32.partialorder %v7993_v21, %v5427_v3  ;;  %v5456_v3 = vcvt.s32.f32 %v1673_v19  ;;  %7999 = vst [vmem:[#allocation200_spill] sm:$0xff] %v5458_v49  ;;  %v1350_v19 = vand.u32 65535, %v8002_v31  ;;  %v5476_v63 = vcvt.s32.f32 %v2836_v20  ;;  %v3334_v34 = vpop.eup %3333 }
 0x33d   :  { %v5444_v53 = vsel %vm1566_vm2, %v1562_v62, inf  ;;  %v2542_v62 = vshra.s32 %v5425_v27, 16  ;;  %v964_v27 = vmul.f32 1.442695, %v910_v33  ;;  %3341 = vpow2.f32 %v2067_v17 }
 0x33e   :  { %1452 = vmin.xlane.f32.xlu0 %v5429_v24  ;;  %2159 = vadd.xlane.f32.xlu1 %v5442_v25  ;;  %7998 = vst [vmem:[#allocation199_spill] sm:$0xff] %v5456_v3  ;;  %v5463_v24 = vsel %vm2389_vm3, %v4210_v15, 128  ;;  %8004 = vst [vmem:[#allocation203_spill] sm:$0xff] %v5476_v63  ;;  %v2025_v57 = vmul.f32 1.442695, %v1987_v40  ;;  %v1352_v33 = vcvt.s32.f32 %v1350_v19  ;;  %v8011_v40 = vld [vmem:[#allocation71_spill] sm:$0xff]  ;;  %vm1299_vm15 = vcmp.eq.f32.partialorder %v7977_v1, %v5177_v11 }
 0x33f   :  { %v5454_v21 = vpop.xlane.xlu0 %2433  ;;  %8000 = vst [vmem:[#allocation201_spill] sm:$0xff] %v5463_v24  ;;  %v2766_v43 = vshra.s32 %v5463_v24, 16  ;;  %3343 = vpow2.f32 %v964_v27  ;;  %v1463_v24 = vshra.s32 %v5480_v50, 16  ;;  %v901_v32 = vsub.f32 %v8011_v40, %v5267_v56  ;;  %v8032_v25 = vld [vmem:[#allocation87_spill] sm:$0xff] }
 0x340   :  { %7997 = vst [vmem:[#allocation17_spill] sm:$0xff] %v5454_v21  ;;  %v5474_v21 = vcvt.s32.f32 %v2542_v62  ;;  %v8007_v62 = vld [vmem:[#allocation107_spill] sm:$0xff]  ;;  %v5507_v19 = vsel %vm4215_vm0, %v3334_v34, 0.0  ;;  %3345 = vpow2.f32 %v2025_v57  ;;  %v8017_v34 = vld [vmem:[#allocation112_spill] sm:$0xff]  ;;  %v903_v47 = vsub.f32 %v8032_v25, %v5366_v55 }
 0x341   :  { %v1574_v31 = vand.u32 65535, %v8007_v62  ;;  %v5493_v17 = vcvt.s32.f32 %v2766_v43  ;;  %8013 = vst [vmem:[#allocation206_spill] sm:$0xff] %v5507_v19  ;;  %v2057_v43 = vmul.f32 1.442695, %v2003_v13 }
 0x342   :  { %1676 = vmin.xlane.f32.xlu0 %v5456_v3  ;;  %2615 = vmin.xlane.f32.xlu1 %v5458_v49  ;;  %8003 = vst [vmem:[#allocation103_spill] sm:$0xff] %v5474_v21 }
 0x343   :  { %v5471_v4 = vpop.xlane.xlu0 %2657  ;;  %8008 = vst [vmem:[#allocation107_spill] sm:$0xff] %v5493_v17  ;;  %v5503_v41 = vpop.xlane.xlu1 %2447  ;;  %3347 = vpow2.f32 %v2057_v43 }
 0x344   :  { %8001 = vst [vmem:[#allocation202_spill] sm:$0xff] %v5471_v4  ;;  %8012 = vst [vmem:[#allocation71_spill] sm:$0xff] %v5503_v41  ;;  %v5517_v4 = vcvt.s32.f32 %v1463_v24 }
 0x345   :  { %v3336_v9 = vpop.eup %3335 }
 0x346   :  { %2545 = vmin.xlane.f32.xlu0 %v5474_v21  ;;  %2839 = vmin.xlane.f32.xlu1 %v5476_v63  ;;  %v5499_v21 = vsel %vm1297_vm5, %v4210_v15, 128 }
 0x347   :  { %v5490_v20 = vpop.xlane.xlu0 %1354  ;;  %8010 = vst [vmem:[#allocation109_spill] sm:$0xff] %v5499_v21  ;;  %v1687_v3 = vshra.s32 %v5499_v21, 16  ;;  %v3338_v13 = vpop.eup %3337 }
 0x348   :  { %8006 = vst [vmem:[#allocation205_spill] sm:$0xff] %v5490_v20  ;;  %vm1356_vm6 = vcmp.eq.f32.partialorder %v8009_v45, %v5490_v20  ;;  %v1576_v45 = vcvt.s32.f32 %v1574_v31  ;;  %v8015_v20 = vld [vmem:[#allocation75_spill] sm:$0xff]  ;;  %v8019_v31 = vld [vmem:[#allocation94_spill] sm:$0xff]  ;;  %v5532_v24 = vpop.xlane.xlu1 %2671 }
 0x349   :  { %v5509_v27 = vsel %vm1356_vm6, %v1352_v33, inf  ;;  %v917_v50 = vsub.f32 %v8015_v20, %v5302_v8  ;;  %8016 = vst [vmem:[#allocation75_spill] sm:$0xff] %v5517_v4  ;;  %v946_v33 = vmul.f32 1.442695, %v901_v32  ;;  %vm2380_vm8 = vcmp.eq.f32.partialorder %v8019_v31, %v5452_v22  ;;  %8020 = vst [vmem:[#allocation94_spill] sm:$0xff] %v5532_v24 }
 0x34a   :  { %2769 = vmin.xlane.f32.xlu0 %v5493_v17  ;;  %1038 = vadd.xlane.f32.xlu1 %v5507_v19  ;;  %v5524_v17 = vsel %vm4215_vm0, %v3336_v9, 0.0  ;;  %v1994_v9 = vsub.f32 %v7980_v38, %v5329_v60  ;;  %v8024_v19 = vld [vmem:[#allocation95_spill] sm:$0xff] }
 0x34b   :  { %v5513_v62 = vpop.xlane.xlu0 %1578  ;;  %8018 = vst [vmem:[#allocation112_spill] sm:$0xff] %v5524_v17  ;;  %v978_v32 = vmul.f32 1.442695, %v917_v50  ;;  %3349 = vpow2.f32 %v946_v33  ;;  %vm2396_vm9 = vcmp.eq.f32.partialorder %v8024_v19, %v5482_v16 }
 0x34c   :  { %8014 = vst [vmem:[#allocation207_spill] sm:$0xff] %v5513_v62  ;;  %vm1580_vm7 = vcmp.eq.f32.partialorder %v8017_v34, %v5513_v62  ;;  %v3340_v34 = vpop.eup %3339  ;;  %v5536_v62 = vcvt.s32.f32 %v1687_v3  ;;  %v2039_v33 = vmul.f32 1.442695, %v1994_v9 }
 0x34d   :  { %v5526_v57 = vsel %vm1580_vm7, %v1576_v45, inf  ;;  %v5541_v45 = vsel %vm2380_vm8, %v4210_v15, 128  ;;  %3351 = vpow2.f32 %v978_v32  ;;  %v5557_v60 = vsel %vm4215_vm0, %v3340_v34, 0.0 }
 0x34e   :  { %1466 = vmin.xlane.f32.xlu0 %v5517_v4  ;;  %1070 = vadd.xlane.f32.xlu1 %v5524_v17  ;;  %8021 = vst [vmem:[#allocation208_spill] sm:$0xff] %v5536_v62  ;;  %8022 = vst [vmem:[#allocation209_spill] sm:$0xff] %v5541_v45  ;;  %v5545_v4 = vsel %vm4244_vm1, %v3338_v13, 0.0  ;;  %v3342_v17 = vpop.eup %3341  ;;  %v2640_v38 = vshra.s32 %v5541_v45, 16  ;;  %v2010_v13 = vsub.f32 %v7989_v28, %v5342_v6  ;;  %3353 = vpow2.f32 %v2039_v33 }
 0x34f   :  { %v5534_v21 = vpop.xlane.xlu0 %1368  ;;  %8023 = vst [vmem:[#allocation210_spill] sm:$0xff] %v5545_v4  ;;  %8026 = vst [vmem:[#allocation211_spill] sm:$0xff] %v5557_v60  ;;  %v3344_v43 = vpop.eup %3343  ;;  %vm1285_vm7 = vcmp.eq.f32.partialorder %v8011_v40, %v5267_v56 }
 0x350   :  { %v3346_v45 = vpop.eup %3345  ;;  %v5575_v9 = vcvt.s32.f32 %v2640_v38  ;;  %v2071_v28 = vmul.f32 1.442695, %v2010_v13  ;;  %v5877_v40 = vsel %vm1285_vm7, %v4210_v15, 128 }
 0x351   :  { %v5592_v33 = vsel %vm4244_vm1, %v3346_v45, 0.0  ;;  %v1996_v45 = vsub.f32 %v8019_v31, %v5452_v22  ;;  %v8045_v22 = vld [vmem:[#allocation60_spill] sm:$0xff]  ;;  %v896_v31 = vsub.f32 %v7968_v54, %v5010_v7 }
 0x352   :  { %1690 = vmin.xlane.f32.xlu0 %v5536_v62  ;;  %2131 = vadd.xlane.f32.xlu1 %v5545_v4  ;;  %v5563_v62 = vsel %vm2396_vm9, %v4210_v15, 128  ;;  %v5567_v4 = vsel %vm4244_vm1, %v3342_v17, 0.0  ;;  %8031 = vst [vmem:[#allocation216_spill] sm:$0xff] %v5575_v9  ;;  %v5582_v17 = vsel %vm4215_vm0, %v3344_v43, 0.0  ;;  %8036 = vst [vmem:[#allocation217_spill] sm:$0xff] %v5592_v33  ;;  %vm2375_vm12 = vcmp.eq.f32.partialorder %v8045_v22, %v5136_v52  ;;  %v8050_v54 = vld [vmem:[#allocation64_spill] sm:$0xff] }
 0x353   :  { %v5551_v3 = vpop.xlane.xlu0 %1592  ;;  %v5553_v50 = vpop.xlane.xlu1 %2475  ;;  %8027 = vst [vmem:[#allocation212_spill] sm:$0xff] %v5563_v62  ;;  %8028 = vst [vmem:[#allocation213_spill] sm:$0xff] %v5567_v4  ;;  %v2864_v6 = vshra.s32 %v5563_v62, 16  ;;  %v950_v62 = vmul.f32 1.442695, %v903_v47  ;;  %v5635_v46 = vsel %vm2375_vm12, %v4210_v15, 128  ;;  %vm2391_vm13 = vcmp.eq.f32.partialorder %v8050_v54, %v5150_v18 }
 0x354   :  { %8025 = vst [vmem:[#allocation95_spill] sm:$0xff] %v5553_v50  ;;  %8033 = vst [vmem:[#allocation87_spill] sm:$0xff] %v5582_v17  ;;  %vm1301_vm9 = vcmp.eq.f32.partialorder %v8015_v20, %v5302_v8  ;;  %v2007_v8 = vsub.f32 %v8050_v54, %v5150_v18 }
 0x355   :  { %v5594_v13 = vcvt.s32.f32 %v2864_v6  ;;  %8048 = vst [vmem:[#allocation223_spill] sm:$0xff] %v5635_v46  ;;  %v5891_v20 = vsel %vm1301_vm9, %v4210_v15, 128 }
 0x356   :  { %1028 = vadd.xlane.f32.xlu0 %v5557_v60  ;;  %2163 = vadd.xlane.f32.xlu1 %v5567_v4  ;;  %v8034_v4 = vld [vmem:[#allocation16_spill] sm:$0xff]  ;;  %v3348_v60 = vpop.eup %3347  ;;  %v1743_v54 = vshra.s32 %v5891_v20, 16 }
 0x357   :  { %v5571_v34 = vpop.xlane.xlu0 %2461  ;;  %v5573_v32 = vpop.xlane.xlu1 %2699  ;;  %vm1282_vm10 = vcmp.eq.f32.partialorder %v8034_v4, %v5108_v5  ;;  %8037 = vst [vmem:[#allocation218_spill] sm:$0xff] %v5594_v13  ;;  %v5611_v47 = vsel %vm4244_vm1, %v3348_v60, 0.0  ;;  %v2043_v60 = vmul.f32 1.442695, %v1996_v45 }
 0x358   :  { %8029 = vst [vmem:[#allocation214_spill] sm:$0xff] %v5571_v34  ;;  %8030 = vst [vmem:[#allocation215_spill] sm:$0xff] %v5573_v32  ;;  %v5597_v43 = vsel %vm1282_vm10, %v4210_v15, 128 }
 0x359   :  { %8038 = vst [vmem:[#allocation219_spill] sm:$0xff] %v5597_v43 }
 0x35a   :  { %1060 = vadd.xlane.f32.xlu0 %v5582_v17  ;;  %2643 = vmin.xlane.f32.xlu1 %v5575_v9  ;;  %v8039_v17 = vld [vmem:[#allocation91_spill] sm:$0xff]  ;;  %v3350_v9 = vpop.eup %3349 }
 0x35b   :  { %v5588_v38 = vpop.xlane.xlu0 %2685  ;;  %v1019_v34 = vpop.xlane.xlu1 %1018  ;;  %v919_v63 = vsub.f32 %v8039_v17, %v5410_v10 }
 0x35c   :  { %8035 = vst [vmem:[#allocation16_spill] sm:$0xff] %v5588_v38  ;;  %3355 = vrcp.f32 %v1019_v34  ;;  %v8040_v38 = vld [vmem:[#allocation56_spill] sm:$0xff]  ;;  %v3352_v26 = vpop.eup %3351 }
 0x35d   :  { %3357 = vpow2.f32 %v2071_v28  ;;  %vm1298_vm11 = vcmp.eq.f32.partialorder %v8040_v38, %v5125_v51  ;;  %8042 = vst [vmem:[#allocation56_spill] sm:$0xff] %v5611_v47  ;;  %v1477_v28 = vshra.s32 %v5597_v43, 16  ;;  %v3354_v7 = vpop.eup %3353 }
 0x35e   :  { %2121 = vadd.xlane.f32.xlu0 %v5592_v33  ;;  %2867 = vmin.xlane.f32.xlu1 %v5594_v13  ;;  %v5615_v49 = vsel %vm1298_vm11, %v4210_v15, 128  ;;  %v982_v33 = vmul.f32 1.442695, %v919_v63  ;;  %v5619_v13 = vsel %vm4215_vm0, %v3350_v9, 0.0  ;;  %v2012_v63 = vsub.f32 %v8024_v19, %v5482_v16 }
 0x35f   :  { %v5607_v34 = vpop.xlane.xlu0 %1382  ;;  %v1051_v6 = vpop.xlane.xlu1 %1050  ;;  %8043 = vst [vmem:[#allocation220_spill] sm:$0xff] %v5615_v49  ;;  %8044 = vst [vmem:[#allocation221_spill] sm:$0xff] %v5619_v13  ;;  %v1701_v9 = vshra.s32 %v5615_v49, 16  ;;  %v936_v16 = vmul.f32 1.442695, %v896_v31  ;;  %v912_v19 = vsub.f32 %v7976_v0, %v7975_v48  ;;  %v5655_v31 = vsel %vm4244_vm1, %v3354_v7, 0.0 }
 0x360   :  { %8041 = vst [vmem:[#allocation91_spill] sm:$0xff] %v5607_v34  ;;  %3359 = vrcp.f32 %v1051_v6  ;;  %8053 = vst [vmem:[#allocation226_spill] sm:$0xff] %v5655_v31  ;;  %v8054_v0 = vld [vmem:[#allocation126_spill] sm:$0xff]  ;;  %v1989_v7 = vsub.f32 %v7985_v44, %v5054_v29  ;;  %v8059_v44 = vld [vmem:[#allocation128_spill] sm:$0xff] }
 0x361   :  { %3361 = vpow2.f32 %v950_v62  ;;  %v5631_v62 = vcvt.s32.f32 %v1477_v28  ;;  %v5647_v28 = vcvt.s32.f32 %v1701_v9  ;;  %v968_v9 = vmul.f32 1.442695, %v912_v19 }
 0x362   :  { %2153 = vadd.xlane.f32.xlu0 %v5611_v47  ;;  %1042 = vadd.xlane.f32.xlu1 %v5619_v13  ;;  %v5639_v13 = vsel %vm4215_vm0, %v3352_v26, 0.0  ;;  %v2570_v26 = vshra.s32 %v5635_v46, 16  ;;  %v5651_v47 = vsel %vm2391_vm13, %v4210_v15, 128 }
 0x363   :  { %v5627_v6 = vpop.xlane.xlu0 %1606  ;;  %v2112_v43 = vpop.xlane.xlu1 %2111  ;;  %8047 = vst [vmem:[#allocation222_spill] sm:$0xff] %v5631_v62  ;;  %8049 = vst [vmem:[#allocation224_spill] sm:$0xff] %v5639_v13  ;;  %v2794_v23 = vshra.s32 %v5651_v47, 16 }
 0x364   :  { %8046 = vst [vmem:[#allocation60_spill] sm:$0xff] %v5627_v6  ;;  %3363 = vrcp.f32 %v2112_v43  ;;  %8051 = vst [vmem:[#allocation64_spill] sm:$0xff] %v5647_v28  ;;  %v5669_v2 = vcvt.s32.f32 %v2570_v26 }
 0x365   :  { %3365 = vpow2.f32 %v982_v33  ;;  %v2075_v33 = vmul.f32 1.442695, %v2012_v63  ;;  %8052 = vst [vmem:[#allocation225_spill] sm:$0xff] %v5651_v47 }
 0x366   :  { %1480 = vmin.xlane.f32.xlu0 %v5631_v62  ;;  %1074 = vadd.xlane.f32.xlu1 %v5639_v13  ;;  %3367 = vpow2.f32 %v2043_v60  ;;  %v8055_v60 = vld [vmem:[#allocation20_spill] sm:$0xff]  ;;  %8056 = vst [vmem:[#allocation126_spill] sm:$0xff] %v5669_v2 }
 0x367   :  { %v1017_v43 = vpop.xlane.xlu0 %1016  ;;  %v2144_v45 = vpop.xlane.xlu1 %2143  ;;  %v1145_v63 = vsel %vm4215_vm0, %v8055_v60, 0.0  ;;  %v2005_v60 = vsub.f32 %v7996_v36, %v5081_v59  ;;  %v8064_v36 = vld [vmem:[#allocation131_spill] sm:$0xff] }
 0x368   :  { %3369 = vrcp.f32 %v1017_v43 }
 0x369   :  { %v3356_v49 = vpop.eup %3355  ;;  %3371 = vrcp.f32 %v2144_v45 }
 0x36a   :  { %v3358_v62 = vpop.eup %3357  ;;  %1704 = vmin.xlane.f32.xlu0 %v5647_v28  ;;  %2135 = vadd.xlane.f32.xlu1 %v5655_v31  ;;  %v1113_v48 = vmul.f32 %v3356_v49, %v8054_v0  ;;  %3373 = vpow2.f32 %v936_v16  ;;  %v5675_v0 = vsel %vm1283_vm14, %v4210_v15, 128 }
 0x36b   :  { %v1049_v43 = vpop.xlane.xlu0 %1048  ;;  %v5667_v45 = vpop.xlane.xlu1 %2503  ;;  %3375 = vpow2.f32 %v2075_v33  ;;  %8057 = vst [vmem:[#allocation20_spill] sm:$0xff] %v5675_v0  ;;  %v5679_v16 = vsel %vm4244_vm1, %v3358_v62, 0.0  ;;  %v8060_v33 = vld [vmem:[#allocation27_spill] sm:$0xff]  ;;  %v1491_v11 = vshra.s32 %v5675_v0, 16 }
 0x36c   :  { %v5672_v46 = vmul.f32 %v1145_v63, %v1113_v48  ;;  %3377 = vrcp.f32 %v1049_v43  ;;  %8058 = vst [vmem:[#allocation227_spill] sm:$0xff] %v5679_v16  ;;  %v1161_v26 = vsel %vm4215_vm0, %v8060_v33, 0.0  ;;  %v2029_v48 = vmul.f32 1.442695, %v1989_v7 }
 0x36d   :  { %v3360_v49 = vpop.eup %3359  ;;  %3379 = vpow2.f32 %v968_v9  ;;  %v5693_v43 = vcvt.s32.f32 %v2794_v23  ;;  %v8065_v23 = vld [vmem:[#allocation21_spill] sm:$0xff] }
 0x36e   :  { %v3362_v29 = vpop.eup %3361  ;;  %2573 = vmin.xlane.f32.xlu0 %v5669_v2  ;;  %2167 = vadd.xlane.f32.xlu1 %v5679_v16  ;;  %v1129_v19 = vmul.f32 %v3360_v49, %v8059_v44  ;;  %v5699_v49 = vsel %vm1299_vm15, %v4210_v15, 128  ;;  %v2238_v44 = vsel %vm4244_vm1, %v8065_v23, 0.0  ;;  %v5711_v2 = vcvt.s32.f32 %v1491_v11  ;;  %v8069_v11 = vld [vmem:[#allocation134_spill] sm:$0xff]  ;;  %v8093_v16 = vld [vmem:[#allocation141_spill] sm:$0xff] }
 0x36f   :  { %v2110_v62 = vpop.xlane.xlu0 %2109  ;;  %v5691_v63 = vpop.xlane.xlu1 %2727  ;;  %8061 = vst [vmem:[#allocation128_spill] sm:$0xff] %v5693_v43  ;;  %8062 = vst [vmem:[#allocation27_spill] sm:$0xff] %v5699_v49  ;;  %v5703_v7 = vsel %vm4215_vm0, %v3362_v29, 0.0  ;;  %v1715_v29 = vshra.s32 %v5699_v49, 16  ;;  %v8070_v49 = vld [vmem:[#allocation22_spill] sm:$0xff] }
 0x370   :  { %v5696_v1 = vmul.f32 %v1161_v26, %v1129_v19  ;;  %3381 = vrcp.f32 %v2110_v62  ;;  %8063 = vst [vmem:[#allocation228_spill] sm:$0xff] %v5703_v7  ;;  %v2061_v19 = vmul.f32 1.442695, %v2005_v60  ;;  %8066 = vst [vmem:[#allocation131_spill] sm:$0xff] %v5711_v2 }
 0x371   :  { %v3364_v47 = vpop.eup %3363  ;;  %3383 = vpow2.f32 %v2029_v48 }
 0x372   :  { %v3366_v59 = vpop.eup %3365  ;;  %2797 = vmin.xlane.f32.xlu0 %v5693_v43  ;;  %1046 = vadd.xlane.f32.xlu1 %v5703_v7  ;;  %v2206_v9 = vmul.f32 %v3364_v47, %v8064_v36 }
 0x373   :  { %v2142_v33 = vpop.xlane.xlu0 %2141  ;;  %v1023_v26 = vpop.xlane.xlu1 %1022  ;;  %v5718_v47 = vsel %vm4215_vm0, %v3366_v59, 0.0 }
 0x374   :  { %v3368_v62 = vpop.eup %3367  ;;  %3385 = vrcp.f32 %v2142_v33  ;;  %v5714_v0 = vmul.f32 %v2238_v44, %v2206_v9  ;;  %8067 = vst [vmem:[#allocation21_spill] sm:$0xff] %v5718_v47  ;;  %v2254_v9 = vsel %vm4244_vm1, %v8070_v49, 0.0  ;;  %v5728_v44 = vcvt.s32.f32 %v1715_v29 }
 0x375   :  { %v3370_v43 = vpop.eup %3369  ;;  %3387 = vrcp.f32 %v1023_v26  ;;  %v5732_v26 = vsel %vm4244_vm1, %v3368_v62, 0.0 }
 0x376   :  { %v3372_v36 = vpop.eup %3371  ;;  %1494 = vmin.xlane.f32.xlu0 %v5711_v2  ;;  %1078 = vadd.xlane.f32.xlu1 %v5718_v47  ;;  %3389 = vpow2.f32 %v2061_v19  ;;  %8071 = vst [vmem:[#allocation134_spill] sm:$0xff] %v5728_v44  ;;  %8072 = vst [vmem:[#allocation22_spill] sm:$0xff] %v5732_v26  ;;  %v8074_v47 = vld [vmem:[#allocation132_spill] sm:$0xff] }
 0x377   :  { %v5722_v48 = vpop.xlane.xlu0 %1396  ;;  %v1055_v60 = vpop.xlane.xlu1 %1054  ;;  %v2222_v23 = vmul.f32 %v3372_v36, %v8069_v11  ;;  %v1112_v7 = vmul.f32 %v3370_v43, %v8074_v47  ;;  %v8075_v36 = vld [vmem:[#allocation26_spill] sm:$0xff]  ;;  %v8080_v47 = vld [vmem:[#allocation136_spill] sm:$0xff] }
 0x378   :  { %8068 = vst [vmem:[#allocation229_spill] sm:$0xff] %v5722_v48  ;;  %v3374_v33 = vpop.eup %3373  ;;  %3391 = vrcp.f32 %v1055_v60  ;;  %v1144_v11 = vsel %vm4215_vm0, %v8075_v36, 0.0  ;;  %v8081_v36 = vld [vmem:[#allocation42_spill] sm:$0xff] }
 0x379   :  { %v3376_v59 = vpop.eup %3375  ;;  %v5734_v2 = vmul.f32 %v2254_v9, %v2222_v23  ;;  %v5744_v29 = vmul.f32 %v1144_v11, %v1112_v7  ;;  %v5748_v60 = vsel %vm4215_vm0, %v3374_v33, 0.0 }
 0x37a   :  { %v3378_v28 = vpop.eup %3377  ;;  %1718 = vmin.xlane.f32.xlu0 %v5728_v44  ;;  %2139 = vadd.xlane.f32.xlu1 %v5732_v26  ;;  %8078 = vst [vmem:[#allocation231_spill] sm:$0xff] %v5748_v60  ;;  %v5752_v43 = vsel %vm4244_vm1, %v3376_v59, 0.0  ;;  %v1160_v44 = vsel %vm4215_vm0, %v8081_v36, 0.0  ;;  %v8085_v59 = vld [vmem:[#allocation139_spill] sm:$0xff]  ;;  %v8086_v36 = vld [vmem:[#allocation25_spill] sm:$0xff] }
 0x37b   :  { %8073 = vst [vmem:[#allocation230_spill] sm:$0xff] %v5734_v2  ;;  %v5742_v49 = vpop.xlane.xlu0 %1620  ;;  %v2116_v19 = vpop.xlane.xlu1 %2115  ;;  %8077 = vst [vmem:[#allocation26_spill] sm:$0xff] %v5744_v29  ;;  %v1128_v23 = vmul.f32 %v3378_v28, %v8080_v47 }
 0x37c   :  { %8076 = vst [vmem:[#allocation132_spill] sm:$0xff] %v5742_v49  ;;  %v3380_v62 = vpop.eup %3379  ;;  %3393 = vrcp.f32 %v2116_v19  ;;  %8079 = vst [vmem:[#allocation232_spill] sm:$0xff] %v5752_v43 }
 0x37d   :  { %v3382_v9 = vpop.eup %3381  ;;  %v5762_v33 = vmul.f32 %v1160_v44, %v1128_v23  ;;  %v5766_v28 = vsel %vm4215_vm0, %v3380_v62, 0.0 }
 0x37e   :  { %1032 = vadd.xlane.f32.xlu0 %v5748_v60  ;;  %2171 = vadd.xlane.f32.xlu1 %v5752_v43  ;;  %v3384_v19 = vpop.eup %3383  ;;  %8084 = vst [vmem:[#allocation233_spill] sm:$0xff] %v5766_v28  ;;  %v2205_v47 = vmul.f32 %v3382_v9, %v8085_v59  ;;  %v2237_v60 = vsel %vm4244_vm1, %v8086_v36, 0.0  ;;  %v8087_v43 = vld [vmem:[#allocation67_spill] sm:$0xff]  ;;  %v8092_v36 = vld [vmem:[#allocation142_spill] sm:$0xff] }
 0x37f   :  { %v5760_v7 = vpop.xlane.xlu0 %2489  ;;  %v2148_v11 = vpop.xlane.xlu1 %2147  ;;  %8083 = vst [vmem:[#allocation42_spill] sm:$0xff] %v5762_v33  ;;  %vm1284_vm2 = vcmp.eq.f32.partialorder %v8087_v43, %v5179_v39  ;;  %v5787_v59 = vsel %vm4244_vm1, %v3384_v19, 0.0 }
 0x380   :  { %8082 = vst [vmem:[#allocation136_spill] sm:$0xff] %v5760_v7  ;;  %3395 = vrcp.f32 %v2148_v11  ;;  %v5780_v62 = vmul.f32 %v2237_v60, %v2205_v47  ;;  %v5783_v9 = vsel %vm1284_vm2, %v4210_v15, 128  ;;  %8091 = vst [vmem:[#allocation234_spill] sm:$0xff] %v5787_v59  ;;  %v8096_v47 = vld [vmem:[#allocation70_spill] sm:$0xff]  ;;  %v8103_v7 = vld [vmem:[#allocation28_spill] sm:$0xff] }
 0x381   :  { %v3386_v26 = vpop.eup %3385  ;;  %8090 = vst [vmem:[#allocation67_spill] sm:$0xff] %v5783_v9  ;;  %vm1300_vm3 = vcmp.eq.f32.partialorder %v8096_v47, %v5212_v30  ;;  %v1163_v2 = vsel %vm4215_vm0, %v8103_v7, 0.0 }
 0x382   :  { %v3388_v29 = vpop.eup %3387  ;;  %1064 = vadd.xlane.f32.xlu0 %v5766_v28  ;;  %1344 = vmin.xlane.f32.xlu1 %v5416_v14  ;;  %8089 = vst [vmem:[#allocation25_spill] sm:$0xff] %v5780_v62  ;;  %v2221_v28 = vmul.f32 %v3386_v26, %v8093_v16  ;;  %v8094_v14 = vld [vmem:[#allocation41_spill] sm:$0xff] }
 0x383   :  { %v5776_v44 = vpop.xlane.xlu0 %2713  ;;  %v5778_v23 = vpop.xlane.xlu1 %2531  ;;  %v1115_v33 = vmul.f32 %v3388_v29, %v8092_v36  ;;  %v2253_v13 = vsel %vm4244_vm1, %v8094_v14, 0.0  ;;  %v1505_v36 = vshra.s32 %v5783_v9, 16  ;;  %v5811_v14 = vsel %vm1300_vm3, %v4210_v15, 128 }
 0x384   :  { %8088 = vst [vmem:[#allocation139_spill] sm:$0xff] %v5776_v44  ;;  %v3390_v11 = vpop.eup %3389  ;;  %v8095_v44 = vld [vmem:[#allocation18_spill] sm:$0xff]  ;;  %v5807_v26 = vmul.f32 %v2253_v13, %v2221_v28  ;;  %v898_v13 = vsub.f32 %v8034_v4, %v5108_v5  ;;  %v1729_v7 = vshra.s32 %v5811_v14, 16 }
 0x385   :  { %v3392_v31 = vpop.eup %3391  ;;  %v1147_v60 = vsel %vm4215_vm0, %v8095_v44, 0.0  ;;  %8100 = vst [vmem:[#allocation18_spill] sm:$0xff] %v5811_v14  ;;  %v5815_v44 = vsel %vm4244_vm1, %v3390_v11, 0.0  ;;  %v5832_v9 = vcvt.s32.f32 %v1505_v36 }
 0x386   :  { %2125 = vadd.xlane.f32.xlu0 %v5787_v59  ;;  %1568 = vmin.xlane.f32.xlu1 %v5444_v53  ;;  %v5805_v16 = vmul.f32 %v1147_v60, %v1115_v33  ;;  %8099 = vst [vmem:[#allocation41_spill] sm:$0xff] %v5807_v26  ;;  %8101 = vst [vmem:[#allocation70_spill] sm:$0xff] %v5815_v44  ;;  %v8102_v59 = vld [vmem:[#allocation146_spill] sm:$0xff]  ;;  %v8105_v60 = vld [vmem:[#allocation104_spill] sm:$0xff] }
 0x387   :  { %v5801_v19 = vpop.xlane.xlu0 %1410  ;;  %v5803_v29 = vpop.xlane.xlu1 %2755  ;;  %v1131_v62 = vmul.f32 %v3392_v31, %v8102_v59  ;;  %v8104_v33 = vld [vmem:[#allocation74_spill] sm:$0xff]  ;;  %v2443_v31 = vand.u32 65535, %v8105_v60  ;;  %8106 = vst [vmem:[#allocation146_spill] sm:$0xff] %v5832_v9  ;;  %v8108_v26 = vld [vmem:[#allocation19_spill] sm:$0xff] }
 0x388   :  { %8097 = vst [vmem:[#allocation142_spill] sm:$0xff] %v5801_v19  ;;  %8098 = vst [vmem:[#allocation141_spill] sm:$0xff] %v5805_v16  ;;  %vm2377_vm4 = vcmp.eq.f32.partialorder %v8104_v33, %v5241_v12  ;;  %v940_v16 = vmul.f32 1.442695, %v898_v13  ;;  %v8109_v60 = vld [vmem:[#allocation78_spill] sm:$0xff]  ;;  %v5853_v13 = vcvt.s32.f32 %v1729_v7 }
 0x389   :  { %v3394_v53 = vpop.eup %3393  ;;  %v5830_v59 = vmul.f32 %v1163_v2, %v1131_v62  ;;  %v5836_v5 = vsel %vm2377_vm4, %v4210_v15, 128  ;;  %vm2393_vm5 = vcmp.eq.f32.partialorder %v8109_v60, %v5269_v58  ;;  %v8110_v2 = vld [vmem:[#allocation108_spill] sm:$0xff]  ;;  %v914_v62 = vsub.f32 %v8040_v38, %v5125_v51  ;;  %v8114_v51 = vld [vmem:[#allocation31_spill] sm:$0xff]  ;;  %8118 = vst [vmem:[#allocation78_spill] sm:$0xff] %v5877_v40 }
 0x38a   :  { %2157 = vadd.xlane.f32.xlu0 %v5815_v44  ;;  %1358 = vmin.xlane.f32.xlu1 %v5509_v27  ;;  %8107 = vst [vmem:[#allocation28_spill] sm:$0xff] %v5836_v5  ;;  %v2208_v4 = vmul.f32 %v3394_v53, %v5075_v61  ;;  %v2240_v27 = vsel %vm4244_vm1, %v8108_v26, 0.0  ;;  %vm2449_vm6 = vcmp.eq.f32.partialorder %v8110_v2, %v5503_v41  ;;  %v2445_v53 = vcvt.s32.f32 %v2443_v31  ;;  %v8115_v31 = vld [vmem:[#allocation110_spill] sm:$0xff] }
 0x38b   :  { %v5827_v28 = vpop.xlane.xlu0 %1634  ;;  %v1027_v11 = vpop.xlane.xlu1 %1026  ;;  %8112 = vst [vmem:[#allocation74_spill] sm:$0xff] %v5853_v13  ;;  %v2256_v38 = vsel %vm4244_vm1, %v8114_v51, 0.0  ;;  %vm2673_vm8 = vcmp.eq.f32.partialorder %v8115_v31, %v5532_v24  ;;  %v972_v7 = vmul.f32 1.442695, %v914_v62  ;;  %v8132_v24 = vld [vmem:[#allocation160_spill] sm:$0xff] }
 0x38c   :  { %3397 = vrcp.f32 %v1027_v11  ;;  %v8111_v11 = vld [vmem:[#allocation105_spill] sm:$0xff]  ;;  %v5851_v26 = vmul.f32 %v2240_v27, %v2208_v4  ;;  %v2450_v2 = vsel %vm2449_vm6, %v2445_v53, inf }
 0x38d   :  { %v3396_v44 = vpop.eup %3395  ;;  %v2667_v14 = vand.u32 65535, %v8111_v11  ;;  %8122 = vst [vmem:[#allocation105_spill] sm:$0xff] %v5891_v20 }
 0x38e   :  { %1508 = vmin.xlane.f32.xlu0 %v5832_v9  ;;  %1582 = vmin.xlane.f32.xlu1 %v5526_v57  ;;  %v2598_v9 = vshra.s32 %v5836_v5, 16  ;;  %v5857_v57 = vsel %vm2393_vm5, %v4210_v15, 128  ;;  %v2224_v41 = vmul.f32 %v3396_v44, %v5102_v37  ;;  %v8135_v5 = vld [vmem:[#allocation49_spill] sm:$0xff] }
 0x38f   :  { %v1021_v61 = vpop.xlane.xlu0 %1020  ;;  %v1059_v36 = vpop.xlane.xlu1 %1058  ;;  %8113 = vst [vmem:[#allocation104_spill] sm:$0xff] %v5857_v57  ;;  %v2822_v56 = vshra.s32 %v5857_v57, 16 }
 0x390   :  { %3399 = vrcp.f32 %v1021_v61  ;;  %v2669_v61 = vcvt.s32.f32 %v2667_v14  ;;  %v5869_v44 = vmul.f32 %v2256_v38, %v2224_v41  ;;  %v5873_v53 = vcvt.s32.f32 %v2598_v9  ;;  %v8119_v41 = vld [vmem:[#allocation114_spill] sm:$0xff]  ;;  %v8120_v14 = vld [vmem:[#allocation113_spill] sm:$0xff] }
 0x391   :  { %3401 = vrcp.f32 %v1059_v36  ;;  %v8116_v36 = vld [vmem:[#allocation111_spill] sm:$0xff]  ;;  %vm1370_vm10 = vcmp.eq.f32.partialorder %v8119_v41, %v5534_v21  ;;  %v1588_v11 = vand.u32 65535, %v8120_v14  ;;  %v5885_v51 = vcvt.s32.f32 %v2822_v56  ;;  %v8127_v14 = vld [vmem:[#allocation9_spill] sm:$0xff] }
 0x392   :  { %3403 = vpow2.f32 %v940_v16  ;;  %1732 = vmin.xlane.f32.xlu0 %v5853_v13  ;;  %2451 = vmin.xlane.f32.xlu1 %v2450_v2  ;;  %v1364_v37 = vand.u32 65535, %v8116_v36  ;;  %v1991_v16 = vsub.f32 %v8045_v22, %v5136_v52  ;;  %8117 = vst [vmem:[#allocation19_spill] sm:$0xff] %v5873_v53  ;;  %v2674_v62 = vsel %vm2673_vm8, %v2669_v61, inf }
 0x393   :  { %v1053_v4 = vpop.xlane.xlu0 %1052  ;;  %v2120_v27 = vpop.xlane.xlu1 %2119  ;;  %8121 = vst [vmem:[#allocation108_spill] sm:$0xff] %v5885_v51  ;;  %v1519_v38 = vshra.s32 %v5877_v40, 16  ;;  %v1590_v36 = vcvt.s32.f32 %v1588_v11  ;;  %v8128_v11 = vld [vmem:[#allocation127_spill] sm:$0xff] }
 0x394   :  { %3405 = vrcp.f32 %v1053_v4  ;;  %v1366_v9 = vcvt.s32.f32 %v1364_v37  ;;  %v2033_v2 = vmul.f32 1.442695, %v1991_v16  ;;  %v8123_v4 = vld [vmem:[#allocation118_spill] sm:$0xff]  ;;  %v8124_v37 = vld [vmem:[#allocation123_spill] sm:$0xff]  ;;  %vm1384_vm12 = vcmp.eq.f32.partialorder %v8128_v11, %v5607_v34 }
 0x395   :  { %3407 = vrcp.f32 %v2120_v27  ;;  %vm1594_vm11 = vcmp.eq.f32.partialorder %v8123_v4, %v5551_v3  ;;  %v1378_v16 = vand.u32 65535, %v8124_v37  ;;  %v5899_v18 = vcvt.s32.f32 %v1519_v38 }
 0x396   :  { %2601 = vmin.xlane.f32.xlu0 %v5873_v53  ;;  %2675 = vmin.xlane.f32.xlu1 %v2674_v62  ;;  %3409 = vpow2.f32 %v972_v7  ;;  %v1371_v31 = vsel %vm1370_vm10, %v1366_v9, inf  ;;  %v2065_v62 = vmul.f32 1.442695, %v2007_v8  ;;  %v1595_v41 = vsel %vm1594_vm11, %v1590_v36, inf  ;;  %v8134_v53 = vld [vmem:[#allocation29_spill] sm:$0xff] }
 0x397   :  { %v2114_v52 = vpop.xlane.xlu0 %2113  ;;  %v2152_v22 = vpop.xlane.xlu1 %2151  ;;  %8125 = vst [vmem:[#allocation31_spill] sm:$0xff] %v5899_v18  ;;  %v1380_v8 = vcvt.s32.f32 %v1378_v16  ;;  %v5916_v37 = vcvt.s32.f32 %v1743_v54  ;;  %v1146_v20 = vsel %vm4215_vm0, %v8134_v53, 0.0  ;;  %v1165_v16 = vsel %vm4215_vm0, %v8135_v5, 0.0  ;;  %v8136_v54 = vld [vmem:[#allocation129_spill] sm:$0xff] }
 0x398   :  { %3411 = vrcp.f32 %v2114_v52  ;;  %v8126_v52 = vld [vmem:[#allocation159_spill] sm:$0xff]  ;;  %vm1608_vm13 = vcmp.eq.f32.partialorder %v8136_v54, %v5627_v6  ;;  %vm1287_vm11 = vcmp.eq.f32.partialorder %v8032_v25, %v5366_v55 }
 0x399   :  { %3413 = vrcp.f32 %v2152_v22  ;;  %v3398_v7 = vpop.eup %3397  ;;  %8131 = vst [vmem:[#allocation111_spill] sm:$0xff] %v5916_v37  ;;  %v6082_v25 = vsel %vm1287_vm11, %v4210_v15, 128 }
 0x39a   :  { %2825 = vmin.xlane.f32.xlu0 %v5885_v51  ;;  %1372 = vmin.xlane.f32.xlu1 %v1371_v31  ;;  %3415 = vpow2.f32 %v2033_v2  ;;  %v1117_v22 = vmul.f32 %v3398_v7, %v8126_v52  ;;  %v1149_v31 = vsel %vm4215_vm0, %v8127_v14, 0.0  ;;  %v1385_v14 = vsel %vm1384_vm12, %v1380_v8, inf  ;;  %v8133_v51 = vld [vmem:[#allocation161_spill] sm:$0xff] }
 0x39b   :  { %v2146_v27 = vpop.xlane.xlu0 %2145  ;;  %v5896_v61 = vpop.xlane.xlu1 %2559 }
 0x39c   :  { %3417 = vrcp.f32 %v2146_v27  ;;  %v8129_v27 = vld [vmem:[#allocation125_spill] sm:$0xff]  ;;  %v5914_v7 = vmul.f32 %v1149_v31, %v1117_v22 }
 0x39d   :  { %v3400_v56 = vpop.eup %3399  ;;  %v1602_v36 = vand.u32 65535, %v8129_v27  ;;  %3419 = vpow2.f32 %v2065_v62 }
 0x39e   :  { %v3402_v9 = vpop.eup %3401  ;;  %1522 = vmin.xlane.f32.xlu0 %v5899_v18  ;;  %1596 = vmin.xlane.f32.xlu1 %v1595_v41  ;;  %8130 = vst [vmem:[#allocation110_spill] sm:$0xff] %v5914_v7  ;;  %v1114_v41 = vmul.f32 %v3400_v56, %v8132_v24  ;;  %v8154_v7 = vld [vmem:[#allocation168_spill] sm:$0xff] }
 0x39f   :  { %v3404_v2 = vpop.eup %3403  ;;  %v5909_v38 = vpop.xlane.xlu0 %1424  ;;  %v1133_v57 = vmul.f32 %v3402_v9, %v8133_v51  ;;  %v1604_v56 = vcvt.s32.f32 %v1602_v36  ;;  %v8137_v51 = vld [vmem:[#allocation116_spill] sm:$0xff] }
 0x3a0   :  { %v5911_v4 = vpop.xlane.xlu1 %2783  ;;  %v2471_v22 = vand.u32 65535, %v8137_v51  ;;  %v5932_v9 = vmul.f32 %v1146_v20, %v1114_v41  ;;  %v5938_v5 = vsel %vm4215_vm0, %v3404_v2, 0.0  ;;  %v8143_v36 = vld [vmem:[#allocation44_spill] sm:$0xff]  ;;  %v8144_v41 = vld [vmem:[#allocation45_spill] sm:$0xff]  ;;  %v8145_v2 = vld [vmem:[#allocation119_spill] sm:$0xff] }
 0x3a1   :  { %v3406_v52 = vpop.eup %3405  ;;  %v5934_v31 = vmul.f32 %v1165_v16, %v1133_v57  ;;  %8140 = vst [vmem:[#allocation118_spill] sm:$0xff] %v5938_v5  ;;  %v1609_v27 = vsel %vm1608_vm13, %v1604_v56, inf  ;;  %v1162_v20 = vsel %vm4215_vm0, %v8143_v36, 0.0  ;;  %v2242_v57 = vsel %vm4244_vm1, %v8144_v41, 0.0  ;;  %v8151_v36 = vld [vmem:[#allocation83_spill] sm:$0xff] }
 0x3a2   :  { %v3408_v11 = vpop.eup %3407  ;;  %1746 = vmin.xlane.f32.xlu0 %v5916_v37  ;;  %1386 = vmin.xlane.f32.xlu1 %v1385_v14  ;;  %8138 = vst [vmem:[#allocation114_spill] sm:$0xff] %v5932_v9  ;;  %v8141_v14 = vld [vmem:[#allocation162_spill] sm:$0xff]  ;;  %v8142_v37 = vld [vmem:[#allocation164_spill] sm:$0xff]  ;;  %vm2477_vm14 = vcmp.eq.f32.partialorder %v8145_v2, %v5553_v50  ;;  %v8187_v9 = vld [vmem:[#allocation93_spill] sm:$0xff]  ;;  %vm1303_vm13 = vcmp.eq.f32.partialorder %v8039_v17, %v5410_v10  ;;  %v1547_v10 = vshra.s32 %v6082_v25, 16 }
 0x3a3   :  { %v5929_v62 = vpop.xlane.xlu0 %1648  ;;  %8139 = vst [vmem:[#allocation113_spill] sm:$0xff] %v5934_v31  ;;  %v3410_v53 = vpop.eup %3409  ;;  %v1130_v54 = vmul.f32 %v3406_v52, %v8141_v14  ;;  %v2210_v18 = vmul.f32 %v3408_v11, %v8142_v37  ;;  %v8147_v37 = vld [vmem:[#allocation117_spill] sm:$0xff]  ;;  %v8150_v14 = vld [vmem:[#allocation184_spill] sm:$0xff]  ;;  %v6102_v17 = vsel %vm1303_vm13, %v4210_v15, 128 }
 0x3a4   :  { %v1031_v24 = vpop.xlane.xlu1 %1030  ;;  %v2695_v11 = vand.u32 65535, %v8147_v37  ;;  %vm1286_vm15 = vcmp.eq.f32.partialorder %v8151_v36, %v8150_v14  ;;  %v5962_v41 = vsel %vm4215_vm0, %v3410_v53, 0.0  ;;  %v8155_v37 = vld [vmem:[#allocation23_spill] sm:$0xff]  ;;  %v8157_v53 = vld [vmem:[#allocation122_spill] sm:$0xff]  ;;  %8195 = vst [vmem:[#allocation117_spill] sm:$0xff] %v6082_v25 }
 0x3a5   :  { %v3412_v8 = vpop.eup %3411  ;;  %3421 = vrcp.f32 %v1031_v24  ;;  %v2473_v24 = vcvt.s32.f32 %v2471_v22  ;;  %v5954_v56 = vmul.f32 %v1162_v20, %v1130_v54  ;;  %v5956_v51 = vmul.f32 %v2242_v57, %v2210_v18  ;;  %8152 = vst [vmem:[#allocation127_spill] sm:$0xff] %v5962_v41  ;;  %v8156_v54 = vld [vmem:[#allocation5_spill] sm:$0xff] }
 0x3a6   :  { %v3414_v40 = vpop.eup %3413  ;;  %1036 = vadd.xlane.f32.xlu0 %v5938_v5  ;;  %1610 = vmin.xlane.f32.xlu1 %v1609_v27  ;;  %v8153_v5 = vld [vmem:[#allocation166_spill] sm:$0xff]  ;;  %v2239_v18 = vsel %vm4244_vm1, %v8155_v37, 0.0  ;;  %v2258_v20 = vsel %vm4244_vm1, %v8156_v54, 0.0  ;;  %vm2701_vm2 = vcmp.eq.f32.partialorder %v8157_v53, %v5573_v32  ;;  %v5986_v37 = vsel %vm1286_vm15, %v4210_v15, 128  ;;  %v8164_v53 = vld [vmem:[#allocation171_spill] sm:$0xff] }
 0x3a7   :  { %v5951_v16 = vpop.xlane.xlu0 %2517  ;;  %8148 = vst [vmem:[#allocation159_spill] sm:$0xff] %v5954_v56  ;;  %8149 = vst [vmem:[#allocation9_spill] sm:$0xff] %v5956_v51  ;;  %v3416_v27 = vpop.eup %3415  ;;  %v2478_v2 = vsel %vm2477_vm14, %v2473_v24, inf  ;;  %v2207_v31 = vmul.f32 %v3412_v8, %v8153_v5  ;;  %v2226_v22 = vmul.f32 %v3414_v40, %v8154_v7  ;;  %v2697_v8 = vcvt.s32.f32 %v2695_v11  ;;  %v8159_v40 = vld [vmem:[#allocation138_spill] sm:$0xff] }
 0x3a8   :  { %8146 = vst [vmem:[#allocation123_spill] sm:$0xff] %v5951_v16  ;;  %v1063_v52 = vpop.xlane.xlu1 %1062  ;;  %v1392_v7 = vand.u32 65535, %v8159_v40  ;;  %8162 = vst [vmem:[#allocation29_spill] sm:$0xff] %v5986_v37  ;;  %v8165_v40 = vld [vmem:[#allocation43_spill] sm:$0xff] }
 0x3a9   :  { %3423 = vrcp.f32 %v1063_v52  ;;  %v3418_v13 = vpop.eup %3417  ;;  %v5978_v52 = vmul.f32 %v2239_v18, %v2207_v31  ;;  %v5980_v24 = vmul.f32 %v2258_v20, %v2226_v22  ;;  %v2702_v54 = vsel %vm2701_vm2, %v2697_v8, inf  ;;  %v8166_v22 = vld [vmem:[#allocation189_spill] sm:$0xff]  ;;  %v8167_v18 = vld [vmem:[#allocation86_spill] sm:$0xff]  ;;  %v8168_v20 = vld [vmem:[#allocation144_spill] sm:$0xff]  ;;  %8202 = vst [vmem:[#allocation166_spill] sm:$0xff] %v6102_v17 }
 0x3aa   :  { %1068 = vadd.xlane.f32.xlu0 %v5962_v41  ;;  %2479 = vmin.xlane.f32.xlu1 %v2478_v2  ;;  %v5990_v2 = vsel %vm4244_vm1, %v3416_v27, 0.0  ;;  %v2223_v11 = vmul.f32 %v3418_v13, %v8164_v53  ;;  %v3420_v41 = vpop.eup %3419  ;;  %v2255_v31 = vsel %vm4244_vm1, %v8165_v40, 0.0  ;;  %vm1302_vm3 = vcmp.eq.f32.partialorder %v8167_v18, %v8166_v22  ;;  %v8170_v53 = vld [vmem:[#allocation183_spill] sm:$0xff] }
 0x3ab   :  { %v5975_v57 = vpop.xlane.xlu0 %2741  ;;  %8160 = vst [vmem:[#allocation160_spill] sm:$0xff] %v5978_v52  ;;  %8161 = vst [vmem:[#allocation161_spill] sm:$0xff] %v5980_v24  ;;  %vm1398_vm4 = vcmp.eq.f32.partialorder %v8168_v20, %v5722_v48  ;;  %v1394_v8 = vcvt.s32.f32 %v1392_v7  ;;  %v8169_v24 = vld [vmem:[#allocation140_spill] sm:$0xff]  ;;  %v2583_v51 = vand.u32 65535, %v8170_v53  ;;  %v1533_v40 = vshra.s32 %v5986_v37, 16  ;;  %v8174_v48 = vld [vmem:[#allocation10_spill] sm:$0xff] }
 0x3ac   :  { %8158 = vst [vmem:[#allocation125_spill] sm:$0xff] %v5975_v57  ;;  %v2124_v5 = vpop.xlane.xlu1 %2123  ;;  %8163 = vst [vmem:[#allocation49_spill] sm:$0xff] %v5990_v2  ;;  %v1616_v13 = vand.u32 65535, %v8169_v24  ;;  %v6005_v32 = vmul.f32 %v2255_v31, %v2223_v11  ;;  %v6009_v50 = vsel %vm1302_vm3, %v4210_v15, 128  ;;  %v1167_v7 = vsel %vm4215_vm0, %v8174_v48, 0.0  ;;  %v8175_v11 = vld [vmem:[#allocation193_spill] sm:$0xff] }
 0x3ad   :  { %3425 = vrcp.f32 %v2124_v5  ;;  %8172 = vst [vmem:[#allocation116_spill] sm:$0xff] %v6009_v50  ;;  %v1399_v20 = vsel %vm1398_vm4, %v1394_v8, inf  ;;  %v900_v24 = vsub.f32 %v8087_v43, %v5179_v39  ;;  %v8176_v31 = vld [vmem:[#allocation90_spill] sm:$0xff]  ;;  %v2585_v48 = vcvt.s32.f32 %v2583_v51  ;;  %v8180_v52 = vld [vmem:[#allocation187_spill] sm:$0xff]  ;;  %v8181_v39 = vld [vmem:[#allocation48_spill] sm:$0xff] }
 0x3ae   :  { %2129 = vadd.xlane.f32.xlu0 %v5990_v2  ;;  %2703 = vmin.xlane.f32.xlu1 %v2702_v54  ;;  %8171 = vst [vmem:[#allocation129_spill] sm:$0xff] %v6005_v32  ;;  %v6013_v54 = vsel %vm4244_vm1, %v3420_v41, 0.0  ;;  %vm2379_vm5 = vcmp.eq.f32.partialorder %v8176_v31, %v8175_v11  ;;  %v1618_v53 = vcvt.s32.f32 %v1616_v13  ;;  %v8179_v37 = vld [vmem:[#allocation150_spill] sm:$0xff]  ;;  %v2807_v6 = vand.u32 65535, %v8180_v52  ;;  %v8185_v51 = vld [vmem:[#allocation177_spill] sm:$0xff] }
 0x3af   :  { %v6001_v5 = vpop.xlane.xlu0 %1438  ;;  %8173 = vst [vmem:[#allocation162_spill] sm:$0xff] %v6013_v54  ;;  %v1406_v32 = vand.u32 65535, %v8179_v37  ;;  %v1151_v43 = vsel %vm4215_vm0, %v8181_v39, 0.0  ;;  %v6034_v56 = vcvt.s32.f32 %v1533_v40  ;;  %v944_v34 = vmul.f32 1.442695, %v900_v24  ;;  %v8186_v40 = vld [vmem:[#allocation195_spill] sm:$0xff] }
 0x3b0   :  { %v2156_v27 = vpop.xlane.xlu1 %2155  ;;  %v916_v39 = vsub.f32 %v8096_v47, %v5212_v30  ;;  %vm2395_vm8 = vcmp.eq.f32.partialorder %v8187_v9, %v8186_v40 }
 0x3b1   :  { %3427 = vrcp.f32 %v2156_v27  ;;  %v8177_v27 = vld [vmem:[#allocation147_spill] sm:$0xff]  ;;  %8182 = vst [vmem:[#allocation44_spill] sm:$0xff] %v6034_v56 }
 0x3b2   :  { %v3422_v2 = vpop.eup %3421  ;;  %2161 = vadd.xlane.f32.xlu0 %v6013_v54  ;;  %1400 = vmin.xlane.f32.xlu1 %v1399_v20  ;;  %vm1622_vm6 = vcmp.eq.f32.partialorder %v8177_v27, %v5742_v49  ;;  %v1757_v20 = vshra.s32 %v6009_v50, 16  ;;  %v8183_v27 = vld [vmem:[#allocation191_spill] sm:$0xff]  ;;  %v6040_v54 = vsel %vm2379_vm5, %v4210_v15, 128 }
 0x3b3   :  { %v6025_v41 = vpop.xlane.xlu0 %1662  ;;  %v1623_v13 = vsel %vm1622_vm6, %v1618_v53, inf  ;;  %v1119_v37 = vmul.f32 %v3422_v2, %v8185_v51  ;;  %v8190_v50 = vld [vmem:[#allocation155_spill] sm:$0xff]  ;;  %v2809_v51 = vcvt.s32.f32 %v2807_v6  ;;  %v2626_v47 = vshra.s32 %v6040_v54, 16 }
 0x3b4   :  { %v6027_v8 = vpop.xlane.xlu1 %2587  ;;  %v1630_v2 = vand.u32 65535, %v8190_v50  ;;  %v6057_v30 = vcvt.s32.f32 %v1757_v20  ;;  %v976_v6 = vmul.f32 1.442695, %v916_v39 }
 0x3b5   :  { %8178 = vst [vmem:[#allocation164_spill] sm:$0xff] %v6027_v8  ;;  %vm2589_vm7 = vcmp.eq.f32.partialorder %v8183_v27, %v6027_v8  ;;  %v8188_v27 = vld [vmem:[#allocation156_spill] sm:$0xff]  ;;  %v6055_v24 = vmul.f32 %v1151_v43, %v1119_v37 }
 0x3b6   :  { %v6042_v49 = vsel %vm2589_vm7, %v2585_v48, inf  ;;  %v3424_v52 = vpop.eup %3423  ;;  %1536 = vmin.xlane.f32.xlu0 %v6034_v56  ;;  %1624 = vmin.xlane.f32.xlu1 %v1623_v13  ;;  %vm1412_vm9 = vcmp.eq.f32.partialorder %v8188_v27, %v5801_v19  ;;  %v1408_v48 = vcvt.s32.f32 %v1406_v32  ;;  %v8191_v56 = vld [vmem:[#allocation192_spill] sm:$0xff]  ;;  %v6063_v13 = vsel %vm2395_vm8, %v4210_v15, 128  ;;  %v8223_v15 = vld [vmem:[#allocation14_spill] sm:$0xff] }
 0x3b7   :  { %8184 = vst [vmem:[#allocation45_spill] sm:$0xff] %v6042_v49  ;;  %v1025_v8 = vpop.xlane.xlu0 %1024  ;;  %v8192_v32 = vld [vmem:[#allocation180_spill] sm:$0xff]  ;;  %v1632_v37 = vcvt.s32.f32 %v1630_v2  ;;  %v2850_v55 = vshra.s32 %v6063_v13, 16 }
 0x3b8   :  { %v6052_v53 = vpop.xlane.xlu1 %2811  ;;  %3429 = vrcp.f32 %v1025_v8  ;;  %v1413_v27 = vsel %vm1412_vm9, %v1408_v48, inf  ;;  %v1135_v49 = vmul.f32 %v3424_v52, %v8192_v32  ;;  %v8193_v8 = vld [vmem:[#allocation158_spill] sm:$0xff] }
 0x3b9   :  { %8189 = vst [vmem:[#allocation119_spill] sm:$0xff] %v6052_v53  ;;  %vm2813_vm10 = vcmp.eq.f32.partialorder %v8191_v56, %v6052_v53  ;;  %3431 = vpow2.f32 %v944_v34  ;;  %vm1636_vm12 = vcmp.eq.f32.partialorder %v8193_v8, %v5827_v28  ;;  %v1993_v56 = vsub.f32 %v8104_v33, %v5241_v12  ;;  %v8194_v48 = vld [vmem:[#allocation130_spill] sm:$0xff]  ;;  %v8197_v33 = vld [vmem:[#allocation47_spill] sm:$0xff] }
 0x3ba   :  { %v6065_v19 = vsel %vm2813_vm10, %v2809_v51, inf  ;;  %v3426_v50 = vpop.eup %3425  ;;  %1760 = vmin.xlane.f32.xlu0 %v6057_v30  ;;  %1414 = vmin.xlane.f32.xlu1 %v1413_v27  ;;  %v2499_v52 = vand.u32 65535, %v8194_v48  ;;  %v6076_v51 = vmul.f32 %v1167_v7, %v1135_v49  ;;  %v6078_v34 = vcvt.s32.f32 %v2626_v47  ;;  %v8196_v27 = vld [vmem:[#allocation185_spill] sm:$0xff]  ;;  %v8198_v49 = vld [vmem:[#allocation135_spill] sm:$0xff] }
 0x3bb   :  { %v1057_v43 = vpop.xlane.xlu0 %1056  ;;  %v1637_v39 = vsel %vm1636_vm12, %v1632_v37, inf  ;;  %v2212_v32 = vmul.f32 %v3426_v50, %v8196_v27  ;;  %v2244_v2 = vsel %vm4244_vm1, %v8197_v33, 0.0  ;;  %vm2505_vm14 = vcmp.eq.f32.partialorder %v8198_v49, %v5667_v45  ;;  %v8199_v50 = vld [vmem:[#allocation133_spill] sm:$0xff] }
 0x3bc   :  { %v1035_v20 = vpop.xlane.xlu1 %1034  ;;  %3433 = vrcp.f32 %v1057_v43  ;;  %v2037_v7 = vmul.f32 1.442695, %v1993_v56  ;;  %v2501_v43 = vcvt.s32.f32 %v2499_v52  ;;  %v6098_v48 = vcvt.s32.f32 %v2850_v55  ;;  %v8204_v52 = vld [vmem:[#allocation8_spill] sm:$0xff] }
 0x3bd   :  { %3435 = vrcp.f32 %v1035_v20  ;;  %v2723_v20 = vand.u32 65535, %v8199_v50  ;;  %v6094_v37 = vmul.f32 %v2244_v2, %v2212_v32  ;;  %v2260_v32 = vsel %vm4244_vm1, %v8204_v52, 0.0  ;;  %v8206_v2 = vld [vmem:[#allocation165_spill] sm:$0xff]  ;;  %v8211_v52 = vld [vmem:[#allocation46_spill] sm:$0xff] }
 0x3be   :  { %v3428_v12 = vpop.eup %3427  ;;  %3437 = vpow2.f32 %v976_v6  ;;  %2629 = vmin.xlane.f32.xlu0 %v6078_v34  ;;  %1638 = vmin.xlane.f32.xlu1 %v1637_v39  ;;  %v2009_v6 = vsub.f32 %v8109_v60, %v5269_v58  ;;  %8201 = vst [vmem:[#allocation83_spill] sm:$0xff] %v6098_v48  ;;  %v2506_v56 = vsel %vm2505_vm14, %v2501_v43, inf  ;;  %v8203_v39 = vld [vmem:[#allocation188_spill] sm:$0xff]  ;;  %v8205_v58 = vld [vmem:[#allocation137_spill] sm:$0xff]  ;;  %v1420_v49 = vand.u32 65535, %v8206_v2 }
 0x3bf   :  { %v2118_v47 = vpop.xlane.xlu0 %2117  ;;  %8200 = vst [vmem:[#allocation184_spill] sm:$0xff] %v6094_v37  ;;  %v2228_v27 = vmul.f32 %v3428_v12, %v8203_v39  ;;  %vm2729_vm15 = vcmp.eq.f32.partialorder %v8205_v58, %v5691_v63  ;;  %v2725_v33 = vcvt.s32.f32 %v2723_v20  ;;  %v6114_v12 = vcvt.s32.f32 %v1547_v10  ;;  %v8210_v20 = vld [vmem:[#allocation194_spill] sm:$0xff] }
 0x3c0   :  { %v1067_v8 = vpop.xlane.xlu1 %1066  ;;  %3439 = vrcp.f32 %v2118_v47  ;;  %v1771_v43 = vshra.s32 %v6102_v17, 16  ;;  %v1148_v10 = vsel %vm4215_vm0, %v8211_v52, 0.0  ;;  %v8215_v52 = vld [vmem:[#allocation7_spill] sm:$0xff] }
 0x3c1   :  { %3441 = vrcp.f32 %v1067_v8  ;;  %v6112_v47 = vmul.f32 %v2260_v32, %v2228_v27  ;;  %v2069_v8 = vmul.f32 1.442695, %v2009_v6  ;;  %8208 = vst [vmem:[#allocation23_spill] sm:$0xff] %v6114_v12  ;;  %v2730_v39 = vsel %vm2729_vm15, %v2725_v33, inf  ;;  %v8224_v17 = vld [vmem:[#allocation51_spill] sm:$0xff] }
 0x3c2   :  { %2853 = vmin.xlane.f32.xlu0 %v6098_v48  ;;  %2507 = vmin.xlane.f32.xlu1 %v2506_v56  ;;  %3443 = vpow2.f32 %v2037_v7  ;;  %v902_v56 = vsub.f32 %v8151_v36, %v8150_v14  ;;  %v8209_v7 = vld [vmem:[#allocation172_spill] sm:$0xff]  ;;  %v8213_v14 = vld [vmem:[#allocation170_spill] sm:$0xff]  ;;  %v6131_v33 = vcvt.s32.f32 %v1771_v43  ;;  %v1164_v53 = vsel %vm4215_vm0, %v8215_v52, 0.0 }
 0x3c3   :  { %v2150_v60 = vpop.xlane.xlu0 %2149  ;;  %8207 = vst [vmem:[#allocation168_spill] sm:$0xff] %v6112_v47  ;;  %vm1426_vm2 = vcmp.eq.f32.partialorder %v8209_v7, %v5909_v38  ;;  %v1644_v36 = vand.u32 65535, %v8213_v14 }
 0x3c4   :  { %v2128_v55 = vpop.xlane.xlu1 %2127  ;;  %3445 = vrcp.f32 %v2150_v60  ;;  %v1422_v60 = vcvt.s32.f32 %v1420_v49  ;;  %8214 = vst [vmem:[#allocation122_spill] sm:$0xff] %v6131_v33  ;;  %v8216_v49 = vld [vmem:[#allocation175_spill] sm:$0xff] }
 0x3c5   :  { %v3430_v50 = vpop.eup %3429  ;;  %3447 = vrcp.f32 %v2128_v55  ;;  %v918_v55 = vsub.f32 %v8167_v18, %v8166_v22  ;;  %vm1650_vm3 = vcmp.eq.f32.partialorder %v8216_v49, %v5929_v62  ;;  %v8217_v22 = vld [vmem:[#allocation179_spill] sm:$0xff] }
 0x3c6   :  { %1550 = vmin.xlane.f32.xlu0 %v6114_v12  ;;  %2731 = vmin.xlane.f32.xlu1 %v2730_v39  ;;  %v1116_v27 = vmul.f32 %v3430_v50, %v8210_v20  ;;  %v3432_v6 = vpop.eup %3431  ;;  %3449 = vpow2.f32 %v2069_v8  ;;  %v948_v39 = vmul.f32 1.442695, %v902_v56  ;;  %v1427_v7 = vsel %vm1426_vm2, %v1422_v60, inf  ;;  %v8218_v8 = vld [vmem:[#allocation12_spill] sm:$0xff] }
 0x3c7   :  { %v6126_v32 = vpop.xlane.xlu0 %1452  ;;  %v1434_v18 = vand.u32 65535, %v8217_v22  ;;  %v980_v22 = vmul.f32 1.442695, %v918_v55  ;;  %v8229_v55 = vld [vmem:[#allocation143_spill] sm:$0xff] }
 0x3c8   :  { %8212 = vst [vmem:[#allocation5_spill] sm:$0xff] %v6126_v32  ;;  %v2160_v58 = vpop.xlane.xlu1 %2159  ;;  %v6133_v2 = vmul.f32 %v1148_v10, %v1116_v27  ;;  %v8219_v10 = vld [vmem:[#allocation34_spill] sm:$0xff] }
 0x3c9   :  { %v3434_v50 = vpop.eup %3433  ;;  %3451 = vrcp.f32 %v2160_v58  ;;  %v2241_v56 = vsel %vm4244_vm1, %v8219_v10, 0.0  ;;  %v8220_v58 = vld [vmem:[#allocation30_spill] sm:$0xff] }
 0x3ca   :  { %v3436_v20 = vpop.eup %3435  ;;  %1774 = vmin.xlane.f32.xlu0 %v6131_v33  ;;  %1428 = vmin.xlane.f32.xlu1 %v1427_v7  ;;  %v1132_v43 = vmul.f32 %v3434_v50, %v8218_v8  ;;  %v2257_v60 = vsel %vm4244_vm1, %v8220_v58, 0.0  ;;  %v1646_v7 = vcvt.s32.f32 %v1644_v36  ;;  %v2611_v33 = vand.u32 65535, %v8223_v15  ;;  %v8226_v36 = vld [vmem:[#allocation57_spill] sm:$0xff] }
 0x3cb   :  { %v3438_v27 = vpop.eup %3437  ;;  %v6149_v14 = vpop.xlane.xlu0 %1676  ;;  %v1153_v50 = vsel %vm4215_vm0, %v8224_v17, 0.0  ;;  %v1995_v8 = vsub.f32 %v8176_v31, %v8175_v11  ;;  %3453 = vpow2.f32 %v948_v39  ;;  %v6163_v58 = vsel %vm4215_vm0, %v3432_v6, 0.0  ;;  %v8227_v11 = vld [vmem:[#allocation186_spill] sm:$0xff]  ;;  %v8228_v31 = vld [vmem:[#allocation181_spill] sm:$0xff] }
 0x3cc   :  { %8221 = vst [vmem:[#allocation138_spill] sm:$0xff] %v6149_v14  ;;  %v6151_v52 = vpop.xlane.xlu1 %2615  ;;  %v6159_v10 = vmul.f32 %v1164_v53, %v1132_v43  ;;  %8225 = vst [vmem:[#allocation43_spill] sm:$0xff] %v6163_v58  ;;  %v1651_v15 = vsel %vm1650_vm3, %v1646_v7, inf  ;;  %v1121_v47 = vmul.f32 %v3436_v20, %v8226_v36  ;;  %v1436_v17 = vcvt.s32.f32 %v1434_v18  ;;  %v8232_v7 = vld [vmem:[#allocation200_spill] sm:$0xff] }
 0x3cd   :  { %8222 = vst [vmem:[#allocation171_spill] sm:$0xff] %v6151_v52  ;;  %v3440_v12 = vpop.eup %3439  ;;  %vm1440_vm4 = vcmp.eq.f32.partialorder %v8227_v11, %v6001_v5  ;;  %v1658_v53 = vand.u32 65535, %v8228_v31  ;;  %v2613_v49 = vcvt.s32.f32 %v2611_v33  ;;  %vm2617_vm5 = vcmp.eq.f32.partialorder %v8232_v7, %v6151_v52  ;;  %v8233_v20 = vld [vmem:[#allocation100_spill] sm:$0xff] }
 0x3ce   :  { %v3442_v25 = vpop.eup %3441  ;;  %1040 = vadd.xlane.f32.xlu0 %v6163_v58  ;;  %1652 = vmin.xlane.f32.xlu1 %v1651_v15  ;;  %v2209_v39 = vmul.f32 %v3440_v12, %v8229_v55  ;;  %v2835_v36 = vand.u32 65535, %v8233_v20  ;;  %v6181_v58 = vmul.f32 %v1153_v50, %v1121_v47  ;;  %3455 = vpow2.f32 %v980_v22  ;;  %v8236_v47 = vld [vmem:[#allocation15_spill] sm:$0xff] }
 0x3cf   :  { %v6174_v6 = vpop.xlane.xlu0 %2545  ;;  %v3444_v18 = vpop.eup %3443  ;;  %v2041_v15 = vmul.f32 1.442695, %v1995_v8  ;;  %v2011_v31 = vsub.f32 %v8187_v9, %v8186_v40  ;;  %v6189_v55 = vsel %vm4215_vm0, %v3438_v27, 0.0  ;;  %v1441_v33 = vsel %vm1440_vm4, %v1436_v17, inf  ;;  %v8237_v8 = vld [vmem:[#allocation50_spill] sm:$0xff]  ;;  %v8239_v27 = vld [vmem:[#allocation149_spill] sm:$0xff] }
 0x3d0   :  { %8230 = vst [vmem:[#allocation189_spill] sm:$0xff] %v6174_v6  ;;  %v6176_v43 = vpop.xlane.xlu1 %2839  ;;  %8234 = vst [vmem:[#allocation144_spill] sm:$0xff] %v6181_v58  ;;  %v6185_v37 = vmul.f32 %v2241_v56, %v2209_v39  ;;  %v6194_v7 = vsel %vm2617_vm5, %v2613_v49, inf  ;;  %v1137_v50 = vmul.f32 %v3442_v25, %v8236_v47  ;;  %v1169_v9 = vsel %vm4215_vm0, %v8237_v8, 0.0  ;;  %v8238_v40 = vld [vmem:[#allocation190_spill] sm:$0xff]  ;;  %v8240_v39 = vld [vmem:[#allocation97_spill] sm:$0xff] }
 0x3d1   :  { %8231 = vst [vmem:[#allocation86_spill] sm:$0xff] %v6176_v43  ;;  %v3446_v12 = vpop.eup %3445  ;;  %8235 = vst [vmem:[#allocation140_spill] sm:$0xff] %v6189_v55  ;;  %vm1664_vm6 = vcmp.eq.f32.partialorder %v8238_v40, %v6025_v41  ;;  %v2527_v56 = vand.u32 65535, %v8239_v27  ;;  %v1660_v20 = vcvt.s32.f32 %v1658_v53  ;;  %v2837_v25 = vcvt.s32.f32 %v2835_v36  ;;  %v8242_v47 = vld [vmem:[#allocation203_spill] sm:$0xff]  ;;  %v8245_v53 = vld [vmem:[#allocation98_spill] sm:$0xff] }
 0x3d2   :  { %v3448_v22 = vpop.eup %3447  ;;  %1072 = vadd.xlane.f32.xlu0 %v6189_v55  ;;  %1442 = vmin.xlane.f32.xlu1 %v1441_v33  ;;  %v2225_v11 = vmul.f32 %v3446_v12, %v8240_v39  ;;  %vm2841_vm7 = vcmp.eq.f32.partialorder %v8242_v47, %v6176_v43  ;;  %v6209_v52 = vmul.f32 %v1169_v9, %v1137_v50  ;;  %3457 = vpow2.f32 %v2041_v15  ;;  %v8246_v58 = vld [vmem:[#allocation53_spill] sm:$0xff]  ;;  %v8249_v9 = vld [vmem:[#allocation152_spill] sm:$0xff] }
 0x3d3   :  { %v6205_v17 = vpop.xlane.xlu0 %2769  ;;  %v2073_v8 = vmul.f32 1.442695, %v2011_v31  ;;  %v6213_v33 = vsel %vm4244_vm1, %v3444_v18, 0.0  ;;  %v3450_v27 = vpop.eup %3449  ;;  %v1665_v12 = vsel %vm1664_vm6, %v1660_v20, inf  ;;  %v6217_v39 = vsel %vm2841_vm7, %v2837_v25, inf  ;;  %v8247_v18 = vld [vmem:[#allocation154_spill] sm:$0xff] }
 0x3d4   :  { %8241 = vst [vmem:[#allocation183_spill] sm:$0xff] %v6205_v17  ;;  %v1039_v49 = vpop.xlane.xlu1 %1038  ;;  %8243 = vst [vmem:[#allocation10_spill] sm:$0xff] %v6209_v52  ;;  %v6215_v40 = vmul.f32 %v2257_v60, %v2225_v11  ;;  %v2214_v36 = vmul.f32 %v3448_v22, %v8245_v53  ;;  %v2246_v50 = vsel %vm4244_vm1, %v8246_v58, 0.0  ;;  %vm2533_vm8 = vcmp.eq.f32.partialorder %v8247_v18, %v5778_v23  ;;  %v8252_v20 = vld [vmem:[#allocation198_spill] sm:$0xff] }
 0x3d5   :  { %8244 = vst [vmem:[#allocation193_spill] sm:$0xff] %v6213_v33  ;;  %3459 = vrcp.f32 %v1039_v49  ;;  %v2529_v31 = vcvt.s32.f32 %v2527_v56  ;;  %v2751_v11 = vand.u32 65535, %v8249_v9  ;;  %v6233_v22 = vsel %vm4244_vm1, %v3450_v27, 0.0  ;;  %v8254_v56 = vld [vmem:[#allocation157_spill] sm:$0xff]  ;;  %v8256_v27 = vld [vmem:[#allocation96_spill] sm:$0xff] }
 0x3d6   :  { %v3452_v55 = vpop.eup %3451  ;;  %2133 = vadd.xlane.f32.xlu0 %v6213_v33  ;;  %1666 = vmin.xlane.f32.xlu1 %v1665_v12  ;;  %v6229_v49 = vmul.f32 %v2246_v50, %v2214_v36  ;;  %3461 = vpow2.f32 %v2073_v8  ;;  %8251 = vst [vmem:[#allocation150_spill] sm:$0xff] %v6233_v22  ;;  %v8253_v12 = vld [vmem:[#allocation37_spill] sm:$0xff]  ;;  %vm2757_vm9 = vcmp.eq.f32.partialorder %v8254_v56, %v5803_v29  ;;  %v1448_v18 = vand.u32 65535, %v8256_v27 }
 0x3d7   :  { %v6226_v60 = vpop.xlane.xlu0 %1466  ;;  %v2534_v58 = vsel %vm2533_vm8, %v2529_v31, inf  ;;  %v2230_v25 = vmul.f32 %v3452_v55, %v8252_v20  ;;  %v2262_v53 = vsel %vm4244_vm1, %v8253_v12, 0.0  ;;  %v2753_v50 = vcvt.s32.f32 %v2751_v11  ;;  %v8260_v56 = vld [vmem:[#allocation61_spill] sm:$0xff] }
 0x3d8   :  { %8248 = vst [vmem:[#allocation90_spill] sm:$0xff] %v6226_v60  ;;  %v1071_v15 = vpop.xlane.xlu1 %1070  ;;  %8250 = vst [vmem:[#allocation147_spill] sm:$0xff] %v6229_v49  ;;  %v3454_v47 = vpop.eup %3453  ;;  %v1450_v11 = vcvt.s32.f32 %v1448_v18  ;;  %v1672_v27 = vand.u32 65535, %v8260_v56  ;;  %v8266_v56 = vld [vmem:[#allocation206_spill] sm:$0xff] }
 0x3d9   :  { %3463 = vrcp.f32 %v1071_v15  ;;  %v6245_v15 = vmul.f32 %v2262_v53, %v2230_v25  ;;  %v6249_v31 = vsel %vm4215_vm0, %v3454_v47, 0.0  ;;  %v2758_v9 = vsel %vm2757_vm9, %v2753_v50, inf  ;;  %v8262_v50 = vld [vmem:[#allocation199_spill] sm:$0xff] }
 0x3da   :  { %2165 = vadd.xlane.f32.xlu0 %v6233_v22  ;;  %2535 = vmin.xlane.f32.xlu1 %v2534_v58  ;;  %8258 = vst [vmem:[#allocation191_spill] sm:$0xff] %v6249_v31  ;;  %v8259_v58 = vld [vmem:[#allocation197_spill] sm:$0xff]  ;;  %vm1678_vm11 = vcmp.eq.f32.partialorder %v8262_v50, %v6149_v14  ;;  %v8268_v22 = vld [vmem:[#allocation212_spill] sm:$0xff] }
 0x3db   :  { %v6242_v8 = vpop.xlane.xlu0 %1690  ;;  %8257 = vst [vmem:[#allocation48_spill] sm:$0xff] %v6245_v15  ;;  %v3456_v55 = vpop.eup %3455  ;;  %vm1454_vm10 = vcmp.eq.f32.partialorder %v8259_v58, %v6126_v32  ;;  %v8270_v15 = vld [vmem:[#allocation99_spill] sm:$0xff]  ;;  %v8311_v14 = vld [vmem:[#allocation32_spill] sm:$0xff] }
 0x3dc   :  { %8255 = vst [vmem:[#allocation187_spill] sm:$0xff] %v6242_v8  ;;  %v2132_v36 = vpop.xlane.xlu1 %2131  ;;  %v6257_v53 = vsel %vm4215_vm0, %v3456_v55, 0.0  ;;  %v1455_v47 = vsel %vm1454_vm10, %v1450_v11, inf }
 0x3dd   :  { %3465 = vrcp.f32 %v2132_v36  ;;  %8261 = vst [vmem:[#allocation177_spill] sm:$0xff] %v6257_v53 }
 0x3de   :  { %1044 = vadd.xlane.f32.xlu0 %v6249_v31  ;;  %2759 = vmin.xlane.f32.xlu1 %v2758_v9  ;;  %v8263_v9 = vld [vmem:[#allocation209_spill] sm:$0xff] }
 0x3df   :  { %v1029_v20 = vpop.xlane.xlu0 %1028  ;;  %v3458_v25 = vpop.eup %3457  ;;  %v2639_v58 = vand.u32 65535, %v8263_v9 }
 0x3e0   :  { %v2164_v12 = vpop.xlane.xlu1 %2163  ;;  %3467 = vrcp.f32 %v1029_v20  ;;  %v1674_v20 = vcvt.s32.f32 %v1672_v27  ;;  %v6267_v55 = vsel %vm4244_vm1, %v3458_v25, 0.0  ;;  %v2863_v27 = vand.u32 65535, %v8268_v22 }
 0x3e1   :  { %3469 = vrcp.f32 %v2164_v12  ;;  %8265 = vst [vmem:[#allocation93_spill] sm:$0xff] %v6267_v55  ;;  %v2641_v9 = vcvt.s32.f32 %v2639_v58  ;;  %v2429_v25 = vand.u32 65535, %v8270_v15  ;;  %v8275_v58 = vld [vmem:[#allocation112_spill] sm:$0xff]  ;;  %v8277_v15 = vld [vmem:[#allocation17_spill] sm:$0xff] }
 0x3e2   :  { %v3460_v36 = vpop.eup %3459  ;;  %1076 = vadd.xlane.f32.xlu0 %v6257_v53  ;;  %1456 = vmin.xlane.f32.xlu1 %v1455_v47  ;;  %v1679_v11 = vsel %vm1678_vm11, %v1674_v20, inf  ;;  %v8267_v47 = vld [vmem:[#allocation55_spill] sm:$0xff]  ;;  %v8271_v20 = vld [vmem:[#allocation216_spill] sm:$0xff] }
 0x3e3   :  { %v1061_v18 = vpop.xlane.xlu0 %1060  ;;  %v3462_v12 = vpop.eup %3461  ;;  %v1123_v31 = vmul.f32 %v3460_v36, %v8266_v56  ;;  %v1155_v50 = vsel %vm4215_vm0, %v8267_v47, 0.0 }
 0x3e4   :  { %v6263_v43 = vpop.xlane.xlu1 %2643  ;;  %3471 = vrcp.f32 %v1061_v18  ;;  %v6286_v47 = vsel %vm4244_vm1, %v3462_v12, 0.0  ;;  %v8279_v12 = vld [vmem:[#allocation101_spill] sm:$0xff] }
 0x3e5   :  { %8264 = vst [vmem:[#allocation195_spill] sm:$0xff] %v6263_v43  ;;  %vm2645_vm12 = vcmp.eq.f32.partialorder %v8271_v20, %v6263_v43  ;;  %v6280_v36 = vmul.f32 %v1155_v50, %v1123_v31  ;;  %8274 = vst [vmem:[#allocation180_spill] sm:$0xff] %v6286_v47  ;;  %v8278_v31 = vld [vmem:[#allocation102_spill] sm:$0xff]  ;;  %v2865_v50 = vcvt.s32.f32 %v2863_v27  ;;  %v2431_v20 = vcvt.s32.f32 %v2429_v25  ;;  %v8284_v27 = vld [vmem:[#allocation59_spill] sm:$0xff] }
 0x3e6   :  { %v3464_v53 = vpop.eup %3463  ;;  %2137 = vadd.xlane.f32.xlu0 %v6267_v55  ;;  %1680 = vmin.xlane.f32.xlu1 %v1679_v11  ;;  %v6282_v56 = vsel %vm2645_vm12, %v2641_v9, inf  ;;  %v8276_v55 = vld [vmem:[#allocation54_spill] sm:$0xff]  ;;  %vm2435_vm13 = vcmp.eq.f32.partialorder %v8278_v31, %v8277_v15  ;;  %v2653_v43 = vand.u32 65535, %v8279_v12  ;;  %v2248_v25 = vsel %vm4244_vm1, %v8284_v27, 0.0 }
 0x3e7   :  { %v2122_v18 = vpop.xlane.xlu0 %2121  ;;  %8272 = vst [vmem:[#allocation155_spill] sm:$0xff] %v6280_v36  ;;  %8273 = vst [vmem:[#allocation192_spill] sm:$0xff] %v6282_v56  ;;  %v1139_v11 = vmul.f32 %v3464_v53, %v8275_v58  ;;  %v1171_v49 = vsel %vm4215_vm0, %v8276_v55, 0.0  ;;  %v8280_v53 = vld [vmem:[#allocation218_spill] sm:$0xff] }
 0x3e8   :  { %v6275_v33 = vpop.xlane.xlu1 %2867  ;;  %3473 = vrcp.f32 %v2122_v18  ;;  %v8283_v36 = vld [vmem:[#allocation210_spill] sm:$0xff] }
 0x3e9   :  { %8269 = vst [vmem:[#allocation156_spill] sm:$0xff] %v6275_v33  ;;  %vm2869_vm14 = vcmp.eq.f32.partialorder %v8280_v53, %v6275_v33  ;;  %v6299_v58 = vmul.f32 %v1171_v49, %v1139_v11  ;;  %v8285_v12 = vld [vmem:[#allocation202_spill] sm:$0xff]  ;;  %v8287_v49 = vld [vmem:[#allocation211_spill] sm:$0xff] }
 0x3ea   :  { %v3466_v22 = vpop.eup %3465  ;;  %2169 = vadd.xlane.f32.xlu0 %v6286_v47  ;;  %1210 = vadd.xlane.f32.xlu1 %v5672_v46  ;;  %v6301_v55 = vsel %vm2869_vm14, %v2865_v50, inf  ;;  %v2436_v46 = vsel %vm2435_vm13, %v2431_v20, inf  ;;  %v8286_v53 = vld [vmem:[#allocation106_spill] sm:$0xff]  ;;  %v8288_v50 = vld [vmem:[#allocation11_spill] sm:$0xff] }
 0x3eb   :  { %v2154_v9 = vpop.xlane.xlu0 %2153  ;;  %8281 = vst [vmem:[#allocation158_spill] sm:$0xff] %v6299_v58  ;;  %8282 = vst [vmem:[#allocation130_spill] sm:$0xff] %v6301_v55  ;;  %v2216_v52 = vmul.f32 %v3466_v22, %v8283_v36  ;;  %vm2659_vm15 = vcmp.eq.f32.partialorder %v8286_v53, %v8285_v12  ;;  %v2655_v22 = vcvt.s32.f32 %v2653_v43  ;;  %v8290_v20 = vld [vmem:[#allocation115_spill] sm:$0xff]  ;;  %v8292_v53 = vld [vmem:[#allocation213_spill] sm:$0xff] }
 0x3ec   :  { %v1043_v18 = vpop.xlane.xlu1 %1042  ;;  %3475 = vrcp.f32 %v2154_v9  ;;  %v1150_v9 = vsel %vm4215_vm0, %v8288_v50, 0.0  ;;  %v2457_v33 = vand.u32 65535, %v8290_v20  ;;  %v8294_v50 = vld [vmem:[#allocation62_spill] sm:$0xff]  ;;  %v8296_v43 = vld [vmem:[#allocation121_spill] sm:$0xff] }
 0x3ed   :  { %v3468_v47 = vpop.eup %3467  ;;  %3477 = vrcp.f32 %v1043_v18  ;;  %v6317_v58 = vmul.f32 %v2248_v25, %v2216_v52  ;;  %v2660_v27 = vsel %vm2659_vm15, %v2655_v22, inf  ;;  %v2264_v15 = vsel %vm4244_vm1, %v8294_v50, 0.0  ;;  %v8295_v52 = vld [vmem:[#allocation214_spill] sm:$0xff]  ;;  %v8297_v25 = vld [vmem:[#allocation87_spill] sm:$0xff]  ;;  %v8299_v22 = vld [vmem:[#allocation120_spill] sm:$0xff] }
 0x3ee   :  { %v3470_v31 = vpop.eup %3469  ;;  %2437 = vmin.xlane.f32.xlu0 %v2436_v46  ;;  %1242 = vadd.xlane.f32.xlu1 %v5696_v1  ;;  %v1118_v11 = vmul.f32 %v3468_v47, %v8287_v49  ;;  %v8293_v47 = vld [vmem:[#allocation33_spill] sm:$0xff]  ;;  %vm2463_vm2 = vcmp.eq.f32.partialorder %v8296_v43, %v8295_v52  ;;  %v2681_v20 = vand.u32 65535, %v8299_v22  ;;  %v8302_v50 = vld [vmem:[#allocation6_spill] sm:$0xff]  ;;  %v8306_v22 = vld [vmem:[#allocation75_spill] sm:$0xff] }
 0x3ef   :  { %v6314_v18 = vpop.xlane.xlu0 %1480  ;;  %8291 = vst [vmem:[#allocation47_spill] sm:$0xff] %v6317_v58  ;;  %v2232_v12 = vmul.f32 %v3470_v31, %v8292_v53  ;;  %v1166_v49 = vsel %vm4215_vm0, %v8293_v47, 0.0  ;;  %v2459_v31 = vcvt.s32.f32 %v2457_v33  ;;  %v8300_v53 = vld [vmem:[#allocation204_spill] sm:$0xff]  ;;  %v2243_v43 = vsel %vm4244_vm1, %v8302_v50, 0.0 }
 0x3f0   :  { %8289 = vst [vmem:[#allocation185_spill] sm:$0xff] %v6314_v18  ;;  %v1075_v36 = vpop.xlane.xlu1 %1074  ;;  %v6319_v46 = vmul.f32 %v1150_v9, %v1118_v11  ;;  %v1462_v47 = vand.u32 65535, %v8300_v53  ;;  %v8305_v33 = vld [vmem:[#allocation124_spill] sm:$0xff]  ;;  %vm1468_vm4 = vcmp.eq.f32.partialorder %v8306_v22, %v6226_v60  ;;  %v8309_v53 = vld [vmem:[#allocation145_spill] sm:$0xff]  ;;  %v8317_v60 = vld [vmem:[#allocation163_spill] sm:$0xff] }
 0x3f1   :  { %v3472_v1 = vpop.eup %3471  ;;  %3479 = vrcp.f32 %v1075_v36  ;;  %v6336_v58 = vmul.f32 %v2264_v15, %v2232_v12  ;;  %v8307_v15 = vld [vmem:[#allocation217_spill] sm:$0xff]  ;;  %v2485_v52 = vand.u32 65535, %v8309_v53  ;;  %v8312_v22 = vld [vmem:[#allocation136_spill] sm:$0xff]  ;;  %v2555_v32 = vand.u32 65535, %v8317_v60  ;;  %v8323_v60 = vld [vmem:[#allocation174_spill] sm:$0xff] }
 0x3f2   :  { %2661 = vmin.xlane.f32.xlu0 %v2660_v27  ;;  %2303 = vadd.xlane.f32.xlu1 %v5714_v0  ;;  %v1134_v11 = vmul.f32 %v3472_v1, %v8297_v25  ;;  %v2464_v0 = vsel %vm2463_vm2, %v2459_v31, inf  ;;  %v8303_v1 = vld [vmem:[#allocation230_spill] sm:$0xff]  ;;  %v8304_v25 = vld [vmem:[#allocation16_spill] sm:$0xff]  ;;  %v1464_v31 = vcvt.s32.f32 %v1462_v47 }
 0x3f3   :  { %v6332_v9 = vpop.xlane.xlu0 %1704  ;;  %8301 = vst [vmem:[#allocation133_spill] sm:$0xff] %v6336_v58  ;;  %vm2687_vm3 = vcmp.eq.f32.partialorder %v8305_v33, %v8304_v25  ;;  %v8310_v58 = vld [vmem:[#allocation109_spill] sm:$0xff]  ;;  %v8314_v47 = vld [vmem:[#allocation208_spill] sm:$0xff] }
 0x3f4   :  { %8298 = vst [vmem:[#allocation135_spill] sm:$0xff] %v6332_v9  ;;  %v2136_v36 = vpop.xlane.xlu1 %2135  ;;  %v6338_v55 = vmul.f32 %v1166_v49, %v1134_v11  ;;  %v1686_v50 = vand.u32 65535, %v8310_v58  ;;  %v1469_v33 = vsel %vm1468_vm4, %v1464_v31, inf  ;;  %vm1692_vm6 = vcmp.eq.f32.partialorder %v8314_v47, %v6242_v8  ;;  %v8315_v58 = vld [vmem:[#allocation56_spill] sm:$0xff]  ;;  %v8319_v47 = vld [vmem:[#allocation66_spill] sm:$0xff] }
 0x3f5   :  { %v3474_v27 = vpop.eup %3473  ;;  %3481 = vrcp.f32 %v2136_v36  ;;  %v2683_v36 = vcvt.s32.f32 %v2681_v20  ;;  %v8313_v20 = vld [vmem:[#allocation151_spill] sm:$0xff]  ;;  %v8316_v31 = vld [vmem:[#allocation148_spill] sm:$0xff] }
 0x3f6   :  { %2465 = vmin.xlane.f32.xlu0 %v2464_v0  ;;  %2335 = vadd.xlane.f32.xlu1 %v8303_v1  ;;  %v2211_v12 = vmul.f32 %v3474_v27, %v8307_v15  ;;  %v2259_v27 = vsel %vm4244_vm1, %v8311_v14, 0.0  ;;  %vm2491_vm5 = vcmp.eq.f32.partialorder %v8313_v20, %v8312_v22  ;;  %v2709_v53 = vand.u32 65535, %v8316_v31  ;;  %v8318_v20 = vld [vmem:[#allocation221_spill] sm:$0xff] }
 0x3f7   :  { %v6349_v49 = vpop.xlane.xlu0 %2573  ;;  %v2688_v56 = vsel %vm2687_vm3, %v2683_v36, inf  ;;  %v1688_v36 = vcvt.s32.f32 %v1686_v50  ;;  %v8321_v50 = vld [vmem:[#allocation153_spill] sm:$0xff] }
 0x3f8   :  { %8308 = vst [vmem:[#allocation188_spill] sm:$0xff] %v6349_v49  ;;  %v2168_v11 = vpop.xlane.xlu1 %2167  ;;  %v6353_v0 = vmul.f32 %v2243_v43, %v2211_v12 }
 0x3f9   :  { %v3476_v1 = vpop.eup %3475  ;;  %3483 = vrcp.f32 %v2168_v11  ;;  %v2487_v11 = vcvt.s32.f32 %v2485_v52  ;;  %v8320_v52 = vld [vmem:[#allocation139_spill] sm:$0xff] }
 0x3fa   :  { %v3478_v25 = vpop.eup %3477  ;;  %2689 = vmin.xlane.f32.xlu0 %v2688_v56  ;;  %1470 = vmin.xlane.f32.xlu1 %v1469_v33  ;;  %v2227_v43 = vmul.f32 %v3476_v1, %v8315_v58  ;;  %v1693_v33 = vsel %vm1692_vm6, %v1688_v36, inf  ;;  %v1157_v1 = vsel %vm4215_vm0, %v8319_v47, 0.0  ;;  %vm2715_vm7 = vcmp.eq.f32.partialorder %v8321_v50, %v8320_v52  ;;  %v8322_v58 = vld [vmem:[#allocation169_spill] sm:$0xff]  ;;  %v8325_v36 = vld [vmem:[#allocation167_spill] sm:$0xff]  ;;  %v8327_v47 = vld [vmem:[#allocation224_spill] sm:$0xff] }
 0x3fb   :  { %v6363_v15 = vpop.xlane.xlu0 %2797  ;;  %v2492_v56 = vsel %vm2491_vm5, %v2487_v11, inf  ;;  %v1125_v22 = vmul.f32 %v3478_v25, %v8318_v20  ;;  %vm2561_vm8 = vcmp.eq.f32.partialorder %v8322_v58, %v5896_v61  ;;  %v2711_v11 = vcvt.s32.f32 %v2709_v53  ;;  %v8328_v52 = vld [vmem:[#allocation69_spill] sm:$0xff] }
 0x3fc   :  { %v1047_v12 = vpop.xlane.xlu1 %1046  ;;  %v6367_v14 = vmul.f32 %v2259_v27, %v2227_v43  ;;  %v2513_v27 = vand.u32 65535, %v8323_v60  ;;  %v2557_v25 = vcvt.s32.f32 %v2555_v32  ;;  %v2779_v31 = vand.u32 65535, %v8325_v36  ;;  %v8329_v60 = vld [vmem:[#allocation178_spill] sm:$0xff]  ;;  %v8330_v32 = vld [vmem:[#allocation173_spill] sm:$0xff] }
 0x3fd   :  { %3485 = vrcp.f32 %v1047_v12  ;;  %v6381_v20 = vmul.f32 %v1157_v1, %v1125_v22  ;;  %v1173_v58 = vsel %vm4215_vm0, %v8328_v52, 0.0  ;;  %vm2519_vm9 = vcmp.eq.f32.partialorder %v8329_v60, %v5951_v16  ;;  %v8331_v22 = vld [vmem:[#allocation176_spill] sm:$0xff]  ;;  %v8336_v16 = vld [vmem:[#allocation73_spill] sm:$0xff] }
 0x3fe   :  { %v3480_v48 = vpop.eup %3479  ;;  %2493 = vmin.xlane.f32.xlu0 %v2492_v56  ;;  %1694 = vmin.xlane.f32.xlu1 %v1693_v33  ;;  %v2716_v56 = vsel %vm2715_vm7, %v2711_v11, inf  ;;  %v2562_v33 = vsel %vm2561_vm8, %v2557_v25, inf  ;;  %vm2785_vm10 = vcmp.eq.f32.partialorder %v8330_v32, %v5911_v4  ;;  %v2737_v53 = vand.u32 65535, %v8331_v22  ;;  %v8333_v25 = vld [vmem:[#allocation219_spill] sm:$0xff]  ;;  %v8337_v22 = vld [vmem:[#allocation182_spill] sm:$0xff] }
 0x3ff   :  { %v6378_v43 = vpop.xlane.xlu0 %1494  ;;  %8326 = vst [vmem:[#allocation137_spill] sm:$0xff] %v6381_v20  ;;  %v1141_v8 = vmul.f32 %v3480_v48, %v8327_v47  ;;  %v2515_v11 = vcvt.s32.f32 %v2513_v27  ;;  %v2781_v48 = vcvt.s32.f32 %v2779_v31  ;;  %v1476_v36 = vand.u32 65535, %v8333_v25  ;;  %v8338_v27 = vld [vmem:[#allocation222_spill] sm:$0xff]  ;;  %v8341_v25 = vld [vmem:[#allocation79_spill] sm:$0xff] }
 0x400   :  { %8324 = vst [vmem:[#allocation8_spill] sm:$0xff] %v6378_v43  ;;  %v1079_v12 = vpop.xlane.xlu1 %1078  ;;  %v2250_v32 = vsel %vm4244_vm1, %v8336_v16, 0.0  ;;  %vm2743_vm11 = vcmp.eq.f32.partialorder %v8337_v22, %v5975_v57  ;;  %vm1482_vm12 = vcmp.eq.f32.partialorder %v8338_v27, %v6314_v18  ;;  %v8343_v57 = vld [vmem:[#allocation76_spill] sm:$0xff] }
 0x401   :  { %3487 = vrcp.f32 %v1079_v12  ;;  %v6395_v47 = vmul.f32 %v1173_v58, %v1141_v8  ;;  %v2520_v52 = vsel %vm2519_vm9, %v2515_v11, inf  ;;  %v2739_v58 = vcvt.s32.f32 %v2737_v53  ;;  %v8339_v11 = vld [vmem:[#allocation220_spill] sm:$0xff] }
 0x402   :  { %v3482_v50 = vpop.eup %3481  ;;  %2717 = vmin.xlane.f32.xlu0 %v2716_v56  ;;  %2563 = vmin.xlane.f32.xlu1 %v2562_v33  ;;  %v2786_v56 = vsel %vm2785_vm10, %v2781_v48, inf  ;;  %v8335_v33 = vld [vmem:[#allocation226_spill] sm:$0xff]  ;;  %v1700_v48 = vand.u32 65535, %v8339_v11  ;;  %v2266_v27 = vsel %vm4244_vm1, %v8343_v57, 0.0  ;;  %v8344_v53 = vld [vmem:[#allocation64_spill] sm:$0xff]  ;;  %v8348_v57 = vld [vmem:[#allocation81_spill] sm:$0xff] }
 0x403   :  { %v6392_v1 = vpop.xlane.xlu0 %1718  ;;  %8334 = vst [vmem:[#allocation172_spill] sm:$0xff] %v6395_v47  ;;  %v2218_v20 = vmul.f32 %v3482_v50, %v8335_v33  ;;  %v1347_v33 = vcvt.f32.s32 %v8341_v25  ;;  %v2744_v16 = vsel %vm2743_vm11, %v2739_v58, inf  ;;  %vm1706_vm13 = vcmp.eq.f32.partialorder %v8344_v53, %v6332_v9  ;;  %v8347_v25 = vld [vmem:[#allocation228_spill] sm:$0xff]  ;;  %v8350_v53 = vld [vmem:[#allocation26_spill] sm:$0xff] }
 0x404   :  { %8332 = vst [vmem:[#allocation165_spill] sm:$0xff] %v6392_v1  ;;  %v2140_v12 = vpop.xlane.xlu1 %2139 }
 0x405   :  { %3489 = vrcp.f32 %v2140_v12  ;;  %v1478_v12 = vcvt.s32.f32 %v1476_v36  ;;  %v6406_v50 = vmul.f32 %v2250_v32, %v2218_v20  ;;  %v1702_v32 = vcvt.s32.f32 %v1700_v48 }
 0x406   :  { %v3484_v60 = vpop.eup %3483  ;;  %2521 = vmin.xlane.f32.xlu0 %v2520_v52  ;;  %2787 = vmin.xlane.f32.xlu1 %v2786_v56  ;;  %v8342_v56 = vld [vmem:[#allocation227_spill] sm:$0xff] }
 0x407   :  { %v1033_v8 = vpop.xlane.xlu0 %1032  ;;  %8340 = vst [vmem:[#allocation194_spill] sm:$0xff] %v6406_v50  ;;  %v1483_v52 = vsel %vm1482_vm12, %v1478_v12, inf  ;;  %v2234_v47 = vmul.f32 %v3484_v60, %v8342_v56  ;;  %v1707_v12 = vsel %vm1706_vm13, %v1702_v32, inf }
 0x408   :  { %v2172_v31 = vpop.xlane.xlu1 %2171  ;;  %3491 = vrcp.f32 %v1033_v8  ;;  %v1348_v8 = vshll.u32 %v1347_v33, 16 }
 0x409   :  { %3493 = vrcp.f32 %v2172_v31  ;;  %v6415_v11 = vmul.f32 %v2266_v27, %v2234_v47  ;;  %v8346_v31 = vld [vmem:[#allocation196_spill] sm:$0xff] }
 0x40a   :  { %v3486_v22 = vpop.eup %3485  ;;  %2745 = vmin.xlane.f32.xlu0 %v2744_v16  ;;  %1484 = vmin.xlane.f32.xlu1 %v1483_v52  ;;  %v1571_v58 = vcvt.f32.s32 %v8346_v31  ;;  %v1159_v16 = vsel %vm4215_vm0, %v8348_v57, 0.0  ;;  %v8356_v57 = vld [vmem:[#allocation42_spill] sm:$0xff] }
 0x40b   :  { %v1065_v20 = vpop.xlane.xlu0 %1064  ;;  %8345 = vst [vmem:[#allocation46_spill] sm:$0xff] %v6415_v11  ;;  %v1127_v56 = vmul.f32 %v3486_v22, %v8347_v25  ;;  %v8353_v22 = vld [vmem:[#allocation21_spill] sm:$0xff] }
 0x40c   :  { %v1345_v36 = vpop.xlane.xlu1 %1344  ;;  %3495 = vrcp.f32 %v1065_v20  ;;  %v1572_v27 = vshll.u32 %v1571_v58, 16  ;;  %v8352_v20 = vld [vmem:[#allocation205_spill] sm:$0xff] }
 0x40d   :  { %v1346_v60 = vcvt.f32.s32 %v1345_v36  ;;  %v6425_v33 = vmul.f32 %v1159_v16, %v1127_v56  ;;  %v1361_v36 = vcvt.f32.s32 %v8352_v20  ;;  %v8354_v11 = vld [vmem:[#allocation85_spill] sm:$0xff] }
 0x40e   :  { %v3488_v50 = vpop.eup %3487  ;;  %1208 = vadd.xlane.f32.xlu0 %v8350_v53  ;;  %1708 = vmin.xlane.f32.xlu1 %v1707_v12  ;;  %v8357_v12 = vld [vmem:[#allocation141_spill] sm:$0xff] }
 0x40f   :  { %v6422_v52 = vadd.s32 %v1348_v8, %v1346_v60  ;;  %v2126_v47 = vpop.xlane.xlu0 %2125  ;;  %8351 = vst [vmem:[#allocation7_spill] sm:$0xff] %v6425_v33  ;;  %v1143_v31 = vmul.f32 %v3488_v50, %v8353_v22  ;;  %v1175_v8 = vsel %vm4215_vm0, %v8354_v11, 0.0  ;;  %v1362_v53 = vshll.u32 %v1361_v36, 16  ;;  %v8360_v22 = vld [vmem:[#allocation22_spill] sm:$0xff]  ;;  %v8361_v11 = vld [vmem:[#allocation89_spill] sm:$0xff] }
 0x410   :  { %v1569_v48 = vpop.xlane.xlu1 %1568  ;;  %3497 = vrcp.f32 %v2126_v47  ;;  %v8359_v47 = vld [vmem:[#allocation207_spill] sm:$0xff] }
 0x411   :  { %8349 = vst [vmem:[#allocation170_spill] sm:$0xff] %v6422_v52  ;;  %v1570_v32 = vcvt.f32.s32 %v1569_v48  ;;  %v6436_v58 = vmul.f32 %v1175_v8, %v1143_v31  ;;  %v1585_v48 = vcvt.f32.s32 %v8359_v47  ;;  %v8363_v31 = vld [vmem:[#allocation231_spill] sm:$0xff] }
 0x412   :  { %v3490_v25 = vpop.eup %3489  ;;  %1240 = vadd.xlane.f32.xlu0 %v8356_v57  ;;  %1214 = vadd.xlane.f32.xlu1 %v8357_v12  ;;  %v8362_v57 = vld [vmem:[#allocation25_spill] sm:$0xff] }
 0x413   :  { %v6432_v60 = vadd.s32 %v1572_v27, %v1570_v32  ;;  %v2158_v56 = vpop.xlane.xlu0 %2157  ;;  %8358 = vst [vmem:[#allocation179_spill] sm:$0xff] %v6436_v58  ;;  %v2220_v33 = vmul.f32 %v3490_v25, %v8360_v22  ;;  %v2252_v27 = vsel %vm4244_vm1, %v8361_v11, 0.0  ;;  %v8367_v25 = vld [vmem:[#allocation13_spill] sm:$0xff]  ;;  %v1586_v11 = vshll.u32 %v1585_v48, 16 }
 0x414   :  { %v1359_v16 = vpop.xlane.xlu1 %1358  ;;  %3499 = vrcp.f32 %v2158_v56  ;;  %v8365_v56 = vld [vmem:[#allocation82_spill] sm:$0xff]  ;;  %v1152_v22 = vsel %vm4215_vm0, %v8367_v25, 0.0  ;;  %v8372_v48 = vld [vmem:[#allocation233_spill] sm:$0xff] }
 0x415   :  { %8355 = vst [vmem:[#allocation175_spill] sm:$0xff] %v6432_v60  ;;  %v1360_v50 = vcvt.f32.s32 %v1359_v16  ;;  %v3492_v20 = vpop.eup %3491  ;;  %v2541_v16 = vand.u32 65535, %v8365_v56  ;;  %v6451_v47 = vmul.f32 %v2252_v27, %v2220_v33  ;;  %v8369_v60 = vld [vmem:[#allocation92_spill] sm:$0xff]  ;;  %v8370_v56 = vld [vmem:[#allocation41_spill] sm:$0xff]  ;;  %v8371_v33 = vld [vmem:[#allocation103_spill] sm:$0xff] }
 0x416   :  { %v3494_v52 = vpop.eup %3493  ;;  %2301 = vadd.xlane.f32.xlu0 %v8362_v57  ;;  %1246 = vadd.xlane.f32.xlu1 %v5830_v59  ;;  %v1120_v36 = vmul.f32 %v3492_v20, %v8363_v31  ;;  %v8368_v57 = vld [vmem:[#allocation232_spill] sm:$0xff]  ;;  %v2268_v20 = vsel %vm4244_vm1, %v8369_v60, 0.0  ;;  %vm2547_vm14 = vcmp.eq.f32.partialorder %v8371_v33, %v6174_v6  ;;  %v8374_v25 = vld [vmem:[#allocation201_spill] sm:$0xff]  ;;  %v8386_v6 = vld [vmem:[#allocation38_spill] sm:$0xff] }
 0x417   :  { %v6443_v32 = vadd.s32 %v1362_v53, %v1360_v50  ;;  %v6448_v8 = vpop.xlane.xlu0 %1508  ;;  %8366 = vst [vmem:[#allocation34_spill] sm:$0xff] %v6451_v47  ;;  %v2236_v59 = vmul.f32 %v3494_v52, %v8368_v57  ;;  %v2543_v52 = vcvt.s32.f32 %v2541_v16  ;;  %v8375_v57 = vld [vmem:[#allocation20_spill] sm:$0xff]  ;;  %v8379_v16 = vld [vmem:[#allocation131_spill] sm:$0xff] }
 0x418   :  { %8364 = vst [vmem:[#allocation12_spill] sm:$0xff] %v6448_v8  ;;  %v1583_v12 = vpop.xlane.xlu1 %1582  ;;  %v6456_v58 = vmul.f32 %v1152_v22, %v1120_v36  ;;  %v2765_v22 = vand.u32 65535, %v8374_v25  ;;  %v1490_v60 = vand.u32 65535, %v8375_v57  ;;  %vm1496_vm2 = vcmp.eq.f32.partialorder %v8379_v16, %v6378_v43 }
 0x419   :  { %v1584_v53 = vcvt.f32.s32 %v1583_v12  ;;  %v3496_v50 = vpop.eup %3495  ;;  %v2548_v47 = vsel %vm2547_vm14, %v2543_v52, inf  ;;  %v8382_v52 = vld [vmem:[#allocation27_spill] sm:$0xff] }
 0x41a   :  { %2333 = vadd.xlane.f32.xlu0 %v8370_v56  ;;  %2307 = vadd.xlane.f32.xlu1 %v5851_v26  ;;  %v1136_v27 = vmul.f32 %v3496_v50, %v8372_v48  ;;  %v8378_v50 = vld [vmem:[#allocation107_spill] sm:$0xff]  ;;  %v8380_v48 = vld [vmem:[#allocation234_spill] sm:$0xff]  ;;  %v2767_v57 = vcvt.s32.f32 %v2765_v22 }
 0x41b   :  { %v6462_v31 = vadd.s32 %v1586_v11, %v1584_v53  ;;  %v6469_v12 = vpop.xlane.xlu0 %1732  ;;  %v6475_v11 = vmul.f32 %v2268_v20, %v2236_v59  ;;  %v8377_v53 = vld [vmem:[#allocation36_spill] sm:$0xff]  ;;  %vm2771_vm15 = vcmp.eq.f32.partialorder %v8378_v50, %v6205_v17  ;;  %v8385_v22 = vld [vmem:[#allocation70_spill] sm:$0xff] }
 0x41c   :  { %8373 = vst [vmem:[#allocation30_spill] sm:$0xff] %v6469_v12  ;;  %v6471_v36 = vpop.xlane.xlu1 %2451  ;;  %v1168_v26 = vsel %vm4215_vm0, %v8377_v53, 0.0  ;;  %v1492_v53 = vcvt.s32.f32 %v1490_v60 }
 0x41d   :  { %8376 = vst [vmem:[#allocation14_spill] sm:$0xff] %v6475_v11  ;;  %v3498_v56 = vpop.eup %3497  ;;  %v6480_v33 = vmul.f32 %v1168_v26, %v1136_v27  ;;  %v1714_v27 = vand.u32 65535, %v8382_v52  ;;  %v8383_v26 = vld [vmem:[#allocation35_spill] sm:$0xff]  ;;  %v2772_v11 = vsel %vm2771_vm15, %v2767_v57, inf  ;;  %v1599_v57 = vcvt.f32.s32 %v5551_v3  ;;  %v8392_v3 = vld [vmem:[#allocation45_spill] sm:$0xff] }
 0x41e   :  { %2549 = vmin.xlane.f32.xlu0 %v2548_v47  ;;  %2339 = vadd.xlane.f32.xlu1 %v5869_v44  ;;  %v2213_v59 = vmul.f32 %v3498_v56, %v8380_v48  ;;  %v2245_v44 = vsel %vm4244_vm1, %v8383_v26, 0.0  ;;  %v1375_v47 = vcvt.f32.s32 %v5534_v21  ;;  %v1497_v17 = vsel %vm1496_vm2, %v1492_v53, inf  ;;  %v8384_v56 = vld [vmem:[#allocation134_spill] sm:$0xff] }
 0x41f   :  { %v6488_v20 = vpop.xlane.xlu0 %2601  ;;  %vm1720_vm3 = vcmp.eq.f32.partialorder %v8384_v56, %v6392_v1  ;;  %v1716_v43 = vcvt.s32.f32 %v1714_v27  ;;  %v2261_v21 = vsel %vm4244_vm1, %v8386_v6, 0.0  ;;  %v1600_v27 = vshll.u32 %v1599_v57, 16  ;;  %v8397_v57 = vld [vmem:[#allocation160_spill] sm:$0xff] }
 0x420   :  { %8381 = vst [vmem:[#allocation51_spill] sm:$0xff] %v6488_v20  ;;  %v6490_v25 = vpop.xlane.xlu1 %2675  ;;  %v6497_v16 = vmul.f32 %v2245_v44, %v2213_v59  ;;  %v1376_v26 = vshll.u32 %v1375_v47, 16  ;;  %v8388_v44 = vld [vmem:[#allocation114_spill] sm:$0xff]  ;;  %v8391_v47 = vld [vmem:[#allocation159_spill] sm:$0xff] }
 0x421   :  { %v3500_v50 = vpop.eup %3499  ;;  %v1721_v53 = vsel %vm1720_vm3, %v1716_v43, inf }
 0x422   :  { %2773 = vmin.xlane.f32.xlu0 %v2772_v11  ;;  %1498 = vmin.xlane.f32.xlu1 %v1497_v17  ;;  %v2229_v60 = vmul.f32 %v3500_v50, %v8385_v22  ;;  %v8389_v22 = vld [vmem:[#allocation91_spill] sm:$0xff] }
 0x423   :  { %v6502_v48 = vpop.xlane.xlu0 %2825  ;;  %v1389_v1 = vcvt.f32.s32 %v8389_v22 }
 0x424   :  { %v1373_v52 = vpop.xlane.xlu1 %1372  ;;  %v6508_v11 = vmul.f32 %v2261_v21, %v2229_v60 }
 0x425   :  { %v1374_v59 = vcvt.f32.s32 %v1373_v52  ;;  %v8394_v52 = vld [vmem:[#allocation67_spill] sm:$0xff] }
 0x426   :  { %1212 = vadd.xlane.f32.xlu0 %v8388_v44  ;;  %1722 = vmin.xlane.f32.xlu1 %v1721_v53  ;;  %v1504_v21 = vand.u32 65535, %v8394_v52  ;;  %v8400_v52 = vld [vmem:[#allocation18_spill] sm:$0xff] }
 0x427   :  { %v6510_v17 = vadd.s32 %v1376_v26, %v1374_v59  ;;  %v6513_v50 = vpop.xlane.xlu0 %1522  ;;  %v1390_v26 = vshll.u32 %v1389_v1, 16  ;;  %v8395_v59 = vld [vmem:[#allocation60_spill] sm:$0xff]  ;;  %v1728_v1 = vand.u32 65535, %v8400_v52 }
 0x428   :  { %v1597_v56 = vpop.xlane.xlu1 %1596  ;;  %v1613_v53 = vcvt.f32.s32 %v8395_v59  ;;  %v1506_v22 = vcvt.s32.f32 %v1504_v21 }
 0x429   :  { %8387 = vst [vmem:[#allocation57_spill] sm:$0xff] %v6510_v17  ;;  %v1598_v9 = vcvt.f32.s32 %v1597_v56 }
 0x42a   :  { %1244 = vadd.xlane.f32.xlu0 %v8391_v47  ;;  %2591 = vmin.xlane.f32.xlu1 %v8392_v3  ;;  %v8399_v47 = vld [vmem:[#allocation223_spill] sm:$0xff] }
 0x42b   :  { %v6516_v6 = vadd.s32 %v1600_v27, %v1598_v9  ;;  %v6520_v43 = vpop.xlane.xlu0 %1746  ;;  %v8398_v9 = vld [vmem:[#allocation146_spill] sm:$0xff]  ;;  %v2569_v3 = vand.u32 65535, %v8399_v47 }
 0x42c   :  { %8393 = vst [vmem:[#allocation181_spill] sm:$0xff] %v6520_v43  ;;  %v1387_v60 = vpop.xlane.xlu1 %1386  ;;  %vm1510_vm4 = vcmp.eq.f32.partialorder %v8398_v9, %v6448_v8  ;;  %v8405_v9 = vld [vmem:[#allocation74_spill] sm:$0xff]  ;;  %v1730_v8 = vcvt.s32.f32 %v1728_v1 }
 0x42d   :  { %8390 = vst [vmem:[#allocation186_spill] sm:$0xff] %v6516_v6  ;;  %v1388_v44 = vcvt.f32.s32 %v1387_v60  ;;  %v8401_v6 = vld [vmem:[#allocation95_spill] sm:$0xff]  ;;  %v1614_v60 = vshll.u32 %v1613_v53, 16  ;;  %vm1734_vm6 = vcmp.eq.f32.partialorder %v8405_v9, %v6469_v12  ;;  %v2571_v52 = vcvt.s32.f32 %v2569_v3 }
 0x42e   :  { %2305 = vadd.xlane.f32.xlu0 %v8397_v57  ;;  %2815 = vmin.xlane.f32.xlu1 %v6065_v19  ;;  %v2482_v59 = vcvt.f32.s32 %v8401_v6  ;;  %v8403_v57 = vld [vmem:[#allocation129_spill] sm:$0xff]  ;;  %v8404_v19 = vld [vmem:[#allocation126_spill] sm:$0xff] }
 0x42f   :  { %v6524_v17 = vadd.s32 %v1390_v26, %v1388_v44  ;;  %v6530_v56 = vpop.xlane.xlu0 %1036  ;;  %v1511_v44 = vsel %vm1510_vm4, %v1506_v22, inf  ;;  %vm2575_vm5 = vcmp.eq.f32.partialorder %v8404_v19, %v6349_v49  ;;  %v8406_v6 = vld [vmem:[#allocation225_spill] sm:$0xff]  ;;  %v8407_v22 = vld [vmem:[#allocation215_spill] sm:$0xff]  ;;  %v8408_v19 = vld [vmem:[#allocation128_spill] sm:$0xff] }
 0x430   :  { %v1611_v27 = vpop.xlane.xlu1 %1610  ;;  %v2793_v53 = vand.u32 65535, %v8406_v6  ;;  %vm2799_vm7 = vcmp.eq.f32.partialorder %v8408_v19, %v6363_v15  ;;  %v8409_v49 = vld [vmem:[#allocation229_spill] sm:$0xff]  ;;  %3501 = vrcp.f32 %v6530_v56 }
 0x431   :  { %8396 = vst [vmem:[#allocation143_spill] sm:$0xff] %v6524_v17  ;;  %v1612_v26 = vcvt.f32.s32 %v1611_v27  ;;  %v2483_v27 = vshll.u32 %v2482_v59, 16  ;;  %v1403_v6 = vcvt.f32.s32 %v8409_v49 }
 0x432   :  { %2337 = vadd.xlane.f32.xlu0 %v8403_v57  ;;  %1512 = vmin.xlane.f32.xlu1 %v1511_v44  ;;  %v1735_v57 = vsel %vm1734_vm6, %v1730_v8, inf  ;;  %v2795_v3 = vcvt.s32.f32 %v2793_v53  ;;  %v8410_v8 = vld [vmem:[#allocation110_spill] sm:$0xff]  ;;  %v8413_v53 = vld [vmem:[#allocation113_spill] sm:$0xff] }
 0x433   :  { %v6535_v17 = vadd.s32 %v1614_v60, %v1612_v26  ;;  %v6542_v21 = vpop.xlane.xlu0 %1068  ;;  %v2706_v60 = vcvt.f32.s32 %v8407_v22 }
 0x434   :  { %v2480_v47 = vpop.xlane.xlu1 %2479  ;;  %v2800_v18 = vsel %vm2799_vm7, %v2795_v3, inf  ;;  %3503 = vrcp.f32 %v6542_v21 }
 0x435   :  { %8402 = vst [vmem:[#allocation200_spill] sm:$0xff] %v6535_v17  ;;  %v2481_v26 = vcvt.f32.s32 %v2480_v47  ;;  %v2576_v17 = vsel %vm2575_vm5, %v2571_v52, inf  ;;  %v2707_v1 = vshll.u32 %v2706_v60, 16  ;;  %v1404_v52 = vshll.u32 %v1403_v6, 16  ;;  %v8416_v6 = vld [vmem:[#allocation9_spill] sm:$0xff] }
 0x436   :  { %2577 = vmin.xlane.f32.xlu0 %v2576_v17  ;;  %1736 = vmin.xlane.f32.xlu1 %v1735_v57 }
 0x437   :  { %v6546_v44 = vadd.s32 %v2483_v27, %v2481_v26  ;;  %v6550_v9 = vpop.xlane.xlu0 %2129  ;;  %v8411_v27 = vld [vmem:[#allocation132_spill] sm:$0xff] }
 0x438   :  { %v2704_v12 = vpop.xlane.xlu1 %2703  ;;  %v1627_v26 = vcvt.f32.s32 %v8411_v27  ;;  %3505 = vrcp.f32 %v6550_v9 }
 0x439   :  { %v2705_v59 = vcvt.f32.s32 %v2704_v12 }
 0x43a   :  { %2801 = vmin.xlane.f32.xlu0 %v2800_v18  ;;  %1218 = vadd.xlane.f32.xlu1 %v8410_v8  ;;  %v1628_v60 = vshll.u32 %v1627_v26, 16  ;;  %v8414_v18 = vld [vmem:[#allocation142_spill] sm:$0xff]  ;;  %v8418_v26 = vld [vmem:[#allocation161_spill] sm:$0xff] }
 0x43b   :  { %v6553_v22 = vadd.s32 %v2707_v1, %v2705_v59  ;;  %v6556_v47 = vpop.xlane.xlu0 %2161  ;;  %v1417_v3 = vcvt.f32.s32 %v8414_v18 }
 0x43c   :  { %v1401_v17 = vpop.xlane.xlu1 %1400  ;;  %3507 = vrcp.f32 %v6556_v47 }
 0x43d   :  { %v1402_v57 = vcvt.f32.s32 %v1401_v17  ;;  %v1418_v27 = vshll.u32 %v1417_v3, 16 }
 0x43e   :  { %1216 = vadd.xlane.f32.xlu0 %v6133_v2  ;;  %1250 = vadd.xlane.f32.xlu1 %v8413_v53 }
 0x43f   :  { %v6559_v19 = vadd.s32 %v1404_v52, %v1402_v57  ;;  %v6563_v49 = vpop.xlane.xlu0 %1536  ;;  %v8417_v52 = vld [vmem:[#allocation78_spill] sm:$0xff]  ;;  %v1641_v57 = vcvt.f32.s32 %v5827_v28  ;;  %v2510_v28 = vcvt.f32.s32 %v5667_v45  ;;  %v8424_v45 = vld [vmem:[#allocation104_spill] sm:$0xff] }
 0x440   :  { %v1625_v12 = vpop.xlane.xlu1 %1624  ;;  %v1518_v2 = vand.u32 65535, %v8417_v52  ;;  %v8421_v52 = vld [vmem:[#allocation105_spill] sm:$0xff] }
 0x441   :  { %8412 = vst [vmem:[#allocation100_spill] sm:$0xff] %v6559_v19  ;;  %v1626_v1 = vcvt.f32.s32 %v1625_v12  ;;  %v8419_v12 = vld [vmem:[#allocation31_spill] sm:$0xff]  ;;  %v1742_v3 = vand.u32 65535, %v8421_v52 }
 0x442   :  { %1248 = vadd.xlane.f32.xlu0 %v6159_v10  ;;  %2311 = vadd.xlane.f32.xlu1 %v8416_v6  ;;  %vm1524_vm8 = vcmp.eq.f32.partialorder %v8419_v12, %v6513_v50  ;;  %v1520_v18 = vcvt.s32.f32 %v1518_v2 }
 0x443   :  { %v6566_v59 = vadd.s32 %v1628_v60, %v1626_v1  ;;  %v6570_v8 = vpop.xlane.xlu0 %1760  ;;  %v8420_v1 = vld [vmem:[#allocation28_spill] sm:$0xff]  ;;  %v1744_v52 = vcvt.s32.f32 %v1742_v3 }
 0x444   :  { %v1415_v17 = vpop.xlane.xlu1 %1414  ;;  %v2597_v6 = vand.u32 65535, %v8420_v1  ;;  %vm1762_vm13 = vcmp.eq.f32.partialorder %v6057_v30, %v6570_v8  ;;  %v2538_v30 = vcvt.f32.s32 %v5778_v23  ;;  %v2762_v23 = vcvt.f32.s32 %v5803_v29 }
 0x445   :  { %8415 = vst [vmem:[#allocation15_spill] sm:$0xff] %v6566_v59  ;;  %v1416_v53 = vcvt.f32.s32 %v1415_v17  ;;  %v1642_v17 = vshll.u32 %v1641_v57, 16  ;;  %v2821_v57 = vand.u32 65535, %v8424_v45  ;;  %v1431_v45 = vcvt.f32.s32 %v5909_v38  ;;  %v8427_v38 = vld [vmem:[#allocation44_spill] sm:$0xff] }
 0x446   :  { %2309 = vadd.xlane.f32.xlu0 %v6185_v37  ;;  %2343 = vadd.xlane.f32.xlu1 %v8418_v26  ;;  %v8422_v37 = vld [vmem:[#allocation19_spill] sm:$0xff]  ;;  %v2599_v1 = vcvt.s32.f32 %v2597_v6  ;;  %vm1538_vm12 = vcmp.eq.f32.partialorder %v8427_v38, %v6563_v49  ;;  %v2625_v38 = vand.u32 65535, %v6040_v54  ;;  %v2539_v54 = vshll.u32 %v2538_v30, 16 }
 0x447   :  { %v6574_v19 = vadd.s32 %v1418_v27, %v1416_v53  ;;  %v6580_v10 = vpop.xlane.xlu0 %2629  ;;  %v1525_v53 = vsel %vm1524_vm8, %v1520_v18, inf  ;;  %vm2603_vm9 = vcmp.eq.f32.partialorder %v8422_v37, %v6488_v20  ;;  %v8423_v26 = vld [vmem:[#allocation111_spill] sm:$0xff]  ;;  %v2734_v18 = vcvt.f32.s32 %v5691_v63  ;;  %v8425_v37 = vld [vmem:[#allocation108_spill] sm:$0xff] }
 0x448   :  { %v1639_v60 = vpop.xlane.xlu1 %1638  ;;  %vm1748_vm10 = vcmp.eq.f32.partialorder %v8423_v26, %v6520_v43  ;;  %vm2827_vm11 = vcmp.eq.f32.partialorder %v8425_v37, %v6502_v48  ;;  %v2823_v6 = vcvt.s32.f32 %v2821_v57  ;;  %vm2631_vm14 = vcmp.eq.f32.partialorder %v6078_v34, %v6580_v10 }
 0x449   :  { %v1640_v27 = vcvt.f32.s32 %v1639_v60  ;;  %v2511_v60 = vshll.u32 %v2510_v28, 16  ;;  %v2735_v3 = vshll.u32 %v2734_v18, 16  ;;  %v8428_v18 = vld [vmem:[#allocation116_spill] sm:$0xff] }
 0x44a   :  { %2341 = vadd.xlane.f32.xlu0 %v6215_v40  ;;  %1526 = vmin.xlane.f32.xlu1 %v1525_v53  ;;  %v1749_v40 = vsel %vm1748_vm10, %v1744_v52, inf  ;;  %v2828_v20 = vsel %vm2827_vm11, %v2823_v6, inf  ;;  %v8426_v52 = vld [vmem:[#allocation29_spill] sm:$0xff]  ;;  %v1756_v37 = vand.u32 65535, %v8428_v18 }
 0x44b   :  { %v6585_v59 = vadd.s32 %v1642_v17, %v1640_v27  ;;  %v6592_v2 = vpop.xlane.xlu0 %2853  ;;  %v2604_v27 = vsel %vm2603_vm9, %v2599_v1, inf }
 0x44c   :  { %v2508_v12 = vpop.xlane.xlu1 %2507 }
 0x44d   :  { %v2509_v17 = vcvt.f32.s32 %v2508_v12 }
 0x44e   :  { %2605 = vmin.xlane.f32.xlu0 %v2604_v27  ;;  %1750 = vmin.xlane.f32.xlu1 %v1749_v40  ;;  %v1655_v27 = vcvt.f32.s32 %v5929_v62 }
 0x44f   :  { %v6596_v53 = vadd.s32 %v2511_v60, %v2509_v17  ;;  %v6600_v26 = vpop.xlane.xlu0 %1550  ;;  %v1532_v60 = vand.u32 65535, %v8426_v52  ;;  %v1432_v17 = vshll.u32 %v1431_v45, 16 }
 0x450   :  { %v2732_v43 = vpop.xlane.xlu1 %2731  ;;  %v1656_v6 = vshll.u32 %v1655_v27, 16 }
 0x451   :  { %v2733_v28 = vcvt.f32.s32 %v2732_v43  ;;  %v1534_v43 = vcvt.s32.f32 %v1532_v60  ;;  %v1669_v60 = vcvt.f32.s32 %v6025_v41 }
 0x452   :  { %2829 = vmin.xlane.f32.xlu0 %v2828_v20  ;;  %2619 = vmin.xlane.f32.xlu1 %v6194_v7 }
 0x453   :  { %v6603_v63 = vadd.s32 %v2735_v3, %v2733_v28  ;;  %v6606_v12 = vpop.xlane.xlu0 %1774  ;;  %v1445_v3 = vcvt.f32.s32 %v6001_v5  ;;  %v1539_v45 = vsel %vm1538_vm12, %v1534_v43, inf }
 0x454   :  { %v1429_v1 = vpop.xlane.xlu1 %1428 }
 0x455   :  { %v1430_v40 = vcvt.f32.s32 %v1429_v1  ;;  %v1758_v1 = vcvt.s32.f32 %v1756_v37  ;;  %v1446_v52 = vshll.u32 %v1445_v3, 16  ;;  %v2627_v37 = vcvt.s32.f32 %v2625_v38  ;;  %v8432_v38 = vld [vmem:[#allocation117_spill] sm:$0xff] }
 0x456   :  { %1220 = vadd.xlane.f32.xlu0 %v6319_v46  ;;  %2843 = vmin.xlane.f32.xlu1 %v6217_v39  ;;  %v1546_v30 = vand.u32 65535, %v8432_v38 }
 0x457   :  { %v6610_v57 = vadd.s32 %v1432_v17, %v1430_v40  ;;  %v6616_v20 = vpop.xlane.xlu0 %1040  ;;  %v1763_v27 = vsel %vm1762_vm13, %v1758_v1, inf  ;;  %v8430_v1 = vld [vmem:[#allocation5_spill] sm:$0xff] }
 0x458   :  { %v1653_v7 = vpop.xlane.xlu1 %1652  ;;  %3509 = vrcp.f32 %v6616_v20  ;;  %v8443_v20 = vld [vmem:[#allocation192_spill] sm:$0xff] }
 0x459   :  { %v1654_v62 = vcvt.f32.s32 %v1653_v7  ;;  %v1670_v7 = vshll.u32 %v1669_v60, 16 }
 0x45a   :  { %1252 = vadd.xlane.f32.xlu0 %v6338_v55  ;;  %1540 = vmin.xlane.f32.xlu1 %v1539_v45 }
 0x45b   :  { %v6620_v28 = vadd.s32 %v1656_v6, %v1654_v62  ;;  %v6625_v39 = vpop.xlane.xlu0 %1072  ;;  %v2849_v6 = vand.u32 65535, %v6063_v13  ;;  %v2632_v62 = vsel %vm2631_vm14, %v2627_v37, inf  ;;  %v2763_v13 = vshll.u32 %v2762_v23, 16 }
 0x45c   :  { %v1443_v46 = vpop.xlane.xlu1 %1442  ;;  %3511 = vrcp.f32 %v6625_v39  ;;  %v8446_v39 = vld [vmem:[#allocation130_spill] sm:$0xff] }
 0x45d   :  { %v1444_v17 = vcvt.f32.s32 %v1443_v46  ;;  %v2851_v46 = vcvt.s32.f32 %v2849_v6  ;;  %v8434_v6 = vld [vmem:[#allocation168_spill] sm:$0xff] }
 0x45e   :  { %2313 = vadd.xlane.f32.xlu0 %v6353_v0  ;;  %1764 = vmin.xlane.f32.xlu1 %v1763_v27  ;;  %v8431_v27 = vld [vmem:[#allocation184_spill] sm:$0xff] }
 0x45f   :  { %v6628_v5 = vadd.s32 %v1446_v52, %v1444_v17  ;;  %v6631_v40 = vpop.xlane.xlu0 %2133  ;;  %v1459_v52 = vcvt.f32.s32 %v8430_v1 }
 0x460   :  { %v1667_v55 = vpop.xlane.xlu1 %1666  ;;  %3513 = vrcp.f32 %v6631_v40  ;;  %v8450_v40 = vld [vmem:[#allocation144_spill] sm:$0xff] }
 0x461   :  { %v1668_v43 = vcvt.f32.s32 %v1667_v55  ;;  %v1460_v56 = vshll.u32 %v1459_v52, 16 }
 0x462   :  { %2345 = vadd.xlane.f32.xlu0 %v6367_v14  ;;  %1222 = vadd.xlane.f32.xlu1 %v6055_v24  ;;  %v8429_v24 = vld [vmem:[#allocation83_spill] sm:$0xff] }
 0x463   :  { %v6635_v18 = vadd.s32 %v1670_v7, %v1668_v43  ;;  %v6641_v41 = vpop.xlane.xlu0 %2165  ;;  %vm2855_vm15 = vcmp.eq.f32.partialorder %v8429_v24, %v6592_v2  ;;  %v8433_v7 = vld [vmem:[#allocation138_spill] sm:$0xff] }
 0x464   :  { %v2536_v0 = vpop.xlane.xlu1 %2535  ;;  %v2856_v60 = vsel %vm2855_vm15, %v2851_v46, inf  ;;  %v1683_v43 = vcvt.f32.s32 %v8433_v7  ;;  %v8436_v24 = vld [vmem:[#allocation166_spill] sm:$0xff]  ;;  %3515 = vrcp.f32 %v6641_v41 }
 0x465   :  { %v2537_v3 = vcvt.f32.s32 %v2536_v0 }
 0x466   :  { %2633 = vmin.xlane.f32.xlu0 %v2632_v62  ;;  %1254 = vadd.xlane.f32.xlu1 %v6076_v51  ;;  %v1548_v62 = vcvt.s32.f32 %v1546_v30  ;;  %v1684_v46 = vshll.u32 %v1683_v43, 16  ;;  %v3502_v30 = vpop.eup %3501  ;;  %v8440_v43 = vld [vmem:[#allocation24_spill] sm:$0xff] }
 0x467   :  { %v6645_v45 = vadd.s32 %v2539_v54, %v2537_v3  ;;  %v6651_v34 = vpop.xlane.xlu0 %1044  ;;  %v8435_v54 = vld [vmem:[#allocation23_spill] sm:$0xff]  ;;  %vm1816_vm4 = vcmp.eq.s32.totalorder %v8440_v43, 0  ;;  %vm1849_vm5 = vcmp.eq.s32.totalorder %v8440_v43, 1  ;;  %vm2909_vm6 = vcmp.eq.s32.totalorder %v8440_v43, 2 }
 0x468   :  { %v2760_v14 = vpop.xlane.xlu1 %2759  ;;  %vm1552_vm2 = vcmp.eq.f32.partialorder %v8435_v54, %v6600_v26  ;;  %vm2942_vm7 = vcmp.eq.s32.totalorder %v8440_v43, 3  ;;  %3517 = vrcp.f32 %v6651_v34  ;;  %v8460_v34 = vld [vmem:[#allocation123_spill] sm:$0xff] }
 0x469   :  { %v2761_v29 = vcvt.f32.s32 %v2760_v14  ;;  %v1770_v14 = vand.u32 65535, %v8436_v24  ;;  %v1553_v52 = vsel %vm1552_vm2, %v1548_v62, inf  ;;  %v3504_v24 = vpop.eup %3503 }
 0x46a   :  { %2857 = vmin.xlane.f32.xlu0 %v2856_v60  ;;  %2315 = vadd.xlane.f32.xlu1 %v8431_v27  ;;  %v2453_v60 = vcvt.f32.s32 %v6471_v36 }
 0x46b   :  { %v6654_v17 = vadd.s32 %v2763_v13, %v2761_v29  ;;  %v6657_v51 = vpop.xlane.xlu0 %1076  ;;  %v8437_v13 = vld [vmem:[#allocation71_spill] sm:$0xff]  ;;  %v1772_v38 = vcvt.s32.f32 %v1770_v14 }
 0x46c   :  { %v1457_v55 = vpop.xlane.xlu1 %1456  ;;  %v2454_v1 = vcvt.f32.s32 %v8437_v13  ;;  %3519 = vrcp.f32 %v6657_v51 }
 0x46d   :  { %v1458_v0 = vcvt.f32.s32 %v1457_v55 }
 0x46e   :  { %1224 = vadd.xlane.f32.xlu0 %v6456_v58  ;;  %2347 = vadd.xlane.f32.xlu1 %v8434_v6  ;;  %v8438_v58 = vld [vmem:[#allocation122_spill] sm:$0xff]  ;;  %v2455_v9 = vshll.u32 %v2454_v1, 16  ;;  %v2677_v6 = vcvt.f32.s32 %v6490_v25 }
 0x46f   :  { %v6662_v37 = vadd.s32 %v1460_v56, %v1458_v0  ;;  %v6668_v23 = vpop.xlane.xlu0 %2137  ;;  %vm1776_vm3 = vcmp.eq.f32.partialorder %v8438_v58, %v6606_v12  ;;  %v8439_v56 = vld [vmem:[#allocation94_spill] sm:$0xff] }
 0x470   :  { %v1681_v3 = vpop.xlane.xlu1 %1680  ;;  %v2678_v7 = vcvt.f32.s32 %v8439_v56  ;;  %v1777_v0 = vsel %vm1776_vm3, %v1772_v38, inf  ;;  %3521 = vrcp.f32 %v6668_v23 }
 0x471   :  { %v1682_v21 = vcvt.f32.s32 %v1681_v3  ;;  %v8441_v3 = vld [vmem:[#allocation118_spill] sm:$0xff] }
 0x472   :  { %1256 = vadd.xlane.f32.xlu0 %v6480_v33  ;;  %1554 = vmin.xlane.f32.xlu1 %v1553_v52  ;;  %v2456_v33 = vadd.s32 %v2455_v9, %v2453_v60  ;;  %v1122_v62 = vmul.f32 %v3502_v30, %v8441_v3  ;;  %v2679_v14 = vshll.u32 %v2678_v7, 16  ;;  %v3506_v30 = vpop.eup %3505  ;;  %v1801_v9 = vcvt.s32.f32 %v6462_v31  ;;  %v8445_v7 = vld [vmem:[#allocation40_spill] sm:$0xff] }
 0x473   :  { %v6673_v29 = vadd.s32 %v1684_v46, %v1682_v21  ;;  %v6679_v27 = vpop.xlane.xlu0 %2169  ;;  %v8442_v46 = vld [vmem:[#allocation52_spill] sm:$0xff] }
 0x474   :  { %v1211_v55 = vpop.xlane.xlu1 %1210  ;;  %v1154_v25 = vsel %vm4215_vm0, %v8442_v46, 0.0  ;;  %v2878_v21 = vcvt.s32.f32 %v2456_v33  ;;  %v2680_v13 = vadd.s32 %v2679_v14, %v2677_v6  ;;  %v8447_v33 = vld [vmem:[#allocation90_spill] sm:$0xff]  ;;  %v8448_v14 = vld [vmem:[#allocation49_spill] sm:$0xff]  ;;  %v3508_v46 = vpop.eup %3507  ;;  %3523 = vrcp.f32 %v6679_v27 }
 0x475   :  { %v1818_v47 = vsel %vm1816_vm4, %v1211_v55, 0.0  ;;  %v1186_v58 = vmul.f32 %v1154_v25, %v1122_v62  ;;  %v8444_v55 = vld [vmem:[#allocation127_spill] sm:$0xff]  ;;  %v1473_v6 = vcvt.f32.s32 %v8447_v33 }
 0x476   :  { %2317 = vadd.xlane.f32.xlu0 %v6497_v16  ;;  %1778 = vmin.xlane.f32.xlu1 %v1777_v0  ;;  %v1785_v16 = vcvt.s32.f32 %v6443_v32  ;;  %v1138_v38 = vmul.f32 %v3504_v24, %v8444_v55  ;;  %v1170_v0 = vsel %vm4215_vm0, %v8445_v7, 0.0 }
 0x477   :  { %v6687_v36 = vpop.xlane.xlu0 %2437 }
 0x478   :  { %v1243_v54 = vpop.xlane.xlu1 %1242  ;;  %v1851_v52 = vsel %vm1849_vm5, %v1785_v16, %v1818_v47  ;;  %v1202_v24 = vmul.f32 %v1170_v0, %v1138_v38  ;;  %v2215_v16 = vmul.f32 %v3506_v30, %v8448_v14  ;;  %v3510_v38 = vpop.eup %3509  ;;  %v8454_v0 = vld [vmem:[#allocation58_spill] sm:$0xff]  ;;  %v2439_v27 = vcvt.f32.s32 %v6687_v36 }
 0x479   :  { %v1834_v60 = vsel %vm1816_vm4, %v1243_v54, 0.0  ;;  %v2894_v54 = vcvt.s32.f32 %v2680_v13  ;;  %v8451_v13 = vld [vmem:[#allocation39_spill] sm:$0xff] }
 0x47a   :  { %2349 = vadd.xlane.f32.xlu0 %v6508_v11  ;;  %2647 = vmin.xlane.f32.xlu1 %v8443_v20  ;;  %v1867_v3 = vsel %vm1849_vm5, %v1801_v9, %v1834_v60  ;;  %v8449_v20 = vld [vmem:[#allocation136_spill] sm:$0xff] }
 0x47b   :  { %v6701_v1 = vpop.xlane.xlu0 %2661 }
 0x47c   :  { %v2304_v32 = vpop.xlane.xlu1 %2303 }
 0x47d   :  { %v2911_v11 = vsel %vm2909_vm6, %v2304_v32, %v1851_v52  ;;  %v2247_v52 = vsel %vm4244_vm1, %v8451_v13, 0.0  ;;  %v1474_v32 = vshll.u32 %v1473_v6, 16  ;;  %v8455_v6 = vld [vmem:[#allocation10_spill] sm:$0xff]  ;;  %v8458_v13 = vld [vmem:[#allocation63_spill] sm:$0xff] }
 0x47e   :  { %v2944_v56 = vsel %vm2942_vm7, %v2878_v21, %v2911_v11  ;;  %1228 = vadd.xlane.f32.xlu0 %v1186_v58  ;;  %2871 = vmin.xlane.f32.xlu1 %v8446_v39  ;;  %v2496_v21 = vcvt.f32.s32 %v8449_v20  ;;  %v8452_v58 = vld [vmem:[#allocation187_spill] sm:$0xff]  ;;  %v2279_v9 = vmul.f32 %v2247_v52, %v2215_v16  ;;  %v2263_v39 = vsel %vm4244_vm1, %v8454_v0, 0.0 }
 0x47f   :  { %2976 = vst [vmem:[%s7295_s3 + $0x8] sm:$0xff] %v2944_v56  ;;  %v6723_v31 = vpop.xlane.xlu0 %2465  ;;  %v1697_v60 = vcvt.f32.s32 %v8452_v58  ;;  %v8453_v56 = vld [vmem:[#allocation162_spill] sm:$0xff]  ;;  %v8457_v16 = vld [vmem:[#allocation43_spill] sm:$0xff]  ;;  %v1156_v52 = vsel %vm4215_vm0, %v8458_v13, 0.0 }
 0x480   :  { %v2336_v62 = vpop.xlane.xlu1 %2335  ;;  %v2231_v7 = vmul.f32 %v3508_v46, %v8453_v56  ;;  %v2497_v33 = vshll.u32 %v2496_v21, 16  ;;  %v3512_v21 = vpop.eup %3511 }
 0x481   :  { %v2927_v47 = vsel %vm2909_vm6, %v2336_v62, %v1867_v3  ;;  %v8456_v3 = vld [vmem:[#allocation139_spill] sm:$0xff]  ;;  %v3514_v0 = vpop.eup %3513 }
 0x482   :  { %v2960_v25 = vsel %vm2942_vm7, %v2894_v54, %v2927_v47  ;;  %1260 = vadd.xlane.f32.xlu0 %v1202_v24  ;;  %1226 = vadd.xlane.f32.xlu1 %v8450_v40  ;;  %v2720_v62 = vcvt.f32.s32 %v8456_v3  ;;  %v2566_v47 = vcvt.f32.s32 %v5896_v61  ;;  %v1698_v24 = vshll.u32 %v1697_v60, 16  ;;  %v8459_v60 = vld [vmem:[#allocation147_spill] sm:$0xff]  ;;  %v8462_v3 = vld [vmem:[#allocation65_spill] sm:$0xff] }
 0x483   :  { %2992 = vst [vmem:[%s7295_s3 + $0x88] sm:$0xff] %v2960_v25  ;;  %v6741_v11 = vpop.xlane.xlu0 %2689  ;;  %v1124_v25 = vmul.f32 %v3510_v38, %v8457_v16  ;;  %v2295_v40 = vmul.f32 %v2263_v39, %v2231_v7  ;;  %v8464_v16 = vld [vmem:[#allocation125_spill] sm:$0xff] }
 0x484   :  { %v1471_v55 = vpop.xlane.xlu1 %1470  ;;  %v2567_v38 = vshll.u32 %v2566_v47, 16  ;;  %v8463_v47 = vld [vmem:[#allocation48_spill] sm:$0xff] }
 0x485   :  { %v1472_v30 = vcvt.f32.s32 %v1471_v55  ;;  %v2721_v55 = vshll.u32 %v2720_v62, 16  ;;  %v1188_v7 = vmul.f32 %v1156_v52, %v1124_v25  ;;  %v2748_v25 = vcvt.f32.s32 %v8464_v16  ;;  %v8470_v16 = vld [vmem:[#allocation150_spill] sm:$0xff] }
 0x486   :  { %2321 = vadd.xlane.f32.xlu0 %v2279_v9  ;;  %1258 = vadd.xlane.f32.xlu1 %v8455_v6 }
 0x487   :  { %v6748_v54 = vadd.s32 %v1474_v32, %v1472_v30  ;;  %v2494_v41 = vpop.xlane.xlu0 %2493  ;;  %v2790_v32 = vcvt.f32.s32 %v5911_v4  ;;  %v2524_v30 = vcvt.f32.s32 %v8460_v34  ;;  %v8461_v4 = vld [vmem:[#allocation140_spill] sm:$0xff]  ;;  %v3516_v34 = vpop.eup %3515  ;;  %v2749_v23 = vshll.u32 %v2748_v25, 16  ;;  %v8472_v25 = vld [vmem:[#allocation158_spill] sm:$0xff] }
 0x488   :  { %v1695_v14 = vpop.xlane.xlu1 %1694  ;;  %v2495_v46 = vcvt.f32.s32 %v2494_v41 }
 0x489   :  { %v1696_v20 = vcvt.f32.s32 %v1695_v14  ;;  %v2791_v41 = vshll.u32 %v2790_v32, 16  ;;  %v2525_v52 = vshll.u32 %v2524_v30, 16 }
 0x48a   :  { %v6759_v58 = vadd.s32 %v2497_v33, %v2495_v46  ;;  %2353 = vadd.xlane.f32.xlu0 %v2295_v40  ;;  %2319 = vadd.xlane.f32.xlu1 %v8459_v60  ;;  %v1140_v33 = vmul.f32 %v3512_v21, %v8461_v4  ;;  %v8465_v46 = vld [vmem:[#allocation185_spill] sm:$0xff]  ;;  %v8469_v4 = vld [vmem:[#allocation135_spill] sm:$0xff] }
 0x48b   :  { %v6761_v61 = vadd.s32 %v1698_v24, %v1696_v20  ;;  %v2718_v9 = vpop.xlane.xlu0 %2717  ;;  %v1172_v24 = vsel %vm4215_vm0, %v8462_v3, 0.0  ;;  %v1487_v51 = vcvt.f32.s32 %v8465_v46  ;;  %v8466_v21 = vld [vmem:[#allocation193_spill] sm:$0xff]  ;;  %v2233_v46 = vmul.f32 %v3516_v34, %v8470_v16 }
 0x48c   :  { %v2564_v56 = vpop.xlane.xlu1 %2563  ;;  %v2719_v39 = vcvt.f32.s32 %v2718_v9  ;;  %v2217_v13 = vmul.f32 %v3514_v0, %v8466_v21  ;;  %v1711_v0 = vcvt.f32.s32 %v8469_v4 }
 0x48d   :  { %v2565_v6 = vcvt.f32.s32 %v2564_v56 }
 0x48e   :  { %v6770_v14 = vadd.s32 %v2721_v55, %v2719_v39  ;;  %1232 = vadd.xlane.f32.xlu0 %v1188_v7  ;;  %2351 = vadd.xlane.f32.xlu1 %v8463_v47  ;;  %v1204_v55 = vmul.f32 %v1172_v24, %v1140_v33  ;;  %v8468_v39 = vld [vmem:[#allocation155_spill] sm:$0xff] }
 0x48f   :  { %v6772_v62 = vadd.s32 %v2567_v38, %v2565_v6  ;;  %v2522_v20 = vpop.xlane.xlu0 %2521  ;;  %v8467_v38 = vld [vmem:[#allocation68_spill] sm:$0xff]  ;;  %v1488_v6 = vshll.u32 %v1487_v51, 16 }
 0x490   :  { %v2788_v40 = vpop.xlane.xlu1 %2787  ;;  %v2523_v60 = vcvt.f32.s32 %v2522_v20  ;;  %v2249_v9 = vsel %vm4244_vm1, %v8467_v38, 0.0  ;;  %v3518_v20 = vpop.eup %3517  ;;  %v8473_v51 = vld [vmem:[#allocation72_spill] sm:$0xff] }
 0x491   :  { %v2789_v32 = vcvt.f32.s32 %v2788_v40  ;;  %v2281_v47 = vmul.f32 %v2249_v9, %v2217_v13  ;;  %v8471_v40 = vld [vmem:[#allocation17_spill] sm:$0xff]  ;;  %v2265_v13 = vsel %vm4244_vm1, %v8473_v51, 0.0  ;;  %v8474_v9 = vld [vmem:[#allocation191_spill] sm:$0xff] }
 0x492   :  { %v6782_v56 = vadd.s32 %v2525_v52, %v2523_v60  ;;  %1264 = vadd.xlane.f32.xlu0 %v1204_v55  ;;  %1230 = vadd.xlane.f32.xlu1 %v8468_v39  ;;  %v1712_v55 = vshll.u32 %v1711_v0, 16  ;;  %v2297_v38 = vmul.f32 %v2265_v13, %v2233_v46  ;;  %v1126_v39 = vmul.f32 %v3518_v20, %v8474_v9 }
 0x493   :  { %v6784_v7 = vadd.s32 %v2791_v41, %v2789_v32  ;;  %v2746_v30 = vpop.xlane.xlu0 %2745  ;;  %v2440_v41 = vcvt.f32.s32 %v8471_v40  ;;  %v2663_v0 = vcvt.f32.s32 %v6701_v1 }
 0x494   :  { %v1485_v3 = vpop.xlane.xlu1 %1484  ;;  %v2747_v33 = vcvt.f32.s32 %v2746_v30 }
 0x495   :  { %v1486_v24 = vcvt.f32.s32 %v1485_v3  ;;  %v2441_v4 = vshll.u32 %v2440_v41, 16 }
 0x496   :  { %v6791_v21 = vadd.s32 %v2749_v23, %v2747_v33  ;;  %2325 = vadd.xlane.f32.xlu0 %v2281_v47  ;;  %1262 = vadd.xlane.f32.xlu1 %v8472_v25  ;;  %v3520_v23 = vpop.eup %3519  ;;  %v8476_v47 = vld [vmem:[#allocation47_spill] sm:$0xff]  ;;  %v8477_v33 = vld [vmem:[#allocation77_spill] sm:$0xff] }
 0x497   :  { %v6793_v52 = vadd.s32 %v1488_v6, %v1486_v24  ;;  %v1209_v60 = vpop.xlane.xlu0 %1208  ;;  %v8475_v6 = vld [vmem:[#allocation202_spill] sm:$0xff]  ;;  %v1158_v36 = vsel %vm4215_vm0, %v8477_v33, 0.0  ;;  %v2442_v24 = vadd.s32 %v2441_v4, %v2439_v27  ;;  %v3522_v40 = vpop.eup %3521  ;;  %v8478_v25 = vld [vmem:[#allocation177_spill] sm:$0xff] }
 0x498   :  { %v1709_v32 = vpop.xlane.xlu1 %1708  ;;  %v2664_v30 = vcvt.f32.s32 %v8475_v6  ;;  %v1817_v20 = vsel %vm1816_vm4, %v1209_v60, 0.0  ;;  %v1190_v41 = vmul.f32 %v1158_v36, %v1126_v39  ;;  %v1142_v51 = vmul.f32 %v3520_v23, %v8478_v25  ;;  %v8481_v27 = vld [vmem:[#allocation133_spill] sm:$0xff]  ;;  %v3524_v36 = vpop.eup %3523 }
 0x499   :  { %v1710_v34 = vcvt.f32.s32 %v1709_v32  ;;  %v8479_v32 = vld [vmem:[#allocation170_spill] sm:$0xff]  ;;  %v2877_v1 = vcvt.s32.f32 %v2442_v24  ;;  %v8482_v39 = vld [vmem:[#allocation93_spill] sm:$0xff]  ;;  %v8483_v24 = vld [vmem:[#allocation175_spill] sm:$0xff] }
 0x49a   :  { %2357 = vadd.xlane.f32.xlu0 %v2297_v38  ;;  %2323 = vadd.xlane.f32.xlu1 %v8476_v47  ;;  %v2665_v13 = vshll.u32 %v2664_v30, 16  ;;  %v2219_v47 = vmul.f32 %v3522_v40, %v8482_v39 }
 0x49b   :  { %v6802_v3 = vadd.s32 %v1712_v55, %v1710_v34  ;;  %v1241_v16 = vpop.xlane.xlu0 %1240  ;;  %v1784_v55 = vcvt.s32.f32 %v8479_v32  ;;  %v8480_v34 = vld [vmem:[#allocation80_spill] sm:$0xff] }
 0x49c   :  { %v1215_v46 = vpop.xlane.xlu1 %1214  ;;  %v1174_v38 = vsel %vm4215_vm0, %v8480_v34, 0.0  ;;  %v2666_v9 = vadd.s32 %v2665_v13, %v2663_v0  ;;  %v1833_v23 = vsel %vm1816_vm4, %v1241_v16, 0.0  ;;  %v1800_v0 = vcvt.s32.f32 %v8483_v24  ;;  %v8485_v13 = vld [vmem:[#allocation84_spill] sm:$0xff]  ;;  %v8486_v16 = vld [vmem:[#allocation189_spill] sm:$0xff] }
 0x49d   :  { %v1850_v4 = vsel %vm1849_vm5, %v1784_v55, %v1817_v20  ;;  %v1820_v30 = vsel %vm1816_vm4, %v1215_v46, 0.0  ;;  %v1206_v33 = vmul.f32 %v1174_v38, %v1142_v51  ;;  %v2251_v40 = vsel %vm4244_vm1, %v8485_v13, 0.0  ;;  %v8487_v51 = vld [vmem:[#allocation137_spill] sm:$0xff] }
 0x49e   :  { %1236 = vadd.xlane.f32.xlu0 %v1190_v41  ;;  %2355 = vadd.xlane.f32.xlu1 %v8481_v27  ;;  %v8484_v41 = vld [vmem:[#allocation143_spill] sm:$0xff]  ;;  %v2552_v32 = vcvt.f32.s32 %v8486_v16  ;;  %v2880_v46 = vcvt.s32.f32 %v6546_v44  ;;  %v2893_v55 = vcvt.s32.f32 %v2666_v9  ;;  %v1866_v34 = vsel %vm1849_vm5, %v1800_v0, %v1833_v23  ;;  %v8493_v16 = vld [vmem:[#allocation8_spill] sm:$0xff] }
 0x49f   :  { %v2302_v6 = vpop.xlane.xlu0 %2301  ;;  %v1787_v25 = vcvt.s32.f32 %v8484_v41  ;;  %v8492_v41 = vld [vmem:[#allocation183_spill] sm:$0xff] }
 0x4a0   :  { %v1247_v60 = vpop.xlane.xlu1 %1246  ;;  %v2910_v42 = vsel %vm2909_vm6, %v2302_v6, %v1850_v4  ;;  %v2283_v4 = vmul.f32 %v2251_v40, %v2219_v47  ;;  %v8490_v47 = vld [vmem:[#allocation88_spill] sm:$0xff]  ;;  %v2553_v0 = vshll.u32 %v2552_v32, 16 }
 0x4a1   :  { %v2943_v20 = vsel %vm2942_vm7, %v2877_v1, %v2910_v42  ;;  %v1853_v38 = vsel %vm1849_vm5, %v1787_v25, %v1820_v30  ;;  %v1836_v44 = vsel %vm1816_vm4, %v1247_v60, 0.0  ;;  %v8488_v42 = vld [vmem:[#allocation180_spill] sm:$0xff]  ;;  %v2267_v60 = vsel %vm4244_vm1, %v8490_v47, 0.0  ;;  %v8497_v47 = vld [vmem:[#allocation46_spill] sm:$0xff] }
 0x4a2   :  { %2975 = vst [vmem:[%s7295_s3] sm:$0xff] %v2943_v20  ;;  %1268 = vadd.xlane.f32.xlu0 %v1206_v33  ;;  %1234 = vadd.xlane.f32.xlu1 %v8487_v51  ;;  %v2235_v9 = vmul.f32 %v3524_v36, %v8488_v42  ;;  %v8489_v33 = vld [vmem:[#allocation200_spill] sm:$0xff]  ;;  %v2776_v25 = vcvt.f32.s32 %v8492_v41  ;;  %v2896_v20 = vcvt.s32.f32 %v6553_v22  ;;  %v8494_v22 = vld [vmem:[#allocation194_spill] sm:$0xff] }
 0x4a3   :  { %v2334_v27 = vpop.xlane.xlu0 %2333  ;;  %v1803_v24 = vcvt.s32.f32 %v8489_v33  ;;  %v8491_v36 = vld [vmem:[#allocation172_spill] sm:$0xff]  ;;  %v8496_v33 = vld [vmem:[#allocation214_spill] sm:$0xff] }
 0x4a4   :  { %v2308_v1 = vpop.xlane.xlu1 %2307  ;;  %v2926_v6 = vsel %vm2909_vm6, %v2334_v27, %v1866_v34  ;;  %v2299_v34 = vmul.f32 %v2267_v60, %v2235_v9  ;;  %v2777_v27 = vshll.u32 %v2776_v25, 16  ;;  %v2467_v60 = vcvt.f32.s32 %v6723_v31  ;;  %v8498_v41 = vld [vmem:[#allocation164_spill] sm:$0xff] }
 0x4a5   :  { %v2913_v39 = vsel %vm2909_vm6, %v2308_v1, %v1853_v38  ;;  %v2959_v23 = vsel %vm2942_vm7, %v2893_v55, %v2926_v6  ;;  %v1869_v35 = vsel %vm1849_vm5, %v1803_v24, %v1836_v44  ;;  %v8495_v6 = vld [vmem:[#allocation165_spill] sm:$0xff]  ;;  %v2468_v24 = vcvt.f32.s32 %v8496_v33  ;;  %v8503_v33 = vld [vmem:[#allocation179_spill] sm:$0xff] }
 0x4a6   :  { %v2946_v30 = vsel %vm2942_vm7, %v2880_v46, %v2913_v39  ;;  %2991 = vst [vmem:[%s7295_s3 + $0x80] sm:$0xff] %v2959_v23  ;;  %2329 = vadd.xlane.f32.xlu0 %v2283_v4  ;;  %1266 = vadd.xlane.f32.xlu1 %v8491_v36  ;;  %v1501_v46 = vcvt.f32.s32 %v8493_v16  ;;  %v1725_v39 = vcvt.f32.s32 %v8495_v6  ;;  %v2594_v25 = vcvt.f32.s32 %v8498_v41 }
 0x4a7   :  { %2978 = vst [vmem:[%s7295_s3 + $0x18] sm:$0xff] %v2946_v30  ;;  %v2550_v13 = vpop.xlane.xlu0 %2549 }
 0x4a8   :  { %v2340_v40 = vpop.xlane.xlu1 %2339  ;;  %v2551_v51 = vcvt.f32.s32 %v2550_v13  ;;  %v1502_v44 = vshll.u32 %v1501_v46, 16  ;;  %v2469_v13 = vshll.u32 %v2468_v24, 16 }
 0x4a9   :  { %v2929_v55 = vsel %vm2909_vm6, %v2340_v40, %v1869_v35  ;;  %v8499_v40 = vld [vmem:[#allocation16_spill] sm:$0xff] }
 0x4aa   :  { %v2962_v38 = vsel %vm2942_vm7, %v2896_v20, %v2929_v55  ;;  %v6874_v32 = vadd.s32 %v2553_v0, %v2551_v51  ;;  %2361 = vadd.xlane.f32.xlu0 %v2299_v34  ;;  %2327 = vadd.xlane.f32.xlu1 %v8494_v22  ;;  %v1726_v20 = vshll.u32 %v1725_v39, 16  ;;  %v2692_v16 = vcvt.f32.s32 %v8499_v40  ;;  %v8500_v51 = vld [vmem:[#allocation7_spill] sm:$0xff]  ;;  %v8502_v39 = vld [vmem:[#allocation57_spill] sm:$0xff]  ;;  %v8505_v40 = vld [vmem:[#allocation186_spill] sm:$0xff] }
 0x4ab   :  { %2994 = vst [vmem:[%s7295_s3 + $0x98] sm:$0xff] %v2962_v38  ;;  %v2774_v1 = vpop.xlane.xlu0 %2773  ;;  %v8501_v55 = vld [vmem:[#allocation119_spill] sm:$0xff]  ;;  %v2470_v38 = vadd.s32 %v2469_v13, %v2467_v60  ;;  %v2691_v22 = vcvt.f32.s32 %v6741_v11 }
 0x4ac   :  { %v1499_v4 = vpop.xlane.xlu1 %1498  ;;  %v2775_v42 = vcvt.f32.s32 %v2774_v1  ;;  %v2818_v34 = vcvt.f32.s32 %v8501_v55  ;;  %v2595_v1 = vshll.u32 %v2594_v25, 16  ;;  %v2693_v6 = vshll.u32 %v2692_v16, 16  ;;  %v8504_v25 = vld [vmem:[#allocation12_spill] sm:$0xff] }
 0x4ad   :  { %v1500_v9 = vcvt.f32.s32 %v1499_v4  ;;  %v1802_v16 = vcvt.s32.f32 %v8505_v40 }
 0x4ae   :  { %v6882_v23 = vadd.s32 %v2777_v27, %v2775_v42  ;;  %2359 = vadd.xlane.f32.xlu1 %v8497_v47  ;;  %v1786_v42 = vcvt.s32.f32 %v8502_v39  ;;  %v2819_v24 = vshll.u32 %v2818_v34, 16  ;;  %v2879_v47 = vcvt.s32.f32 %v2470_v38  ;;  %v8506_v34 = vld [vmem:[#allocation34_spill] sm:$0xff]  ;;  %v8507_v38 = vld [vmem:[#allocation188_spill] sm:$0xff] }
 0x4af   :  { %v6884_v30 = vadd.s32 %v1502_v44, %v1500_v9  ;;  %v1213_v36 = vpop.xlane.xlu0 %1212 }
 0x4b0   :  { %v1723_v0 = vpop.xlane.xlu1 %1722  ;;  %v1819_v4 = vsel %vm1816_vm4, %v1213_v36, 0.0 }
 0x4b1   :  { %v1724_v35 = vcvt.f32.s32 %v1723_v0  ;;  %v2694_v0 = vadd.s32 %v2693_v6, %v2691_v22  ;;  %v1852_v11 = vsel %vm1849_vm5, %v1786_v42, %v1819_v4  ;;  %v2580_v22 = vcvt.f32.s32 %v8507_v38  ;;  %v8508_v6 = vld [vmem:[#allocation30_spill] sm:$0xff] }
 0x4b2   :  { %1238 = vadd.xlane.f32.xlu1 %v8500_v51  ;;  %v1739_v39 = vcvt.f32.s32 %v8508_v6 }
 0x4b3   :  { %v6890_v46 = vadd.s32 %v1726_v20, %v1724_v35  ;;  %v1245_v27 = vpop.xlane.xlu0 %1244  ;;  %v1515_v20 = vcvt.f32.s32 %v8504_v25  ;;  %v2804_v25 = vcvt.f32.s32 %v6363_v15  ;;  %v1789_v15 = vcvt.s32.f32 %v6574_v19 }
 0x4b4   :  { %v2592_v31 = vpop.xlane.xlu1 %2591  ;;  %v1835_v36 = vsel %vm1816_vm4, %v1245_v27, 0.0  ;;  %v2895_v27 = vcvt.s32.f32 %v2694_v0  ;;  %v8509_v0 = vld [vmem:[#allocation14_spill] sm:$0xff]  ;;  %v1805_v19 = vcvt.s32.f32 %v6585_v59  ;;  %v1529_v59 = vcvt.f32.s32 %v6513_v50  ;;  %v8512_v50 = vld [vmem:[#allocation51_spill] sm:$0xff] }
 0x4b5   :  { %v2593_v44 = vcvt.f32.s32 %v2592_v31  ;;  %v1868_v31 = vsel %vm1849_vm5, %v1802_v16, %v1835_v36 }
 0x4b6   :  { %1270 = vadd.xlane.f32.xlu1 %v8503_v33 }
 0x4b7   :  { %v6898_v9 = vadd.s32 %v2595_v1, %v2593_v44  ;;  %v2306_v60 = vpop.xlane.xlu0 %2305  ;;  %v1516_v44 = vshll.u32 %v1515_v20, 16  ;;  %v1740_v20 = vshll.u32 %v1739_v39, 16 }
 0x4b8   :  { %v2816_v41 = vpop.xlane.xlu1 %2815  ;;  %v2912_v35 = vsel %vm2909_vm6, %v2306_v60, %v1852_v11  ;;  %v2581_v11 = vshll.u32 %v2580_v22, 16 }
 0x4b9   :  { %v2817_v13 = vcvt.f32.s32 %v2816_v41  ;;  %v2945_v51 = vsel %vm2942_vm7, %v2879_v47, %v2912_v35 }
 0x4ba   :  { %2977 = vst [vmem:[%s7295_s3 + $0x10] sm:$0xff] %v2945_v51  ;;  %2331 = vadd.xlane.f32.xlu1 %v8506_v34  ;;  %v2805_v34 = vshll.u32 %v2804_v25, 16 }
 0x4bb   :  { %v6914_v55 = vadd.s32 %v2819_v24, %v2817_v13  ;;  %v2338_v1 = vpop.xlane.xlu0 %2337 }
 0x4bc   :  { %v1513_v4 = vpop.xlane.xlu1 %1512  ;;  %v2928_v42 = vsel %vm2909_vm6, %v2338_v1, %v1868_v31 }
 0x4bd   :  { %v1514_v33 = vcvt.f32.s32 %v1513_v4  ;;  %v2961_v24 = vsel %vm2942_vm7, %v2895_v27, %v2928_v42  ;;  %v2882_v4 = vcvt.s32.f32 %v6596_v53 }
 0x4be   :  { %2993 = vst [vmem:[%s7295_s3 + $0x90] sm:$0xff] %v2961_v24  ;;  %2363 = vadd.xlane.f32.xlu1 %v8509_v0  ;;  %v8510_v0 = vld [vmem:[#allocation100_spill] sm:$0xff] }
 0x4bf   :  { %v6928_v47 = vadd.s32 %v1516_v44, %v1514_v33  ;;  %v2578_v60 = vpop.xlane.xlu0 %2577 }
 0x4c0   :  { %v1737_v41 = vpop.xlane.xlu1 %1736  ;;  %v2579_v36 = vcvt.f32.s32 %v2578_v60  ;;  %v2898_v60 = vcvt.s32.f32 %v6603_v63 }
 0x4c1   :  { %v1738_v35 = vcvt.f32.s32 %v1737_v41  ;;  %v2881_v41 = vcvt.s32.f32 %v6759_v58  ;;  %v8511_v58 = vld [vmem:[#allocation15_spill] sm:$0xff] }
 0x4c2   :  { %v6932_v13 = vadd.s32 %v2581_v11, %v2579_v36  ;;  %v1788_v11 = vcvt.s32.f32 %v8510_v0 }
 0x4c3   :  { %v6934_v40 = vadd.s32 %v1740_v20, %v1738_v35  ;;  %v2802_v16 = vpop.xlane.xlu0 %2801 }
 0x4c4   :  { %v1219_v51 = vpop.xlane.xlu1 %1218  ;;  %v2803_v38 = vcvt.f32.s32 %v2802_v16 }
 0x4c5   :  { %v1822_v22 = vsel %vm1816_vm4, %v1219_v51, 0.0 }
 0x4c6   :  { %v6936_v27 = vadd.s32 %v2805_v34, %v2803_v38  ;;  %v1855_v44 = vsel %vm1849_vm5, %v1789_v15, %v1822_v22  ;;  %v1804_v34 = vcvt.s32.f32 %v8511_v58  ;;  %v2897_v22 = vcvt.s32.f32 %v6770_v14 }
 0x4c7   :  { %v1217_v31 = vpop.xlane.xlu0 %1216 }
 0x4c8   :  { %v1251_v1 = vpop.xlane.xlu1 %1250  ;;  %v1821_v42 = vsel %vm1816_vm4, %v1217_v31, 0.0 }
 0x4c9   :  { %v1838_v33 = vsel %vm1816_vm4, %v1251_v1, 0.0  ;;  %v1854_v25 = vsel %vm1849_vm5, %v1788_v11, %v1821_v42  ;;  %v2608_v1 = vcvt.f32.s32 %v8512_v50  ;;  %v8514_v11 = vld [vmem:[#allocation171_spill] sm:$0xff] }
 0x4ca   :  { %v1871_v20 = vsel %vm1849_vm5, %v1805_v19, %v1838_v33  ;;  %v2622_v19 = vcvt.f32.s32 %v8514_v11  ;;  %v1767_v11 = vcvt.f32.s32 %v6570_v8 }
 0x4cb   :  { %v1249_v6 = vpop.xlane.xlu0 %1248 }
 0x4cc   :  { %v2312_v39 = vpop.xlane.xlu1 %2311  ;;  %v1837_v16 = vsel %vm1816_vm4, %v1249_v6, 0.0  ;;  %v1530_v6 = vshll.u32 %v1529_v59, 16 }
 0x4cd   :  { %v2915_v24 = vsel %vm2909_vm6, %v2312_v39, %v1855_v44  ;;  %v1870_v15 = vsel %vm1849_vm5, %v1804_v34, %v1837_v16  ;;  %v8513_v39 = vld [vmem:[#allocation181_spill] sm:$0xff]  ;;  %v8515_v34 = vld [vmem:[#allocation86_spill] sm:$0xff] }
 0x4ce   :  { %v2948_v53 = vsel %vm2942_vm7, %v2882_v4, %v2915_v24  ;;  %v1753_v42 = vcvt.f32.s32 %v8513_v39 }
 0x4cf   :  { %2980 = vst [vmem:[%s7295_s3 + $0x28] sm:$0xff] %v2948_v53  ;;  %v2310_v36 = vpop.xlane.xlu0 %2309  ;;  %v2609_v53 = vshll.u32 %v2608_v1, 16 }
 0x4d0   :  { %v2344_v35 = vpop.xlane.xlu1 %2343  ;;  %v2914_v51 = vsel %vm2909_vm6, %v2310_v36, %v1854_v25  ;;  %v2832_v25 = vcvt.f32.s32 %v6502_v48 }
 0x4d1   :  { %v2931_v63 = vsel %vm2909_vm6, %v2344_v35, %v1871_v20  ;;  %v2947_v38 = vsel %vm2942_vm7, %v2881_v41, %v2914_v51  ;;  %v1754_v20 = vshll.u32 %v1753_v42, 16  ;;  %v2623_v51 = vshll.u32 %v2622_v19, 16 }
 0x4d2   :  { %v2964_v31 = vsel %vm2942_vm7, %v2898_v60, %v2931_v63  ;;  %2979 = vst [vmem:[%s7295_s3 + $0x20] sm:$0xff] %v2947_v38  ;;  %v2846_v38 = vcvt.f32.s32 %v8515_v34  ;;  %v2899_v34 = vcvt.s32.f32 %v6791_v21 }
 0x4d3   :  { %2996 = vst [vmem:[%s7295_s3 + $0xa8] sm:$0xff] %v2964_v31  ;;  %v2342_v4 = vpop.xlane.xlu0 %2341  ;;  %v2833_v31 = vshll.u32 %v2832_v25, 16  ;;  %v2883_v25 = vcvt.s32.f32 %v6782_v56 }
 0x4d4   :  { %v1527_v44 = vpop.xlane.xlu1 %1526  ;;  %v2930_v33 = vsel %vm2909_vm6, %v2342_v4, %v1870_v15 }
 0x4d5   :  { %v1528_v24 = vcvt.f32.s32 %v1527_v44  ;;  %v2963_v0 = vsel %vm2942_vm7, %v2897_v22, %v2930_v33  ;;  %v2847_v44 = vshll.u32 %v2846_v38, 16 }
 0x4d6   :  { %2995 = vst [vmem:[%s7295_s3 + $0xa0] sm:$0xff] %v2963_v0 }
 0x4d7   :  { %v6993_v14 = vadd.s32 %v1530_v6, %v1528_v24  ;;  %v2606_v60 = vpop.xlane.xlu0 %2605  ;;  %v1543_v6 = vcvt.f32.s32 %v6563_v49 }
 0x4d8   :  { %v1751_v41 = vpop.xlane.xlu1 %1750  ;;  %v2607_v36 = vcvt.f32.s32 %v2606_v60  ;;  %v1790_v60 = vcvt.s32.f32 %v6610_v57 }
 0x4d9   :  { %v1752_v35 = vcvt.f32.s32 %v1751_v41  ;;  %v1544_v0 = vshll.u32 %v1543_v6, 16  ;;  %v2884_v6 = vcvt.s32.f32 %v6645_v45 }
 0x4da   :  { %v6997_v59 = vadd.s32 %v2609_v53, %v2607_v36 }
 0x4db   :  { %v6999_v16 = vadd.s32 %v1754_v20, %v1752_v35  ;;  %v2830_v63 = vpop.xlane.xlu0 %2829  ;;  %v1768_v35 = vshll.u32 %v1767_v11, 16 }
 0x4dc   :  { %v2620_v58 = vpop.xlane.xlu1 %2619  ;;  %v2831_v50 = vcvt.f32.s32 %v2830_v63 }
 0x4dd   :  { %v2621_v22 = vcvt.f32.s32 %v2620_v58  ;;  %v1806_v58 = vcvt.s32.f32 %v6620_v28 }
 0x4de   :  { %v7002_v1 = vadd.s32 %v2833_v31, %v2831_v50 }
 0x4df   :  { %v7004_v15 = vadd.s32 %v2623_v51, %v2621_v22  ;;  %v1221_v48 = vpop.xlane.xlu0 %1220 }
 0x4e0   :  { %v2844_v4 = vpop.xlane.xlu1 %2843  ;;  %v1823_v19 = vsel %vm1816_vm4, %v1221_v48, 0.0 }
 0x4e1   :  { %v2845_v39 = vcvt.f32.s32 %v2844_v4  ;;  %v1856_v49 = vsel %vm1849_vm5, %v1790_v60, %v1823_v19  ;;  %v1807_v19 = vcvt.s32.f32 %v6635_v18 }
 0x4e3   :  { %v7007_v42 = vadd.s32 %v2847_v44, %v2845_v39  ;;  %v1253_v33 = vpop.xlane.xlu0 %1252  ;;  %v1791_v44 = vcvt.s32.f32 %v6628_v5  ;;  %v2900_v5 = vcvt.s32.f32 %v6654_v17 }
 0x4e4   :  { %v1541_v24 = vpop.xlane.xlu1 %1540  ;;  %v1839_v51 = vsel %vm1816_vm4, %v1253_v33, 0.0 }
 0x4e5   :  { %v1542_v53 = vcvt.f32.s32 %v1541_v24  ;;  %v1872_v38 = vsel %vm1849_vm5, %v1806_v58, %v1839_v51  ;;  %v1781_v51 = vcvt.f32.s32 %v6606_v12 }
 0x4e7   :  { %v7013_v41 = vadd.s32 %v1544_v0, %v1542_v53  ;;  %v2314_v20 = vpop.xlane.xlu0 %2313 }
 0x4e8   :  { %v1765_v36 = vpop.xlane.xlu1 %1764  ;;  %v2916_v8 = vsel %vm2909_vm6, %v2314_v20, %v1856_v49  ;;  %v1557_v49 = vcvt.f32.s32 %v6600_v26  ;;  %v1792_v26 = vcvt.s32.f32 %v6662_v37 }
 0x4e9   :  { %v1766_v63 = vcvt.f32.s32 %v1765_v36  ;;  %v2949_v57 = vsel %vm2942_vm7, %v2883_v25, %v2916_v8 }
 0x4ea   :  { %2981 = vst [vmem:[%s7295_s3 + $0x30] sm:$0xff] %v2949_v57  ;;  %v1558_v17 = vshll.u32 %v1557_v49, 16  ;;  %v2885_v57 = vcvt.s32.f32 %v6874_v32 }
 0x4eb   :  { %v7028_v56 = vadd.s32 %v1768_v35, %v1766_v63  ;;  %v2346_v31 = vpop.xlane.xlu0 %2345 }
 0x4ec   :  { %v1223_v50 = vpop.xlane.xlu1 %1222  ;;  %v2932_v22 = vsel %vm2909_vm6, %v2346_v31, %v1872_v38 }
 0x4ed   :  { %v2965_v28 = vsel %vm2942_vm7, %v2899_v34, %v2932_v22  ;;  %v1824_v21 = vsel %vm1816_vm4, %v1223_v50, 0.0  ;;  %v1782_v50 = vshll.u32 %v1781_v51, 16  ;;  %v2903_v51 = vcvt.s32.f32 %v6936_v27 }
 0x4ee   :  { %2997 = vst [vmem:[%s7295_s3 + $0xb0] sm:$0xff] %v2965_v28  ;;  %v1857_v39 = vsel %vm1849_vm5, %v1791_v44, %v1824_v21  ;;  %v2901_v21 = vcvt.s32.f32 %v6882_v23 }
 0x4ef   :  { %v7040_v48 = vpop.xlane.xlu0 %2633 }
 0x4f0   :  { %v1255_v4 = vpop.xlane.xlu1 %1254 }
 0x4f1   :  { %v1840_v0 = vsel %vm1816_vm4, %v1255_v4, 0.0  ;;  %v1808_v4 = vcvt.s32.f32 %v6673_v29 }
 0x4f2   :  { %v1873_v45 = vsel %vm1849_vm5, %v1807_v19, %v1840_v0 }
 0x4f3   :  { %v7048_v33 = vpop.xlane.xlu0 %2857 }
 0x4f4   :  { %v2316_v24 = vpop.xlane.xlu1 %2315 }
 0x4f5   :  { %v2917_v11 = vsel %vm2909_vm6, %v2316_v24, %v1857_v39 }
 0x4f6   :  { %v2950_v53 = vsel %vm2942_vm7, %v2884_v6, %v2917_v11 }
 0x4f7   :  { %2982 = vst [vmem:[%s7295_s3 + $0x38] sm:$0xff] %v2950_v53  ;;  %v1225_v60 = vpop.xlane.xlu0 %1224 }
 0x4f8   :  { %v2348_v25 = vpop.xlane.xlu1 %2347  ;;  %v1825_v8 = vsel %vm1816_vm4, %v1225_v60, 0.0 }
 0x4f9   :  { %v2933_v20 = vsel %vm2909_vm6, %v2348_v25, %v1873_v45  ;;  %v1858_v34 = vsel %vm1849_vm5, %v1792_v26, %v1825_v8  ;;  %v2887_v45 = vcvt.s32.f32 %v6932_v13 }
 0x4fa   :  { %v2966_v18 = vsel %vm2942_vm7, %v2900_v5, %v2933_v20  ;;  %v1794_v5 = vcvt.s32.f32 %v6793_v52  ;;  %v1810_v52 = vcvt.s32.f32 %v6802_v3 }
 0x4fb   :  { %2998 = vst [vmem:[%s7295_s3 + $0xb8] sm:$0xff] %v2966_v18  ;;  %v1257_v36 = vpop.xlane.xlu0 %1256 }
 0x4fc   :  { %v1555_v35 = vpop.xlane.xlu1 %1554  ;;  %v1841_v22 = vsel %vm1816_vm4, %v1257_v36, 0.0 }
 0x4fd   :  { %v1556_v63 = vcvt.f32.s32 %v1555_v35  ;;  %v1874_v44 = vsel %vm1849_vm5, %v1808_v4, %v1841_v22  ;;  %v1793_v35 = vcvt.s32.f32 %v6748_v54 }
 0x4ff   :  { %v7075_v58 = vadd.s32 %v1558_v17, %v1556_v63  ;;  %v2318_v38 = vpop.xlane.xlu0 %2317  ;;  %v2886_v17 = vcvt.s32.f32 %v6772_v62  ;;  %v1809_v62 = vcvt.s32.f32 %v6761_v61 }
 0x500   :  { %v1779_v31 = vpop.xlane.xlu1 %1778  ;;  %v2918_v12 = vsel %vm2909_vm6, %v2318_v38, %v1858_v34 }
 0x501   :  { %v1780_v28 = vcvt.f32.s32 %v1779_v31  ;;  %v2951_v37 = vsel %vm2942_vm7, %v2885_v57, %v2918_v12  ;;  %v2902_v31 = vcvt.s32.f32 %v6784_v7 }
 0x502   :  { %2983 = vst [vmem:[%s7295_s3 + $0x40] sm:$0xff] %v2951_v37 }
 0x503   :  { %v7090_v32 = vadd.s32 %v1782_v50, %v1780_v28  ;;  %v2350_v6 = vpop.xlane.xlu0 %2349 }
 0x504   :  { %v7095_v39 = vpop.xlane.xlu1 %2647  ;;  %v2934_v29 = vsel %vm2909_vm6, %v2350_v6, %v1874_v44  ;;  %v2889_v44 = vcvt.s32.f32 %v6997_v59 }
 0x505   :  { %v2967_v24 = vsel %vm2942_vm7, %v2901_v21, %v2934_v29  ;;  %v1796_v21 = vcvt.s32.f32 %v6928_v47  ;;  %v1812_v47 = vcvt.s32.f32 %v6934_v40 }
 0x506   :  { %2999 = vst [vmem:[%s7295_s3 + $0xc0] sm:$0xff] %v2967_v24 }
 0x507   :  { %v1229_v0 = vpop.xlane.xlu0 %1228 }
 0x508   :  { %v7104_v11 = vpop.xlane.xlu1 %2871  ;;  %v1827_v53 = vsel %vm1816_vm4, %v1229_v0, 0.0 }
 0x509   :  { %v1860_v60 = vsel %vm1849_vm5, %v1794_v5, %v1827_v53  ;;  %v1795_v53 = vcvt.s32.f32 %v6884_v30  ;;  %v2888_v5 = vcvt.s32.f32 %v6898_v9  ;;  %v2636_v9 = vcvt.f32.s32 %v6580_v10 }
 0x50a   :  { %v2635_v10 = vcvt.f32.s32 %v7040_v48  ;;  %v2859_v48 = vcvt.f32.s32 %v7048_v33 }
 0x50b   :  { %v1261_v23 = vpop.xlane.xlu0 %1260 }
 0x50c   :  { %v1227_v19 = vpop.xlane.xlu1 %1226  ;;  %v1843_v20 = vsel %vm1816_vm4, %v1261_v23, 0.0 }
 0x50d   :  { %v1826_v18 = vsel %vm1816_vm4, %v1227_v19, 0.0  ;;  %v1876_v8 = vsel %vm1849_vm5, %v1810_v52, %v1843_v20  ;;  %v2904_v52 = vcvt.s32.f32 %v6914_v55 }
 0x50e   :  { %v1859_v63 = vsel %vm1849_vm5, %v1793_v35, %v1826_v18 }
 0x50f   :  { %v2322_v25 = vpop.xlane.xlu0 %2321 }
 0x510   :  { %v1259_v49 = vpop.xlane.xlu1 %1258  ;;  %v2920_v36 = vsel %vm2909_vm6, %v2322_v25, %v1860_v60 }
 0x511   :  { %v2953_v13 = vsel %vm2942_vm7, %v2887_v45, %v2920_v36  ;;  %v1842_v3 = vsel %vm1816_vm4, %v1259_v49, 0.0  ;;  %v2905_v45 = vcvt.s32.f32 %v7002_v1  ;;  %v1811_v1 = vcvt.s32.f32 %v6890_v46 }
 0x512   :  { %2985 = vst [vmem:[%s7295_s3 + $0x50] sm:$0xff] %v2953_v13  ;;  %v1875_v50 = vsel %vm1849_vm5, %v1809_v62, %v1842_v3  ;;  %v1798_v62 = vcvt.s32.f32 %v7013_v41  ;;  %v1814_v41 = vcvt.s32.f32 %v7028_v56 }
 0x513   :  { %v2354_v54 = vpop.xlane.xlu0 %2353 }
 0x514   :  { %v2320_v26 = vpop.xlane.xlu1 %2319  ;;  %v2936_v57 = vsel %vm2909_vm6, %v2354_v54, %v1876_v8  ;;  %v2637_v8 = vshll.u32 %v2636_v9, 16 }
 0x515   :  { %v2919_v34 = vsel %vm2909_vm6, %v2320_v26, %v1859_v63  ;;  %v2969_v27 = vsel %vm2942_vm7, %v2903_v51, %v2936_v57  ;;  %v2860_v63 = vcvt.f32.s32 %v6592_v2 }
 0x516   :  { %v2952_v38 = vsel %vm2942_vm7, %v2886_v17, %v2919_v34  ;;  %3001 = vst [vmem:[%s7295_s3 + $0xd0] sm:$0xff] %v2969_v27  ;;  %v2638_v55 = vadd.s32 %v2637_v8, %v2635_v10 }
 0x517   :  { %2984 = vst [vmem:[%s7295_s3 + $0x48] sm:$0xff] %v2952_v38  ;;  %v1233_v61 = vpop.xlane.xlu0 %1232  ;;  %v2861_v34 = vshll.u32 %v2860_v63, 16 }
 0x518   :  { %v2352_v22 = vpop.xlane.xlu1 %2351  ;;  %v1829_v7 = vsel %vm1816_vm4, %v1233_v61, 0.0  ;;  %v2891_v27 = vcvt.s32.f32 %v2638_v55 }
 0x519   :  { %v2935_v12 = vsel %vm2909_vm6, %v2352_v22, %v1875_v50  ;;  %v1862_v6 = vsel %vm1849_vm5, %v1796_v21, %v1829_v7  ;;  %v2862_v2 = vadd.s32 %v2861_v34, %v2859_v48 }
 0x51a   :  { %v2968_v28 = vsel %vm2942_vm7, %v2902_v31, %v2935_v12  ;;  %v1797_v12 = vcvt.s32.f32 %v6993_v14 }
 0x51b   :  { %3000 = vst [vmem:[%s7295_s3 + $0xc8] sm:$0xff] %v2968_v28  ;;  %v1265_v4 = vpop.xlane.xlu0 %1264 }
 0x51c   :  { %v1231_v37 = vpop.xlane.xlu1 %1230  ;;  %v1845_v0 = vsel %vm1816_vm4, %v1265_v4, 0.0  ;;  %v2890_v4 = vcvt.s32.f32 %v7004_v15  ;;  %v1813_v15 = vcvt.s32.f32 %v6999_v16 }
 0x51d   :  { %v1828_v23 = vsel %vm1816_vm4, %v1231_v37, 0.0  ;;  %v1878_v60 = vsel %vm1849_vm5, %v1812_v47, %v1845_v0  ;;  %v2907_v37 = vcvt.s32.f32 %v2862_v2  ;;  %v8516_v47 = vld [vmem:[#allocation195_spill] sm:$0xff] }
 0x51e   :  { %v1861_v25 = vsel %vm1849_vm5, %v1795_v53, %v1828_v23  ;;  %v2906_v23 = vcvt.s32.f32 %v7007_v42 }
 0x51f   :  { %v2326_v29 = vpop.xlane.xlu0 %2325 }
 0x520   :  { %v1263_v24 = vpop.xlane.xlu1 %1262  ;;  %v2922_v19 = vsel %vm2909_vm6, %v2326_v29, %v1862_v6 }
 0x521   :  { %v2955_v59 = vsel %vm2942_vm7, %v2889_v44, %v2922_v19  ;;  %v1844_v40 = vsel %vm1816_vm4, %v1263_v24, 0.0 }
 0x522   :  { %2987 = vst [vmem:[%s7295_s3 + $0x60] sm:$0xff] %v2955_v59  ;;  %v1877_v46 = vsel %vm1849_vm5, %v1811_v1, %v1844_v40  ;;  %v2650_v59 = vcvt.f32.s32 %v8516_v47  ;;  %v2873_v40 = vcvt.f32.s32 %v7104_v11  ;;  %v1799_v1 = vcvt.s32.f32 %v7075_v58 }
 0x523   :  { %v2358_v30 = vpop.xlane.xlu0 %2357  ;;  %v1815_v11 = vcvt.s32.f32 %v7090_v32 }
 0x524   :  { %v2324_v49 = vpop.xlane.xlu1 %2323  ;;  %v2938_v20 = vsel %vm2909_vm6, %v2358_v30, %v1878_v60  ;;  %v2651_v42 = vshll.u32 %v2650_v59, 16 }
 0x525   :  { %v2921_v18 = vsel %vm2909_vm6, %v2324_v49, %v1861_v25  ;;  %v2971_v36 = vsel %vm2942_vm7, %v2905_v45, %v2938_v20  ;;  %v2649_v45 = vcvt.f32.s32 %v7095_v39  ;;  %v8517_v25 = vld [vmem:[#allocation156_spill] sm:$0xff] }
 0x526   :  { %v2954_v35 = vsel %vm2942_vm7, %v2888_v5, %v2921_v18  ;;  %3003 = vst [vmem:[%s7295_s3 + $0xe0] sm:$0xff] %v2971_v36  ;;  %v2874_v30 = vcvt.f32.s32 %v8517_v25 }
 0x527   :  { %2986 = vst [vmem:[%s7295_s3 + $0x58] sm:$0xff] %v2954_v35  ;;  %v1237_v13 = vpop.xlane.xlu0 %1236  ;;  %v2652_v49 = vadd.s32 %v2651_v42, %v2649_v45 }
 0x528   :  { %v2356_v17 = vpop.xlane.xlu1 %2355  ;;  %v1831_v57 = vsel %vm1816_vm4, %v1237_v13, 0.0  ;;  %v2875_v9 = vshll.u32 %v2874_v30, 16 }
 0x529   :  { %v2937_v51 = vsel %vm2909_vm6, %v2356_v17, %v1877_v46  ;;  %v1864_v38 = vsel %vm1849_vm5, %v1798_v62, %v1831_v57  ;;  %v2892_v36 = vcvt.s32.f32 %v2652_v49 }
 0x52a   :  { %v2970_v54 = vsel %vm2942_vm7, %v2904_v52, %v2937_v51  ;;  %v2876_v35 = vadd.s32 %v2875_v9, %v2873_v40 }
 0x52b   :  { %3002 = vst [vmem:[%s7295_s3 + $0xd8] sm:$0xff] %v2970_v54  ;;  %v1269_v26 = vpop.xlane.xlu0 %1268 }
 0x52c   :  { %v1235_v3 = vpop.xlane.xlu1 %1234  ;;  %v1847_v61 = vsel %vm1816_vm4, %v1269_v26, 0.0  ;;  %v2908_v58 = vcvt.s32.f32 %v2876_v35 }
 0x52d   :  { %v1830_v33 = vsel %vm1816_vm4, %v1235_v3, 0.0  ;;  %v1880_v7 = vsel %vm1849_vm5, %v1814_v41, %v1847_v61 }
 0x52e   :  { %v1863_v21 = vsel %vm1849_vm5, %v1797_v12, %v1830_v33 }
 0x52f   :  { %v2330_v31 = vpop.xlane.xlu0 %2329 }
 0x530   :  { %v1267_v50 = vpop.xlane.xlu1 %1266  ;;  %v2924_v22 = vsel %vm2909_vm6, %v2330_v31, %v1864_v38 }
 0x531   :  { %v2957_v28 = vsel %vm2942_vm7, %v2891_v27, %v2924_v22  ;;  %v1846_v56 = vsel %vm1816_vm4, %v1267_v50, 0.0 }
 0x532   :  { %2989 = vst [vmem:[%s7295_s3 + $0x70] sm:$0xff] %v2957_v28  ;;  %v1879_v19 = vsel %vm1849_vm5, %v1813_v15, %v1846_v56 }
 0x533   :  { %v2362_v44 = vpop.xlane.xlu0 %2361 }
 0x534   :  { %v2328_v14 = vpop.xlane.xlu1 %2327  ;;  %v2940_v6 = vsel %vm2909_vm6, %v2362_v44, %v1880_v7 }
 0x535   :  { %v2923_v29 = vsel %vm2909_vm6, %v2328_v14, %v1863_v21  ;;  %v2973_v24 = vsel %vm2942_vm7, %v2907_v37, %v2940_v6 }
 0x536   :  { %v2956_v0 = vsel %vm2942_vm7, %v2890_v4, %v2923_v29  ;;  %3005 = vst [vmem:[%s7295_s3 + $0xf0] sm:$0xff] %v2973_v24 }
 0x537   :  { %2988 = vst [vmem:[%s7295_s3 + $0x68] sm:$0xff] %v2956_v0 }
 0x538   :  { %v2360_v16 = vpop.xlane.xlu1 %2359 }
 0x539   :  { %v2939_v53 = vsel %vm2909_vm6, %v2360_v16, %v1879_v19 }
 0x53a   :  { %v2972_v5 = vsel %vm2942_vm7, %v2906_v23, %v2939_v53 }
 0x53b   :  { %3004 = vst [vmem:[%s7295_s3 + $0xe8] sm:$0xff] %v2972_v5 }
 0x53c   :  { %v1239_v60 = vpop.xlane.xlu1 %1238 }
 0x53d   :  { %v1832_v18 = vsel %vm1816_vm4, %v1239_v60, 0.0 }
 0x53e   :  { %v1865_v52 = vsel %vm1849_vm5, %v1799_v1, %v1832_v18 }
 0x540   :  { %v1271_v20 = vpop.xlane.xlu1 %1270 }
 0x541   :  { %v1848_v10 = vsel %vm1816_vm4, %v1271_v20, 0.0 }
 0x542   :  { %v1881_v17 = vsel %vm1849_vm5, %v1815_v11, %v1848_v10 }
 0x544   :  { %v2332_v39 = vpop.xlane.xlu1 %2331 }
 0x545   :  { %v2925_v46 = vsel %vm2909_vm6, %v2332_v39, %v1865_v52 }
 0x546   :  { %v2958_v13 = vsel %vm2942_vm7, %v2892_v36, %v2925_v46 }
 0x547   :  { %2990 = vst [vmem:[%s7295_s3 + $0x78] sm:$0xff] %v2958_v13 }
 0x548   :  { %v2364_v51 = vpop.xlane.xlu1 %2363 }
 0x549   :  { %v2941_v8 = vsel %vm2909_vm6, %v2364_v51, %v1881_v17 }
 0x54a   :  { %v2974_v63 = vsel %vm2942_vm7, %v2908_v58, %v2941_v8 }
 0x54b   :  { %3006 = vst [vmem:[%s7295_s3 + $0xf8] sm:$0xff] %v2974_v63 }

</bundles_post_ra>
